<compile_context>
chip_gen: v5e
topology: v5e:2x2
jax: 0.10.0
libtpu: 0.0.40
codegen_flags: <defaults>
</compile_context>

<pallas_src>
import functools

import jax
import jax.numpy as jnp
import numpy as np
from jax.experimental import pallas as pl
from jax.experimental.pallas import tpu as pltpu

_VMEM_LIMIT = 32 * 1024 * 1024  # safe on v5e/v6e (128 MiB) and v7x (64 MiB)


def _round_up(x, m):
    return (x + m - 1) // m * m


def _cdiv(a, b):
    return (a + b - 1) // b


def _images_per_step(batch):
    """Images per grid step: amortize per-step overhead at larger batch while
    keeping >=2 grid steps so both v7x TensorCores get work."""
    for g in (4, 2):
        if batch % g == 0 and batch // g >= 2:
            return g
    return 1


def _m_tiling(M, *, align=16, max_tm=256):
    """(TM, Mp) for the fc head: one full block for small M, otherwise
    16-aligned (bf16 packing) tiles with >=2 grid steps."""
    if M <= align:
        return M, M
    tm = min(max_tm, _round_up(_cdiv(M, 2), align))
    n = _cdiv(M, tm)
    tm = _round_up(_cdiv(M, n), align)
    return tm, n * tm


# -----------------------------------------------------------------------------
# Pallas kernels
# -----------------------------------------------------------------------------
def _conv1_kernel(x_ref, w_ref, b_ref, o_ref):
    """conv1 (8x8, stride 4) for G images via 4 shifted-tap matmuls.

    x_ref : (G, 448, 16*C) bf16  space-to-depth(4) input, row = 21*i + j,
                                 rows >= 441 are zero padding
    w_ref : (4, 16*C, 32)  bf16  one tap per (di, dj) in {0,1}^2, k = 2*di + dj
    b_ref : (1, 32) f32
    o_ref : (G, 420, 32)   bf16  relu(conv1), row = 21*p + q' (q'=20 is junk)
    """
    bias = b_ref[...]
    for g in range(x_ref.shape[0]):
        acc = jnp.zeros((420, 32), jnp.float32)
        for k in range(4):
            off = 21 * (k // 2) + (k % 2)
            acc = acc + jnp.dot(x_ref[g, off:off + 420, :], w_ref[k],
                                preferred_element_type=jnp.float32)
        o_ref[g, :, :] = jnp.maximum(acc + bias, 0.0).astype(o_ref.dtype)


def _conv23_kernel(x_ref, w2_ref, b2_ref, w3_ref, b3_ref, o_ref, r2_ref):
    """conv2 (4x4 s2) + conv3 (3x3 s1) fused; conv2's output never leaves VMEM.

    x_ref : (G, 112, 128) bf16  space-to-depth(2) of relu(conv1), row = 10*I + J,
                                rows >= 100 are zero padding
    w2_ref: (4, 128, 64)  bf16  conv2 taps (k = 2*di + dj)
    b2_ref: (1, 64) f32
    w3_ref: (9, 64, 64)   bf16  conv3 taps (k = 3*ki + kj)
    b3_ref: (1, 64) f32
    r2_ref: (96, 64) bf16 VMEM scratch: relu(conv2), row = 10*p2 + q2' (q2'=9 junk)
    o_ref : (G, 70, 64)   bf16  relu(conv3), row = 10*p3 + q3' (q3' >= 7 junk;
                                masked downstream by zero rows in fc1's weight)
    """
    b2 = b2_ref[...]
    b3 = b3_ref[...]
    r2_ref[...] = jnp.zeros((96, 64), r2_ref.dtype)   # rows 90..95 stay zero
    for g in range(x_ref.shape[0]):
        acc2 = jnp.zeros((90, 64), jnp.float32)
        for k in range(4):
            off = 10 * (k // 2) + (k % 2)
            acc2 = acc2 + jnp.dot(x_ref[g, off:off + 90, :], w2_ref[k],
                                  preferred_element_type=jnp.float32)
        r2_ref[0:90, :] = jnp.maximum(acc2 + b2, 0.0).astype(r2_ref.dtype)

        acc3 = jnp.zeros((70, 64), jnp.float32)
        for k in range(9):
            off = 10 * (k // 3) + (k % 3)
            acc3 = acc3 + jnp.dot(r2_ref[off:off + 70, :], w3_ref[k],
                                  preferred_element_type=jnp.float32)
        o_ref[g, :, :] = jnp.maximum(acc3 + b3, 0.0).astype(o_ref.dtype)


def _fc_head_kernel(x_ref, w1_ref, b1_ref, w2_ref, b2_ref, o_ref):
    """out = relu(x @ W1 + b1) @ W2 + b2, entirely in VMEM (h never hits HBM)."""
    h = jnp.dot(x_ref[...], w1_ref[...], preferred_element_type=jnp.float32)
    h = jnp.maximum(h + b1_ref[...], 0.0)
    y = jnp.dot(h.astype(w2_ref.dtype), w2_ref[...],
                preferred_element_type=jnp.float32)
    o_ref[...] = (y + b2_ref[...]).astype(o_ref.dtype)


# -----------------------------------------------------------------------------
# pallas_call wrappers
# -----------------------------------------------------------------------------
def _conv1_call(x, w, b):
    B, R, K = x.shape                       # (B, 448, 16*C)
    G = _images_per_step(B)
    return pl.pallas_call(
        _conv1_kernel,
        out_shape=jax.ShapeDtypeStruct((B, 420, 32), jnp.bfloat16),
        grid=(B // G,),
        in_specs=[
            pl.BlockSpec((G, R, K), lambda i: (i, 0, 0)),
            pl.BlockSpec(w.shape, lambda i: (0, 0, 0)),
            pl.BlockSpec((1, 32), lambda i: (0, 0)),
        ],
        out_specs=pl.BlockSpec((G, 420, 32), lambda i: (i, 0, 0)),
        compiler_params=pltpu.CompilerParams(
            dimension_semantics=("parallel",), vmem_limit_bytes=_VMEM_LIMIT),
    )(x, w, b)


def _conv23_call(x, w2, b2, w3, b3):
    B = x.shape[0]
    G = _images_per_step(B)
    return pl.pallas_call(
        _conv23_kernel,
        out_shape=jax.ShapeDtypeStruct((B, 70, 64), jnp.bfloat16),
        grid=(B // G,),
        in_specs=[
            pl.BlockSpec((G, 112, 128), lambda i: (i, 0, 0)),
            pl.BlockSpec((4, 128, 64), lambda i: (0, 0, 0)),
            pl.BlockSpec((1, 64), lambda i: (0, 0)),
            pl.BlockSpec((9, 64, 64), lambda i: (0, 0, 0)),
            pl.BlockSpec((1, 64), lambda i: (0, 0)),
        ],
        out_specs=pl.BlockSpec((G, 70, 64), lambda i: (i, 0, 0)),
        scratch_shapes=[pltpu.VMEM((96, 64), jnp.bfloat16)],
        compiler_params=pltpu.CompilerParams(
            dimension_semantics=("parallel",), vmem_limit_bytes=_VMEM_LIMIT),
    )(x, w2, b2, w3, b3)


def _fc_head_call(x, w1, b1, w2, b2, *, num_actions):
    M, K = x.shape                          # K = 4480 (true K, no padding pass)
    H = w1.shape[1]
    NP = w2.shape[1]
    TM, Mp = _m_tiling(M)
    if Mp > M:
        x = jnp.pad(x, ((0, Mp - M), (0, 0)))
    out = pl.pallas_call(
        _fc_head_kernel,
        out_shape=jax.ShapeDtypeStruct((Mp, NP), jnp.float32),
        grid=(Mp // TM,),
        in_specs=[
            pl.BlockSpec((TM, K), lambda i: (i, 0)),
            pl.BlockSpec((K, H), lambda i: (0, 0)),
            pl.BlockSpec((1, H), lambda i: (0, 0)),
            pl.BlockSpec((H, NP), lambda i: (0, 0)),
            pl.BlockSpec((1, NP), lambda i: (0, 0)),
        ],
        out_specs=pl.BlockSpec((TM, NP), lambda i: (i, 0)),
        compiler_params=pltpu.CompilerParams(
            dimension_semantics=("parallel",), vmem_limit_bytes=_VMEM_LIMIT),
    )(x, w1, b1, w2, b2)
    return out[:M, :num_actions]


# -----------------------------------------------------------------------------
# One-time weight preparation (all layout work hoisted out of the call path)
# -----------------------------------------------------------------------------
def prepare_params(p, num_actions):
    bf16 = jnp.bfloat16
    f32 = jnp.float32

    def s2d_conv_w(w, s):
        # (O, I, 2s, 2s) -> (4, s*s*I, O): tap k = 2*di + dj, row = ru*(s*I)+rv*I+c
        o, i = w.shape[0], w.shape[1]
        w = w.reshape(o, i, 2, s, 2, s)              # (o, c, di, ru, dj, rv)
        w = jnp.transpose(w, (2, 4, 3, 5, 1, 0))     # (di, dj, ru, rv, c, o)
        return w.reshape(4, s * s * i, o).astype(bf16)

    # conv3: (64, 64, 3, 3) -> (9, 64, 64), tap k = 3*ki + kj.
    w3 = jnp.transpose(p["conv3_w"], (2, 3, 1, 0)).reshape(9, 64, 64).astype(bf16)

    # fc1: permute K rows from PyTorch's NCHW flatten (c, p, q) to this
    # pipeline's (p, q', c) order with q' widened 7 -> 10; the 3 extra q'
    # positions are ZERO rows, which mask the junk columns the conv3 kernel
    # emits (no gather/compaction ever needed).
    fc1 = p["fc1_w"].reshape(512, 64, 7, 7)          # (o, c, p, q)
    fc1 = jnp.transpose(fc1, (2, 3, 1, 0))           # (p, q, c, o)
    fc1 = jnp.pad(fc1, ((0, 0), (0, 3), (0, 0), (0, 0)))
    fc1 = fc1.reshape(70 * 64, 512).astype(bf16)     # row = (10*p + q')*64 + c

    # fc2: (A, 512) -> (512, 128): zero-pad N to 128 lanes (dense stores).
    npad = _round_up(num_actions, 128) - num_actions
    fc2 = jnp.pad(jnp.transpose(p["fc2_w"], (1, 0)), ((0, 0), (0, npad))).astype(bf16)
    fc2_b = jnp.pad(p["fc2_b"], (0, npad))

    return {
        "conv1_w": s2d_conv_w(p["conv1_w"], 4),      # (4, 16*C, 32)
        "conv1_b": p["conv1_b"].reshape(1, 32).astype(f32),
        "conv2_w": s2d_conv_w(p["conv2_w"], 2),      # (4, 128, 64)
        "conv2_b": p["conv2_b"].reshape(1, 64).astype(f32),
        "conv3_w": w3,                               # (9, 64, 64)
        "conv3_b": p["conv3_b"].reshape(1, 64).astype(f32),
        "fc1_w": fc1,                                # (4480, 512)
        "fc1_b": p["fc1_b"].reshape(1, 512).astype(f32),
        "fc2_w": fc2,                                # (512, 128)
        "fc2_b": fc2_b.reshape(1, -1).astype(f32),
    }


# -----------------------------------------------------------------------------
# QFunction forward
# -----------------------------------------------------------------------------
@functools.partial(jax.jit, static_argnums=(2,))
def qfunction_forward(x_nchw, cp, num_actions):
    B, C, H, W = x_nchw.shape
    assert (H, W) == (84, 84), "fc1 (7*7*64) pins the input to 84x84"
    bf16 = jnp.bfloat16

    # x/255, NCHW -> space-to-depth(4): conv1 becomes a 2x2 stride-1 conv.
    x = (x_nchw.astype(jnp.float32) * (1.0 / 255.0)).astype(bf16)
    x = x.reshape(B, C, 21, 4, 21, 4)                # (b, c, i, ru, j, rv)
    x = jnp.transpose(x, (0, 2, 4, 3, 5, 1))         # (b, i, j, ru, rv, c)
    x = x.reshape(B, 441, 16 * C)
    x = jnp.pad(x, ((0, 0), (0, 7), (0, 0)))         # rows 441..447 = 0

    y1 = _conv1_call(x, cp["conv1_w"], cp["conv1_b"])            # (B, 420, 32)

    # relu(conv1) -> space-to-depth(2) for conv2 (drops the junk q'=20 column).
    # TODO(synk): fold this small shuffle into the conv kernels with manual DMAs
    # so the conv1->conv2 boundary also stays VMEM-resident.
    a = y1.reshape(B, 20, 21, 32)[:, :, :20, :]
    a = a.reshape(B, 10, 2, 10, 2, 32)               # (b, P, rp, Q, rq, c)
    a = jnp.transpose(a, (0, 1, 3, 2, 4, 5))         # (b, P, Q, rp, rq, c)
    a = a.reshape(B, 100, 128)
    a = jnp.pad(a, ((0, 0), (0, 12), (0, 0)))        # rows 100..111 = 0

    y3 = _conv23_call(a, cp["conv2_w"], cp["conv2_b"],
                      cp["conv3_w"], cp["conv3_b"])              # (B, 70, 64)

    feat = y3.reshape(B, 70 * 64)                    # free reshape; junk rows are
                                                     # zeroed by fc1's weight rows
    return _fc_head_call(feat, cp["fc1_w"], cp["fc1_b"],
                         cp["fc2_w"], cp["fc2_b"], num_actions=num_actions)


# -----------------------------------------------------------------------------
# Pure-JAX reference with the same bf16-matmul / f32-accumulate numerics
# -----------------------------------------------------------------------------
def reference_forward(x, p):
    bf16 = jnp.bfloat16
    xb = (x / 255.0).astype(bf16)

    def conv(x, w, b, s):
        y = jax.lax.conv_general_dilated(
            x, w.astype(bf16), (s, s), "VALID",
            dimension_numbers=("NCHW", "OIHW", "NCHW"),
            preferred_element_type=jnp.float32)
        return y + b.reshape(1, -1, 1, 1)

    x1 = jax.nn.relu(conv(xb, p["conv1_w"], p["conv1_b"], 4)).astype(bf16)
    x2 = jax.nn.relu(conv(x1, p["conv2_w"], p["conv2_b"], 2)).astype(bf16)
    x3 = jax.nn.relu(conv(x2, p["conv3_w"], p["conv3_b"], 1)).astype(bf16)
    xf = x3.reshape(x3.shape[0], -1)                 # PyTorch NCHW flatten
    h = jnp.dot(xf, p["fc1_w"].T.astype(bf16),
                preferred_element_type=jnp.float32) + p["fc1_b"]
    h = jax.nn.relu(h).astype(bf16)
    return jnp.dot(h, p["fc2_w"].T.astype(bf16),
                   preferred_element_type=jnp.float32) + p["fc2_b"]


# -----------------------------------------------------------------------------
def init_params(key, in_channels, num_actions):
    ks = jax.random.split(key, 10)
    f32 = jnp.float32
    return {
        "conv1_w": jax.random.normal(ks[0], (32, in_channels, 8, 8), f32) * 0.05,
        "conv1_b": jax.random.normal(ks[1], (32,), f32) * 0.05,
        "conv2_w": jax.random.normal(ks[2], (64, 32, 4, 4), f32) * 0.05,
        "conv2_b": jax.random.normal(ks[3], (64,), f32) * 0.05,
        "conv3_w": jax.random.normal(ks[4], (64, 64, 3, 3), f32) * 0.05,
        "conv3_b": jax.random.normal(ks[5], (64,), f32) * 0.05,
        "fc1_w": jax.random.normal(ks[6], (512, 7 * 7 * 64), f32) * 0.01,
        "fc1_b": jax.random.normal(ks[7], (512,), f32) * 0.01,
        "fc2_w": jax.random.normal(ks[8], (num_actions, 512), f32) * 0.01,
        "fc2_b": jax.random.normal(ks[9], (num_actions,), f32) * 0.01,
    }


if __name__ == "__main__":
    in_channels, num_actions = 4, 6
    batch = 2

    key = jax.random.PRNGKey(0)
    k_param, k_in = jax.random.split(key)
    params = init_params(k_param, in_channels, num_actions)
    cparams = prepare_params(params, num_actions)   # one-time layout work

    # fc1 expects 7*7*64 features, which pins the spatial size to 84x84.
    x = jax.random.uniform(k_in, (batch, in_channels, 84, 84),
                           jnp.float32, 0.0, 255.0)

    out = jax.block_until_ready(qfunction_forward(x, cparams, num_actions))
    assert out.shape == (batch, num_actions), out.shape
    assert out.dtype == jnp.float32, out.dtype

    ref = jax.block_until_ready(reference_forward(x, params))
    np.testing.assert_allclose(np.asarray(out), np.asarray(ref),
                               rtol=2e-2, atol=2e-2)

    print("KERNEL_OK")
</pallas_src>

<mosaic_0001>
module attributes {stable_mosaic.version = 11 : i64} {
  func.func @_conv1_kernel(%arg0: i32, %arg1: memref<1x448x64xbf16, #tpu.memory_space<vmem>>, %arg2: memref<4x64x32xbf16, #tpu.memory_space<vmem>>, %arg3: memref<1x32xf32, #tpu.memory_space<vmem>>, %arg4: memref<1x420x32xbf16, #tpu.memory_space<vmem>>) attributes {dimension_semantics = [#tpu.dimension_semantics<parallel>], iteration_bounds = array<i64: 2>, scalar_prefetch = 0 : i64, scratch_operands = 0 : i64, tpu.core_type = #tpu.core_type<tc>, window_params = [{transform_indices = @transform_0, window_bounds = array<i64: 1, 448, 64>}, {pipeline_mode = #tpu.pipeline_mode<synchronous>, transform_indices = @transform_1, window_bounds = array<i64: 4, 64, 32>}, {pipeline_mode = #tpu.pipeline_mode<synchronous>, transform_indices = @transform_2, window_bounds = array<i64: 1, 32>}, {transform_indices = @transform_3, window_bounds = array<i64: 1, 420, 32>}]} {
    %c0 = arith.constant 0 : index
    %c0_0 = arith.constant 0 : index
    %0 = vector.load %arg3[%c0, %c0_0] : memref<1x32xf32, #tpu.memory_space<vmem>>, vector<1x32xf32>
    %cst = arith.constant 0.000000e+00 : f32
    %1 = vector.broadcast %cst : f32 to vector<420x32xf32>
    %c0_1 = arith.constant 0 : index
    %c0_2 = arith.constant 0 : index
    %c0_3 = arith.constant 0 : index
    %2 = vector.load %arg1[%c0_1, %c0_2, %c0_3] : memref<1x448x64xbf16, #tpu.memory_space<vmem>>, vector<1x420x64xbf16>
    %3 = vector.shape_cast %2 : vector<1x420x64xbf16> to vector<420x64xbf16>
    %c0_4 = arith.constant 0 : index
    %c0_5 = arith.constant 0 : index
    %c0_6 = arith.constant 0 : index
    %4 = vector.load %arg2[%c0_4, %c0_5, %c0_6] : memref<4x64x32xbf16, #tpu.memory_space<vmem>>, vector<1x64x32xbf16>
    %5 = vector.shape_cast %4 : vector<1x64x32xbf16> to vector<64x32xbf16>
    %cst_7 = arith.constant dense<0.000000e+00> : vector<420x32xf32>
    %6 = tpu.matmul %3, %5, %cst_7 {dimension_numbers = #tpu.dot_dimension_numbers<[1], [0], [0], [1], [0, 0, 1, 1], [], []>} : vector<420x64xbf16>, vector<64x32xbf16>, vector<420x32xf32> -> vector<420x32xf32>
    %7 = arith.addf %1, %6 : vector<420x32xf32>
    %c0_8 = arith.constant 0 : index
    %c1 = arith.constant 1 : index
    %c0_9 = arith.constant 0 : index
    %8 = vector.load %arg1[%c0_8, %c1, %c0_9] : memref<1x448x64xbf16, #tpu.memory_space<vmem>>, vector<1x420x64xbf16>
    %9 = vector.shape_cast %8 : vector<1x420x64xbf16> to vector<420x64xbf16>
    %c1_10 = arith.constant 1 : index
    %c0_11 = arith.constant 0 : index
    %c0_12 = arith.constant 0 : index
    %10 = vector.load %arg2[%c1_10, %c0_11, %c0_12] : memref<4x64x32xbf16, #tpu.memory_space<vmem>>, vector<1x64x32xbf16>
    %11 = vector.shape_cast %10 : vector<1x64x32xbf16> to vector<64x32xbf16>
    %cst_13 = arith.constant dense<0.000000e+00> : vector<420x32xf32>
    %12 = tpu.matmul %9, %11, %cst_13 {dimension_numbers = #tpu.dot_dimension_numbers<[1], [0], [0], [1], [0, 0, 1, 1], [], []>} : vector<420x64xbf16>, vector<64x32xbf16>, vector<420x32xf32> -> vector<420x32xf32>
    %13 = arith.addf %7, %12 : vector<420x32xf32>
    %c0_14 = arith.constant 0 : index
    %c21 = arith.constant 21 : index
    %c0_15 = arith.constant 0 : index
    %14 = vector.load %arg1[%c0_14, %c21, %c0_15] : memref<1x448x64xbf16, #tpu.memory_space<vmem>>, vector<1x420x64xbf16>
    %15 = vector.shape_cast %14 : vector<1x420x64xbf16> to vector<420x64xbf16>
    %c2 = arith.constant 2 : index
    %c0_16 = arith.constant 0 : index
    %c0_17 = arith.constant 0 : index
    %16 = vector.load %arg2[%c2, %c0_16, %c0_17] : memref<4x64x32xbf16, #tpu.memory_space<vmem>>, vector<1x64x32xbf16>
    %17 = vector.shape_cast %16 : vector<1x64x32xbf16> to vector<64x32xbf16>
    %cst_18 = arith.constant dense<0.000000e+00> : vector<420x32xf32>
    %18 = tpu.matmul %15, %17, %cst_18 {dimension_numbers = #tpu.dot_dimension_numbers<[1], [0], [0], [1], [0, 0, 1, 1], [], []>} : vector<420x64xbf16>, vector<64x32xbf16>, vector<420x32xf32> -> vector<420x32xf32>
    %19 = arith.addf %13, %18 : vector<420x32xf32>
    %c0_19 = arith.constant 0 : index
    %c22 = arith.constant 22 : index
    %c0_20 = arith.constant 0 : index
    %20 = vector.load %arg1[%c0_19, %c22, %c0_20] : memref<1x448x64xbf16, #tpu.memory_space<vmem>>, vector<1x420x64xbf16>
    %21 = vector.shape_cast %20 : vector<1x420x64xbf16> to vector<420x64xbf16>
    %c3 = arith.constant 3 : index
    %c0_21 = arith.constant 0 : index
    %c0_22 = arith.constant 0 : index
    %22 = vector.load %arg2[%c3, %c0_21, %c0_22] : memref<4x64x32xbf16, #tpu.memory_space<vmem>>, vector<1x64x32xbf16>
    %23 = vector.shape_cast %22 : vector<1x64x32xbf16> to vector<64x32xbf16>
    %cst_23 = arith.constant dense<0.000000e+00> : vector<420x32xf32>
    %24 = tpu.matmul %21, %23, %cst_23 {dimension_numbers = #tpu.dot_dimension_numbers<[1], [0], [0], [1], [0, 0, 1, 1], [], []>} : vector<420x64xbf16>, vector<64x32xbf16>, vector<420x32xf32> -> vector<420x32xf32>
    %25 = arith.addf %19, %24 : vector<420x32xf32>
    %26 = vector.broadcast %0 : vector<1x32xf32> to vector<420x32xf32>
    %27 = arith.addf %25, %26 : vector<420x32xf32>
    %cst_24 = arith.constant 0.000000e+00 : f32
    %28 = vector.broadcast %cst_24 : f32 to vector<420x32xf32>
    %29 = arith.maximumf %27, %28 : vector<420x32xf32>
    %30 = arith.truncf %29 : vector<420x32xf32> to vector<420x32xbf16>
    %c0_25 = arith.constant 0 : index
    %c0_26 = arith.constant 0 : index
    %c0_27 = arith.constant 0 : index
    %31 = vector.load %arg4[%c0_25, %c0_26, %c0_27] : memref<1x420x32xbf16, #tpu.memory_space<vmem>>, vector<1x420x32xbf16>
    %32 = vector.shape_cast %31 : vector<1x420x32xbf16> to vector<420x32xbf16>
    %33 = vector.shape_cast %30 : vector<420x32xbf16> to vector<1x420x32xbf16>
    tpu.vector_store %arg4[%c0_25, %c0_26, %c0_27], %33 {strides = array<i32>} : memref<1x420x32xbf16, #tpu.memory_space<vmem>>, vector<1x420x32xbf16>,
    return
  }
  func.func @transform_0(%arg0: i32) -> (i32, i32, i32) {
    %c0_i32 = arith.constant 0 : i32
    %c0_i32_0 = arith.constant 0 : i32
    %c0_i32_1 = arith.constant 0 : i32
    return %arg0, %c0_i32, %c0_i32_0 : i32, i32, i32
  }
  func.func @transform_1(%arg0: i32) -> (i32, i32, i32) {
    %c0_i32 = arith.constant 0 : i32
    %c0_i32_0 = arith.constant 0 : i32
    %c0_i32_1 = arith.constant 0 : i32
    %c0_i32_2 = arith.constant 0 : i32
    return %c0_i32, %c0_i32_0, %c0_i32_1 : i32, i32, i32
  }
  func.func @transform_2(%arg0: i32) -> (i32, i32) {
    %c0_i32 = arith.constant 0 : i32
    %c0_i32_0 = arith.constant 0 : i32
    %c0_i32_1 = arith.constant 0 : i32
    return %c0_i32, %c0_i32_0 : i32, i32
  }
  func.func @transform_3(%arg0: i32) -> (i32, i32, i32) {
    %c0_i32 = arith.constant 0 : i32
    %c0_i32_0 = arith.constant 0 : i32
    %c0_i32_1 = arith.constant 0 : i32
    return %arg0, %c0_i32, %c0_i32_0 : i32, i32, i32
  }
}

module attributes {stable_mosaic.version = 11 : i64} {
  func.func @_conv23_kernel(%arg0: i32, %arg1: memref<1x112x128xbf16, #tpu.memory_space<vmem>>, %arg2: memref<4x128x64xbf16, #tpu.memory_space<vmem>>, %arg3: memref<1x64xf32, #tpu.memory_space<vmem>>, %arg4: memref<9x64x64xbf16, #tpu.memory_space<vmem>>, %arg5: memref<1x64xf32, #tpu.memory_space<vmem>>, %arg6: memref<1x70x64xbf16, #tpu.memory_space<vmem>>, %arg7: memref<96x64xbf16, #tpu.memory_space<vmem>>) attributes {dimension_semantics = [#tpu.dimension_semantics<parallel>], iteration_bounds = array<i64: 2>, scalar_prefetch = 0 : i64, scratch_operands = 1 : i64, tpu.core_type = #tpu.core_type<tc>, window_params = [{transform_indices = @transform_0, window_bounds = array<i64: 1, 112, 128>}, {pipeline_mode = #tpu.pipeline_mode<synchronous>, transform_indices = @transform_1, window_bounds = array<i64: 4, 128, 64>}, {pipeline_mode = #tpu.pipeline_mode<synchronous>, transform_indices = @transform_2, window_bounds = array<i64: 1, 64>}, {pipeline_mode = #tpu.pipeline_mode<synchronous>, transform_indices = @transform_3, window_bounds = array<i64: 9, 64, 64>}, {pipeline_mode = #tpu.pipeline_mode<synchronous>, transform_indices = @transform_4, window_bounds = array<i64: 1, 64>}, {transform_indices = @transform_5, window_bounds = array<i64: 1, 70, 64>}]} {
    %c0 = arith.constant 0 : index
    %c0_0 = arith.constant 0 : index
    %0 = vector.load %arg3[%c0, %c0_0] : memref<1x64xf32, #tpu.memory_space<vmem>>, vector<1x64xf32>
    %c0_1 = arith.constant 0 : index
    %c0_2 = arith.constant 0 : index
    %1 = vector.load %arg5[%c0_1, %c0_2] : memref<1x64xf32, #tpu.memory_space<vmem>>, vector<1x64xf32>
    %cst = arith.constant 0.000000e+00 : bf16
    %2 = vector.broadcast %cst : bf16 to vector<96x64xbf16>
    %c0_3 = arith.constant 0 : index
    %c0_4 = arith.constant 0 : index
    %3 = vector.load %arg7[%c0_3, %c0_4] : memref<96x64xbf16, #tpu.memory_space<vmem>>, vector<96x64xbf16>
    tpu.vector_store %arg7[%c0_3, %c0_4], %2 {strides = array<i32>} : memref<96x64xbf16, #tpu.memory_space<vmem>>, vector<96x64xbf16>,
    %cst_5 = arith.constant 0.000000e+00 : f32
    %4 = vector.broadcast %cst_5 : f32 to vector<90x64xf32>
    %c0_6 = arith.constant 0 : index
    %c0_7 = arith.constant 0 : index
    %c0_8 = arith.constant 0 : index
    %5 = vector.load %arg1[%c0_6, %c0_7, %c0_8] : memref<1x112x128xbf16, #tpu.memory_space<vmem>>, vector<1x90x128xbf16>
    %6 = vector.shape_cast %5 : vector<1x90x128xbf16> to vector<90x128xbf16>
    %c0_9 = arith.constant 0 : index
    %c0_10 = arith.constant 0 : index
    %c0_11 = arith.constant 0 : index
    %7 = vector.load %arg2[%c0_9, %c0_10, %c0_11] : memref<4x128x64xbf16, #tpu.memory_space<vmem>>, vector<1x128x64xbf16>
    %8 = vector.shape_cast %7 : vector<1x128x64xbf16> to vector<128x64xbf16>
    %cst_12 = arith.constant dense<0.000000e+00> : vector<90x64xf32>
    %9 = tpu.matmul %6, %8, %cst_12 {dimension_numbers = #tpu.dot_dimension_numbers<[1], [0], [0], [1], [0, 0, 1, 1], [], []>} : vector<90x128xbf16>, vector<128x64xbf16>, vector<90x64xf32> -> vector<90x64xf32>
    %10 = arith.addf %4, %9 : vector<90x64xf32>
    %c0_13 = arith.constant 0 : index
    %c1 = arith.constant 1 : index
    %c0_14 = arith.constant 0 : index
    %11 = vector.load %arg1[%c0_13, %c1, %c0_14] : memref<1x112x128xbf16, #tpu.memory_space<vmem>>, vector<1x90x128xbf16>
    %12 = vector.shape_cast %11 : vector<1x90x128xbf16> to vector<90x128xbf16>
    %c1_15 = arith.constant 1 : index
    %c0_16 = arith.constant 0 : index
    %c0_17 = arith.constant 0 : index
    %13 = vector.load %arg2[%c1_15, %c0_16, %c0_17] : memref<4x128x64xbf16, #tpu.memory_space<vmem>>, vector<1x128x64xbf16>
    %14 = vector.shape_cast %13 : vector<1x128x64xbf16> to vector<128x64xbf16>
    %cst_18 = arith.constant dense<0.000000e+00> : vector<90x64xf32>
    %15 = tpu.matmul %12, %14, %cst_18 {dimension_numbers = #tpu.dot_dimension_numbers<[1], [0], [0], [1], [0, 0, 1, 1], [], []>} : vector<90x128xbf16>, vector<128x64xbf16>, vector<90x64xf32> -> vector<90x64xf32>
    %16 = arith.addf %10, %15 : vector<90x64xf32>
    %c0_19 = arith.constant 0 : index
    %c10 = arith.constant 10 : index
    %c0_20 = arith.constant 0 : index
    %17 = vector.load %arg1[%c0_19, %c10, %c0_20] : memref<1x112x128xbf16, #tpu.memory_space<vmem>>, vector<1x90x128xbf16>
    %18 = vector.shape_cast %17 : vector<1x90x128xbf16> to vector<90x128xbf16>
    %c2 = arith.constant 2 : index
    %c0_21 = arith.constant 0 : index
    %c0_22 = arith.constant 0 : index
    %19 = vector.load %arg2[%c2, %c0_21, %c0_22] : memref<4x128x64xbf16, #tpu.memory_space<vmem>>, vector<1x128x64xbf16>
    %20 = vector.shape_cast %19 : vector<1x128x64xbf16> to vector<128x64xbf16>
    %cst_23 = arith.constant dense<0.000000e+00> : vector<90x64xf32>
    %21 = tpu.matmul %18, %20, %cst_23 {dimension_numbers = #tpu.dot_dimension_numbers<[1], [0], [0], [1], [0, 0, 1, 1], [], []>} : vector<90x128xbf16>, vector<128x64xbf16>, vector<90x64xf32> -> vector<90x64xf32>
    %22 = arith.addf %16, %21 : vector<90x64xf32>
    %c0_24 = arith.constant 0 : index
    %c11 = arith.constant 11 : index
    %c0_25 = arith.constant 0 : index
    %23 = vector.load %arg1[%c0_24, %c11, %c0_25] : memref<1x112x128xbf16, #tpu.memory_space<vmem>>, vector<1x90x128xbf16>
    %24 = vector.shape_cast %23 : vector<1x90x128xbf16> to vector<90x128xbf16>
    %c3 = arith.constant 3 : index
    %c0_26 = arith.constant 0 : index
    %c0_27 = arith.constant 0 : index
    %25 = vector.load %arg2[%c3, %c0_26, %c0_27] : memref<4x128x64xbf16, #tpu.memory_space<vmem>>, vector<1x128x64xbf16>
    %26 = vector.shape_cast %25 : vector<1x128x64xbf16> to vector<128x64xbf16>
    %cst_28 = arith.constant dense<0.000000e+00> : vector<90x64xf32>
    %27 = tpu.matmul %24, %26, %cst_28 {dimension_numbers = #tpu.dot_dimension_numbers<[1], [0], [0], [1], [0, 0, 1, 1], [], []>} : vector<90x128xbf16>, vector<128x64xbf16>, vector<90x64xf32> -> vector<90x64xf32>
    %28 = arith.addf %22, %27 : vector<90x64xf32>
    %29 = vector.broadcast %0 : vector<1x64xf32> to vector<90x64xf32>
    %30 = arith.addf %28, %29 : vector<90x64xf32>
    %cst_29 = arith.constant 0.000000e+00 : f32
    %31 = vector.broadcast %cst_29 : f32 to vector<90x64xf32>
    %32 = arith.maximumf %30, %31 : vector<90x64xf32>
    %33 = arith.truncf %32 : vector<90x64xf32> to vector<90x64xbf16>
    %c0_30 = arith.constant 0 : index
    %c0_31 = arith.constant 0 : index
    %34 = vector.load %arg7[%c0_30, %c0_31] : memref<96x64xbf16, #tpu.memory_space<vmem>>, vector<90x64xbf16>
    tpu.vector_store %arg7[%c0_30, %c0_31], %33 {strides = array<i32>} : memref<96x64xbf16, #tpu.memory_space<vmem>>, vector<90x64xbf16>,
    %cst_32 = arith.constant 0.000000e+00 : f32
    %35 = vector.broadcast %cst_32 : f32 to vector<70x64xf32>
    %c0_33 = arith.constant 0 : index
    %c0_34 = arith.constant 0 : index
    %36 = vector.load %arg7[%c0_33, %c0_34] : memref<96x64xbf16, #tpu.memory_space<vmem>>, vector<70x64xbf16>
    %c0_35 = arith.constant 0 : index
    %c0_36 = arith.constant 0 : index
    %c0_37 = arith.constant 0 : index
    %37 = vector.load %arg4[%c0_35, %c0_36, %c0_37] : memref<9x64x64xbf16, #tpu.memory_space<vmem>>, vector<1x64x64xbf16>
    %38 = vector.shape_cast %37 : vector<1x64x64xbf16> to vector<64x64xbf16>
    %cst_38 = arith.constant dense<0.000000e+00> : vector<70x64xf32>
    %39 = tpu.matmul %36, %38, %cst_38 {dimension_numbers = #tpu.dot_dimension_numbers<[1], [0], [0], [1], [0, 0, 1, 1], [], []>} : vector<70x64xbf16>, vector<64x64xbf16>, vector<70x64xf32> -> vector<70x64xf32>
    %40 = arith.addf %35, %39 : vector<70x64xf32>
    %c1_39 = arith.constant 1 : index
    %c0_40 = arith.constant 0 : index
    %41 = vector.load %arg7[%c1_39, %c0_40] : memref<96x64xbf16, #tpu.memory_space<vmem>>, vector<70x64xbf16>
    %c1_41 = arith.constant 1 : index
    %c0_42 = arith.constant 0 : index
    %c0_43 = arith.constant 0 : index
    %42 = vector.load %arg4[%c1_41, %c0_42, %c0_43] : memref<9x64x64xbf16, #tpu.memory_space<vmem>>, vector<1x64x64xbf16>
    %43 = vector.shape_cast %42 : vector<1x64x64xbf16> to vector<64x64xbf16>
    %cst_44 = arith.constant dense<0.000000e+00> : vector<70x64xf32>
    %44 = tpu.matmul %41, %43, %cst_44 {dimension_numbers = #tpu.dot_dimension_numbers<[1], [0], [0], [1], [0, 0, 1, 1], [], []>} : vector<70x64xbf16>, vector<64x64xbf16>, vector<70x64xf32> -> vector<70x64xf32>
    %45 = arith.addf %40, %44 : vector<70x64xf32>
    %c2_45 = arith.constant 2 : index
    %c0_46 = arith.constant 0 : index
    %46 = vector.load %arg7[%c2_45, %c0_46] : memref<96x64xbf16, #tpu.memory_space<vmem>>, vector<70x64xbf16>
    %c2_47 = arith.constant 2 : index
    %c0_48 = arith.constant 0 : index
    %c0_49 = arith.constant 0 : index
    %47 = vector.load %arg4[%c2_47, %c0_48, %c0_49] : memref<9x64x64xbf16, #tpu.memory_space<vmem>>, vector<1x64x64xbf16>
    %48 = vector.shape_cast %47 : vector<1x64x64xbf16> to vector<64x64xbf16>
    %cst_50 = arith.constant dense<0.000000e+00> : vector<70x64xf32>
    %49 = tpu.matmul %46, %48, %cst_50 {dimension_numbers = #tpu.dot_dimension_numbers<[1], [0], [0], [1], [0, 0, 1, 1], [], []>} : vector<70x64xbf16>, vector<64x64xbf16>, vector<70x64xf32> -> vector<70x64xf32>
    %50 = arith.addf %45, %49 : vector<70x64xf32>
    %c10_51 = arith.constant 10 : index
    %c0_52 = arith.constant 0 : index
    %51 = vector.load %arg7[%c10_51, %c0_52] : memref<96x64xbf16, #tpu.memory_space<vmem>>, vector<70x64xbf16>
    %c3_53 = arith.constant 3 : index
    %c0_54 = arith.constant 0 : index
    %c0_55 = arith.constant 0 : index
    %52 = vector.load %arg4[%c3_53, %c0_54, %c0_55] : memref<9x64x64xbf16, #tpu.memory_space<vmem>>, vector<1x64x64xbf16>
    %53 = vector.shape_cast %52 : vector<1x64x64xbf16> to vector<64x64xbf16>
    %cst_56 = arith.constant dense<0.000000e+00> : vector<70x64xf32>
    %54 = tpu.matmul %51, %53, %cst_56 {dimension_numbers = #tpu.dot_dimension_numbers<[1], [0], [0], [1], [0, 0, 1, 1], [], []>} : vector<70x64xbf16>, vector<64x64xbf16>, vector<70x64xf32> -> vector<70x64xf32>
    %55 = arith.addf %50, %54 : vector<70x64xf32>
    %c11_57 = arith.constant 11 : index
    %c0_58 = arith.constant 0 : index
    %56 = vector.load %arg7[%c11_57, %c0_58] : memref<96x64xbf16, #tpu.memory_space<vmem>>, vector<70x64xbf16>
    %c4 = arith.constant 4 : index
    %c0_59 = arith.constant 0 : index
    %c0_60 = arith.constant 0 : index
    %57 = vector.load %arg4[%c4, %c0_59, %c0_60] : memref<9x64x64xbf16, #tpu.memory_space<vmem>>, vector<1x64x64xbf16>
    %58 = vector.shape_cast %57 : vector<1x64x64xbf16> to vector<64x64xbf16>
    %cst_61 = arith.constant dense<0.000000e+00> : vector<70x64xf32>
    %59 = tpu.matmul %56, %58, %cst_61 {dimension_numbers = #tpu.dot_dimension_numbers<[1], [0], [0], [1], [0, 0, 1, 1], [], []>} : vector<70x64xbf16>, vector<64x64xbf16>, vector<70x64xf32> -> vector<70x64xf32>
    %60 = arith.addf %55, %59 : vector<70x64xf32>
    %c12 = arith.constant 12 : index
    %c0_62 = arith.constant 0 : index
    %61 = vector.load %arg7[%c12, %c0_62] : memref<96x64xbf16, #tpu.memory_space<vmem>>, vector<70x64xbf16>
    %c5 = arith.constant 5 : index
    %c0_63 = arith.constant 0 : index
    %c0_64 = arith.constant 0 : index
    %62 = vector.load %arg4[%c5, %c0_63, %c0_64] : memref<9x64x64xbf16, #tpu.memory_space<vmem>>, vector<1x64x64xbf16>
    %63 = vector.shape_cast %62 : vector<1x64x64xbf16> to vector<64x64xbf16>
    %cst_65 = arith.constant dense<0.000000e+00> : vector<70x64xf32>
    %64 = tpu.matmul %61, %63, %cst_65 {dimension_numbers = #tpu.dot_dimension_numbers<[1], [0], [0], [1], [0, 0, 1, 1], [], []>} : vector<70x64xbf16>, vector<64x64xbf16>, vector<70x64xf32> -> vector<70x64xf32>
    %65 = arith.addf %60, %64 : vector<70x64xf32>
    %c20 = arith.constant 20 : index
    %c0_66 = arith.constant 0 : index
    %66 = vector.load %arg7[%c20, %c0_66] : memref<96x64xbf16, #tpu.memory_space<vmem>>, vector<70x64xbf16>
    %c6 = arith.constant 6 : index
    %c0_67 = arith.constant 0 : index
    %c0_68 = arith.constant 0 : index
    %67 = vector.load %arg4[%c6, %c0_67, %c0_68] : memref<9x64x64xbf16, #tpu.memory_space<vmem>>, vector<1x64x64xbf16>
    %68 = vector.shape_cast %67 : vector<1x64x64xbf16> to vector<64x64xbf16>
    %cst_69 = arith.constant dense<0.000000e+00> : vector<70x64xf32>
    %69 = tpu.matmul %66, %68, %cst_69 {dimension_numbers = #tpu.dot_dimension_numbers<[1], [0], [0], [1], [0, 0, 1, 1], [], []>} : vector<70x64xbf16>, vector<64x64xbf16>, vector<70x64xf32> -> vector<70x64xf32>
    %70 = arith.addf %65, %69 : vector<70x64xf32>
    %c21 = arith.constant 21 : index
    %c0_70 = arith.constant 0 : index
    %71 = vector.load %arg7[%c21, %c0_70] : memref<96x64xbf16, #tpu.memory_space<vmem>>, vector<70x64xbf16>
    %c7 = arith.constant 7 : index
    %c0_71 = arith.constant 0 : index
    %c0_72 = arith.constant 0 : index
    %72 = vector.load %arg4[%c7, %c0_71, %c0_72] : memref<9x64x64xbf16, #tpu.memory_space<vmem>>, vector<1x64x64xbf16>
    %73 = vector.shape_cast %72 : vector<1x64x64xbf16> to vector<64x64xbf16>
    %cst_73 = arith.constant dense<0.000000e+00> : vector<70x64xf32>
    %74 = tpu.matmul %71, %73, %cst_73 {dimension_numbers = #tpu.dot_dimension_numbers<[1], [0], [0], [1], [0, 0, 1, 1], [], []>} : vector<70x64xbf16>, vector<64x64xbf16>, vector<70x64xf32> -> vector<70x64xf32>
    %75 = arith.addf %70, %74 : vector<70x64xf32>
    %c22 = arith.constant 22 : index
    %c0_74 = arith.constant 0 : index
    %76 = vector.load %arg7[%c22, %c0_74] : memref<96x64xbf16, #tpu.memory_space<vmem>>, vector<70x64xbf16>
    %c8 = arith.constant 8 : index
    %c0_75 = arith.constant 0 : index
    %c0_76 = arith.constant 0 : index
    %77 = vector.load %arg4[%c8, %c0_75, %c0_76] : memref<9x64x64xbf16, #tpu.memory_space<vmem>>, vector<1x64x64xbf16>
    %78 = vector.shape_cast %77 : vector<1x64x64xbf16> to vector<64x64xbf16>
    %cst_77 = arith.constant dense<0.000000e+00> : vector<70x64xf32>
    %79 = tpu.matmul %76, %78, %cst_77 {dimension_numbers = #tpu.dot_dimension_numbers<[1], [0], [0], [1], [0, 0, 1, 1], [], []>} : vector<70x64xbf16>, vector<64x64xbf16>, vector<70x64xf32> -> vector<70x64xf32>
    %80 = arith.addf %75, %79 : vector<70x64xf32>
    %81 = vector.broadcast %1 : vector<1x64xf32> to vector<70x64xf32>
    %82 = arith.addf %80, %81 : vector<70x64xf32>
    %cst_78 = arith.constant 0.000000e+00 : f32
    %83 = vector.broadcast %cst_78 : f32 to vector<70x64xf32>
    %84 = arith.maximumf %82, %83 : vector<70x64xf32>
    %85 = arith.truncf %84 : vector<70x64xf32> to vector<70x64xbf16>
    %c0_79 = arith.constant 0 : index
    %c0_80 = arith.constant 0 : index
    %c0_81 = arith.constant 0 : index
    %86 = vector.load %arg6[%c0_79, %c0_80, %c0_81] : memref<1x70x64xbf16, #tpu.memory_space<vmem>>, vector<1x70x64xbf16>
    %87 = vector.shape_cast %86 : vector<1x70x64xbf16> to vector<70x64xbf16>
    %88 = vector.shape_cast %85 : vector<70x64xbf16> to vector<1x70x64xbf16>
    tpu.vector_store %arg6[%c0_79, %c0_80, %c0_81], %88 {strides = array<i32>} : memref<1x70x64xbf16, #tpu.memory_space<vmem>>, vector<1x70x64xbf16>,
    return
  }
  func.func @transform_0(%arg0: i32) -> (i32, i32, i32) {
    %c0_i32 = arith.constant 0 : i32
    %c0_i32_0 = arith.constant 0 : i32
    %c0_i32_1 = arith.constant 0 : i32
    return %arg0, %c0_i32, %c0_i32_0 : i32, i32, i32
  }
  func.func @transform_1(%arg0: i32) -> (i32, i32, i32) {
    %c0_i32 = arith.constant 0 : i32
    %c0_i32_0 = arith.constant 0 : i32
    %c0_i32_1 = arith.constant 0 : i32
    %c0_i32_2 = arith.constant 0 : i32
    return %c0_i32, %c0_i32_0, %c0_i32_1 : i32, i32, i32
  }
  func.func @transform_2(%arg0: i32) -> (i32, i32) {
    %c0_i32 = arith.constant 0 : i32
    %c0_i32_0 = arith.constant 0 : i32
    %c0_i32_1 = arith.constant 0 : i32
    return %c0_i32, %c0_i32_0 : i32, i32
  }
  func.func @transform_3(%arg0: i32) -> (i32, i32, i32) {
    %c0_i32 = arith.constant 0 : i32
    %c0_i32_0 = arith.constant 0 : i32
    %c0_i32_1 = arith.constant 0 : i32
    %c0_i32_2 = arith.constant 0 : i32
    return %c0_i32, %c0_i32_0, %c0_i32_1 : i32, i32, i32
  }
  func.func @transform_4(%arg0: i32) -> (i32, i32) {
    %c0_i32 = arith.constant 0 : i32
    %c0_i32_0 = arith.constant 0 : i32
    %c0_i32_1 = arith.constant 0 : i32
    return %c0_i32, %c0_i32_0 : i32, i32
  }
  func.func @transform_5(%arg0: i32) -> (i32, i32, i32) {
    %c0_i32 = arith.constant 0 : i32
    %c0_i32_0 = arith.constant 0 : i32
    %c0_i32_1 = arith.constant 0 : i32
    return %arg0, %c0_i32, %c0_i32_0 : i32, i32, i32
  }
}

module attributes {stable_mosaic.version = 11 : i64} {
  func.func @_fc_head_kernel(%arg0: i32, %arg1: memref<2x4480xbf16, #tpu.memory_space<vmem>>, %arg2: memref<4480x512xbf16, #tpu.memory_space<vmem>>, %arg3: memref<1x512xf32, #tpu.memory_space<vmem>>, %arg4: memref<512x128xbf16, #tpu.memory_space<vmem>>, %arg5: memref<1x128xf32, #tpu.memory_space<vmem>>, %arg6: memref<2x128xf32, #tpu.memory_space<vmem>>) attributes {dimension_semantics = [#tpu.dimension_semantics<parallel>], iteration_bounds = array<i64: 1>, scalar_prefetch = 0 : i64, scratch_operands = 0 : i64, tpu.core_type = #tpu.core_type<tc>, window_params = [{transform_indices = @transform_0, window_bounds = array<i64: 2, 4480>}, {pipeline_mode = #tpu.pipeline_mode<synchronous>, transform_indices = @transform_1, window_bounds = array<i64: 4480, 512>}, {pipeline_mode = #tpu.pipeline_mode<synchronous>, transform_indices = @transform_2, window_bounds = array<i64: 1, 512>}, {pipeline_mode = #tpu.pipeline_mode<synchronous>, transform_indices = @transform_3, window_bounds = array<i64: 512, 128>}, {pipeline_mode = #tpu.pipeline_mode<synchronous>, transform_indices = @transform_4, window_bounds = array<i64: 1, 128>}, {transform_indices = @transform_5, window_bounds = array<i64: 2, 128>}]} {
    %c0 = arith.constant 0 : index
    %c0_0 = arith.constant 0 : index
    %0 = vector.load %arg1[%c0, %c0_0] : memref<2x4480xbf16, #tpu.memory_space<vmem>>, vector<2x4480xbf16>
    %c0_1 = arith.constant 0 : index
    %c0_2 = arith.constant 0 : index
    %1 = vector.load %arg2[%c0_1, %c0_2] : memref<4480x512xbf16, #tpu.memory_space<vmem>>, vector<4480x512xbf16>
    %cst = arith.constant dense<0.000000e+00> : vector<2x512xf32>
    %2 = tpu.matmul %0, %1, %cst {dimension_numbers = #tpu.dot_dimension_numbers<[1], [0], [0], [1], [0, 0, 1, 1], [], []>} : vector<2x4480xbf16>, vector<4480x512xbf16>, vector<2x512xf32> -> vector<2x512xf32>
    %c0_3 = arith.constant 0 : index
    %c0_4 = arith.constant 0 : index
    %3 = vector.load %arg3[%c0_3, %c0_4] : memref<1x512xf32, #tpu.memory_space<vmem>>, vector<1x512xf32>
    %4 = vector.broadcast %3 : vector<1x512xf32> to vector<2x512xf32>
    %5 = arith.addf %2, %4 : vector<2x512xf32>
    %cst_5 = arith.constant 0.000000e+00 : f32
    %6 = vector.broadcast %cst_5 : f32 to vector<2x512xf32>
    %7 = arith.maximumf %5, %6 : vector<2x512xf32>
    %8 = arith.truncf %7 : vector<2x512xf32> to vector<2x512xbf16>
    %c0_6 = arith.constant 0 : index
    %c0_7 = arith.constant 0 : index
    %9 = vector.load %arg4[%c0_6, %c0_7] : memref<512x128xbf16, #tpu.memory_space<vmem>>, vector<512x128xbf16>
    %cst_8 = arith.constant dense<0.000000e+00> : vector<2x128xf32>
    %10 = tpu.matmul %8, %9, %cst_8 {dimension_numbers = #tpu.dot_dimension_numbers<[1], [0], [0], [1], [0, 0, 1, 1], [], []>} : vector<2x512xbf16>, vector<512x128xbf16>, vector<2x128xf32> -> vector<2x128xf32>
    %c0_9 = arith.constant 0 : index
    %c0_10 = arith.constant 0 : index
    %11 = vector.load %arg5[%c0_9, %c0_10] : memref<1x128xf32, #tpu.memory_space<vmem>>, vector<1x128xf32>
    %12 = vector.broadcast %11 : vector<1x128xf32> to vector<2x128xf32>
    %13 = arith.addf %10, %12 : vector<2x128xf32>
    %c0_11 = arith.constant 0 : index
    %c0_12 = arith.constant 0 : index
    %14 = vector.load %arg6[%c0_11, %c0_12] : memref<2x128xf32, #tpu.memory_space<vmem>>, vector<2x128xf32>
    tpu.vector_store %arg6[%c0_11, %c0_12], %13 {strides = array<i32>} : memref<2x128xf32, #tpu.memory_space<vmem>>, vector<2x128xf32>,
    return
  }
  func.func @transform_0(%arg0: i32) -> (i32, i32) {
    %c0_i32 = arith.constant 0 : i32
    %c0_i32_0 = arith.constant 0 : i32
    return %arg0, %c0_i32 : i32, i32
  }
  func.func @transform_1(%arg0: i32) -> (i32, i32) {
    %c0_i32 = arith.constant 0 : i32
    %c0_i32_0 = arith.constant 0 : i32
    %c0_i32_1 = arith.constant 0 : i32
    return %c0_i32, %c0_i32_0 : i32, i32
  }
  func.func @transform_2(%arg0: i32) -> (i32, i32) {
    %c0_i32 = arith.constant 0 : i32
    %c0_i32_0 = arith.constant 0 : i32
    %c0_i32_1 = arith.constant 0 : i32
    return %c0_i32, %c0_i32_0 : i32, i32
  }
  func.func @transform_3(%arg0: i32) -> (i32, i32) {
    %c0_i32 = arith.constant 0 : i32
    %c0_i32_0 = arith.constant 0 : i32
    %c0_i32_1 = arith.constant 0 : i32
    return %c0_i32, %c0_i32_0 : i32, i32
  }
  func.func @transform_4(%arg0: i32) -> (i32, i32) {
    %c0_i32 = arith.constant 0 : i32
    %c0_i32_0 = arith.constant 0 : i32
    %c0_i32_1 = arith.constant 0 : i32
    return %c0_i32, %c0_i32_0 : i32, i32
  }
  func.func @transform_5(%arg0: i32) -> (i32, i32) {
    %c0_i32 = arith.constant 0 : i32
    %c0_i32_0 = arith.constant 0 : i32
    return %arg0, %c0_i32 : i32, i32
  }
}

</mosaic_0001>

<bundles_post_ra>
// kernel: qfunction_forward.3
= control target key start
LH: loop header
LB: loop body
LE: loop exit
PB: predicated region body
PF: predicated region fallthrough
CT: control target
= control target key end

     0   :  { %s2970_s12 = smov 0   ;;  %s3630_s0 = inlined_call_operand.vmem [shape: bf16[2,448,64], index: 0, kind: input, shape index: {}]   ;;  %s3631_s1 = inlined_call_operand.vmem [shape: bf16[4,64,32], index: 1, kind: input, shape index: {}]   ;;  %s3632_s2 = inlined_call_operand.vmem [shape: f32[1,32], index: 2, kind: input, shape index: {}]   ;;  %s3633_s3 = inlined_call_operand.vmem [shape: bf16[2,420,32], index: 3, kind: output, shape index: {}]  }
   0x1 LB: > { %s2449_s13 = sadd.s32 4294967295, %s2948_s12   ;;  %p2453_p0 = scmp.ge.s32.totalorder %s2948_s12, 1  ;;  %s2948_s12 = sphi %s2970_s12, %s13_s12  }
   0x2   : > { %p137_p1 = scmp.lt.s32.totalorder %s2948_s12, 3 }
   0x4   : > { %p138_p2 = pnand %p2453_p0, %p137_p1 }
   0x5   : > { %p161_p3 = scmp.lt.s32.totalorder (!%p138_p2), %s2449_s13, 1 }
   0x6   : > { %141 = sbr.rel (%p138_p2) target bundleno = 589 (0x24d), region = 32 }
   0xb   : > { %v2895_v0 = vld [vmem:[%s3631_s1 + $0x38] sm:$0xff]  ;;  %v2894_v4 = vld [vmem:[%s3631_s1 + $0x30] sm:$0xff]  ;;  %s3635_s13 = smov (!%p161_p3, %s2449_s13), 1  ;;  %v2893_v8 = vld [vmem:[%s3631_s1 + $0x28] sm:$0xff]  ;;  %vm377_vm0 = vsmask.f32 7424 }
   0xc   : > { %v2891_v1 = vld [vmem:[%s3631_s1 + $0x18] sm:$0xff]  ;;  %703 = vmatpush.bf16.msra.mxu0 %v2895_v0  ;;  %v2890_v5 = vld [vmem:[%s3631_s1 + $0x10] sm:$0xff]  ;;  %s2930_s30 = smul.u32 224, %s3635_s13  ;;  %v2889_v9 = vld [vmem:[%s3631_s1 + $0x8] sm:$0xff]  ;;  %vm1822_vm1 = vcmask 1044480   ;;  %vm617_vm2 = vcmask 523264  }
   0xd   : > { %v2929_v2 = vld [vmem:[%s3631_s1 + $0x78] sm:$0xff]  ;;  %928 = vmatpush.bf16.msra.mxu1 %v2891_v1  ;;  %v2928_v6 = vld [vmem:[%s3631_s1 + $0x70] sm:$0xff]  ;;  %v2927_v10 = vld [vmem:[%s3631_s1 + $0x68] sm:$0xff]  ;;  %vm1265_vm3 = vsmask.f32 5376  ;;  %s2931_s27 = smul.u32 212, %s3635_s13 }
   0xe   : > { %v2925_v3 = vld [vmem:[%s3631_s1 + $0x58] sm:$0xff]  ;;  %1985 = vmatpush.bf16.msra.mxu3 %v2929_v2  ;;  %v2924_v7 = vld [vmem:[%s3631_s1 + $0x50] sm:$0xff]  ;;  %v2923_v11 = vld [vmem:[%s3631_s1 + $0x48] sm:$0xff]  ;;  %s3020_s16 = scalar_lea.vmem %s3630_s0, %s2930_s30  ;;  %vm2339_vm4 = vcmask 257024   ;;  %vm2392_vm5 = vcmask 254976  }
   0xf   : > { %1617 = vmatpush.bf16.msra.mxu2 %v2925_v3  ;;  %v2862_v12 = vld [vmem:[%s3020_s16] sm:$0xff]  ;;  %v3024_v13 = vld [vmem:[%s3020_s16 + $0x8] sm:$0xff]  ;;  %v3028_v15 = vld [vmem:[%s3020_s16 + $0x10] sm:$0xff]  ;;  %s3151_s30 = scalar_lea.vmem %s3633_s3, %s2931_s27 }
  0x10   : > { %704 = vmatpush.bf16.msra.mxu0 %v2894_v4  ;;  %v1068_v14 = vld [vmem:[%s3020_s16 + $0xc] sm:$0xf]  ;;  %v1809_v17 = vld [vmem:[%s3020_s16 + $0x8] sm:$0x8]  ;;  %v379_v19 = vshrl.u32 %v2862_v12, 16  ;;  %v381_v20 = vshll.u32 %v2862_v12, 16 }
  0x11   : > { %929 = vmatpush.bf16.msra.mxu1 %v2890_v5  ;;  %v1185_v16 = vunpack.c.l.b16 %v1068_v14  ;;  %v1067_v18 = vld [vmem:[%s3020_s16 + $0x8] sm:$0xc]  ;;  %v386_v21 = vshll.u32 %v3024_v13, 16  ;;  %v1820_v22 = vunpack.c.l.b16 %v1809_v17  ;;  %v2892_v23 = vld [vmem:[%s3631_s1 + $0x20] sm:$0xff]  ;;  %v1275_v26 = vshrl.u32 %v3028_v15, 16  ;;  %v2864_v47 = vld [vmem:[%s3020_s16 + $0x10] sm:$0xff] }
  0x12   : > { %1986 = vmatpush.bf16.msra.mxu3 %v2928_v6  ;;  %v2888_v24 = vld [vmem:[%s3631_s1] sm:$0xff]  ;;  %v1184_v25 = vunpack.c.l.b16 %v1067_v18  ;;  %v1278_v27 = vshll.u32 %v3028_v15, 16  ;;  %v383_v30 = vrot.slane %v381_v20, 1  ;;  %v1824_v33 = vrot.slane %v3028_v15, 3  ;;  %v2897_v48 = vld [vmem:[%s3020_s16 + $0x18] sm:$0xff]  ;;  %v2899_v15 = vld [vmem:[%s3020_s16 + $0x28] sm:$0xff] }
  0x13   : > { %1618 = vmatpush.bf16.msra.mxu2 %v2924_v7  ;;  %v2926_v28 = vld [vmem:[%s3631_s1 + $0x60] sm:$0xff]  ;;  %v388_v31 = vrot.slane %v386_v21, 1  ;;  %v1821_v32 = vpack.c.b16 %v1185_v16, %v1820_v22  ;;  %v1277_v35 = vrot.slane %v1275_v26, 2  ;;  %v390_v50 = vshrl.u32 %v3024_v13, 16  ;;  %v2865_v63 = vld [vmem:[%s3020_s16 + $0x18] sm:$0xff] }
  0x14   : > { %705 = vmatpush.bf16.msra.mxu0 %v2893_v8  ;;  %v2922_v29 = vld [vmem:[%s3631_s1 + $0x40] sm:$0xff]  ;;  %v1238_v34 = vpack.c.b16 %v1185_v16, %v1184_v25  ;;  %v1280_v36 = vrot.slane %v1278_v27, 3  ;;  %v384_v37 = vor.u32 %v383_v30, %v379_v19  ;;  %v394_v51 = vshll.u32 %v2864_v47, 16  ;;  %v2900_v30 = vld [vmem:[%s3020_s16 + $0x30] sm:$0xff] }
  0x15   : > { %930 = vmatpush.bf16.msra.mxu1 %v2889_v9  ;;  %v1823_v38 = vrot.slane %v1821_v32, 3  ;;  %v1284_v52 = vshrl.u32 %v2897_v48, 16  ;;  %v1287_v53 = vshll.u32 %v2897_v48, 16  ;;  %v392_v54 = vor.u32 %v390_v50, %v388_v31  ;;  %v2898_v0 = vld [vmem:[%s3020_s16 + $0x20] sm:$0xff] }
  0x16   : > { %1987 = vmatpush.bf16.msra.mxu3 %v2927_v10  ;;  %v1267_v39 = vshrl.u32 %v1238_v34, 16  ;;  %v1270_v40 = vshll.u32 %v1238_v34, 16  ;;  %v389_v41 = vsel %vm377_vm0, %v384_v37, %v388_v31  ;;  %v1281_v45 = vor.u32 %v1280_v36, %v1277_v35  ;;  %v2866_v14 = vld [vmem:[%s3020_s16 + $0x20] sm:$0xff] }
  0x17   : > { %1619 = vmatpush.bf16.msra.mxu2 %v2923_v11  ;;  %v1825_v42 = vsel %vm1822_vm1, %v1823_v38, %v1824_v33  ;;  %v396_v55 = vrot.slane %v394_v51, 1  ;;  %v1286_v56 = vrot.slane %v1284_v52, 2  ;;  %v1289_v57 = vrot.slane %v1287_v53, 3 }
  0x18   : > { %706 = vmatpush.bf16.msra.mxu0 %v2892_v23  ;;  %v1269_v43 = vrot.slane %v1267_v39, 2  ;;  %v1272_v44 = vrot.slane %v1270_v40, 3  ;;  %v1826_v58 = vrot.slane %v2897_v48, 3  ;;  %v398_v1 = vshrl.u32 %v2864_v47, 16 }
  0x19   : > { %931 = vmatpush.bf16.msra.mxu1 %v2888_v24  ;;  %v397_v59 = vsel %vm377_vm0, %v392_v54, %v396_v55  ;;  %v1290_v60 = vor.u32 %v1289_v57, %v1286_v56  ;;  %v402_v2 = vshll.u32 %v2865_v63, 16  ;;  %v1293_v3 = vshrl.u32 %v2898_v0, 16 }
  0x1a   : > { %1988 = vmatpush.bf16.msra.mxu3 %v2926_v28  ;;  %v1273_v46 = vor.u32 %v1272_v44, %v1269_v43  ;;  %v1827_v61 = vsel %vm1822_vm1, %v1824_v33, %v1826_v58  ;;  %v1296_v4 = vshll.u32 %v2898_v0, 16  ;;  %v400_v5 = vor.u32 %v398_v1, %v396_v55  ;;  %v2868_v44 = vld [vmem:[%s3020_s16 + $0x30] sm:$0xff] }
  0x1b   : > { %1620 = vmatpush.bf16.msra.mxu2 %v2922_v29  ;;  %2584 = vmatmul.msk.bf16.vlgmr.msra.gmra.mxu0 %vm617_vm2, %v389_v41  ;;  %v1291_v62 = vsel %vm1265_vm3, %v1281_v45, %v1290_v60  ;;  %v404_v6 = vrot.slane %v402_v2, 1  ;;  %v1295_v7 = vrot.slane %v1293_v3, 2  ;;  %v1828_v9 = vrot.slane %v2898_v0, 3  ;;  %v2867_v29 = vld [vmem:[%s3020_s16 + $0x28] sm:$0xff] }
  0x1c   : > { %2627 = vmatmul.msk.bf16.vlgmr.msra.gmra.mxu1 %vm617_vm2, %v2862_v12  ;;  %v1282_v49 = vsel %vm1265_vm3, %v1273_v46, %v1281_v45  ;;  %v1298_v8 = vrot.slane %v1296_v4, 3  ;;  %v406_v16 = vshrl.u32 %v2865_v63, 16  ;;  %v410_v17 = vshll.u32 %v2866_v14, 16  ;;  %v2901_v45 = vld [vmem:[%s3020_s16 + $0x38] sm:$0xff] }
  0x1d   : > { %2833 = vmatmul.msk.bf16.vlgmr.msra.gmra.mxu3 %vm617_vm2, %v1825_v42  ;;  %v405_v10 = vsel %vm377_vm0, %v400_v5, %v404_v6  ;;  %v1829_v12 = vsel %vm1822_vm1, %v1826_v58, %v1828_v9  ;;  %v1302_v18 = vshrl.u32 %v2899_v15, 16  ;;  %v1305_v19 = vshll.u32 %v2899_v15, 16 }
  0x1e   : > { %2782 = vmatmul.msk.bf16.vlgmr.msra.gmra.mxu2 %vm617_vm2, %v1282_v49  ;;  %v1299_v11 = vor.u32 %v1298_v8, %v1295_v7  ;;  %v408_v20 = vor.u32 %v406_v16, %v404_v6  ;;  %v412_v21 = vrot.slane %v410_v17, 1  ;;  %v1830_v24 = vrot.slane %v2899_v15, 3 }
  0x1f   : > { %v1304_v22 = vrot.slane %v1302_v18, 2  ;;  %v1307_v23 = vrot.slane %v1305_v19, 3  ;;  %v414_v31 = vshrl.u32 %v2866_v14, 16  ;;  %v418_v32 = vshll.u32 %v2867_v29, 16 }
  0x20   : > { %v413_v25 = vsel %vm377_vm0, %v408_v20, %v412_v21  ;;  %v1831_v27 = vsel %vm1822_vm1, %v1828_v9, %v1830_v24  ;;  %v1311_v33 = vshrl.u32 %v2900_v30, 16  ;;  %v1314_v34 = vshll.u32 %v2900_v30, 16 }
  0x21   : > { %v1308_v26 = vor.u32 %v1307_v23, %v1304_v22  ;;  %v416_v35 = vor.u32 %v414_v31, %v412_v21  ;;  %v420_v36 = vrot.slane %v418_v32, 1  ;;  %v1832_v39 = vrot.slane %v2900_v30, 3 }
  0x22   : > { %v1313_v37 = vrot.slane %v1311_v33, 2  ;;  %v1316_v38 = vrot.slane %v1314_v34, 3  ;;  %v422_v46 = vshrl.u32 %v2867_v29, 16  ;;  %v1320_v48 = vshrl.u32 %v2901_v45, 16 }
  0x23   : > { %v1309_v28 = vsel %vm1265_vm3, %v1299_v11, %v1308_v26  ;;  %v421_v40 = vsel %vm377_vm0, %v416_v35, %v420_v36  ;;  %v1833_v42 = vsel %vm1822_vm1, %v1830_v24, %v1832_v39  ;;  %v1323_v49 = vshll.u32 %v2901_v45, 16 }
  0x24   : > { %v1317_v41 = vor.u32 %v1316_v38, %v1313_v37  ;;  %v424_v50 = vor.u32 %v422_v46, %v420_v36  ;;  %v1322_v52 = vrot.slane %v1320_v48, 2  ;;  %v1834_v54 = vrot.slane %v2901_v45, 3 }
  0x25   : > { %v1325_v53 = vrot.slane %v1323_v49, 3 }
  0x26   : > { %v1318_v43 = vsel %vm1265_vm3, %v1308_v26, %v1317_v41  ;;  %v1835_v57 = vsel %vm1822_vm1, %v1832_v39, %v1834_v54  ;;  %v2904_v26 = vld [vmem:[%s3020_s16 + $0x50] sm:$0xff] }
  0x27   : > { %v1326_v56 = vor.u32 %v1325_v53, %v1322_v52  ;;  %v1350_v30 = vshll.u32 %v2904_v26, 16  ;;  %v1840_v35 = vrot.slane %v2904_v26, 3 }
  0x29   : > { %v1327_v58 = vsel %vm1265_vm3, %v1317_v41, %v1326_v56  ;;  %v1352_v34 = vrot.slane %v1350_v30, 3 }
  0x2b   : > { %2585 = vmatmul.msk.bf16.gmra.mxu0 %vm617_vm2, %v397_v59  ;;  %v2869_v59 = vld [vmem:[%s3020_s16 + $0x38] sm:$0xff] }
  0x2c   : > { %2628 = vmatmul.msk.bf16.gmra.mxu1 %vm617_vm2, %v3024_v13  ;;  %v1300_v13 = vsel %vm1265_vm3, %v1290_v60, %v1299_v11  ;;  %v2902_v60 = vld [vmem:[%s3020_s16 + $0x40] sm:$0xff]  ;;  %v2903_v11 = vld [vmem:[%s3020_s16 + $0x48] sm:$0xff] }
  0x2d   : > { %2834 = vmatmul.msk.bf16.gmra.mxu3 %vm617_vm2, %v1827_v61  ;;  %v430_v61 = vshrl.u32 %v2868_v44, 16  ;;  %v1332_v0 = vshll.u32 %v2902_v60, 16  ;;  %v1836_v5 = vrot.slane %v2902_v60, 3  ;;  %v1341_v15 = vshll.u32 %v2903_v11, 16 }
  0x2e   : > { %2783 = vmatmul.msk.bf16.gmra.mxu2 %vm617_vm2, %v1291_v62  ;;  %v434_v62 = vshll.u32 %v2869_v59, 16  ;;  %v1838_v20 = vrot.slane %v2903_v11, 3 }
  0x2f   : > { %v1334_v4 = vrot.slane %v1332_v0, 3  ;;  %v1837_v8 = vsel %vm1822_vm1, %v1834_v54, %v1836_v5  ;;  %v1343_v19 = vrot.slane %v1341_v15, 3  ;;  %v3141_v54 = vld [vmem:[%s3632_s2] ss:$0 sm:$0xff] }
  0x30   : > { %v436_v2 = vrot.slane %v434_v62, 1  ;;  %v1839_v23 = vsel %vm1822_vm1, %v1836_v5, %v1838_v20 }
  0x3b   : > { %2586 = vmatmul.msk.bf16.gmra.mxu0 %vm617_vm2, %v405_v10  ;;  %v2870_v10 = vld [vmem:[%s3020_s16 + $0x40] sm:$0xff] }
  0x3c   : > { %2629 = vmatmul.msk.bf16.gmra.mxu1 %vm617_vm2, %v2864_v47  ;;  %v426_v47 = vshll.u32 %v2868_v44, 16 }
  0x3d   : > { %2835 = vmatmul.msk.bf16.gmra.mxu3 %vm617_vm2, %v1829_v12  ;;  %v438_v12 = vshrl.u32 %v2869_v59, 16 }
  0x3e   : > { %2784 = vmatmul.msk.bf16.gmra.mxu2 %vm617_vm2, %v1300_v13  ;;  %v428_v51 = vrot.slane %v426_v47, 1  ;;  %v442_v13 = vshll.u32 %v2870_v10, 16 }
  0x3f   : > { %v440_v16 = vor.u32 %v438_v12, %v436_v2 }
  0x40   : > { %v429_v55 = vsel %vm377_vm0, %v424_v50, %v428_v51  ;;  %v432_v1 = vor.u32 %v430_v61, %v428_v51  ;;  %v444_v17 = vrot.slane %v442_v13, 1 }
  0x42   : > { %v437_v6 = vsel %vm377_vm0, %v432_v1, %v436_v2  ;;  %v445_v21 = vsel %vm377_vm0, %v440_v16, %v444_v17 }
  0x4b   : > { %2587 = vmatmul.msk.bf16.gmra.mxu0 %vm617_vm2, %v413_v25  ;;  %v2871_v25 = vld [vmem:[%s3020_s16 + $0x48] sm:$0xff] }
  0x4c   : > { %2630 = vmatmul.msk.bf16.gmra.mxu1 %vm617_vm2, %v2865_v63  ;;  %v1329_v63 = vshrl.u32 %v2902_v60, 16  ;;  %v454_v48 = vshrl.u32 %v2871_v25, 16 }
  0x4d   : > { %2836 = vmatmul.msk.bf16.gmra.mxu3 %vm617_vm2, %v1831_v27  ;;  %v446_v27 = vshrl.u32 %v2870_v10, 16 }
  0x4e   : > { %2785 = vmatmul.msk.bf16.gmra.mxu2 %vm617_vm2, %v1309_v28  ;;  %v1331_v3 = vrot.slane %v1329_v63, 2  ;;  %v450_v28 = vshll.u32 %v2871_v25, 16 }
  0x4f   : > { %v448_v31 = vor.u32 %v446_v27, %v444_v17 }
  0x50   : > { %v1335_v7 = vor.u32 %v1334_v4, %v1331_v3  ;;  %v452_v32 = vrot.slane %v450_v28, 1 }
  0x52   : > { %v1336_v9 = vsel %vm1265_vm3, %v1326_v56, %v1335_v7  ;;  %v453_v38 = vsel %vm377_vm0, %v448_v31, %v452_v32 }
  0x5b   : > { %2588 = vmatmul.msk.bf16.gmra.mxu0 %vm617_vm2, %v421_v40  ;;  %v1841_v40 = vsel %vm1822_vm1, %v1838_v20, %v1840_v35 }
  0x5c   : > { %2631 = vmatmul.msk.bf16.gmra.mxu1 %vm617_vm2, %v2866_v14  ;;  %v1338_v14 = vshrl.u32 %v2903_v11, 16  ;;  %v3161_v11 = vld [vmem:[%s3020_s16 + $0x60] sm:$0xff] }
  0x5d   : > { %2837 = vmatmul.msk.bf16.gmra.mxu3 %vm617_vm2, %v1833_v42  ;;  %v3129_v42 = vld [vmem:[%s3020_s16 + $0x50] sm:$0xff]  ;;  %v1365_v20 = vshrl.u32 %v3161_v11, 16  ;;  %v1844_v31 = vrot.slane %v3161_v11, 3 }
  0x5e   : > { %2786 = vmatmul.msk.bf16.gmra.mxu2 %vm617_vm2, %v1318_v43  ;;  %v1340_v18 = vrot.slane %v1338_v14, 2  ;;  %v3132_v43 = vld [vmem:[%s3020_s16 + $0x58] sm:$0xff]  ;;  %v458_v49 = vshll.u32 %v3129_v42, 16 }
  0x5f   : > { %v1356_v50 = vshrl.u32 %v3132_v43, 16  ;;  %v1359_v51 = vshll.u32 %v3132_v43, 16  ;;  %v1842_v60 = vrot.slane %v3132_v43, 3  ;;  %v1367_v28 = vrot.slane %v1365_v20, 2 }
  0x60   : > { %v1344_v22 = vor.u32 %v1343_v19, %v1340_v18  ;;  %v460_v56 = vrot.slane %v458_v49, 1  ;;  %v462_v18 = vshrl.u32 %v3129_v42, 16 }
  0x61   : > { %v1843_v5 = vsel %vm1822_vm1, %v1840_v35, %v1842_v60 }
  0x62   : > { %v1345_v24 = vsel %vm1265_vm3, %v1335_v7, %v1344_v22 }
  0x6b   : > { %2589 = vmatmul.msk.bf16.gmra.mxu0 %vm617_vm2, %v429_v55  ;;  %v456_v55 = vor.u32 %v454_v48, %v452_v32 }
  0x6c   : > { %2632 = vmatmul.msk.bf16.gmra.mxu1 %vm617_vm2, %v2867_v29  ;;  %v1347_v29 = vshrl.u32 %v2904_v26, 16  ;;  %v464_v26 = vor.u32 %v462_v18, %v460_v56  ;;  %v3208_v18 = vld [vmem:[%s3020_s16 + $0x68] sm:$0xff] }
  0x6d   : > { %2838 = vmatmul.msk.bf16.gmra.mxu3 %vm617_vm2, %v1835_v57  ;;  %v1358_v57 = vrot.slane %v1356_v50, 2  ;;  %v461_v1 = vsel %vm377_vm0, %v456_v55, %v460_v56 }
  0x6e   : > { %2787 = vmatmul.msk.bf16.gmra.mxu2 %vm617_vm2, %v1327_v58  ;;  %v1349_v33 = vrot.slane %v1347_v29, 2  ;;  %v1361_v58 = vrot.slane %v1359_v51, 3 }
  0x70   : > { %v1353_v39 = vor.u32 %v1352_v34, %v1349_v33  ;;  %v1362_v2 = vor.u32 %v1361_v58, %v1358_v57 }
  0x72   : > { %v1354_v41 = vsel %vm1265_vm3, %v1344_v22, %v1353_v39 }
  0x7b   : > { %2590 = vmatmul.msk.bf16.gmra.mxu0 %vm617_vm2, %v437_v6 }
  0x7c   : > { %2633 = vmatmul.msk.bf16.gmra.mxu1 %vm617_vm2, %v2868_v44 }
  0x7d   : > { %2839 = vmatmul.msk.bf16.gmra.mxu3 %vm617_vm2, %v1837_v8 }
  0x7e   : > { %2788 = vmatmul.msk.bf16.gmra.mxu2 %vm617_vm2, %v1336_v9  ;;  %v1363_v9 = vsel %vm1265_vm3, %v1353_v39, %v1362_v2 }
  0x8b   : > { %2591 = vmatmul.msk.bf16.gmra.mxu0 %vm617_vm2, %v445_v21  ;;  %v1368_v21 = vshll.u32 %v3161_v11, 16 }
  0x8c   : > { %2634 = vmatmul.msk.bf16.gmra.mxu1 %vm617_vm2, %v2869_v59 }
  0x8d   : > { %2840 = vmatmul.msk.bf16.gmra.mxu3 %vm617_vm2, %v1839_v23  ;;  %v1370_v29 = vrot.slane %v1368_v21, 3 }
  0x8e   : > { %2789 = vmatmul.msk.bf16.gmra.mxu2 %vm617_vm2, %v1345_v24 }
  0x98   : > { %v708_v36 = vpop.f32.mrf.mxu0 }
  0x99   : > { %v933_v37 = vpop.f32.mrf.mxu1 }
  0x9a   : > { %v934_v44 = vadd.f32 %v933_v37, %v708_v36  ;;  %v1371_v37 = vor.u32 %v1370_v29, %v1367_v28 }
  0x9b   : > { %2592 = vmatmul.msk.bf16.gmra.mxu0 %vm617_vm2, %v453_v38 }
  0x9c   : > { %2635 = vmatmul.msk.bf16.gmra.mxu1 %vm617_vm2, %v2870_v10  ;;  %v3158_v10 = vld [vmem:[%s3020_s16 + $0x58] sm:$0xff] }
  0x9d   : > { %2841 = vmatmul.msk.bf16.gmra.mxu3 %vm617_vm2, %v1841_v40  ;;  %v466_v19 = vshll.u32 %v3158_v10, 16  ;;  %v1845_v40 = vsel %vm1822_vm1, %v1842_v60, %v1844_v31 }
  0x9e   : > { %2790 = vmatmul.msk.bf16.gmra.mxu2 %vm617_vm2, %v1354_v41 }
  0x9f   : > { %v468_v27 = vrot.slane %v466_v19, 1  ;;  %v3211_v19 = vld [vmem:[%s3020_s16 + $0x70] sm:$0xff] }
  0xa0   : > { %v1990_v45 = vpop.f32.mrf.mxu3  ;;  %v710_v46 = vpop.f32.mrf.mxu0  ;;  %v1386_v28 = vshll.u32 %v3211_v19, 16 }
  0xa1   : > { %v935_v47 = vpop.f32.mrf.mxu1  ;;  %v1622_v52 = vpop.f32.mrf.mxu2  ;;  %v469_v36 = vsel %vm377_vm0, %v464_v26, %v468_v27  ;;  %v482_v26 = vshll.u32 %v3208_v18, 16 }
  0xa2   : > { %v1756_v53 = vadd.f32 %v1622_v52, %v934_v44  ;;  %v936_v4 = vadd.f32 %v935_v47, %v710_v46  ;;  %v3183_v46 = vld [vmem:[%s3020_s16 + $0x60] sm:$0xff]  ;;  %v3186_v47 = vld [vmem:[%s3020_s16 + $0x68] sm:$0xff] }
  0xa3   : > { %v474_v55 = vshll.u32 %v3183_v46, 16  ;;  %v1374_v56 = vshrl.u32 %v3186_v47, 16  ;;  %v1377_v57 = vshll.u32 %v3186_v47, 16 }
  0xa4   : > { %v2124_v59 = vadd.f32 %v1990_v45, %v1756_v53  ;;  %v1372_v45 = vsel %vm1265_vm3, %v1362_v2, %v1371_v37  ;;  %v470_v53 = vshrl.u32 %v3158_v10, 16 }
  0xa6   : > { %v2180_v61 = vadd.f32 %v3141_v54, %v2124_v59 }
  0xa8   : > { %v1992_v62 = vpop.f32.mrf.mxu3  ;;  %v713_v63 = vpop.f32.mrf.mxu0  ;;  %v2233_v3 = vmax.f32 %v2180_v61, 0.0 }
  0xa9   : > { %v938_v0 = vpop.f32.mrf.mxu1  ;;  %v1624_v6 = vpop.f32.mrf.mxu2 }
  0xaa   : > { %v2286_v7 = vpack.c.bf16 %v2233_v3, %v2233_v3  ;;  %v1757_v8 = vadd.f32 %v1624_v6, %v936_v4  ;;  %v939_v14 = vadd.f32 %v938_v0, %v713_v63  ;;  %v476_v63 = vrot.slane %v474_v55, 1  ;;  %v3236_v55 = vld [vmem:[%s3020_s16 + $0x78] sm:$0xff] }
  0xab   : > { %2593 = vmatmul.msk.bf16.gmra.mxu0 %vm617_vm2, %v461_v1  ;;  %v1376_v0 = vrot.slane %v1374_v56, 2  ;;  %v1379_v1 = vrot.slane %v1377_v57, 3  ;;  %v1846_v3 = vrot.slane %v3186_v47, 3 }
  0xac   : > { %2636 = vmatmul.msk.bf16.gmra.mxu1 %vm617_vm2, %v2871_v25  ;;  %2340 = vst.msk [vmem:[%s3151_s30] sm:$0xf] %vm2339_vm4, %v2286_v7  ;;  %v2125_v12 = vadd.f32 %v1992_v62, %v1757_v8  ;;  %v472_v62 = vor.u32 %v470_v53, %v468_v27  ;;  %v1383_v27 = vshrl.u32 %v3211_v19, 16  ;;  %v3233_v53 = vld [vmem:[%s3020_s16 + $0x70] sm:$0xff] }
  0xad   : > { %2842 = vmatmul.msk.bf16.gmra.mxu3 %vm617_vm2, %v1843_v5 }
  0xae   : > { %v2181_v13 = vadd.f32 %v3141_v54, %v2125_v12  ;;  %2791 = vmatmul.msk.bf16.gmra.mxu2 %vm617_vm2, %v1363_v9  ;;  %v477_v8 = vsel %vm377_vm0, %v472_v62, %v476_v63  ;;  %v1380_v9 = vor.u32 %v1379_v1, %v1376_v0  ;;  %v490_v62 = vshll.u32 %v3233_v53, 16 }
  0xaf   : > { %v1395_v0 = vshll.u32 %v3236_v55, 16 }
  0xb0   : > { %v1995_v15 = vpop.f32.mrf.mxu3  ;;  %v715_v16 = vpop.f32.mrf.mxu0  ;;  %v2234_v22 = vmax.f32 %v2181_v13, 0.0  ;;  %v1847_v13 = vsel %vm1822_vm1, %v1844_v31, %v1846_v3 }
  0xb1   : > { %v940_v17 = vpop.f32.mrf.mxu1  ;;  %v1627_v23 = vpop.f32.mrf.mxu2 }
  0xb2   : > { %v2287_v24 = vpack.c.bf16 %v2234_v22, %v2234_v22  ;;  %v1758_v25 = vadd.f32 %v1627_v23, %v939_v14  ;;  %v941_v39 = vadd.f32 %v940_v17, %v715_v16  ;;  %v1381_v17 = vsel %vm1265_vm3, %v1371_v37, %v1380_v9 }
  0xb4   : > { %2341 = vst.msk [vmem:[%s3151_s30 + $0x4] sm:$0xf] %vm2339_vm4, %v2287_v24  ;;  %v2126_v30 = vadd.f32 %v1995_v15, %v1758_v25  ;;  %v478_v25 = vshrl.u32 %v3183_v46, 16 }
  0xb6   : > { %v2182_v32 = vadd.f32 %v3141_v54, %v2126_v30 }
  0xb8   : > { %v1997_v33 = vpop.f32.mrf.mxu3  ;;  %v718_v34 = vpop.f32.mrf.mxu0  ;;  %v2235_v38 = vmax.f32 %v2182_v32, 0.0 }
  0xb9   : > { %v943_v35 = vpop.f32.mrf.mxu1  ;;  %v1629_v41 = vpop.f32.mrf.mxu2 }
  0xba   : > { %v2288_v43 = vpack.c.bf16 %v2235_v38, %v2235_v38  ;;  %v1759_v44 = vadd.f32 %v1629_v41, %v941_v39  ;;  %v944_v50 = vadd.f32 %v943_v35, %v718_v34  ;;  %v484_v34 = vrot.slane %v482_v26, 1  ;;  %v3261_v26 = vld [vmem:[%s3020_s16 + $0x80] sm:$0xff] }
  0xbb   : > { %2594 = vmatmul.msk.bf16.gmra.mxu0 %vm617_vm2, %v469_v36  ;;  %v1385_v35 = vrot.slane %v1383_v27, 2  ;;  %v1388_v36 = vrot.slane %v1386_v28, 3  ;;  %v1848_v38 = vrot.slane %v3211_v19, 3 }
  0xbc   : > { %2637 = vmatmul.msk.bf16.gmra.mxu1 %vm617_vm2, %v3129_v42  ;;  %2342 = vst.msk [vmem:[%s3151_s30 + $0x8] sm:$0xf] %vm2339_vm4, %v2288_v43  ;;  %v2127_v48 = vadd.f32 %v1997_v33, %v1759_v44  ;;  %v480_v33 = vor.u32 %v478_v25, %v476_v63  ;;  %v1392_v63 = vshrl.u32 %v3236_v55, 16  ;;  %v3258_v25 = vld [vmem:[%s3020_s16 + $0x78] sm:$0xff] }
  0xbd   : > { %2843 = vmatmul.msk.bf16.gmra.mxu3 %vm617_vm2, %v1845_v40 }
  0xbe   : > { %v2183_v49 = vadd.f32 %v3141_v54, %v2127_v48  ;;  %2792 = vmatmul.msk.bf16.gmra.mxu2 %vm617_vm2, %v1372_v45  ;;  %v485_v44 = vsel %vm377_vm0, %v480_v33, %v484_v34  ;;  %v1389_v45 = vor.u32 %v1388_v36, %v1385_v35  ;;  %v498_v33 = vshll.u32 %v3258_v25, 16 }
  0xbf   : > { %v1404_v35 = vshll.u32 %v3261_v26, 16 }
  0xc0   : > { %v2000_v51 = vpop.f32.mrf.mxu3  ;;  %v720_v52 = vpop.f32.mrf.mxu0  ;;  %v2236_v58 = vmax.f32 %v2183_v49, 0.0  ;;  %v1849_v49 = vsel %vm1822_vm1, %v1846_v3, %v1848_v38 }
  0xc1   : > { %v945_v42 = vpop.f32.mrf.mxu1  ;;  %v1632_v59 = vpop.f32.mrf.mxu2 }
  0xc2   : > { %v2289_v60 = vpack.c.bf16 %v2236_v58, %v2236_v58  ;;  %v1760_v61 = vadd.f32 %v1632_v59, %v944_v50  ;;  %v946_v12 = vadd.f32 %v945_v42, %v720_v52  ;;  %v1390_v42 = vsel %vm1265_vm3, %v1380_v9, %v1389_v45 }
  0xc4   : > { %2343 = vst.msk [vmem:[%s3151_s30 + $0xc] sm:$0xf] %vm2339_vm4, %v2289_v60  ;;  %v2128_v2 = vadd.f32 %v2000_v51, %v1760_v61  ;;  %v486_v61 = vshrl.u32 %v3208_v18, 16 }
  0xc6   : > { %v2184_v4 = vadd.f32 %v3141_v54, %v2128_v2 }
  0xc8   : > { %v2002_v5 = vpop.f32.mrf.mxu3  ;;  %v723_v6 = vpop.f32.mrf.mxu0  ;;  %v2237_v11 = vmax.f32 %v2184_v4, 0.0 }
  0xc9   : > { %v948_v7 = vpop.f32.mrf.mxu1  ;;  %v1634_v14 = vpop.f32.mrf.mxu2 }
  0xca   : > { %v2290_v15 = vpack.c.bf16 %v2237_v11, %v2237_v11  ;;  %v1761_v16 = vadd.f32 %v1634_v14, %v946_v12  ;;  %v949_v22 = vadd.f32 %v948_v7, %v723_v6  ;;  %v492_v6 = vrot.slane %v490_v62, 1  ;;  %v3286_v62 = vld [vmem:[%s3020_s16 + $0x88] sm:$0xff] }
  0xcb   : > { %2595 = vmatmul.msk.bf16.gmra.mxu0 %vm617_vm2, %v477_v8  ;;  %v1394_v7 = vrot.slane %v1392_v63, 2  ;;  %v1397_v8 = vrot.slane %v1395_v0, 3  ;;  %v1850_v11 = vrot.slane %v3236_v55, 3 }
  0xcc   : > { %2638 = vmatmul.msk.bf16.gmra.mxu1 %vm617_vm2, %v3158_v10  ;;  %2344 = vst.msk [vmem:[%s3151_s30 + $0x10] sm:$0xf] %vm2339_vm4, %v2290_v15  ;;  %v2129_v20 = vadd.f32 %v2002_v5, %v1761_v16  ;;  %v488_v5 = vor.u32 %v486_v61, %v484_v34  ;;  %v1401_v34 = vshrl.u32 %v3261_v26, 16  ;;  %v3283_v61 = vld [vmem:[%s3020_s16 + $0x80] sm:$0xff] }
  0xcd   : > { %2844 = vmatmul.msk.bf16.gmra.mxu3 %vm617_vm2, %v1847_v13 }
  0xce   : > { %v2185_v21 = vadd.f32 %v3141_v54, %v2129_v20  ;;  %2793 = vmatmul.msk.bf16.gmra.mxu2 %vm617_vm2, %v1381_v17  ;;  %v493_v16 = vsel %vm377_vm0, %v488_v5, %v492_v6  ;;  %v1398_v17 = vor.u32 %v1397_v8, %v1394_v7  ;;  %v506_v5 = vshll.u32 %v3283_v61, 16 }
  0xcf   : > { %v1413_v7 = vshll.u32 %v3286_v62, 16 }
  0xd0   : > { %v2005_v23 = vpop.f32.mrf.mxu3  ;;  %v725_v24 = vpop.f32.mrf.mxu0  ;;  %v2238_v29 = vmax.f32 %v2185_v21, 0.0  ;;  %v1851_v21 = vsel %vm1822_vm1, %v1848_v38, %v1850_v11 }
  0xd1   : > { %v950_v10 = vpop.f32.mrf.mxu1  ;;  %v1637_v30 = vpop.f32.mrf.mxu2 }
  0xd2   : > { %v2291_v31 = vpack.c.bf16 %v2238_v29, %v2238_v29  ;;  %v1762_v32 = vadd.f32 %v1637_v30, %v949_v22  ;;  %v951_v48 = vadd.f32 %v950_v10, %v725_v24  ;;  %v1399_v10 = vsel %vm1265_vm3, %v1389_v45, %v1398_v17 }
  0xd4   : > { %2345 = vst.msk [vmem:[%s3151_s30 + $0x14] sm:$0xf] %vm2339_vm4, %v2291_v31  ;;  %v2130_v37 = vadd.f32 %v2005_v23, %v1762_v32  ;;  %v494_v32 = vshrl.u32 %v3233_v53, 16 }
  0xd6   : > { %v2186_v39 = vadd.f32 %v3141_v54, %v2130_v37 }
  0xd8   : > { %v2007_v40 = vpop.f32.mrf.mxu3  ;;  %v728_v41 = vpop.f32.mrf.mxu0  ;;  %v2239_v47 = vmax.f32 %v2186_v39, 0.0 }
  0xd9   : > { %v953_v43 = vpop.f32.mrf.mxu1  ;;  %v1639_v50 = vpop.f32.mrf.mxu2 }
  0xda   : > { %v2292_v51 = vpack.c.bf16 %v2239_v47, %v2239_v47  ;;  %v1763_v52 = vadd.f32 %v1639_v50, %v951_v48  ;;  %v954_v58 = vadd.f32 %v953_v43, %v728_v41  ;;  %v500_v41 = vrot.slane %v498_v33, 1  ;;  %v3311_v33 = vld [vmem:[%s3020_s16 + $0x90] sm:$0xff] }
  0xdb   : > { %2596 = vmatmul.msk.bf16.gmra.mxu0 %vm617_vm2, %v485_v44  ;;  %v1403_v43 = vrot.slane %v1401_v34, 2  ;;  %v1406_v44 = vrot.slane %v1404_v35, 3  ;;  %v1852_v47 = vrot.slane %v3261_v26, 3 }
  0xdc   : > { %2639 = vmatmul.msk.bf16.gmra.mxu1 %vm617_vm2, %v3183_v46  ;;  %2346 = vst.msk [vmem:[%s3151_s30 + $0x18] sm:$0xf] %vm2339_vm4, %v2292_v51  ;;  %v2131_v56 = vadd.f32 %v2007_v40, %v1763_v52  ;;  %v496_v40 = vor.u32 %v494_v32, %v492_v6  ;;  %v1410_v6 = vshrl.u32 %v3286_v62, 16  ;;  %v3308_v32 = vld [vmem:[%s3020_s16 + $0x88] sm:$0xff] }
  0xdd   : > { %2845 = vmatmul.msk.bf16.gmra.mxu3 %vm617_vm2, %v1849_v49 }
  0xde   : > { %v2187_v57 = vadd.f32 %v3141_v54, %v2131_v56  ;;  %2794 = vmatmul.msk.bf16.gmra.mxu2 %vm617_vm2, %v1390_v42  ;;  %v501_v52 = vsel %vm377_vm0, %v496_v40, %v500_v41  ;;  %v1407_v42 = vor.u32 %v1406_v44, %v1403_v43  ;;  %v514_v40 = vshll.u32 %v3308_v32, 16 }
  0xdf   : > { %v1422_v43 = vshll.u32 %v3311_v33, 16 }
  0xe0   : > { %v2010_v59 = vpop.f32.mrf.mxu3  ;;  %v730_v60 = vpop.f32.mrf.mxu0  ;;  %v2240_v1 = vmax.f32 %v2187_v57, 0.0  ;;  %v1853_v57 = vsel %vm1822_vm1, %v1850_v11, %v1852_v47 }
  0xe1   : > { %v955_v46 = vpop.f32.mrf.mxu1  ;;  %v1642_v2 = vpop.f32.mrf.mxu2 }
  0xe2   : > { %v2293_v3 = vpack.c.bf16 %v2240_v1, %v2240_v1  ;;  %v1764_v4 = vadd.f32 %v1642_v2, %v954_v58  ;;  %v956_v20 = vadd.f32 %v955_v46, %v730_v60  ;;  %v1408_v46 = vsel %vm1265_vm3, %v1398_v17, %v1407_v42 }
  0xe4   : > { %2347 = vst.msk [vmem:[%s3151_s30 + $0x1c] sm:$0xf] %vm2339_vm4, %v2293_v3  ;;  %v2132_v9 = vadd.f32 %v2010_v59, %v1764_v4  ;;  %v502_v4 = vshrl.u32 %v3258_v25, 16 }
  0xe6   : > { %v2188_v12 = vadd.f32 %v3141_v54, %v2132_v9 }
  0xe8   : > { %v2012_v13 = vpop.f32.mrf.mxu3  ;;  %v733_v14 = vpop.f32.mrf.mxu0  ;;  %v2241_v19 = vmax.f32 %v2188_v12, 0.0 }
  0xe9   : > { %v958_v15 = vpop.f32.mrf.mxu1  ;;  %v1644_v22 = vpop.f32.mrf.mxu2 }
  0xea   : > { %v2294_v23 = vpack.c.bf16 %v2241_v19, %v2241_v19  ;;  %v1765_v24 = vadd.f32 %v1644_v22, %v956_v20  ;;  %v959_v29 = vadd.f32 %v958_v15, %v733_v14  ;;  %v508_v14 = vrot.slane %v506_v5, 1  ;;  %v3336_v5 = vld [vmem:[%s3020_s16 + $0x98] sm:$0xff] }
  0xeb   : > { %2597 = vmatmul.msk.bf16.gmra.mxu0 %vm617_vm2, %v493_v16  ;;  %v1412_v15 = vrot.slane %v1410_v6, 2  ;;  %v1415_v16 = vrot.slane %v1413_v7, 3  ;;  %v1854_v19 = vrot.slane %v3286_v62, 3 }
  0xec   : > { %2640 = vmatmul.msk.bf16.gmra.mxu1 %vm617_vm2, %v3208_v18  ;;  %2348 = vst.msk [vmem:[%s3151_s30 + $0x20] sm:$0xf] %vm2339_vm4, %v2294_v23  ;;  %v2133_v27 = vadd.f32 %v2012_v13, %v1765_v24  ;;  %v504_v13 = vor.u32 %v502_v4, %v500_v41  ;;  %v1419_v41 = vshrl.u32 %v3311_v33, 16  ;;  %v3333_v4 = vld [vmem:[%s3020_s16 + $0x90] sm:$0xff] }
  0xed   : > { %2846 = vmatmul.msk.bf16.gmra.mxu3 %vm617_vm2, %v1851_v21 }
  0xee   : > { %v2189_v28 = vadd.f32 %v3141_v54, %v2133_v27  ;;  %2795 = vmatmul.msk.bf16.gmra.mxu2 %vm617_vm2, %v1399_v10  ;;  %v509_v24 = vsel %vm377_vm0, %v504_v13, %v508_v14  ;;  %v1416_v10 = vor.u32 %v1415_v16, %v1412_v15  ;;  %v522_v13 = vshll.u32 %v3333_v4, 16 }
  0xef   : > { %v1431_v15 = vshll.u32 %v3336_v5, 16 }
  0xf0   : > { %v2015_v30 = vpop.f32.mrf.mxu3  ;;  %v735_v31 = vpop.f32.mrf.mxu0  ;;  %v2242_v36 = vmax.f32 %v2189_v28, 0.0  ;;  %v1855_v28 = vsel %vm1822_vm1, %v1852_v47, %v1854_v19 }
  0xf1   : > { %v960_v18 = vpop.f32.mrf.mxu1  ;;  %v1647_v37 = vpop.f32.mrf.mxu2 }
  0xf2   : > { %v2295_v38 = vpack.c.bf16 %v2242_v36, %v2242_v36  ;;  %v1766_v39 = vadd.f32 %v1647_v37, %v959_v29  ;;  %v961_v56 = vadd.f32 %v960_v18, %v735_v31  ;;  %v1417_v18 = vsel %vm1265_vm3, %v1407_v42, %v1416_v10 }
  0xf4   : > { %2349 = vst.msk [vmem:[%s3151_s30 + $0x24] sm:$0xf] %vm2339_vm4, %v2295_v38  ;;  %v2134_v45 = vadd.f32 %v2015_v30, %v1766_v39  ;;  %v510_v39 = vshrl.u32 %v3283_v61, 16 }
  0xf6   : > { %v2190_v48 = vadd.f32 %v3141_v54, %v2134_v45 }
  0xf8   : > { %v2017_v49 = vpop.f32.mrf.mxu3  ;;  %v738_v50 = vpop.f32.mrf.mxu0  ;;  %v2243_v55 = vmax.f32 %v2190_v48, 0.0 }
  0xf9   : > { %v963_v51 = vpop.f32.mrf.mxu1  ;;  %v1649_v58 = vpop.f32.mrf.mxu2 }
  0xfa   : > { %v2296_v59 = vpack.c.bf16 %v2243_v55, %v2243_v55  ;;  %v1767_v60 = vadd.f32 %v1649_v58, %v961_v56  ;;  %v964_v1 = vadd.f32 %v963_v51, %v738_v50  ;;  %v516_v50 = vrot.slane %v514_v40, 1  ;;  %v3361_v40 = vld [vmem:[%s3020_s16 + $0xa0] sm:$0xff] }
  0xfb   : > { %2598 = vmatmul.msk.bf16.gmra.mxu0 %vm617_vm2, %v501_v52  ;;  %v1421_v51 = vrot.slane %v1419_v41, 2  ;;  %v1424_v52 = vrot.slane %v1422_v43, 3  ;;  %v1856_v55 = vrot.slane %v3311_v33, 3 }
  0xfc   : > { %2641 = vmatmul.msk.bf16.gmra.mxu1 %vm617_vm2, %v3233_v53  ;;  %2350 = vst.msk [vmem:[%s3151_s30 + $0x28] sm:$0xf] %vm2339_vm4, %v2296_v59  ;;  %v2135_v63 = vadd.f32 %v2017_v49, %v1767_v60  ;;  %v512_v49 = vor.u32 %v510_v39, %v508_v14  ;;  %v1428_v14 = vshrl.u32 %v3336_v5, 16  ;;  %v3358_v39 = vld [vmem:[%s3020_s16 + $0x98] sm:$0xff] }
  0xfd   : > { %2847 = vmatmul.msk.bf16.gmra.mxu3 %vm617_vm2, %v1853_v57 }
  0xfe   : > { %v2191_v0 = vadd.f32 %v3141_v54, %v2135_v63  ;;  %2796 = vmatmul.msk.bf16.gmra.mxu2 %vm617_vm2, %v1408_v46  ;;  %v517_v60 = vsel %vm377_vm0, %v512_v49, %v516_v50  ;;  %v1425_v46 = vor.u32 %v1424_v52, %v1421_v51  ;;  %v530_v49 = vshll.u32 %v3358_v39, 16 }
  0xff   : > { %v1440_v51 = vshll.u32 %v3361_v40, 16 }
 0x100   : > { %v2020_v2 = vpop.f32.mrf.mxu3  ;;  %v740_v3 = vpop.f32.mrf.mxu0  ;;  %v2244_v8 = vmax.f32 %v2191_v0, 0.0  ;;  %v1857_v0 = vsel %vm1822_vm1, %v1854_v19, %v1856_v55 }
 0x101   : > { %v965_v53 = vpop.f32.mrf.mxu1  ;;  %v1652_v9 = vpop.f32.mrf.mxu2 }
 0x102   : > { %v2297_v11 = vpack.c.bf16 %v2244_v8, %v2244_v8  ;;  %v1768_v12 = vadd.f32 %v1652_v9, %v964_v1  ;;  %v966_v27 = vadd.f32 %v965_v53, %v740_v3  ;;  %v1426_v53 = vsel %vm1265_vm3, %v1416_v10, %v1425_v46 }
 0x104   : > { %2351 = vst.msk [vmem:[%s3151_s30 + $0x2c] sm:$0xf] %vm2339_vm4, %v2297_v11  ;;  %v2136_v17 = vadd.f32 %v2020_v2, %v1768_v12  ;;  %v518_v12 = vshrl.u32 %v3308_v32, 16 }
 0x106   : > { %v2192_v20 = vadd.f32 %v3141_v54, %v2136_v17 }
 0x108   : > { %v2022_v21 = vpop.f32.mrf.mxu3  ;;  %v743_v22 = vpop.f32.mrf.mxu0  ;;  %v2245_v26 = vmax.f32 %v2192_v20, 0.0 }
 0x109   : > { %v968_v23 = vpop.f32.mrf.mxu1  ;;  %v1654_v29 = vpop.f32.mrf.mxu2 }
 0x10a   : > { %v2298_v30 = vpack.c.bf16 %v2245_v26, %v2245_v26  ;;  %v1769_v31 = vadd.f32 %v1654_v29, %v966_v27  ;;  %v969_v36 = vadd.f32 %v968_v23, %v743_v22  ;;  %v524_v22 = vrot.slane %v522_v13, 1  ;;  %v3386_v13 = vld [vmem:[%s3020_s16 + $0xa8] sm:$0xff] }
 0x10b   : > { %2599 = vmatmul.msk.bf16.gmra.mxu0 %vm617_vm2, %v509_v24  ;;  %v1430_v23 = vrot.slane %v1428_v14, 2  ;;  %v1433_v24 = vrot.slane %v1431_v15, 3  ;;  %v1858_v26 = vrot.slane %v3336_v5, 3 }
 0x10c   : > { %2642 = vmatmul.msk.bf16.gmra.mxu1 %vm617_vm2, %v3258_v25  ;;  %2352 = vst.msk [vmem:[%s3151_s30 + $0x30] sm:$0xf] %vm2339_vm4, %v2298_v30  ;;  %v2137_v34 = vadd.f32 %v2022_v21, %v1769_v31  ;;  %v520_v21 = vor.u32 %v518_v12, %v516_v50  ;;  %v1437_v50 = vshrl.u32 %v3361_v40, 16  ;;  %v3383_v12 = vld [vmem:[%s3020_s16 + $0xa0] sm:$0xff] }
 0x10d   : > { %2848 = vmatmul.msk.bf16.gmra.mxu3 %vm617_vm2, %v1855_v28 }
 0x10e   : > { %v2193_v35 = vadd.f32 %v3141_v54, %v2137_v34  ;;  %2797 = vmatmul.msk.bf16.gmra.mxu2 %vm617_vm2, %v1417_v18  ;;  %v525_v31 = vsel %vm377_vm0, %v520_v21, %v524_v22  ;;  %v1434_v18 = vor.u32 %v1433_v24, %v1430_v23  ;;  %v538_v21 = vshll.u32 %v3383_v12, 16 }
 0x10f   : > { %v1449_v23 = vshll.u32 %v3386_v13, 16 }
 0x110   : > { %v2025_v37 = vpop.f32.mrf.mxu3  ;;  %v745_v38 = vpop.f32.mrf.mxu0  ;;  %v2246_v44 = vmax.f32 %v2193_v35, 0.0  ;;  %v1859_v35 = vsel %vm1822_vm1, %v1856_v55, %v1858_v26 }
 0x111   : > { %v970_v25 = vpop.f32.mrf.mxu1  ;;  %v1657_v45 = vpop.f32.mrf.mxu2 }
 0x112   : > { %v2299_v47 = vpack.c.bf16 %v2246_v44, %v2246_v44  ;;  %v1770_v48 = vadd.f32 %v1657_v45, %v969_v36  ;;  %v971_v63 = vadd.f32 %v970_v25, %v745_v38  ;;  %v1435_v25 = vsel %vm1265_vm3, %v1425_v46, %v1434_v18 }
 0x114   : > { %2353 = vst.msk [vmem:[%s3151_s30 + $0x34] sm:$0xf] %vm2339_vm4, %v2299_v47  ;;  %v2138_v42 = vadd.f32 %v2025_v37, %v1770_v48  ;;  %v526_v48 = vshrl.u32 %v3333_v4, 16 }
 0x116   : > { %v2194_v56 = vadd.f32 %v3141_v54, %v2138_v42 }
 0x118   : > { %v2027_v57 = vpop.f32.mrf.mxu3  ;;  %v748_v58 = vpop.f32.mrf.mxu0  ;;  %v2247_v62 = vmax.f32 %v2194_v56, 0.0 }
 0x119   : > { %v973_v59 = vpop.f32.mrf.mxu1  ;;  %v1659_v1 = vpop.f32.mrf.mxu2 }
 0x11a   : > { %v2300_v2 = vpack.c.bf16 %v2247_v62, %v2247_v62  ;;  %v1771_v3 = vadd.f32 %v1659_v1, %v971_v63  ;;  %v974_v8 = vadd.f32 %v973_v59, %v748_v58  ;;  %v532_v58 = vrot.slane %v530_v49, 1  ;;  %v3411_v49 = vld [vmem:[%s3020_s16 + $0xb0] sm:$0xff] }
 0x11b   : > { %2600 = vmatmul.msk.bf16.gmra.mxu0 %vm617_vm2, %v517_v60  ;;  %v1439_v59 = vrot.slane %v1437_v50, 2  ;;  %v1442_v60 = vrot.slane %v1440_v51, 3  ;;  %v1860_v62 = vrot.slane %v3361_v40, 3 }
 0x11c   : > { %2643 = vmatmul.msk.bf16.gmra.mxu1 %vm617_vm2, %v3283_v61  ;;  %2354 = vst.msk [vmem:[%s3151_s30 + $0x38] sm:$0xf] %vm2339_vm4, %v2300_v2  ;;  %v2139_v6 = vadd.f32 %v2027_v57, %v1771_v3  ;;  %v528_v57 = vor.u32 %v526_v48, %v524_v22  ;;  %v1446_v22 = vshrl.u32 %v3386_v13, 16  ;;  %v3408_v48 = vld [vmem:[%s3020_s16 + $0xa8] sm:$0xff] }
 0x11d   : > { %2849 = vmatmul.msk.bf16.gmra.mxu3 %vm617_vm2, %v1857_v0 }
 0x11e   : > { %v2195_v7 = vadd.f32 %v3141_v54, %v2139_v6  ;;  %2798 = vmatmul.msk.bf16.gmra.mxu2 %vm617_vm2, %v1426_v53  ;;  %v533_v3 = vsel %vm377_vm0, %v528_v57, %v532_v58  ;;  %v1443_v53 = vor.u32 %v1442_v60, %v1439_v59  ;;  %v546_v57 = vshll.u32 %v3408_v48, 16 }
 0x11f   : > { %v1458_v59 = vshll.u32 %v3411_v49, 16 }
 0x120   : > { %v2030_v9 = vpop.f32.mrf.mxu3  ;;  %v750_v11 = vpop.f32.mrf.mxu0  ;;  %v2248_v16 = vmax.f32 %v2195_v7, 0.0  ;;  %v1861_v7 = vsel %vm1822_vm1, %v1858_v26, %v1860_v62 }
 0x121   : > { %v975_v61 = vpop.f32.mrf.mxu1  ;;  %v1662_v17 = vpop.f32.mrf.mxu2 }
 0x122   : > { %v2301_v19 = vpack.c.bf16 %v2248_v16, %v2248_v16  ;;  %v1772_v20 = vadd.f32 %v1662_v17, %v974_v8  ;;  %v976_v34 = vadd.f32 %v975_v61, %v750_v11  ;;  %v1444_v61 = vsel %vm1265_vm3, %v1434_v18, %v1443_v53 }
 0x124   : > { %2355 = vst.msk [vmem:[%s3151_s30 + $0x3c] sm:$0xf] %vm2339_vm4, %v2301_v19  ;;  %v2140_v10 = vadd.f32 %v2030_v9, %v1772_v20  ;;  %v534_v20 = vshrl.u32 %v3358_v39, 16 }
 0x126   : > { %v2196_v27 = vadd.f32 %v3141_v54, %v2140_v10 }
 0x128   : > { %v2032_v28 = vpop.f32.mrf.mxu3  ;;  %v753_v29 = vpop.f32.mrf.mxu0  ;;  %v2249_v33 = vmax.f32 %v2196_v27, 0.0 }
 0x129   : > { %v978_v30 = vpop.f32.mrf.mxu1  ;;  %v1664_v36 = vpop.f32.mrf.mxu2 }
 0x12a   : > { %v2302_v37 = vpack.c.bf16 %v2249_v33, %v2249_v33  ;;  %v1773_v38 = vadd.f32 %v1664_v36, %v976_v34  ;;  %v979_v44 = vadd.f32 %v978_v30, %v753_v29  ;;  %v540_v29 = vrot.slane %v538_v21, 1  ;;  %v3436_v21 = vld [vmem:[%s3020_s16 + $0xb8] sm:$0xff] }
 0x12b   : > { %2601 = vmatmul.msk.bf16.gmra.mxu0 %vm617_vm2, %v525_v31  ;;  %v1448_v30 = vrot.slane %v1446_v22, 2  ;;  %v1451_v31 = vrot.slane %v1449_v23, 3  ;;  %v1862_v33 = vrot.slane %v3386_v13, 3 }
 0x12c   : > { %2644 = vmatmul.msk.bf16.gmra.mxu1 %vm617_vm2, %v3308_v32  ;;  %2356 = vst.msk [vmem:[%s3151_s30 + $0x40] sm:$0xf] %vm2339_vm4, %v2302_v37  ;;  %v2141_v41 = vadd.f32 %v2032_v28, %v1773_v38  ;;  %v536_v28 = vor.u32 %v534_v20, %v532_v58  ;;  %v1455_v58 = vshrl.u32 %v3411_v49, 16  ;;  %v3433_v20 = vld [vmem:[%s3020_s16 + $0xb0] sm:$0xff] }
 0x12d   : > { %2850 = vmatmul.msk.bf16.gmra.mxu3 %vm617_vm2, %v1859_v35 }
 0x12e   : > { %v2197_v43 = vadd.f32 %v3141_v54, %v2141_v41  ;;  %2799 = vmatmul.msk.bf16.gmra.mxu2 %vm617_vm2, %v1435_v25  ;;  %v541_v38 = vsel %vm377_vm0, %v536_v28, %v540_v29  ;;  %v1452_v25 = vor.u32 %v1451_v31, %v1448_v30  ;;  %v554_v28 = vshll.u32 %v3433_v20, 16 }
 0x12f   : > { %v1467_v30 = vshll.u32 %v3436_v21, 16 }
 0x130   : > { %v2035_v45 = vpop.f32.mrf.mxu3  ;;  %v755_v47 = vpop.f32.mrf.mxu0  ;;  %v2250_v52 = vmax.f32 %v2197_v43, 0.0  ;;  %v1863_v43 = vsel %vm1822_vm1, %v1860_v62, %v1862_v33 }
 0x131   : > { %v980_v32 = vpop.f32.mrf.mxu1  ;;  %v1667_v42 = vpop.f32.mrf.mxu2 }
 0x132   : > { %v2303_v55 = vpack.c.bf16 %v2250_v52, %v2250_v52  ;;  %v1774_v56 = vadd.f32 %v1667_v42, %v979_v44  ;;  %v981_v6 = vadd.f32 %v980_v32, %v755_v47  ;;  %v1453_v32 = vsel %vm1265_vm3, %v1443_v53, %v1452_v25 }
 0x134   : > { %2357 = vst.msk [vmem:[%s3151_s30 + $0x44] sm:$0xf] %vm2339_vm4, %v2303_v55  ;;  %v2142_v46 = vadd.f32 %v2035_v45, %v1774_v56  ;;  %v542_v56 = vshrl.u32 %v3383_v12, 16 }
 0x136   : > { %v2198_v63 = vadd.f32 %v3141_v54, %v2142_v46 }
 0x138   : > { %v2037_v0 = vpop.f32.mrf.mxu3  ;;  %v758_v1 = vpop.f32.mrf.mxu0  ;;  %v2251_v5 = vmax.f32 %v2198_v63, 0.0 }
 0x139   : > { %v983_v2 = vpop.f32.mrf.mxu1  ;;  %v1669_v8 = vpop.f32.mrf.mxu2 }
 0x13a   : > { %v2304_v9 = vpack.c.bf16 %v2251_v5, %v2251_v5  ;;  %v1775_v11 = vadd.f32 %v1669_v8, %v981_v6  ;;  %v984_v16 = vadd.f32 %v983_v2, %v758_v1  ;;  %v548_v1 = vrot.slane %v546_v57, 1 }
 0x13b   : > { %2602 = vmatmul.msk.bf16.gmra.mxu0 %vm617_vm2, %v533_v3  ;;  %v1457_v2 = vrot.slane %v1455_v58, 2  ;;  %v1460_v3 = vrot.slane %v1458_v59, 3  ;;  %v1864_v5 = vrot.slane %v3411_v49, 3  ;;  %v3468_v58 = vld [vmem:[%s3632_s2] ss:$0 sm:$0xff] }
 0x13c   : > { %2645 = vmatmul.msk.bf16.gmra.mxu1 %vm617_vm2, %v3333_v4  ;;  %2358 = vst.msk [vmem:[%s3151_s30 + $0x48] sm:$0xf] %vm2339_vm4, %v2304_v9  ;;  %v2143_v14 = vadd.f32 %v2037_v0, %v1775_v11  ;;  %v544_v0 = vor.u32 %v542_v56, %v540_v29  ;;  %v1464_v29 = vshrl.u32 %v3436_v21, 16  ;;  %v3461_v56 = vld [vmem:[%s3020_s16 + $0xc0] sm:$0xff] }
 0x13d   : > { %2851 = vmatmul.msk.bf16.gmra.mxu3 %vm617_vm2, %v1861_v7 }
 0x13e   : > { %v2199_v15 = vadd.f32 %v3141_v54, %v2143_v14  ;;  %2800 = vmatmul.msk.bf16.gmra.mxu2 %vm617_vm2, %v1444_v61  ;;  %v549_v11 = vsel %vm377_vm0, %v544_v0, %v548_v1  ;;  %v1461_v61 = vor.u32 %v1460_v3, %v1457_v2  ;;  %v1476_v2 = vshll.u32 %v3461_v56, 16 }
 0x140   : > { %v2040_v17 = vpop.f32.mrf.mxu3  ;;  %v760_v19 = vpop.f32.mrf.mxu0  ;;  %v2252_v24 = vmax.f32 %v2199_v15, 0.0  ;;  %v1865_v15 = vsel %vm1822_vm1, %v1862_v33, %v1864_v5 }
 0x141   : > { %v985_v4 = vpop.f32.mrf.mxu1  ;;  %v1672_v10 = vpop.f32.mrf.mxu2 }
 0x142   : > { %v2305_v26 = vpack.c.bf16 %v2252_v24, %v2252_v24  ;;  %v1776_v27 = vadd.f32 %v1672_v10, %v984_v16  ;;  %v986_v41 = vadd.f32 %v985_v4, %v760_v19  ;;  %v1462_v4 = vsel %vm1265_vm3, %v1452_v25, %v1461_v61 }
 0x144   : > { %2359 = vst.msk [vmem:[%s3151_s30 + $0x4c] sm:$0xf] %vm2339_vm4, %v2305_v26  ;;  %v2144_v18 = vadd.f32 %v2040_v17, %v1776_v27  ;;  %v550_v27 = vshrl.u32 %v3408_v48, 16 }
 0x146   : > { %v2200_v34 = vadd.f32 %v3141_v54, %v2144_v18 }
 0x148   : > { %v2042_v35 = vpop.f32.mrf.mxu3  ;;  %v763_v36 = vpop.f32.mrf.mxu0  ;;  %v2253_v40 = vmax.f32 %v2200_v34, 0.0 }
 0x149   : > { %v988_v37 = vpop.f32.mrf.mxu1  ;;  %v1674_v44 = vpop.f32.mrf.mxu2 }
 0x14a   : > { %v2306_v45 = vpack.c.bf16 %v2253_v40, %v2253_v40  ;;  %v1777_v47 = vadd.f32 %v1674_v44, %v986_v41  ;;  %v989_v52 = vadd.f32 %v988_v37, %v763_v36  ;;  %v556_v36 = vrot.slane %v554_v28, 1  ;;  %v3491_v28 = vld [vmem:[%s3020_s16 + $0xc8] sm:$0xff] }
 0x14b   : > { %2603 = vmatmul.msk.bf16.gmra.mxu0 %vm617_vm2, %v541_v38  ;;  %v1466_v37 = vrot.slane %v1464_v29, 2  ;;  %v1469_v38 = vrot.slane %v1467_v30, 3  ;;  %v1866_v40 = vrot.slane %v3436_v21, 3 }
 0x14c   : > { %2646 = vmatmul.msk.bf16.gmra.mxu1 %vm617_vm2, %v3358_v39  ;;  %2360 = vst.msk [vmem:[%s3151_s30 + $0x50] sm:$0xf] %vm2339_vm4, %v2306_v45  ;;  %v2145_v50 = vadd.f32 %v2042_v35, %v1777_v47  ;;  %v552_v35 = vor.u32 %v550_v27, %v548_v1  ;;  %v1473_v1 = vshrl.u32 %v3461_v56, 16  ;;  %v3488_v27 = vld [vmem:[%s3020_s16 + $0xc0] sm:$0xff] }
 0x14d   : > { %2852 = vmatmul.msk.bf16.gmra.mxu3 %vm617_vm2, %v1863_v43 }
 0x14e   : > { %v2201_v51 = vadd.f32 %v3141_v54, %v2145_v50  ;;  %2801 = vmatmul.msk.bf16.gmra.mxu2 %vm617_vm2, %v1453_v32  ;;  %v557_v47 = vsel %vm377_vm0, %v552_v35, %v556_v36  ;;  %v1470_v32 = vor.u32 %v1469_v38, %v1466_v37  ;;  %v570_v35 = vshll.u32 %v3488_v27, 16 }
 0x14f   : > { %v1485_v37 = vshll.u32 %v3491_v28, 16 }
 0x150   : > { %v2045_v42 = vpop.f32.mrf.mxu3  ;;  %v765_v55 = vpop.f32.mrf.mxu0  ;;  %v2254_v60 = vmax.f32 %v2201_v51, 0.0  ;;  %v1867_v51 = vsel %vm1822_vm1, %v1864_v5, %v1866_v40 }
 0x151   : > { %v990_v39 = vpop.f32.mrf.mxu1  ;;  %v1677_v46 = vpop.f32.mrf.mxu2 }
 0x152   : > { %v2307_v62 = vpack.c.bf16 %v2254_v60, %v2254_v60  ;;  %v1778_v63 = vadd.f32 %v1677_v46, %v989_v52  ;;  %v991_v14 = vadd.f32 %v990_v39, %v765_v55  ;;  %v3458_v39 = vld [vmem:[%s3020_s16 + $0xb8] sm:$0xff] }
 0x153   : > { %v562_v0 = vshll.u32 %v3458_v39, 16 }
 0x154   : > { %2361 = vst.msk [vmem:[%s3151_s30 + $0x54] sm:$0xf] %vm2339_vm4, %v2307_v62  ;;  %v2146_v53 = vadd.f32 %v2045_v42, %v1778_v63  ;;  %v558_v63 = vshrl.u32 %v3433_v20, 16 }
 0x156   : > { %v2202_v6 = vadd.f32 %v3141_v54, %v2146_v53 }
 0x158   : > { %v2047_v7 = vpop.f32.mrf.mxu3  ;;  %v768_v8 = vpop.f32.mrf.mxu0  ;;  %v2255_v13 = vmax.f32 %v2202_v6, 0.0 }
 0x159   : > { %v993_v9 = vpop.f32.mrf.mxu1  ;;  %v1679_v16 = vpop.f32.mrf.mxu2 }
 0x15a   : > { %v2308_v17 = vpack.c.bf16 %v2255_v13, %v2255_v13  ;;  %v1779_v19 = vadd.f32 %v1679_v16, %v991_v14  ;;  %v994_v24 = vadd.f32 %v993_v9, %v768_v8  ;;  %v564_v8 = vrot.slane %v562_v0, 1  ;;  %v3516_v0 = vld [vmem:[%s3020_s16 + $0xd0] sm:$0xff] }
 0x15b   : > { %2604 = vmatmul.msk.bf16.gmra.mxu0 %vm617_vm2, %v549_v11  ;;  %v1475_v9 = vrot.slane %v1473_v1, 2  ;;  %v1478_v11 = vrot.slane %v1476_v2, 3  ;;  %v1868_v13 = vrot.slane %v3461_v56, 3 }
 0x15c   : > { %2647 = vmatmul.msk.bf16.gmra.mxu1 %vm617_vm2, %v3383_v12  ;;  %2362 = vst.msk [vmem:[%s3151_s30 + $0x58] sm:$0xf] %vm2339_vm4, %v2308_v17  ;;  %v2147_v22 = vadd.f32 %v2047_v7, %v1779_v19  ;;  %v560_v7 = vor.u32 %v558_v63, %v556_v36  ;;  %v1482_v36 = vshrl.u32 %v3491_v28, 16  ;;  %v3513_v63 = vld [vmem:[%s3020_s16 + $0xc8] sm:$0xff] }
 0x15d   : > { %2853 = vmatmul.msk.bf16.gmra.mxu3 %vm617_vm2, %v1865_v15 }
 0x15e   : > { %v2203_v23 = vadd.f32 %v3141_v54, %v2147_v22  ;;  %2802 = vmatmul.msk.bf16.gmra.mxu2 %vm617_vm2, %v1462_v4  ;;  %v565_v19 = vsel %vm377_vm0, %v560_v7, %v564_v8  ;;  %v1479_v4 = vor.u32 %v1478_v11, %v1475_v9  ;;  %v578_v7 = vshll.u32 %v3513_v63, 16 }
 0x15f   : > { %v1494_v9 = vshll.u32 %v3516_v0, 16 }
 0x160   : > { %v2050_v10 = vpop.f32.mrf.mxu3  ;;  %v770_v26 = vpop.f32.mrf.mxu0  ;;  %v2256_v31 = vmax.f32 %v2203_v23, 0.0  ;;  %v1869_v23 = vsel %vm1822_vm1, %v1866_v40, %v1868_v13 }
 0x161   : > { %v995_v12 = vpop.f32.mrf.mxu1  ;;  %v1682_v18 = vpop.f32.mrf.mxu2 }
 0x162   : > { %v2309_v33 = vpack.c.bf16 %v2256_v31, %v2256_v31  ;;  %v1780_v34 = vadd.f32 %v1682_v18, %v994_v24  ;;  %v996_v50 = vadd.f32 %v995_v12, %v770_v26  ;;  %v1480_v12 = vsel %vm1265_vm3, %v1470_v32, %v1479_v4 }
 0x164   : > { %2363 = vst.msk [vmem:[%s3151_s30 + $0x5c] sm:$0xf] %vm2339_vm4, %v2309_v33  ;;  %v2148_v25 = vadd.f32 %v2050_v10, %v1780_v34  ;;  %v566_v34 = vshrl.u32 %v3458_v39, 16 }
 0x166   : > { %v2204_v41 = vadd.f32 %v3141_v54, %v2148_v25  ;;  %v1471_v54 = vsel %vm1265_vm3, %v1461_v61, %v1470_v32 }
 0x168   : > { %v2052_v43 = vpop.f32.mrf.mxu3  ;;  %v773_v44 = vpop.f32.mrf.mxu0  ;;  %v2257_v49 = vmax.f32 %v2204_v41, 0.0 }
 0x169   : > { %v998_v45 = vpop.f32.mrf.mxu1  ;;  %v1684_v52 = vpop.f32.mrf.mxu2 }
 0x16a   : > { %v2310_v42 = vpack.c.bf16 %v2257_v49, %v2257_v49  ;;  %v1781_v55 = vadd.f32 %v1684_v52, %v996_v50  ;;  %v999_v60 = vadd.f32 %v998_v45, %v773_v44  ;;  %v572_v44 = vrot.slane %v570_v35, 1 }
 0x16b   : > { %2605 = vmatmul.msk.bf16.gmra.mxu0 %vm617_vm2, %v557_v47  ;;  %v1484_v45 = vrot.slane %v1482_v36, 2  ;;  %v1487_v47 = vrot.slane %v1485_v37, 3  ;;  %v1870_v49 = vrot.slane %v3491_v28, 3 }
 0x16c   : > { %2648 = vmatmul.msk.bf16.gmra.mxu1 %vm617_vm2, %v3408_v48  ;;  %2364 = vst.msk [vmem:[%s3151_s30 + $0x60] sm:$0xf] %vm2339_vm4, %v2310_v42  ;;  %v2149_v57 = vadd.f32 %v2052_v43, %v1781_v55  ;;  %v568_v43 = vor.u32 %v566_v34, %v564_v8  ;;  %v1491_v8 = vshrl.u32 %v3516_v0, 16 }
 0x16d   : > { %2854 = vmatmul.msk.bf16.gmra.mxu3 %vm617_vm2, %v1867_v51 }
 0x16e   : > { %v2205_v59 = vadd.f32 %v3468_v58, %v2149_v57  ;;  %2803 = vmatmul.msk.bf16.gmra.mxu2 %vm617_vm2, %v1471_v54  ;;  %v573_v55 = vsel %vm377_vm0, %v568_v43, %v572_v44  ;;  %v1488_v54 = vor.u32 %v1487_v47, %v1484_v45 }
 0x170   : > { %v2055_v48 = vpop.f32.mrf.mxu3  ;;  %v775_v46 = vpop.f32.mrf.mxu0  ;;  %v2258_v3 = vmax.f32 %v2205_v59, 0.0  ;;  %v1871_v59 = vsel %vm1822_vm1, %v1868_v13, %v1870_v49 }
 0x171   : > { %v1000_v62 = vpop.f32.mrf.mxu1  ;;  %v1687_v53 = vpop.f32.mrf.mxu2 }
 0x172   : > { %v2311_v5 = vpack.c.bf16 %v2258_v3, %v2258_v3  ;;  %v1782_v6 = vadd.f32 %v1687_v53, %v999_v60  ;;  %v1001_v22 = vadd.f32 %v1000_v62, %v775_v46  ;;  %v1489_v62 = vsel %vm1265_vm3, %v1479_v4, %v1488_v54 }
 0x174   : > { %2365 = vst.msk [vmem:[%s3151_s30 + $0x64] sm:$0xf] %vm2339_vm4, %v2311_v5  ;;  %v2150_v61 = vadd.f32 %v2055_v48, %v1782_v6  ;;  %v574_v6 = vshrl.u32 %v3488_v27, 16 }
 0x176   : > { %v2206_v14 = vadd.f32 %v3468_v58, %v2150_v61 }
 0x178   : > { %v2057_v15 = vpop.f32.mrf.mxu3  ;;  %v778_v16 = vpop.f32.mrf.mxu0  ;;  %v2259_v21 = vmax.f32 %v2206_v14, 0.0 }
 0x179   : > { %v1003_v17 = vpop.f32.mrf.mxu1  ;;  %v1689_v24 = vpop.f32.mrf.mxu2 }
 0x17a   : > { %v2312_v10 = vpack.c.bf16 %v2259_v21, %v2259_v21  ;;  %v1783_v26 = vadd.f32 %v1689_v24, %v1001_v22  ;;  %v1004_v31 = vadd.f32 %v1003_v17, %v778_v16  ;;  %v580_v16 = vrot.slane %v578_v7, 1  ;;  %v234_v22 = vld [vmem:[%s3020_s16 + $0xd0] sm:$0x7] }
 0x17b   : > { %2606 = vmatmul.msk.bf16.gmra.mxu0 %vm617_vm2, %v565_v19  ;;  %v1493_v17 = vrot.slane %v1491_v8, 2  ;;  %v1496_v19 = vrot.slane %v1494_v9, 3  ;;  %v1872_v21 = vrot.slane %v3516_v0, 3 }
 0x17c   : > { %2649 = vmatmul.msk.bf16.gmra.mxu1 %vm617_vm2, %v3433_v20  ;;  %2366 = vst.msk [vmem:[%s3151_s30 + $0x68] sm:$0xf] %vm2339_vm4, %v2312_v10  ;;  %v2151_v29 = vadd.f32 %v2057_v15, %v1783_v26  ;;  %v576_v15 = vor.u32 %v574_v6, %v572_v44 }
 0x17d   : > { %2855 = vmatmul.msk.bf16.gmra.mxu3 %vm617_vm2, %v1869_v23  ;;  %v1497_v28 = vor.u32 %v1496_v19, %v1493_v17  ;;  %v225_v17 = vld [vmem:[%s3020_s16 + $0xd0] sm:$0x3] }
 0x17e   : > { %v2207_v30 = vadd.f32 %v3468_v58, %v2151_v29  ;;  %2804 = vmatmul.msk.bf16.gmra.mxu2 %vm617_vm2, %v1480_v12  ;;  %v581_v12 = vsel %vm377_vm0, %v576_v15, %v580_v16  ;;  %v349_v29 = vunpack.c.l.b16 %v234_v22 }
 0x17f   : > { %v1498_v37 = vsel %vm1265_vm3, %v1488_v54, %v1497_v28 }
 0x180   : > { %v2060_v18 = vpop.f32.mrf.mxu3  ;;  %v780_v33 = vpop.f32.mrf.mxu0  ;;  %v2260_v38 = vmax.f32 %v2207_v30, 0.0 }
 0x181   : > { %v1005_v20 = vpop.f32.mrf.mxu1  ;;  %v1692_v25 = vpop.f32.mrf.mxu2 }
 0x182   : > { %v2313_v40 = vpack.c.bf16 %v2260_v38, %v2260_v38  ;;  %v1784_v41 = vadd.f32 %v1692_v25, %v1004_v31  ;;  %v1006_v57 = vadd.f32 %v1005_v20, %v780_v33  ;;  %v2764_v33 = vld [vmem:[%s3020_s16 + $0xd8] sm:$0xf]  ;;  %v2921_v20 = vld [vmem:[%s3020_s16 + $0xd8] sm:$0x10]  ;;  %v376_v38 = vpack.c.b16 %v349_v29, %v349_v29 }
 0x183   : > { %v3540_v25 = vor.u32 %v2921_v20, %v2764_v33 }
 0x184   : > { %2367 = vst.msk [vmem:[%s3151_s30 + $0x6c] sm:$0xf] %vm2339_vm4, %v2313_v40  ;;  %v2152_v32 = vadd.f32 %v2060_v18, %v1784_v41  ;;  %v1873_v18 = vsel %vm1822_vm1, %v1870_v49, %v1872_v21  ;;  %v590_v22 = vshrl.u32 %v376_v38, 16 }
 0x185   : > { %v1500_v49 = vshrl.u32 %v3540_v25, 16 }
 0x186   : > { %v2208_v50 = vadd.f32 %v3468_v58, %v2152_v32  ;;  %v586_v32 = vshll.u32 %v376_v38, 16 }
 0x188   : > { %v2062_v51 = vpop.f32.mrf.mxu3  ;;  %v783_v52 = vpop.f32.mrf.mxu0  ;;  %v2261_v56 = vmax.f32 %v2208_v50, 0.0  ;;  %v1503_v50 = vshll.u32 %v3540_v25, 16 }
 0x189   : > { %v1008_v42 = vpop.f32.mrf.mxu1  ;;  %v1694_v60 = vpop.f32.mrf.mxu2 }
 0x18a   : > { %v2314_v48 = vpack.c.bf16 %v2261_v56, %v2261_v56  ;;  %v1785_v46 = vadd.f32 %v1694_v60, %v1006_v57  ;;  %v1009_v3 = vadd.f32 %v1008_v42, %v783_v52  ;;  %v588_v56 = vrot.slane %v586_v32, 1 }
 0x18b   : > { %2607 = vmatmul.msk.bf16.gmra.mxu0 %vm617_vm2, %v573_v55  ;;  %v1502_v57 = vrot.slane %v1500_v49, 2 }
 0x18c   : > { %2650 = vmatmul.msk.bf16.gmra.mxu1 %vm617_vm2, %v3458_v39  ;;  %2368 = vst.msk [vmem:[%s3151_s30 + $0x70] sm:$0xf] %vm2339_vm4, %v2314_v48  ;;  %v2153_v1 = vadd.f32 %v2062_v51, %v1785_v46  ;;  %v1874_v48 = vrot.slane %v3540_v25, 3 }
 0x18d   : > { %2856 = vmatmul.msk.bf16.gmra.mxu3 %vm617_vm2, %v1871_v59  ;;  %v1505_v59 = vrot.slane %v1503_v50, 3 }
 0x18e   : > { %v2209_v2 = vadd.f32 %v3468_v58, %v2153_v1  ;;  %2805 = vmatmul.msk.bf16.gmra.mxu2 %vm617_vm2, %v1489_v62 }
 0x190   : > { %v2065_v53 = vpop.f32.mrf.mxu3  ;;  %v785_v5 = vpop.f32.mrf.mxu0  ;;  %v2262_v11 = vmax.f32 %v2209_v2, 0.0 }
 0x191   : > { %v1010_v39 = vpop.f32.mrf.mxu1  ;;  %v1697_v61 = vpop.f32.mrf.mxu2 }
 0x192   : > { %v2315_v13 = vpack.c.bf16 %v2262_v11, %v2262_v11  ;;  %v1786_v14 = vadd.f32 %v1697_v61, %v1009_v3  ;;  %v1011_v31 = vadd.f32 %v1010_v39, %v785_v5  ;;  %v1506_v3 = vor.u32 %v1505_v59, %v1502_v57 }
 0x193   : > { %v1875_v39 = vsel %vm1822_vm1, %v1872_v21, %v1874_v48 }
 0x194   : > { %2369 = vst.msk [vmem:[%s3151_s30 + $0x74] sm:$0xf] %vm2339_vm4, %v2315_v13  ;;  %v2154_v4 = vadd.f32 %v2065_v53, %v1786_v14  ;;  %v1507_v9 = vsel %vm1265_vm3, %v1497_v28, %v1506_v3 }
 0x196   : > { %v2210_v23 = vadd.f32 %v3468_v58, %v2154_v4 }
 0x198   : > { %v2067_v24 = vpop.f32.mrf.mxu3  ;;  %v788_v10 = vpop.f32.mrf.mxu0  ;;  %v2263_v30 = vmax.f32 %v2210_v23, 0.0  ;;  %v843_v23 = vunpack.c.l.b16 %v225_v17 }
 0x199   : > { %v1013_v26 = vpop.f32.mrf.mxu1  ;;  %v1699_v34 = vpop.f32.mrf.mxu2 }
 0x19a   : > { %v2316_v35 = vpack.c.bf16 %v2263_v30, %v2263_v30  ;;  %v1787_v36 = vadd.f32 %v1699_v34, %v1011_v31  ;;  %v1014_v43 = vadd.f32 %v1013_v26, %v788_v10  ;;  %v844_v28 = vpack.c.b16 %v843_v23, %v843_v23 }
 0x19b   : > { %2608 = vmatmul.msk.bf16.gmra.mxu0 %vm617_vm2, %v581_v12  ;;  %v592_v12 = vor.u32 %v590_v22, %v588_v56 }
 0x19c   : > { %2651 = vmatmul.msk.bf16.gmra.mxu1 %vm617_vm2, %v3488_v27  ;;  %2370 = vst.msk [vmem:[%s3151_s30 + $0x78] sm:$0xf] %vm2339_vm4, %v2316_v35  ;;  %v2155_v40 = vadd.f32 %v2067_v24, %v1787_v36  ;;  %v582_v27 = vshrl.u32 %v3513_v63, 16 }
 0x19d   : > { %2857 = vmatmul.msk.bf16.gmra.mxu3 %vm617_vm2, %v1873_v18 }
 0x19e   : > { %v2211_v41 = vadd.f32 %v3468_v58, %v2155_v40  ;;  %2806 = vmatmul.msk.bf16.gmra.mxu2 %vm617_vm2, %v1498_v37  ;;  %v584_v54 = vor.u32 %v582_v27, %v580_v16 }
 0x1a0   : > { %v2070_v44 = vpop.f32.mrf.mxu3  ;;  %v790_v45 = vpop.f32.mrf.mxu0  ;;  %v2264_v51 = vmax.f32 %v2211_v41, 0.0  ;;  %v589_v2 = vsel %vm377_vm0, %v584_v54, %v588_v56 }
 0x1a1   : > { %v1015_v47 = vpop.f32.mrf.mxu1  ;;  %v1702_v52 = vpop.f32.mrf.mxu2 }
 0x1a2   : > { %v2317_v42 = vpack.c.bf16 %v2264_v51, %v2264_v51  ;;  %v1788_v55 = vadd.f32 %v1702_v52, %v1014_v43  ;;  %v1016_v5 = vadd.f32 %v1015_v47, %v790_v45 }
 0x1a4   : > { %2371 = vst.msk [vmem:[%s3151_s30 + $0x7c] sm:$0xf] %vm2339_vm4, %v2317_v42  ;;  %v2156_v60 = vadd.f32 %v2070_v44, %v1788_v55 }
 0x1a6   : > { %v2212_v46 = vadd.f32 %v3468_v58, %v2156_v60 }
 0x1a8   : > { %v2072_v62 = vpop.f32.mrf.mxu3  ;;  %v793_v0 = vpop.f32.mrf.mxu0  ;;  %v2265_v53 = vmax.f32 %v2212_v46, 0.0 }
 0x1a9   : > { %v1018_v1 = vpop.f32.mrf.mxu1  ;;  %v1704_v6 = vpop.f32.mrf.mxu2 }
 0x1aa   : > { %v2318_v7 = vpack.c.bf16 %v2265_v53, %v2265_v53  ;;  %v1789_v8 = vadd.f32 %v1704_v6, %v1016_v5  ;;  %v1019_v13 = vadd.f32 %v1018_v1, %v793_v0 }
 0x1ab   : > { %2609 = vmatmul.msk.bf16.gmra.mxu0 %vm617_vm2, %v589_v2 }
 0x1ac   : > { %2652 = vmatmul.msk.bf16.gmra.mxu1 %vm617_vm2, %v3513_v63  ;;  %2372 = vst.msk [vmem:[%s3151_s30 + $0x80] sm:$0xf] %vm2339_vm4, %v2318_v7  ;;  %v2157_v11 = vadd.f32 %v2072_v62, %v1789_v8 }
 0x1ad   : > { %2858 = vmatmul.msk.bf16.gmra.mxu3 %vm617_vm2, %v1875_v39 }
 0x1ae   : > { %v2213_v61 = vadd.f32 %v3468_v58, %v2157_v11  ;;  %2807 = vmatmul.msk.bf16.gmra.mxu2 %vm617_vm2, %v1507_v9 }
 0x1b0   : > { %v2075_v14 = vpop.f32.mrf.mxu3  ;;  %v795_v15 = vpop.f32.mrf.mxu0  ;;  %v2266_v19 = vmax.f32 %v2213_v61, 0.0 }
 0x1b1   : > { %v1020_v16 = vpop.f32.mrf.mxu1  ;;  %v1707_v4 = vpop.f32.mrf.mxu2 }
 0x1b2   : > { %v2319_v63 = vpack.c.bf16 %v2266_v19, %v2266_v19  ;;  %v1790_v21 = vadd.f32 %v1707_v4, %v1019_v13  ;;  %v1021_v18 = vadd.f32 %v1020_v16, %v795_v15 }
 0x1b4   : > { %2373 = vst.msk [vmem:[%s3151_s30 + $0x84] sm:$0xf] %vm2339_vm4, %v2319_v63  ;;  %v2158_v24 = vadd.f32 %v2075_v14, %v1790_v21 }
 0x1b6   : > { %v2214_v10 = vadd.f32 %v3468_v58, %v2158_v24 }
 0x1b8   : > { %v2077_v26 = vpop.f32.mrf.mxu3  ;;  %v798_v29 = vpop.f32.mrf.mxu0  ;;  %v2267_v31 = vmax.f32 %v2214_v10, 0.0 }
 0x1b9   : > { %v1023_v30 = vpop.f32.mrf.mxu1  ;;  %v1709_v33 = vpop.f32.mrf.mxu2 }
 0x1ba   : > { %v2320_v20 = vpack.c.bf16 %v2267_v31, %v2267_v31  ;;  %v1791_v34 = vadd.f32 %v1709_v33, %v1021_v18  ;;  %v1024_v37 = vadd.f32 %v1023_v30, %v798_v29 }
 0x1bb   : > { %2610 = vmatmul.msk.bf16.gmra.mxu0 %vm617_vm2, %v592_v12 }
 0x1bc   : > { %2653 = vmatmul.msk.bf16.gmra.mxu1 %vm617_vm2, %v844_v28  ;;  %2374 = vst.msk [vmem:[%s3151_s30 + $0x88] sm:$0xf] %vm2339_vm4, %v2320_v20  ;;  %v2159_v35 = vadd.f32 %v2077_v26, %v1791_v34 }
 0x1bd   : > { %2859 = vmatmul.msk.bf16.gmra.mxu3 %vm617_vm2, %v1874_v48 }
 0x1be   : > { %v2215_v36 = vadd.f32 %v3468_v58, %v2159_v35  ;;  %2808 = vmatmul.msk.bf16.gmra.mxu2 %vm617_vm2, %v1506_v3 }
 0x1c0   : > { %v2080_v38 = vpop.f32.mrf.mxu3  ;;  %v800_v25 = vpop.f32.mrf.mxu0  ;;  %v2268_v41 = vmax.f32 %v2215_v36, 0.0 }
 0x1c1   : > { %v1025_v40 = vpop.f32.mrf.mxu1  ;;  %v1712_v43 = vpop.f32.mrf.mxu2 }
 0x1c2   : > { %v2321_v44 = vpack.c.bf16 %v2268_v41, %v2268_v41  ;;  %v1792_v45 = vadd.f32 %v1712_v43, %v1024_v37  ;;  %v1026_v52 = vadd.f32 %v1025_v40, %v800_v25 }
 0x1c4   : > { %2375 = vst.msk [vmem:[%s3151_s30 + $0x8c] sm:$0xf] %vm2339_vm4, %v2321_v44  ;;  %v2160_v47 = vadd.f32 %v2080_v38, %v1792_v45 }
 0x1c6   : > { %v2216_v27 = vadd.f32 %v3468_v58, %v2160_v47 }
 0x1c8   : > { %v2082_v32 = vpop.f32.mrf.mxu3  ;;  %v803_v49 = vpop.f32.mrf.mxu0  ;;  %v2269_v51 = vmax.f32 %v2216_v27, 0.0 }
 0x1c9   : > { %v1028_v50 = vpop.f32.mrf.mxu1  ;;  %v1714_v42 = vpop.f32.mrf.mxu2 }
 0x1ca   : > { %v2322_v55 = vpack.c.bf16 %v2269_v51, %v2269_v51  ;;  %v1793_v54 = vadd.f32 %v1714_v42, %v1026_v52  ;;  %v1029_v59 = vadd.f32 %v1028_v50, %v803_v49 }
 0x1cc   : > { %2376 = vst.msk [vmem:[%s3151_s30 + $0x90] sm:$0xf] %vm2339_vm4, %v2322_v55  ;;  %v2161_v56 = vadd.f32 %v2082_v32, %v1793_v54 }
 0x1ce   : > { %v2217_v57 = vadd.f32 %v3468_v58, %v2161_v56 }
 0x1d0   : > { %v2085_v60 = vpop.f32.mrf.mxu3  ;;  %v805_v48 = vpop.f32.mrf.mxu0  ;;  %v2270_v62 = vmax.f32 %v2217_v57, 0.0 }
 0x1d1   : > { %v1030_v46 = vpop.f32.mrf.mxu1  ;;  %v1717_v0 = vpop.f32.mrf.mxu2 }
 0x1d2   : > { %v2323_v1 = vpack.c.bf16 %v2270_v62, %v2270_v62  ;;  %v1794_v2 = vadd.f32 %v1717_v0, %v1029_v59  ;;  %v1031_v8 = vadd.f32 %v1030_v46, %v805_v48 }
 0x1d4   : > { %2377 = vst.msk [vmem:[%s3151_s30 + $0x94] sm:$0xf] %vm2339_vm4, %v2323_v1  ;;  %v2162_v3 = vadd.f32 %v2085_v60, %v1794_v2 }
 0x1d6   : > { %v2218_v53 = vadd.f32 %v3468_v58, %v2162_v3 }
 0x1d8   : > { %v2087_v5 = vpop.f32.mrf.mxu3  ;;  %v808_v39 = vpop.f32.mrf.mxu0  ;;  %v2271_v7 = vmax.f32 %v2218_v53, 0.0 }
 0x1d9   : > { %v1033_v6 = vpop.f32.mrf.mxu1  ;;  %v1719_v9 = vpop.f32.mrf.mxu2 }
 0x1da   : > { %v2324_v11 = vpack.c.bf16 %v2271_v7, %v2271_v7  ;;  %v1795_v61 = vadd.f32 %v1719_v9, %v1031_v8  ;;  %v1034_v15 = vadd.f32 %v1033_v6, %v808_v39 }
 0x1dc   : > { %2378 = vst.msk [vmem:[%s3151_s30 + $0x98] sm:$0xf] %vm2339_vm4, %v2324_v11  ;;  %v2163_v13 = vadd.f32 %v2087_v5, %v1795_v61 }
 0x1de   : > { %v2219_v14 = vadd.f32 %v3468_v58, %v2163_v13 }
 0x1e0   : > { %v2090_v16 = vpop.f32.mrf.mxu3  ;;  %v810_v17 = vpop.f32.mrf.mxu0  ;;  %v2272_v4 = vmax.f32 %v2219_v14, 0.0 }
 0x1e1   : > { %v1035_v19 = vpop.f32.mrf.mxu1  ;;  %v1722_v63 = vpop.f32.mrf.mxu2 }
 0x1e2   : > { %v2325_v21 = vpack.c.bf16 %v2272_v4, %v2272_v4  ;;  %v1796_v22 = vadd.f32 %v1722_v63, %v1034_v15  ;;  %v1036_v29 = vadd.f32 %v1035_v19, %v810_v17 }
 0x1e4   : > { %2379 = vst.msk [vmem:[%s3151_s30 + $0x9c] sm:$0xf] %vm2339_vm4, %v2325_v21  ;;  %v2164_v23 = vadd.f32 %v2090_v16, %v1796_v22 }
 0x1e6   : > { %v2220_v24 = vadd.f32 %v3468_v58, %v2164_v23 }
 0x1e8   : > { %v2092_v10 = vpop.f32.mrf.mxu3  ;;  %v813_v26 = vpop.f32.mrf.mxu0  ;;  %v2273_v28 = vmax.f32 %v2220_v24, 0.0 }
 0x1e9   : > { %v1038_v12 = vpop.f32.mrf.mxu1  ;;  %v1724_v30 = vpop.f32.mrf.mxu2 }
 0x1ea   : > { %v2326_v31 = vpack.c.bf16 %v2273_v28, %v2273_v28  ;;  %v1797_v18 = vadd.f32 %v1724_v30, %v1036_v29  ;;  %v1039_v34 = vadd.f32 %v1038_v12, %v813_v26 }
 0x1ec   : > { %2380 = vst.msk [vmem:[%s3151_s30 + $0xa0] sm:$0xf] %vm2339_vm4, %v2326_v31  ;;  %v2165_v33 = vadd.f32 %v2092_v10, %v1797_v18 }
 0x1ee   : > { %v2221_v20 = vadd.f32 %v3468_v58, %v2165_v33 }
 0x1f0   : > { %v2095_v35 = vpop.f32.mrf.mxu3  ;;  %v815_v36 = vpop.f32.mrf.mxu0  ;;  %v2274_v38 = vmax.f32 %v2221_v20, 0.0 }
 0x1f1   : > { %v1040_v37 = vpop.f32.mrf.mxu1  ;;  %v1727_v25 = vpop.f32.mrf.mxu2 }
 0x1f2   : > { %v2327_v40 = vpack.c.bf16 %v2274_v38, %v2274_v38  ;;  %v1798_v41 = vadd.f32 %v1727_v25, %v1039_v34  ;;  %v1041_v49 = vadd.f32 %v1040_v37, %v815_v36 }
 0x1f4   : > { %2381 = vst.msk [vmem:[%s3151_s30 + $0xa4] sm:$0xf] %vm2339_vm4, %v2327_v40  ;;  %v2166_v43 = vadd.f32 %v2095_v35, %v1798_v41 }
 0x1f6   : > { %v2222_v44 = vadd.f32 %v3468_v58, %v2166_v43 }
 0x1f8   : > { %v2097_v45 = vpop.f32.mrf.mxu3  ;;  %v818_v47 = vpop.f32.mrf.mxu0  ;;  %v2275_v32 = vmax.f32 %v2222_v44, 0.0 }
 0x1f9   : > { %v1043_v27 = vpop.f32.mrf.mxu1  ;;  %v1729_v50 = vpop.f32.mrf.mxu2 }
 0x1fa   : > { %v2328_v51 = vpack.c.bf16 %v2275_v32, %v2275_v32  ;;  %v1799_v52 = vadd.f32 %v1729_v50, %v1041_v49  ;;  %v1044_v54 = vadd.f32 %v1043_v27, %v818_v47 }
 0x1fc   : > { %2382 = vst.msk [vmem:[%s3151_s30 + $0xa8] sm:$0xf] %vm2339_vm4, %v2328_v51  ;;  %v2167_v42 = vadd.f32 %v2097_v45, %v1799_v52 }
 0x1fe   : > { %v2223_v55 = vadd.f32 %v3468_v58, %v2167_v42 }
 0x200   : > { %v2100_v56 = vpop.f32.mrf.mxu3  ;;  %v820_v57 = vpop.f32.mrf.mxu0  ;;  %v2276_v60 = vmax.f32 %v2223_v55, 0.0 }
 0x201   : > { %v1045_v59 = vpop.f32.mrf.mxu1  ;;  %v1732_v48 = vpop.f32.mrf.mxu2 }
 0x202   : > { %v2329_v46 = vpack.c.bf16 %v2276_v60, %v2276_v60  ;;  %v1800_v62 = vadd.f32 %v1732_v48, %v1044_v54  ;;  %v1046_v39 = vadd.f32 %v1045_v59, %v820_v57 }
 0x204   : > { %2383 = vst.msk [vmem:[%s3151_s30 + $0xac] sm:$0xf] %vm2339_vm4, %v2329_v46  ;;  %v2168_v0 = vadd.f32 %v2100_v56, %v1800_v62 }
 0x206   : > { %v2224_v1 = vadd.f32 %v3468_v58, %v2168_v0 }
 0x208   : > { %v2102_v2 = vpop.f32.mrf.mxu3  ;;  %v823_v3 = vpop.f32.mrf.mxu0  ;;  %v2277_v5 = vmax.f32 %v2224_v1, 0.0 }
 0x209   : > { %v1048_v53 = vpop.f32.mrf.mxu1  ;;  %v1734_v6 = vpop.f32.mrf.mxu2 }
 0x20a   : > { %v2330_v7 = vpack.c.bf16 %v2277_v5, %v2277_v5  ;;  %v1801_v8 = vadd.f32 %v1734_v6, %v1046_v39  ;;  %v1049_v61 = vadd.f32 %v1048_v53, %v823_v3 }
 0x20c   : > { %2384 = vst.msk [vmem:[%s3151_s30 + $0xb0] sm:$0xf] %vm2339_vm4, %v2330_v7  ;;  %v2169_v9 = vadd.f32 %v2102_v2, %v1801_v8 }
 0x20e   : > { %v2225_v11 = vadd.f32 %v3468_v58, %v2169_v9 }
 0x210   : > { %v2105_v13 = vpop.f32.mrf.mxu3  ;;  %v825_v14 = vpop.f32.mrf.mxu0  ;;  %v2278_v16 = vmax.f32 %v2225_v11, 0.0 }
 0x211   : > { %v1050_v15 = vpop.f32.mrf.mxu1  ;;  %v1737_v17 = vpop.f32.mrf.mxu2 }
 0x212   : > { %v2331_v19 = vpack.c.bf16 %v2278_v16, %v2278_v16  ;;  %v1802_v4 = vadd.f32 %v1737_v17, %v1049_v61  ;;  %v1051_v26 = vadd.f32 %v1050_v15, %v825_v14 }
 0x214   : > { %2385 = vst.msk [vmem:[%s3151_s30 + $0xb4] sm:$0xf] %vm2339_vm4, %v2331_v19  ;;  %v2170_v63 = vadd.f32 %v2105_v13, %v1802_v4 }
 0x216   : > { %v2226_v21 = vadd.f32 %v3468_v58, %v2170_v63 }
 0x218   : > { %v2107_v22 = vpop.f32.mrf.mxu3  ;;  %v828_v23 = vpop.f32.mrf.mxu0  ;;  %v2279_v10 = vmax.f32 %v2226_v21, 0.0 }
 0x219   : > { %v1053_v24 = vpop.f32.mrf.mxu1  ;;  %v1739_v12 = vpop.f32.mrf.mxu2 }
 0x21a   : > { %v2332_v28 = vpack.c.bf16 %v2279_v10, %v2279_v10  ;;  %v1803_v29 = vadd.f32 %v1739_v12, %v1051_v26  ;;  %v1054_v18 = vadd.f32 %v1053_v24, %v828_v23 }
 0x21c   : > { %2386 = vst.msk [vmem:[%s3151_s30 + $0xb8] sm:$0xf] %vm2339_vm4, %v2332_v28  ;;  %v2171_v30 = vadd.f32 %v2107_v22, %v1803_v29 }
 0x21e   : > { %v2227_v31 = vadd.f32 %v3468_v58, %v2171_v30 }
 0x220   : > { %v2110_v33 = vpop.f32.mrf.mxu3  ;;  %v830_v20 = vpop.f32.mrf.mxu0  ;;  %v2280_v35 = vmax.f32 %v2227_v31, 0.0 }
 0x221   : > { %v1055_v34 = vpop.f32.mrf.mxu1  ;;  %v1742_v36 = vpop.f32.mrf.mxu2 }
 0x222   : > { %v2333_v37 = vpack.c.bf16 %v2280_v35, %v2280_v35  ;;  %v1804_v38 = vadd.f32 %v1742_v36, %v1054_v18  ;;  %v1056_v47 = vadd.f32 %v1055_v34, %v830_v20 }
 0x224   : > { %2387 = vst.msk [vmem:[%s3151_s30 + $0xbc] sm:$0xf] %vm2339_vm4, %v2333_v37  ;;  %v2172_v25 = vadd.f32 %v2110_v33, %v1804_v38 }
 0x226   : > { %v2228_v40 = vadd.f32 %v3468_v58, %v2172_v25 }
 0x228   : > { %v2112_v41 = vpop.f32.mrf.mxu3  ;;  %v833_v43 = vpop.f32.mrf.mxu0  ;;  %v2281_v45 = vmax.f32 %v2228_v40, 0.0 }
 0x229   : > { %v1058_v44 = vpop.f32.mrf.mxu1  ;;  %v1744_v27 = vpop.f32.mrf.mxu2 }
 0x22a   : > { %v2334_v32 = vpack.c.bf16 %v2281_v45, %v2281_v45  ;;  %v1805_v49 = vadd.f32 %v1744_v27, %v1056_v47  ;;  %v1059_v52 = vadd.f32 %v1058_v44, %v833_v43 }
 0x22c   : > { %2388 = vst.msk [vmem:[%s3151_s30 + $0xc0] sm:$0xf] %vm2339_vm4, %v2334_v32  ;;  %v2173_v50 = vadd.f32 %v2112_v41, %v1805_v49 }
 0x22e   : > { %v2229_v51 = vadd.f32 %v3468_v58, %v2173_v50 }
 0x230   : > { %v2115_v42 = vpop.f32.mrf.mxu3  ;;  %v835_v55 = vpop.f32.mrf.mxu0  ;;  %v2282_v56 = vmax.f32 %v2229_v51, 0.0 }
 0x231   : > { %v1060_v54 = vpop.f32.mrf.mxu1  ;;  %v1747_v57 = vpop.f32.mrf.mxu2 }
 0x232   : > { %v2335_v59 = vpack.c.bf16 %v2282_v56, %v2282_v56  ;;  %v1806_v60 = vadd.f32 %v1747_v57, %v1059_v52  ;;  %v1061_v3 = vadd.f32 %v1060_v54, %v835_v55 }
 0x234   : > { %2389 = vst.msk [vmem:[%s3151_s30 + $0xc4] sm:$0xf] %vm2339_vm4, %v2335_v59  ;;  %v2174_v48 = vadd.f32 %v2115_v42, %v1806_v60 }
 0x236   : > { %v2230_v46 = vadd.f32 %v3468_v58, %v2174_v48 }
 0x238   : > { %v2117_v62 = vpop.f32.mrf.mxu3  ;;  %v838_v0 = vpop.f32.mrf.mxu0  ;;  %v2283_v2 = vmax.f32 %v2230_v46, 0.0 }
 0x239   : > { %v1063_v1 = vpop.f32.mrf.mxu1  ;;  %v1749_v53 = vpop.f32.mrf.mxu2 }
 0x23a   : > { %v2336_v5 = vpack.c.bf16 %v2283_v2, %v2283_v2  ;;  %v1807_v39 = vadd.f32 %v1749_v53, %v1061_v3  ;;  %v1064_v8 = vadd.f32 %v1063_v1, %v838_v0 }
 0x23c   : > { %2390 = vst.msk [vmem:[%s3151_s30 + $0xc8] sm:$0xf] %vm2339_vm4, %v2336_v5  ;;  %v2175_v6 = vadd.f32 %v2117_v62, %v1807_v39 }
 0x23e   : > { %v2231_v7 = vadd.f32 %v3468_v58, %v2175_v6 }
 0x240   : > { %v2120_v9 = vpop.f32.mrf.mxu3  ;;  %v840_v11 = vpop.f32.mrf.mxu0  ;;  %v2284_v13 = vmax.f32 %v2231_v7, 0.0 }
 0x241   : > { %v1065_v61 = vpop.f32.mrf.mxu1  ;;  %v1752_v14 = vpop.f32.mrf.mxu2 }
 0x242   : > { %v2337_v15 = vpack.c.bf16 %v2284_v13, %v2284_v13  ;;  %v1808_v16 = vadd.f32 %v1752_v14, %v1064_v8 }
 0x244   : > { %2391 = vst.msk [vmem:[%s3151_s30 + $0xcc] sm:$0xf] %vm2339_vm4, %v2337_v15  ;;  %v2176_v17 = vadd.f32 %v2120_v9, %v1808_v16 }
 0x246   : > { %v2232_v19 = vadd.f32 %v3468_v58, %v2176_v17 }
 0x248   : > { %v2122_v4 = vpop.f32.mrf.mxu3  ;;  %v2285_v63 = vmax.f32 %v2232_v19, 0.0 }
 0x249   : > { %v1754_v21 = vpop.f32.mrf.mxu2 }
 0x24a   : > { %v2338_v22 = vpack.c.bf16 %v2285_v63, %v2285_v63 }
 0x24c   : > { %2393 = vst.msk [vmem:[%s3151_s30 + $0xd0] sm:$0x3] %vm2392_vm5, %v2338_v22 }
 0x24d PF: > { %s13_s12 = sadd.s32 1, %s2948_s12  }
 0x24e   : > { %p10_p4 = scmp.ge.s32.totalorder %s13_s12, 4  }
 0x250   :  { %12 = sbr.rel (!%p10_p4) target bundleno = 1 (0x1), region = 65 }

// kernel: qfunction_forward.4
= control target key start
LH: loop header
LB: loop body
LE: loop exit
PB: predicated region body
PF: predicated region fallthrough
CT: control target
= control target key end

     0   :  { %s2874_s18 = smov 0   ;;  %s3464_s0 = inlined_call_operand.vmem [shape: bf16[2,112,128], index: 0, kind: input, shape index: {}]   ;;  %s3465_s1 = inlined_call_operand.vmem [shape: bf16[4,128,64], index: 1, kind: input, shape index: {}]   ;;  %s3466_s2 = inlined_call_operand.vmem [shape: f32[1,64], index: 2, kind: input, shape index: {}]   ;;  %s3467_s3 = inlined_call_operand.vmem [shape: bf16[9,64,64], index: 3, kind: input, shape index: {}]   ;;  %s3468_s4 = inlined_call_operand.vmem [shape: f32[1,64], index: 4, kind: input, shape index: {}]   ;;  %s3469_s5 = inlined_call_operand.vmem [shape: bf16[2,70,64], index: 5, kind: output, shape index: {}]  }
   0x1 LB: > { %s2174_s19 = sadd.s32 4294967295, %s2841_s18   ;;  %p2178_p0 = scmp.ge.s32.totalorder %s2841_s18, 1  ;;  %s2841_s18 = sphi %s2874_s18, %s15_s18  }
   0x2   : > { %p187_p1 = scmp.lt.s32.totalorder %s2841_s18, 3 }
   0x4   : > { %p188_p2 = pnand %p2178_p0, %p187_p1 }
   0x5   : > { %p215_p3 = scmp.lt.s32.totalorder (!%p188_p2), %s2174_s19, 1 }
   0x6   : > { %191 = sbr.rel (%p188_p2) target bundleno = 617 (0x269), region = 40 }
   0xb   : > { %v2728_v0 = vld [vmem:[%s3465_s1 + $0x78] sm:$0xff]  ;;  %v2727_v1 = vld [vmem:[%s3465_s1 + $0x70] sm:$0xff]  ;;  %s3471_s19 = smov (!%p215_p3, %s2174_s19), 1  ;;  %v2726_v4 = vld [vmem:[%s3465_s1 + $0x68] sm:$0xff]  ;;  %vm317_vm0 = vsmask.f32 7424 }
   0xc   : > { %2807 = vmatpush.bf16.msra.mxu1 %v2728_v0  ;;  %2808 = vmatpush.bf16.msra.mxu2 %v2728_v0  ;;  %v2749_v2 = vld [vmem:[%s3465_s1 + $0xf8] sm:$0xff]  ;;  %v2748_v3 = vld [vmem:[%s3465_s1 + $0xf0] sm:$0xff]  ;;  %s2823_s28 = smul.u32 56, %s3471_s19  ;;  %v2747_v5 = vld [vmem:[%s3465_s1 + $0xe8] sm:$0xff]  ;;  %vm751_vm1 = vsmask.f32 6400 }
   0xd   : > { %419 = vmatpush.bf16.msra.mxu0 %v2728_v0  ;;  %859 = vmatpush.bf16.msra.mxu3 %v2749_v2  ;;  %v2725_v8 = vld [vmem:[%s3465_s1 + $0x60] sm:$0xff]  ;;  %v2724_v12 = vld [vmem:[%s3465_s1 + $0x58] sm:$0xff]  ;;  %v2723_v20 = vld [vmem:[%s3465_s1 + $0x50] sm:$0xff]  ;;  %vm613_vm2 = vcmask 1046528   ;;  %vm228_vm3 = vcmask 519168   ;;  %vm1075_vm4 = vcmask 523264  }
   0xe   : > { %s2903_s8 = scalar_lea.vmem %s3464_s0, %s2823_s28  ;;  %v2746_v9 = vld [vmem:[%s3465_s1 + $0xe0] sm:$0xff]  ;;  %v2745_v17 = vld [vmem:[%s3465_s1 + $0xd8] sm:$0xff]  ;;  %v2744_v24 = vld [vmem:[%s3465_s1 + $0xd0] sm:$0xff]  ;;  %vm1988_vm5 = vcmask 1044480   ;;  %vm960_vm6 = vcmask 516096   ;;  %vm1611_vm7 = vcmask 1045504  }
   0xf   : > { %v2909_v6 = vld [vmem:[%s2903_s8 + $0x28] sm:$0xff]   ;;  %v2923_v13 = vld [vmem:[%s2903_s8 + $0x18] sm:$0xff]  ;;  %v2299_v14 = vld [vmem:[%s2903_s8 + $0x4] sm:$0xe]  ;;  %vm1849_vm8 = vsmask.f32 5376 }
  0x10   : > { %2809 = vmatpush.bf16.msra.mxu1 %v2727_v1  ;;  %2810 = vmatpush.bf16.msra.mxu2 %v2727_v1  ;;  %v269_v7 = vld [vmem:[%s2903_s8 + $0x2c] sm:$0x3]  ;;  %v309_v10 = vunpack.c.l.b16 %v2909_v6  ;;  %v2729_v15 = vld [vmem:[%s2903_s8 + $0x4] sm:$0xf0]  ;;  %v2941_v21 = vld [vmem:[%s2903_s8 + $0x20] sm:$0xff]  ;;  %v342_v22 = vshll.u32 %v2923_v13, 16 }
  0x11   : > { %420 = vmatpush.bf16.msra.mxu0 %v2727_v1  ;;  %860 = vmatpush.bf16.msra.mxu3 %v2748_v3  ;;  %v310_v11 = vunpack.c.l.b16 %v269_v7  ;;  %v2933_v18 = vld [vmem:[%s2903_s8 + $0xc] sm:$0xff]  ;;  %v2935_v19 = vor.u32 %v2729_v15, %v2299_v14  ;;  %v2951_v28 = vld [vmem:[%s2903_s8] sm:$0xff]  ;;  %v346_v32 = vshrl.u32 %v2923_v13, 16  ;;  %v350_v33 = vshll.u32 %v2941_v21, 16  ;;  %v2741_v49 = vld [vmem:[%s3465_s1 + $0xb8] sm:$0xff]  ;;  %s2824_s27 = smul.u32 36, %s3471_s19 }
  0x12   : > { %v761_v27 = vshrl.u32 %v2933_v18, 16  ;;  %v764_v29 = vshll.u32 %v2933_v18, 16  ;;  %v2722_v30 = vld [vmem:[%s3465_s1 + $0x48] sm:$0xff]  ;;  %v2957_v31 = vrot.slane %v342_v22, 1  ;;  %v321_v35 = vshll.u32 %v2951_v28, 16  ;;  %v2721_v46 = vld [vmem:[%s3465_s1 + $0x40] sm:$0xff] }
  0x13   : > { %v316_v16 = vpack.c.b16 %v310_v11, %v309_v10  ;;  %v753_v25 = vshrl.u32 %v2935_v19, 16  ;;  %v756_v26 = vshll.u32 %v2935_v19, 16  ;;  %v2962_v34 = vld [vmem:[%s2903_s8 + $0x8] sm:$0xff]  ;;  %v319_v43 = vshrl.u32 %v2951_v28, 16  ;;  %v2720_v50 = vld [vmem:[%s3465_s1 + $0x38] sm:$0xff]  ;;  %v2742_v52 = vld [vmem:[%s3465_s1 + $0xc0] sm:$0xff]  ;;  %s3440_s30 = scalar_lea.vmem %s3469_s5, %s2824_s27 }
  0x14   : > { %2811 = vmatpush.bf16.msra.mxu1 %v2726_v4  ;;  %2812 = vmatpush.bf16.msra.mxu2 %v2726_v4  ;;  %v2743_v38 = vld [vmem:[%s3465_s1 + $0xc8] sm:$0xff]  ;;  %v763_v41 = vrot.slane %v761_v27, 1  ;;  %v766_v42 = vrot.slane %v764_v29, 2  ;;  %v323_v44 = vrot.slane %v321_v35, 1  ;;  %v326_v45 = vshll.u32 %v2962_v34, 16  ;;  %v2740_v58 = vld [vmem:[%s3465_s1 + $0xb0] sm:$0xff] }
  0x15   : > { %421 = vmatpush.bf16.msra.mxu0 %v2726_v4  ;;  %861 = vmatpush.bf16.msra.mxu3 %v2747_v5  ;;  %v358_v23 = vshll.u32 %v316_v16, 16  ;;  %v362_v36 = vshrl.u32 %v316_v16, 16  ;;  %v755_v39 = vrot.slane %v753_v25, 1  ;;  %v758_v40 = vrot.slane %v756_v26, 2  ;;  %v2719_v59 = vld [vmem:[%s3465_s1 + $0x30] sm:$0xff]  ;;  %v2739_v63 = vld [vmem:[%s3465_s1 + $0xa8] sm:$0xff] }
  0x16   : > { %v348_v47 = vor.u32 %v346_v32, %v2957_v31  ;;  %v352_v48 = vrot.slane %v350_v33, 1  ;;  %v767_v54 = vor.u32 %v766_v42, %v763_v41  ;;  %v324_v55 = vor.u32 %v323_v44, %v319_v43  ;;  %v2996_v62 = vld [vmem:[%s2903_s8 + $0x14] sm:$0xff]  ;;  %v2718_v0 = vld [vmem:[%s3465_s1 + $0x28] sm:$0xff]  ;;  %v2738_v5 = vld [vmem:[%s3465_s1 + $0xa0] sm:$0xff] }
  0x17   : > { %v2965_v37 = vrot.slane %v358_v23, 1  ;;  %v759_v53 = vor.u32 %v758_v40, %v755_v39  ;;  %v328_v56 = vrot.slane %v326_v45, 1  ;;  %v770_v1 = vshrl.u32 %v2996_v62, 16  ;;  %v3007_v3 = vld [vmem:[%s2903_s8 + $0x10] sm:$0xff]  ;;  %v2717_v7 = vld [vmem:[%s3465_s1 + $0x20] sm:$0xff]  ;;  %v2737_v15 = vld [vmem:[%s3465_s1 + $0x98] sm:$0xff] }
  0x18   : > { %2813 = vmatpush.bf16.msra.mxu1 %v2725_v8  ;;  %2814 = vmatpush.bf16.msra.mxu2 %v2725_v8  ;;  %v353_v57 = vsel %vm317_vm0, %v348_v47, %v352_v48  ;;  %v773_v2 = vshll.u32 %v2996_v62, 16  ;;  %v354_v4 = vshrl.u32 %v2941_v21, 16  ;;  %v330_v11 = vshrl.u32 %v2962_v34, 16  ;;  %v2716_v16 = vld [vmem:[%s3465_s1 + $0x18] sm:$0xff]  ;;  %v2715_v25 = vld [vmem:[%s3465_s1 + $0x10] sm:$0xff]  ;;  %v2714_v32 = vld [vmem:[%s3465_s1 + $0x8] sm:$0xff] }
  0x19   : > { %422 = vmatpush.bf16.msra.mxu0 %v2725_v8  ;;  %862 = vmatpush.bf16.msra.mxu3 %v2746_v9  ;;  %v364_v51 = vor.u32 %v362_v36, %v2965_v37  ;;  %v768_v60 = vsel %vm751_vm1, %v759_v53, %v767_v54  ;;  %v329_v61 = vsel %vm317_vm0, %v324_v55, %v328_v56  ;;  %v772_v8 = vrot.slane %v770_v1, 1  ;;  %v2732_v29 = vld [vmem:[%s2903_s8 + $0x1c] sm:$0xff]  ;;  %v730_v53 = vld [vmem:[%s2903_s8 + $0x30] sm:$0x7] }
  0x1a   : > { %v775_v9 = vrot.slane %v773_v2, 2  ;;  %v356_v14 = vor.u32 %v354_v4, %v352_v48  ;;  %v779_v33 = vshrl.u32 %v2732_v29, 16  ;;  %v782_v35 = vshll.u32 %v2732_v29, 16  ;;  %v2734_v36 = vld [vmem:[%s3465_s1 + $0x80] sm:$0xff]  ;;  %v565_v2 = vld [vmem:[%s2903_s8 + $0x30] sm:$0x3] }
  0x1b   : > { %v615_v39 = vrot.slane %v2933_v18, 1  ;;  %v338_v42 = vshrl.u32 %v3007_v3, 16  ;;  %v749_v55 = vunpack.c.l.b16 %v730_v53  ;;  %v606_v4 = vunpack.c.l.b16 %v565_v2  ;;  %v2771_v53 = vld [vmem:[%s3467_s3 + $0x70] sm:$0xff] }
  0x1c   : > { %2815 = vmatpush.bf16.msra.mxu1 %v2724_v12  ;;  %2816 = vmatpush.bf16.msra.mxu2 %v2724_v12  ;;  %v361_v23 = vsel %vm317_vm0, %v356_v14, %v2965_v37  ;;  %v2713_v37 = vld [vmem:[%s3465_s1] sm:$0xff]  ;;  %v781_v40 = vrot.slane %v779_v33, 1  ;;  %v784_v41 = vrot.slane %v782_v35, 2  ;;  %v2843_v14 = vmov 0   ;;  %v2764_v35 = vld [vmem:[%s3467_s3 + $0x58] sm:$0xff] }
  0x1d   : > { %423 = vmatpush.bf16.msra.mxu0 %v2724_v12  ;;  %863 = vmatpush.bf16.msra.mxu3 %v2745_v17  ;;  %v334_v12 = vshll.u32 %v3007_v3, 16  ;;  %v776_v17 = vor.u32 %v775_v9, %v772_v8  ;;  %229 = vst.msk [vmem:[#allocation2] sm:$0xf] %vm228_vm3, %v2843_v14  ;;  %v226_v33 = vld [vmem:[%s3466_s2] sm:$0x1]  ;;  %vm2117_vm9 = vcmask 518144  }
  0x1e   : > { %v785_v44 = vor.u32 %v784_v41, %v781_v40  ;;  %230 = vst.msk [vmem:[#allocation2 + $0x4] sm:$0xf] %vm228_vm3, %v2843_v14  ;;  %v2763_v40 = vld [vmem:[%s3467_s3 + $0x50] sm:$0xff] }
  0x1f   : > { %v336_v22 = vrot.slane %v334_v12, 1  ;;  %v777_v26 = vsel %vm751_vm1, %v767_v54, %v776_v17  ;;  %231 = vst.msk [vmem:[#allocation2 + $0x8] sm:$0xf] %vm228_vm3, %v2843_v14 }
  0x20   : > { %2817 = vmatpush.bf16.msra.mxu1 %v2723_v20  ;;  %2818 = vmatpush.bf16.msra.mxu2 %v2723_v20  ;;  %232 = vst.msk [vmem:[#allocation2 + $0xc] sm:$0xf] %vm228_vm3, %v2843_v14 }
  0x21   : > { %424 = vmatpush.bf16.msra.mxu0 %v2723_v20  ;;  %864 = vmatpush.bf16.msra.mxu3 %v2744_v24  ;;  %v332_v20 = vor.u32 %v330_v11, %v328_v56  ;;  %v2736_v24 = vld [vmem:[%s3465_s1 + $0x90] sm:$0xff]  ;;  %v340_v45 = vor.u32 %v338_v42, %v336_v22  ;;  %233 = vst.msk [vmem:[#allocation2 + $0x10] sm:$0xf] %vm228_vm3, %v2843_v14  ;;  %v2758_v42 = vld [vmem:[%s3467_s3 + $0x28] sm:$0xff] }
  0x22   : > { %234 = vst.msk [vmem:[#allocation2 + $0x14] sm:$0xf] %vm228_vm3, %v2843_v14 }
  0x23   : > { %v337_v27 = vsel %vm317_vm0, %v332_v20, %v336_v22  ;;  %v345_v18 = vsel %vm317_vm0, %v340_v45, %v2957_v31  ;;  %235 = vst.msk [vmem:[#allocation2 + $0x18] sm:$0xf] %vm228_vm3, %v2843_v14  ;;  %v2754_v20 = vld [vmem:[%s3467_s3 + $0x8] sm:$0xff] }
  0x24   : > { %2819 = vmatpush.bf16.msra.mxu1 %v2722_v30  ;;  %2820 = vmatpush.bf16.msra.mxu2 %v2722_v30  ;;  %236 = vst.msk [vmem:[#allocation2 + $0x1c] sm:$0xf] %vm228_vm3, %v2843_v14 }
  0x25   : > { %425 = vmatpush.bf16.msra.mxu0 %v2722_v30  ;;  %865 = vmatpush.bf16.msra.mxu3 %v2743_v38  ;;  %v2735_v30 = vld [vmem:[%s3465_s1 + $0x88] sm:$0xff]  ;;  %v614_v38 = vrot.slane %v2935_v19, 1  ;;  %237 = vst.msk [vmem:[#allocation2 + $0x20] sm:$0xf] %vm228_vm3, %v2843_v14 }
  0x26   : > { %v2733_v19 = vld [vmem:[%s2903_s8 + $0x24] sm:$0xff]  ;;  %238 = vst.msk [vmem:[#allocation2 + $0x24] sm:$0xf] %vm228_vm3, %v2843_v14 }
  0x27   : > { %v616_v43 = vsel %vm613_vm2, %v614_v38, %v615_v39  ;;  %v788_v47 = vshrl.u32 %v2733_v19, 16  ;;  %v791_v48 = vshll.u32 %v2733_v19, 16  ;;  %239 = vst.msk [vmem:[#allocation2 + $0x28] sm:$0xf] %vm228_vm3, %v2843_v14 }
  0x28   : > { %2821 = vmatpush.bf16.msra.mxu1 %v2721_v46  ;;  %2822 = vmatpush.bf16.msra.mxu2 %v2721_v46  ;;  %240 = vst.msk [vmem:[#allocation2 + $0x2c] sm:$0xf] %vm228_vm3, %v2843_v14 }
  0x29   : > { %866 = vmatpush.bf16.msra.mxu3 %v2742_v52  ;;  %426 = vmatpush.bf16.msra.mxu0 %v2721_v46  ;;  %v786_v46 = vsel %vm751_vm1, %v776_v17, %v785_v44  ;;  %v2755_v17 = vld [vmem:[%s3467_s3 + $0x10] sm:$0xff] }
  0x2b   : > { %442 = vmatmul.bf16.vlgmr.msra.gmra.mxu1 %v353_v57  ;;  %452 = vmatmul.bf16.vlgmr.msra.gmra.mxu2 %v364_v51  ;;  %v793_v51 = vrot.slane %v791_v48, 2 }
  0x2c   : > { %679 = vmatpush.bf16.msrb.mxu2 %v2741_v49  ;;  %515 = vmatpush.bf16.msrb.mxu1 %v2720_v50  ;;  %v617_v49 = vrot.slane %v2996_v62, 1  ;;  %v790_v50 = vrot.slane %v788_v47, 1 }
  0x2d   : > { %867 = vmatmul.bf16.vlgmr.msra.gmra.mxu3 %v768_v60  ;;  %427 = vmatmul.bf16.vlgmr.msra.gmra.mxu0 %v329_v61 }
  0x2e   : > { %v618_v52 = vsel %vm613_vm2, %v615_v39, %v617_v49  ;;  %v794_v54 = vor.u32 %v793_v51, %v790_v50  ;;  %v3121_v39 = vperm.slane %v226_v33, 0 }
  0x30   : > { %680 = vmatpush.bf16.msrb.mxu2 %v2740_v58  ;;  %516 = vmatpush.bf16.msrb.mxu1 %v2719_v59  ;;  %v795_v31 = vsel %vm751_vm1, %v785_v44, %v794_v54  ;;  %v619_v59 = vrot.slane %v2732_v29, 1 }
  0x32   : > { %v620_v62 = vsel %vm613_vm2, %v617_v49, %v619_v59 }
  0x34   : > { %681 = vmatpush.bf16.msrb.mxu2 %v2739_v63  ;;  %517 = vmatpush.bf16.msrb.mxu1 %v2718_v0 }
  0x38   : > { %682 = vmatpush.bf16.msrb.mxu2 %v2738_v5  ;;  %518 = vmatpush.bf16.msrb.mxu1 %v2717_v7 }
  0x3b   : > { %447 = vmatmul.bf16.gmra.mxu1 %v361_v23  ;;  %v2759_v23 = vld [vmem:[%s3467_s3 + $0x30] sm:$0xff] }
  0x3c   : > { %683 = vmatpush.bf16.msrb.mxu2 %v2737_v15  ;;  %519 = vmatpush.bf16.msrb.mxu1 %v2716_v16 }
  0x3d   : > { %872 = vmatmul.bf16.gmra.mxu3 %v777_v26  ;;  %432 = vmatmul.bf16.gmra.mxu0 %v337_v27  ;;  %v2753_v26 = vld [vmem:[%s3467_s3] sm:$0xff] }
  0x40   : > { %684 = vmatpush.bf16.msrb.mxu2 %v2736_v24  ;;  %520 = vmatpush.bf16.msrb.mxu1 %v2715_v25 }
  0x44   : > { %685 = vmatpush.bf16.msrb.mxu2 %v2735_v30  ;;  %521 = vmatpush.bf16.msrb.mxu1 %v2714_v32 }
  0x48   : > { %686 = vmatpush.bf16.msrb.mxu2 %v2734_v36  ;;  %522 = vmatpush.bf16.msrb.mxu1 %v2713_v37 }
  0x4b   : > { %687 = vmatmul.bf16.vlgmr.msrb.gmra.mxu2 %v616_v43  ;;  %523 = vmatmul.bf16.vlgmr.msrb.gmra.mxu1 %v2951_v28  ;;  %v605_v28 = vunpack.c.h.b16 %v2909_v6  ;;  %v2772_v43 = vld [vmem:[%s3467_s3 + $0x78] sm:$0xff] }
  0x4c   : > { %1260 = vmatpush.bf16.msra.mxu2 %v2764_v35  ;;  %1391 = vmatpush.bf16.msrb.mxu3 %v2772_v43 }
  0x4d   : > { %877 = vmatmul.bf16.gmra.mxu3 %v786_v46  ;;  %437 = vmatmul.bf16.gmra.mxu0 %v345_v18  ;;  %v750_v56 = vpack.c.b16 %v749_v55, %v605_v28  ;;  %v612_v5 = vpack.c.b16 %v606_v4, %v605_v28  ;;  %v2762_v18 = vld [vmem:[%s3467_s3 + $0x48] sm:$0xff]  ;;  %v2757_v28 = vld [vmem:[%s3467_s3 + $0x20] sm:$0xff] }
  0x4f   : > { %v797_v57 = vshrl.u32 %v750_v56, 16  ;;  %v800_v58 = vshll.u32 %v750_v56, 16  ;;  %v623_v7 = vrot.slane %v612_v5, 1 }
  0x50   : > { %1261 = vmatpush.bf16.msra.mxu2 %v2763_v40  ;;  %1392 = vmatpush.bf16.msrb.mxu3 %v2771_v53 }
  0x51   : > { %v799_v60 = vrot.slane %v797_v57, 1  ;;  %v802_v61 = vrot.slane %v800_v58, 2  ;;  %v2770_v57 = vld [vmem:[%s3467_s3 + $0x68] sm:$0xff] }
  0x53   : > { %v803_v63 = vor.u32 %v802_v61, %v799_v60 }
  0x54   : > { %1262 = vmatpush.bf16.msra.mxu2 %v2762_v18  ;;  %1393 = vmatpush.bf16.msrb.mxu3 %v2770_v57 }
  0x55   : > { %v804_v0 = vsel %vm751_vm1, %v794_v54, %v803_v63 }
  0x5b   : > { %692 = vmatmul.bf16.gmra.mxu2 %v618_v52  ;;  %528 = vmatmul.bf16.gmra.mxu1 %v2962_v34  ;;  %v621_v34 = vrot.slane %v2733_v19, 1  ;;  %v2761_v52 = vld [vmem:[%s3467_s3 + $0x40] sm:$0xff] }
  0x5c   : > { %1263 = vmatpush.bf16.msra.mxu2 %v2761_v52 }
  0x5d   : > { %882 = vmatmul.bf16.gmra.mxu3 %v795_v31  ;;  %v622_v1 = vsel %vm613_vm2, %v619_v59, %v621_v34  ;;  %v624_v8 = vsel %vm613_vm2, %v621_v34, %v623_v7 }
  0x6b   : > { %697 = vmatmul.bf16.gmra.mxu2 %v620_v62  ;;  %533 = vmatmul.bf16.gmra.mxu1 %v3007_v3  ;;  %v252_v3 = vld [vmem:[%s2903_s8 + $0x2c] sm:$0x1] }
  0x6c   : > { %v459_v9 = vunpack.c.l.b16 %v252_v3 }
  0x6d   : > { %887 = vmatmul.bf16.gmra.mxu3 %v804_v0 }
  0x6e   : > { %v460_v11 = vpack.c.b16 %v459_v9, %v309_v10  ;;  %v2756_v10 = vld [vmem:[%s3467_s3 + $0x18] sm:$0xff] }
  0x6f   : > { %1166 = vmatpush.bf16.msra.mxu1 %v2756_v10  ;;  %v2780_v10 = vld [vmem:[%s3467_s3 + $0x98] sm:$0xff] }
  0x73   : > { %1167 = vmatpush.bf16.msra.mxu1 %v2755_v17 }
  0x77   : > { %1168 = vmatpush.bf16.msra.mxu1 %v2754_v20 }
  0x7b   : > { %702 = vmatmul.bf16.gmra.mxu2 %v622_v1  ;;  %538 = vmatmul.bf16.gmra.mxu1 %v2923_v13  ;;  %v2760_v13 = vld [vmem:[%s3467_s3 + $0x38] sm:$0xff] }
  0x7c   : > { %1095 = vmatpush.bf16.msrb.mxu0 %v2760_v13  ;;  %1169 = vmatpush.bf16.msra.mxu1 %v2753_v26 }
  0x7d   : > { %892 = vmatmul.bf16.gmra.mxu3 %v803_v63  ;;  %v2769_v63 = vld [vmem:[%s3467_s3 + $0x60] sm:$0xff] }
  0x7e   : > { %1394 = vmatpush.bf16.msrb.mxu3 %v2769_v63 }
  0x80   : > { %1096 = vmatpush.bf16.msrb.mxu0 %v2759_v23 }
  0x84   : > { %1097 = vmatpush.bf16.msrb.mxu0 %v2758_v42 }
  0x88   : > { %1098 = vmatpush.bf16.msrb.mxu0 %v2757_v28 }
  0x8b   : > { %707 = vmatmul.bf16.gmra.mxu2 %v624_v8  ;;  %543 = vmatmul.bf16.gmra.mxu1 %v2941_v21 }
  0x8c   : > { %1560 = vmatpush.bf16.msra.mxu0 %v2780_v10 }
  0x9b   : > { %712 = vmatmul.bf16.gmra.mxu2 %v623_v7  ;;  %548 = vmatmul.bf16.gmra.mxu1 %v460_v11 }
  0xa8   : > { %v3073_v12 = vpop.f32.mrf.mxu1 }
  0xaa   : > { %v428_v22 = vpop.f32.mrf.mxu0 }
  0xae   : > { %v3097_v16 = vpop.f32.mrf.mxu2 }
  0xb0   : > { %v3081_v6 = vpop.f32.mrf.mxu1  ;;  %v868_v21 = vpop.f32.mrf.mxu3 }
  0xb2   : > { %v430_v30 = vpop.f32.mrf.mxu0 }
  0xb6   : > { %v3113_v27 = vpop.f32.mrf.mxu2 }
  0xb8   : > { %v3095_v15 = vpop.f32.mrf.mxu1  ;;  %v870_v25 = vpop.f32.mrf.mxu3 }
  0xba   : > { %v433_v47 = vpop.f32.mrf.mxu0 }
  0xc0   : > { %v3108_v24 = vpop.f32.mrf.mxu1  ;;  %v873_v37 = vpop.f32.mrf.mxu3 }
  0xc2   : > { %v435_v61 = vpop.f32.mrf.mxu0 }
  0xc8   : > { %v524_v29 = vpop.f32.mrf.mxu1  ;;  %v875_v51 = vpop.f32.mrf.mxu3 }
  0xc9   : > { %v525_v32 = vadd.f32 %v524_v29, %v428_v22 }
  0xca   : > { %v438_v11 = vpop.f32.mrf.mxu0 }
  0xce   : > { %v688_v36 = vpop.f32.mrf.mxu2 }
  0xcf   : > { %v718_v38 = vadd.f32 %v688_v36, %v525_v32 }
  0xd0   : > { %v526_v45 = vpop.f32.mrf.mxu1  ;;  %v878_v34 = vpop.f32.mrf.mxu3 }
  0xd1   : > { %v898_v41 = vadd.f32 %v868_v21, %v718_v38  ;;  %v527_v46 = vadd.f32 %v526_v45, %v430_v30 }
  0xd2   : > { %v440_v30 = vpop.f32.mrf.mxu0 }
  0xd3   : > { %v913_v44 = vadd.f32 %v3121_v39, %v898_v41 }
  0xd5   : > { %v925_v19 = vmax.f32 %v913_v44, 0.0 }
  0xd6   : > { %v690_v48 = vpop.f32.mrf.mxu2 }
  0xd7   : > { %v937_v49 = vpack.c.bf16 %v925_v19, %v925_v19  ;;  %v719_v50 = vadd.f32 %v690_v48, %v527_v46 }
  0xd8   : > { %v529_v31 = vpop.f32.mrf.mxu1  ;;  %v880_v20 = vpop.f32.mrf.mxu3 }
  0xd9   : > { %949 = vst.msk [vmem:[#allocation2] sm:$0xf] %vm228_vm3, %v937_v49  ;;  %v899_v54 = vadd.f32 %v870_v25, %v719_v50  ;;  %v530_v56 = vadd.f32 %v529_v31, %v433_v47  ;;  %v2779_v47 = vld [vmem:[%s3467_s3 + $0x90] sm:$0xff] }
  0xda   : > { %1561 = vmatpush.bf16.msra.mxu0 %v2779_v47 }
  0xdb   : > { %v914_v55 = vadd.f32 %v3121_v39, %v899_v54 }
  0xdd   : > { %v926_v58 = vmax.f32 %v914_v55, 0.0 }
  0xde   : > { %v693_v59 = vpop.f32.mrf.mxu2 }
  0xdf   : > { %v938_v60 = vpack.c.bf16 %v926_v58, %v926_v58  ;;  %v720_v62 = vadd.f32 %v693_v59, %v530_v56 }
  0xe0   : > { %v531_v2 = vpop.f32.mrf.mxu1  ;;  %v2805_v40 = vld [vmem:[#allocation2] sm:$0xe]  ;;  %v883_v42 = vpop.f32.mrf.mxu3 }
  0xe1   : > { %950 = vst.msk [vmem:[#allocation2 + $0x4] sm:$0xf] %vm228_vm3, %v938_v60  ;;  %v900_v0 = vadd.f32 %v873_v37, %v720_v62  ;;  %v532_v4 = vadd.f32 %v531_v2, %v435_v61 }
  0xe3   : > { %v915_v1 = vadd.f32 %v3121_v39, %v900_v0 }
  0xe5   : > { %v927_v5 = vmax.f32 %v915_v1, 0.0 }
  0xe6   : > { %v695_v7 = vpop.f32.mrf.mxu2 }
  0xe7   : > { %v939_v8 = vpack.c.bf16 %v927_v5, %v927_v5  ;;  %v721_v3 = vadd.f32 %v695_v7, %v532_v4 }
  0xe8   : > { %v2801_v9 = vld [vmem:[#allocation2] sm:$0xff]   ;;  %v534_v21 = vpop.f32.mrf.mxu1  ;;  %v885_v0 = vpop.f32.mrf.mxu3 }
  0xe9   : > { %951 = vst.msk [vmem:[#allocation2 + $0x8] sm:$0xf] %vm228_vm3, %v939_v8  ;;  %v901_v14 = vadd.f32 %v875_v51, %v721_v3  ;;  %2454 = vmatmul.msk.bf16.vlgmr.msra.gmra.mxu1 %vm1075_vm4, %v2801_v9  ;;  %v535_v17 = vadd.f32 %v534_v21, %v438_v11  ;;  %v2804_v35 = vld [vmem:[#allocation2] sm:$0xf0]  ;;  %v1015_v36 = vshll.u32 %v2801_v9, 16  ;;  %v1013_v48 = vshrl.u32 %v2801_v9, 16 }
  0xea   : > { %v2806_v43 = vor.u32 %v2805_v40, %v2804_v35  ;;  %v2498_v58 = vld [vmem:[#allocation2 + $0x4] sm:$0xe] }
  0xeb   : > { %v916_v13 = vadd.f32 %v3121_v39, %v901_v14  ;;  %v1017_v46 = vrot.slane %v1015_v36, 1 }
  0xec   : > { %v1208_v49 = vrot.slane %v2806_v43, 1 }
  0xed   : > { %v928_v22 = vmax.f32 %v916_v13, 0.0  ;;  %v1018_v31 = vor.u32 %v1017_v46, %v1013_v48 }
  0xee   : > { %v698_v23 = vpop.f32.mrf.mxu2 }
  0xef   : > { %v940_v25 = vpack.c.bf16 %v928_v22, %v928_v22  ;;  %v722_v26 = vadd.f32 %v698_v23, %v535_v17 }
  0xf0   : > { %v536_v33 = vpop.f32.mrf.mxu1  ;;  %v2765_v54 = vld [vmem:[#allocation2 + $0x4] sm:$0xf0] }
  0xf1   : > { %952 = vst.msk [vmem:[#allocation2 + $0xc] sm:$0xf] %vm228_vm3, %v940_v25  ;;  %v902_v29 = vadd.f32 %v878_v34, %v722_v26  ;;  %v537_v37 = vadd.f32 %v536_v33, %v440_v30  ;;  %v2499_v61 = vor.u32 %v2765_v54, %v2498_v58  ;;  %v1975_v5 = vld [vmem:[#allocation2 + $0x8] sm:$0x8]  ;;  %v888_v26 = vpop.f32.mrf.mxu3 }
  0xf2   : > { %v1986_v10 = vunpack.c.l.b16 %v1975_v5 }
  0xf3   : > { %v917_v32 = vadd.f32 %v3121_v39, %v902_v29  ;;  %v1339_v2 = vrot.slane %v2499_v61, 1 }
  0xf5   : > { %v929_v38 = vmax.f32 %v917_v32, 0.0 }
  0xf6   : > { %v700_v41 = vpop.f32.mrf.mxu2 }
  0xf7   : > { %v941_v44 = vpack.c.bf16 %v929_v38, %v929_v38  ;;  %v723_v45 = vadd.f32 %v700_v41, %v537_v37 }
  0xf8   : > { %v3163_v18 = vld [vmem:[#allocation2 + $0x8] sm:$0xff]  ;;  %v539_v53 = vpop.f32.mrf.mxu1 }
  0xf9   : > { %953 = vst.msk [vmem:[#allocation2 + $0x10] sm:$0xf] %vm228_vm3, %v941_v44  ;;  %v903_v19 = vadd.f32 %v880_v20, %v723_v45  ;;  %2455 = vmatmul.msk.bf16.gmra.mxu1 %vm1075_vm4, %v3163_v18  ;;  %v1209_v50 = vrot.slane %v3163_v18, 1  ;;  %v1020_v51 = vshll.u32 %v3163_v18, 16  ;;  %v540_v28 = vadd.f32 %v539_v53, %v3073_v12  ;;  %v3181_v12 = vld [vmem:[#allocation2 + $0x8] sm:$0xff]   ;;  %v2783_v44 = vld [vmem:[%s3467_s3 + $0xb0] sm:$0xff] }
  0xfa   : > { %v1732_v3 = vunpack.c.h.b16 %v3181_v12  ;;  %v1024_v30 = vshrl.u32 %v3163_v18, 16 }
  0xfb   : > { %v918_v52 = vadd.f32 %v3121_v39, %v903_v19  ;;  %v1210_v55 = vsel %vm613_vm2, %v1208_v49, %v1209_v50  ;;  %v1022_v56 = vrot.slane %v1020_v51, 1  ;;  %v2778_v49 = vld [vmem:[%s3467_s3 + $0x88] sm:$0xff] }
  0xfc   : > { %2483 = vmatmul.msk.bf16.vlgmr.msra.gmra.mxu2 %vm1075_vm4, %v1210_v55  ;;  %v1987_v20 = vpack.c.b16 %v1732_v3, %v1986_v10  ;;  %1562 = vmatpush.bf16.msra.mxu0 %v2778_v49  ;;  %v2794_v49 = vld [vmem:[%s3467_s3 + $0xf0] sm:$0xff] }
  0xfd   : > { %v930_v57 = vmax.f32 %v918_v52, 0.0  ;;  %v1023_v60 = vsel %vm317_vm0, %v1018_v31, %v1022_v56  ;;  %v1026_v41 = vor.u32 %v1024_v30, %v1022_v56  ;;  %v2781_v56 = vld [vmem:[%s3467_s3 + $0xa0] sm:$0xff] }
  0xfe   : > { %v703_v59 = vpop.f32.mrf.mxu2  ;;  %2433 = vmatmul.msk.bf16.vlgmr.msrb.gmra.mxu0 %vm1075_vm4, %v1023_v60  ;;  %v1989_v36 = vrot.slane %v1987_v20, 3 }
  0xff   : > { %v942_v62 = vpack.c.bf16 %v930_v57, %v930_v57  ;;  %v724_v63 = vadd.f32 %v703_v59, %v540_v28  ;;  %v890_v28 = vpop.f32.mrf.mxu3 }
 0x100   : > { %v3179_v34 = vld [vmem:[#allocation2 + $0xc] sm:$0xff]  ;;  %v541_v8 = vpop.f32.mrf.mxu1 }
 0x101   : > { %954 = vst.msk [vmem:[#allocation2 + $0x14] sm:$0xf] %vm228_vm3, %v942_v62  ;;  %v904_v1 = vadd.f32 %v883_v42, %v724_v63  ;;  %v1340_v4 = vrot.slane %v3179_v34, 1  ;;  %v542_v9 = vadd.f32 %v541_v8, %v3081_v6  ;;  %v2784_v6 = vld [vmem:[%s3467_s3 + $0xb8] sm:$0xff]  ;;  %v2777_v34 = vld [vmem:[%s3467_s3 + $0x80] sm:$0xff] }
 0x102   : > { %1664 = vmatpush.bf16.msrb.mxu1 %v2784_v6  ;;  %1563 = vmatpush.bf16.msra.mxu0 %v2777_v34 }
 0x103   : > { %v919_v7 = vadd.f32 %v3121_v39, %v904_v1  ;;  %v1341_v11 = vsel %vm613_vm2, %v1339_v2, %v1340_v4 }
 0x104   : > { %2528 = vmatmul.msk.bf16.vlgmr.msrb.gmra.mxu3 %vm1075_vm4, %v1341_v11 }
 0x105   : > { %v931_v14 = vmax.f32 %v919_v7, 0.0 }
 0x106   : > { %v705_v13 = vpop.f32.mrf.mxu2  ;;  %1665 = vmatpush.bf16.msrb.mxu1 %v2783_v44 }
 0x107   : > { %v943_v21 = vpack.c.bf16 %v931_v14, %v931_v14  ;;  %v725_v17 = vadd.f32 %v705_v13, %v542_v9  ;;  %v893_v8 = vpop.f32.mrf.mxu3 }
 0x108   : > { %v3192_v22 = vld [vmem:[#allocation2 + $0x10] sm:$0xff]  ;;  %v544_v35 = vpop.f32.mrf.mxu1 }
 0x109   : > { %v3194_v23 = vld [vmem:[#allocation2 + $0x10] sm:$0xff]  ;;  %955 = vst.msk [vmem:[#allocation2 + $0x18] sm:$0xf] %vm228_vm3, %v943_v21  ;;  %v905_v25 = vadd.f32 %v885_v0, %v725_v17  ;;  %2456 = vmatmul.msk.bf16.gmra.mxu1 %vm1075_vm4, %v3192_v22  ;;  %v1211_v29 = vrot.slane %v3192_v22, 1  ;;  %v1028_v32 = vshll.u32 %v3192_v22, 16  ;;  %v545_v38 = vadd.f32 %v544_v35, %v3095_v15 }
 0x10a   : > { %v1990_v37 = vrot.slane %v3194_v23, 3  ;;  %v1032_v63 = vshrl.u32 %v3192_v22, 16  ;;  %v2791_v22 = vld [vmem:[%s3467_s3 + $0xd8] sm:$0xff] }
 0x10b   : > { %v920_v33 = vadd.f32 %v3121_v39, %v905_v25  ;;  %v1212_v40 = vsel %vm613_vm2, %v1209_v50, %v1211_v29  ;;  %v1030_v42 = vrot.slane %v1028_v32, 1  ;;  %v2782_v50 = vld [vmem:[%s3467_s3 + $0xa8] sm:$0xff]  ;;  %1798 = vmatpush.bf16.msrb.mxu2 %v2791_v22 }
 0x10c   : > { %2484 = vmatmul.msk.bf16.gmra.mxu2 %vm1075_vm4, %v1212_v40  ;;  %v3214_v45 = vsel %vm1988_vm5, %v1989_v36, %v1990_v37  ;;  %1666 = vmatpush.bf16.msrb.mxu1 %v2782_v50 }
 0x10d   : > { %v932_v43 = vmax.f32 %v920_v33, 0.0  ;;  %v1031_v18 = vsel %vm317_vm0, %v1026_v41, %v1030_v42  ;;  %v1034_v9 = vor.u32 %v1032_v63, %v1030_v42  ;;  %v2789_v42 = vld [vmem:[%s3467_s3 + $0xc8] sm:$0xff] }
 0x10e   : > { %v708_v46 = vpop.f32.mrf.mxu2  ;;  %2434 = vmatmul.msk.bf16.gmra.mxu0 %vm1075_vm4, %v1031_v18 }
 0x10f   : > { %v944_v19 = vpack.c.bf16 %v932_v43, %v932_v43  ;;  %v726_v47 = vadd.f32 %v708_v46, %v545_v38  ;;  %v2795_v38 = vld [vmem:[%s3467_s3 + $0xf8] sm:$0xff]  ;;  %v895_v41 = vpop.f32.mrf.mxu3 }
 0x110   : > { %v2767_v15 = vld [vmem:[#allocation2 + $0x14] sm:$0xff]  ;;  %v546_v53 = vpop.f32.mrf.mxu1  ;;  %1667 = vmatpush.bf16.msrb.mxu1 %v2781_v56  ;;  %1937 = vmatpush.bf16.msra.mxu3 %v2795_v38  ;;  %v1459_v56 = vunpack.c.l.b16 %v3181_v12 }
 0x111   : > { %956 = vst.msk [vmem:[#allocation2 + $0x1c] sm:$0xf] %vm228_vm3, %v944_v19  ;;  %v906_v48 = vadd.f32 %v888_v26, %v726_v47  ;;  %v1342_v51 = vrot.slane %v2767_v15, 1  ;;  %v547_v54 = vadd.f32 %v546_v53, %v3108_v24 }
 0x113   : > { %v921_v52 = vadd.f32 %v3121_v39, %v906_v48  ;;  %v1343_v55 = vsel %vm613_vm2, %v1340_v4, %v1342_v51  ;;  %v2788_v48 = vld [vmem:[%s3467_s3 + $0xc0] sm:$0xff] }
 0x114   : > { %2529 = vmatmul.msk.bf16.gmra.mxu3 %vm1075_vm4, %v1343_v55 }
 0x115   : > { %v933_v31 = vmax.f32 %v921_v52, 0.0  ;;  %1938 = vmatpush.bf16.msra.mxu3 %v2794_v49  ;;  %v1747_v49 = vrot.slane %v3194_v23, 2 }
 0x116   : > { %v710_v57 = vpop.f32.mrf.mxu2 }
 0x117   : > { %v945_v58 = vpack.c.bf16 %v933_v31, %v933_v31  ;;  %v727_v59 = vadd.f32 %v710_v57, %v547_v54  ;;  %v1598_v57 = vld [vmem:[#allocation2 + $0x4] sm:$0xc] }
 0x118   : > { %v3232_v60 = vld [vmem:[#allocation2 + $0x18] sm:$0xff]  ;;  %v549_v2 = vpop.f32.mrf.mxu1 }
 0x119   : > { %v3234_v61 = vld [vmem:[#allocation2 + $0x18] sm:$0xff]  ;;  %957 = vst.msk [vmem:[#allocation2 + $0x20] sm:$0xf] %vm228_vm3, %v945_v58  ;;  %v907_v24 = vadd.f32 %v890_v28, %v727_v59  ;;  %2457 = vmatmul.msk.bf16.gmra.mxu1 %vm1075_vm4, %v3232_v60  ;;  %v1213_v62 = vrot.slane %v3232_v60, 1  ;;  %v1036_v0 = vshll.u32 %v3232_v60, 16  ;;  %v550_v5 = vadd.f32 %v549_v2, %v3097_v16  ;;  %v2793_v58 = vld [vmem:[%s3467_s3 + $0xe8] sm:$0xff] }
 0x11a   : > { %v1992_v4 = vrot.slane %v3234_v61, 3  ;;  %v1040_v55 = vshrl.u32 %v3232_v60, 16  ;;  %1939 = vmatpush.bf16.msra.mxu3 %v2793_v58  ;;  %v2773_v2 = vld [vmem:[#allocation2 + $0xc] sm:$0xff]  ;;  %v2792_v60 = vld [vmem:[%s3467_s3 + $0xe0] sm:$0xff] }
 0x11b   : > { %v922_v1 = vadd.f32 %v3121_v39, %v907_v24  ;;  %v1214_v7 = vsel %vm613_vm2, %v1211_v29, %v1213_v62  ;;  %v1038_v11 = vrot.slane %v1036_v0, 1  ;;  %v2790_v29 = vld [vmem:[%s3467_s3 + $0xd0] sm:$0xff]  ;;  %v1482_v38 = vshrl.u32 %v2773_v2, 16 }
 0x11c   : > { %2485 = vmatmul.msk.bf16.gmra.mxu2 %vm1075_vm4, %v1214_v7  ;;  %v3255_v10 = vsel %vm1988_vm5, %v1990_v37, %v1992_v4 }
 0x11d   : > { %v934_v14 = vmax.f32 %v922_v1, 0.0  ;;  %v1039_v21 = vsel %vm317_vm0, %v1034_v9, %v1038_v11  ;;  %1799 = vmatpush.bf16.msrb.mxu2 %v2790_v29  ;;  %v1042_v63 = vor.u32 %v1040_v55, %v1038_v11  ;;  %v2774_v29 = vld [vmem:[#allocation2 + $0x14] sm:$0xff] }
 0x11e   : > { %v713_v13 = vpop.f32.mrf.mxu2  ;;  %2435 = vmatmul.msk.bf16.gmra.mxu0 %vm1075_vm4, %v1039_v21  ;;  %1940 = vmatpush.bf16.msra.mxu3 %v2792_v60 }
 0x11f   : > { %v946_v16 = vpack.c.bf16 %v934_v14, %v934_v14  ;;  %v728_v17 = vadd.f32 %v713_v13, %v550_v5  ;;  %v1609_v5 = vunpack.c.l.b16 %v1598_v57 }
 0x120   : > { %v3259_v20 = vld [vmem:[#allocation2 + $0x1c] sm:$0xff]  ;;  %v551_v32 = vpop.f32.mrf.mxu1 }
 0x121   : > { %958 = vst.msk [vmem:[#allocation2 + $0x24] sm:$0xf] %vm228_vm3, %v946_v16  ;;  %v908_v25 = vadd.f32 %v893_v8, %v728_v17  ;;  %v970_v6 = vld [vmem:[#allocation2 + $0x20] sm:$0x7]  ;;  %v1344_v26 = vrot.slane %v3259_v20, 1  ;;  %v552_v33 = vadd.f32 %v551_v32, %v3113_v27  ;;  %1800 = vmatpush.bf16.msrb.mxu2 %v2789_v42  ;;  %v1613_v8 = vrot.slane %v2773_v2, 2 }
 0x122   : > { %v1125_v36 = vunpack.c.l.b16 %v970_v6  ;;  %v2775_v58 = vld [vmem:[#allocation2 + $0x1c] sm:$0xff] }
 0x123   : > { %v923_v30 = vadd.f32 %v3121_v39, %v908_v25  ;;  %v1345_v35 = vsel %vm613_vm2, %v1342_v51, %v1344_v26  ;;  %v1429_v25 = vld [vmem:[#allocation2 + $0x4] sm:$0xe] }
 0x124   : > { %2530 = vmatmul.msk.bf16.gmra.mxu3 %vm1075_vm4, %v1345_v35  ;;  %v1126_v27 = vpack.c.b16 %v1125_v36, %v1125_v36  ;;  %v1458_v32 = vunpack.c.l.b16 %v1429_v25 }
 0x125   : > { %v935_v37 = vmax.f32 %v923_v30, 0.0  ;;  %1801 = vmatpush.bf16.msrb.mxu2 %v2788_v48  ;;  %v1702_v30 = vld [vmem:[#allocation2 + $0x8] sm:$0xc] }
 0x126   : > { %v715_v40 = vpop.f32.mrf.mxu2  ;;  %v1468_v35 = vpack.c.b16 %v1459_v56, %v1458_v32  ;;  %v1731_v36 = vunpack.c.l.b16 %v1702_v30  ;;  %v1500_v30 = vshrl.u32 %v2775_v58, 16  ;;  %v1503_v32 = vshll.u32 %v2775_v58, 16 }
 0x127   : > { %v947_v43 = vpack.c.bf16 %v935_v37, %v935_v37  ;;  %v729_v44 = vadd.f32 %v715_v40, %v552_v33  ;;  %v2798_v33 = vld [vmem:[%s3467_s3 + $0x110] sm:$0xff]  ;;  %v1615_v37 = vrot.slane %v2774_v29, 2  ;;  %v1485_v40 = vshll.u32 %v2773_v2, 16 }
 0x128   : > { %v979_v46 = vld [vmem:[#allocation2 + $0x20] sm:$0xff]   ;;  %v1474_v42 = vshrl.u32 %v1468_v35, 16  ;;  %v1871_v2 = vshll.u32 %v3234_v61, 16 }
 0x129   : > { %v3279_v18 = vld [vmem:[#allocation2 + $0x20] sm:$0xff]  ;;  %959 = vst.msk [vmem:[#allocation2 + $0x28] sm:$0xf] %vm228_vm3, %v947_v43  ;;  %v909_v19 = vadd.f32 %v895_v41, %v729_v44  ;;  %v1006_v47 = vunpack.c.l.b16 %v979_v46  ;;  %v1333_v15 = vunpack.c.h.b16 %v979_v46  ;;  %2458 = vmatmul.msk.bf16.gmra.mxu1 %vm1075_vm4, %v1126_v27  ;;  %v1741_v41 = vpack.c.b16 %v1732_v3, %v1731_v36 }
 0x12a   : > { %v1994_v52 = vrot.slane %v3279_v18, 3  ;;  %v1477_v43 = vshll.u32 %v1468_v35, 16  ;;  %v1859_v44 = vshrl.u32 %v3194_v23, 16  ;;  %v1862_v27 = vshll.u32 %v3194_v23, 16 }
 0x12b   : > { %v924_v50 = vadd.f32 %v3121_v39, %v909_v19  ;;  %v1011_v51 = vpack.c.b16 %v1006_v47, %v1006_v47  ;;  %v1338_v53 = vpack.c.b16 %v1333_v15, %v1333_v15  ;;  %v1616_v46 = vsel %vm1611_vm7, %v1613_v8, %v1615_v37 }
 0x12c   : > { %v3299_v39 = vsel %vm1988_vm5, %v1992_v4, %v1994_v52  ;;  %v2799_v4 = vld [vmem:[%s3467_s3 + $0x118] sm:$0xff]  ;;  %v1484_v19 = vrot.slane %v1482_v38, 1  ;;  %v1487_v47 = vrot.slane %v1485_v40, 2  ;;  %v1851_v15 = vshrl.u32 %v1741_v41, 16 }
 0x12d   : > { %v936_v54 = vmax.f32 %v924_v50, 0.0  ;;  %v1215_v28 = vrot.slane %v1011_v51, 1  ;;  %v1044_v31 = vshll.u32 %v1011_v51, 16  ;;  %v1346_v34 = vrot.slane %v1338_v53, 1  ;;  %2041 = vmatpush.bf16.msrb.mxu0 %v2799_v4 }
 0x12e   : > { %v1048_v22 = vshrl.u32 %v1011_v51, 16  ;;  %v1854_v48 = vshll.u32 %v1741_v41, 16  ;;  %v1476_v50 = vrot.slane %v1474_v42, 1  ;;  %v1479_v51 = vrot.slane %v1477_v43, 2 }
 0x12f   : > { %v948_v59 = vpack.c.bf16 %v936_v54, %v936_v54  ;;  %v1216_v24 = vsel %vm613_vm2, %v1213_v62, %v1215_v28  ;;  %v1046_v0 = vrot.slane %v1044_v31, 1  ;;  %v1610_v62 = vpack.c.b16 %v1459_v56, %v1609_v5 }
 0x130   : > { %2486 = vmatmul.msk.bf16.gmra.mxu2 %vm1075_vm4, %v1216_v24  ;;  %v1347_v7 = vsel %vm613_vm2, %v1344_v26, %v1346_v34  ;;  %v3315_v9 = vld [vmem:[#allocation2 + $0x28] sm:$0xf]  ;;  %v1861_v12 = vrot.slane %v1859_v44, 2  ;;  %v1864_v3 = vrot.slane %v1862_v27, 3  ;;  %v1488_v53 = vor.u32 %v1487_v47, %v1484_v19 }
 0x131   : > { %961 = vst.msk [vmem:[#allocation2 + $0x2c] sm:$0x1] %vm960_vm6, %v948_v59  ;;  %v1047_v1 = vsel %vm317_vm0, %v1042_v63, %v1046_v0  ;;  %v1612_v11 = vrot.slane %v1610_v62, 2  ;;  %v1739_v21 = vunpack.c.l.b16 %v3315_v9  ;;  %v1050_v26 = vor.u32 %v1048_v22, %v1046_v0  ;;  %2042 = vmatpush.bf16.msrb.mxu0 %v2798_v33  ;;  %v2555_v22 = vld [vmem:[#allocation2 + $0x24] sm:$0xf] }
 0x132   : > { %2436 = vmatmul.msk.bf16.gmra.mxu0 %vm1075_vm4, %v1047_v1  ;;  %v1853_v54 = vrot.slane %v1851_v15, 2  ;;  %v1480_v31 = vor.u32 %v1479_v51, %v1476_v50  ;;  %v1865_v56 = vor.u32 %v1864_v3, %v1861_v12  ;;  %v1617_v24 = vrot.slane %v2775_v58, 2 }
 0x133   : > { %v1614_v13 = vsel %vm1611_vm7, %v1612_v11, %v1613_v8  ;;  %v1491_v63 = vshrl.u32 %v2774_v29, 16  ;;  %v1494_v0 = vshll.u32 %v2774_v29, 16  ;;  %v1868_v1 = vshrl.u32 %v3234_v61, 16 }
 0x134   : > { %2531 = vmatmul.msk.bf16.gmra.mxu3 %vm1075_vm4, %v1347_v7  ;;  %v1489_v57 = vsel %vm751_vm1, %v1480_v31, %v1488_v53  ;;  %v1618_v5 = vsel %vm1611_vm7, %v1615_v37, %v1617_v24  ;;  %v1749_v62 = vrot.slane %v3234_v61, 2  ;;  %v1873_v8 = vrot.slane %v1871_v2, 3 }
 0x135   : > { %v1493_v4 = vrot.slane %v1491_v63, 1  ;;  %v1496_v60 = vrot.slane %v1494_v0, 2  ;;  %v1870_v7 = vrot.slane %v1868_v1, 2  ;;  %v1877_v35 = vshrl.u32 %v3279_v18, 16 }
 0x136   : > { %v1880_v36 = vshll.u32 %v3279_v18, 16  ;;  %v1502_v38 = vrot.slane %v1500_v30, 1  ;;  %v1505_v40 = vrot.slane %v1503_v32, 2  ;;  %v1751_v42 = vrot.slane %v3279_v18, 2 }
 0x137   : > { %v1497_v11 = vor.u32 %v1496_v60, %v1493_v4  ;;  %v1879_v43 = vrot.slane %v1877_v35, 2 }
 0x138   : > { %v1836_v14 = vld [vmem:[#allocation2 + $0x2c] sm:$0x3]  ;;  %v1882_v44 = vrot.slane %v1880_v36, 3  ;;  %v1506_v27 = vor.u32 %v1505_v40, %v1502_v38  ;;  %v1752_v19 = vsel %vm1611_vm7, %v1749_v62, %v1751_v42 }
 0x139   : > { %v1847_v16 = vunpack.c.l.b16 %v1836_v14  ;;  %2602 = vmatmul.msk.bf16.vlgmr.msrb.gmra.mxu1 %vm1075_vm4, %v1614_v13  ;;  %v2776_v14 = vld [vmem:[#allocation2 + $0x24] sm:$0x10]  ;;  %v1750_v13 = vsel %vm1611_vm7, %v1747_v49, %v1749_v62  ;;  %v1498_v25 = vsel %vm751_vm1, %v1488_v53, %v1497_v11  ;;  %v1711_v15 = vld [vmem:[#allocation2 + $0x2c] sm:$0x1] }
 0x13a   : > { %v1883_v47 = vor.u32 %v1882_v44, %v1879_v43 }
 0x13b   : > { %v3322_v17 = vpack.c.b16 %v1847_v16, %v1739_v21  ;;  %v1874_v16 = vor.u32 %v1873_v8, %v1870_v7 }
 0x13d   : > { %v1996_v20 = vrot.slane %v3322_v17, 3  ;;  %v1875_v29 = vsel %vm1849_vm8, %v1865_v56, %v1874_v16  ;;  %v1884_v50 = vsel %vm1849_vm8, %v1874_v16, %v1883_v47  ;;  %v1889_v53 = vshll.u32 %v3322_v17, 16 }
 0x13f   : > { %v3328_v6 = vsel %vm1988_vm5, %v1994_v52, %v1996_v20  ;;  %v1746_v52 = vrot.slane %v1741_v41, 2  ;;  %v2796_v41 = vld [vmem:[%s3467_s3 + $0x100] sm:$0xff] }
 0x140   : > { %2487 = vmatmul.msk.bf16.gmra.mxu2 %vm1075_vm4, %v1215_v28  ;;  %v1856_v28 = vrot.slane %v1854_v48, 3  ;;  %v1507_v48 = vsel %vm751_vm1, %v1497_v11, %v1506_v27 }
 0x141   : > { %v1748_v55 = vsel %vm1611_vm7, %v1746_v52, %v1747_v49  ;;  %v1740_v49 = vunpack.c.l.b16 %v1711_v15  ;;  %v1886_v52 = vshrl.u32 %v3322_v17, 16 }
 0x142   : > { %2437 = vmatmul.msk.bf16.gmra.mxu0 %vm1075_vm4, %v1050_v26  ;;  %v1857_v23 = vor.u32 %v1856_v28, %v1853_v54  ;;  %v2556_v26 = vor.u32 %v2776_v14, %v2555_v22 }
 0x143   : > { %v1745_v3 = vpack.c.b16 %v1740_v49, %v1739_v21 }
 0x144   : > { %2532 = vmatmul.msk.bf16.gmra.mxu3 %vm1075_vm4, %v1346_v34  ;;  %v1866_v59 = vsel %vm1849_vm8, %v1857_v23, %v1865_v56  ;;  %v2797_v34 = vld [vmem:[%s3467_s3 + $0x108] sm:$0xff]  ;;  %v1619_v61 = vrot.slane %v2556_v26, 2  ;;  %v1509_v18 = vshrl.u32 %v2556_v26, 16  ;;  %v1512_v51 = vshll.u32 %v2556_v26, 16 }
 0x145   : > { %2043 = vmatpush.bf16.msrb.mxu0 %v2797_v34  ;;  %v1888_v56 = vrot.slane %v1886_v52, 2 }
 0x146   : > { %v1620_v37 = vsel %vm1611_vm7, %v1617_v24, %v1619_v61  ;;  %v1511_v54 = vrot.slane %v1509_v18, 1  ;;  %v1514_v28 = vrot.slane %v1512_v51, 2 }
 0x148   : > { %v1515_v23 = vor.u32 %v1514_v28, %v1511_v54 }
 0x149   : > { %2603 = vmatmul.msk.bf16.gmra.mxu1 %vm1075_vm4, %v1616_v46  ;;  %2044 = vmatpush.bf16.msrb.mxu0 %v2796_v41 }
 0x14a   : > { %v1516_v63 = vsel %vm751_vm1, %v1506_v27, %v1515_v23 }
 0x150   : > { %2643 = vmatmul.msk.bf16.vlgmr.msrb.gmra.mxu2 %vm1075_vm4, %v1748_v55  ;;  %v1753_v55 = vrot.slane %v1745_v3, 2 }
 0x152   : > { %2573 = vmatmul.msk.bf16.vlgmr.msra.gmra.mxu0 %vm1075_vm4, %v1489_v57  ;;  %v1891_v57 = vrot.slane %v1889_v53, 3 }
 0x154   : > { %2672 = vmatmul.msk.bf16.vlgmr.msra.gmra.mxu3 %vm1075_vm4, %v1866_v59  ;;  %v1754_v59 = vsel %vm1611_vm7, %v1751_v42, %v1753_v55  ;;  %v1892_v21 = vor.u32 %v1891_v57, %v1888_v56 }
 0x156   : > { %v1893_v1 = vsel %vm1849_vm8, %v1883_v47, %v1892_v21 }
 0x159   : > { %2604 = vmatmul.msk.bf16.gmra.mxu1 %vm1075_vm4, %v1618_v5 }
 0x160   : > { %2644 = vmatmul.msk.bf16.gmra.mxu2 %vm1075_vm4, %v1750_v13 }
 0x162   : > { %2574 = vmatmul.msk.bf16.gmra.mxu0 %vm1075_vm4, %v1498_v25 }
 0x164   : > { %2673 = vmatmul.msk.bf16.gmra.mxu3 %vm1075_vm4, %v1875_v29 }
 0x166   : > { %v1171_v33 = vpop.f32.mrf.mxu1 }
 0x169   : > { %2605 = vmatmul.msk.bf16.gmra.mxu1 %vm1075_vm4, %v1620_v37 }
 0x16e   : > { %v1173_v46 = vpop.f32.mrf.mxu1 }
 0x170   : > { %2645 = vmatmul.msk.bf16.gmra.mxu2 %vm1075_vm4, %v1752_v19 }
 0x172   : > { %2575 = vmatmul.msk.bf16.gmra.mxu0 %vm1075_vm4, %v1507_v48 }
 0x174   : > { %2674 = vmatmul.msk.bf16.gmra.mxu3 %vm1075_vm4, %v1884_v50 }
 0x176   : > { %v1176_v12 = vpop.f32.mrf.mxu1 }
 0x179   : > { %2606 = vmatmul.msk.bf16.gmra.mxu1 %vm1075_vm4, %v1619_v61 }
 0x17b   : > { %v1100_v31 = vpop.f32.mrf.mxu0 }
 0x17c   : > { %v1172_v58 = vadd.f32 %v1171_v33, %v1100_v31 }
 0x17e   : > { %v1178_v24 = vpop.f32.mrf.mxu1 }
 0x17f   : > { %v1265_v9 = vpop.f32.mrf.mxu2 }
 0x180   : > { %2646 = vmatmul.msk.bf16.gmra.mxu2 %vm1075_vm4, %v1754_v59  ;;  %v1289_v0 = vadd.f32 %v1265_v9, %v1172_v58 }
 0x182   : > { %2576 = vmatmul.msk.bf16.gmra.mxu0 %vm1075_vm4, %v1516_v63 }
 0x183   : > { %v1102_v34 = vpop.f32.mrf.mxu0 }
 0x184   : > { %v1174_v2 = vadd.f32 %v1173_v46, %v1102_v34  ;;  %2675 = vmatmul.msk.bf16.gmra.mxu3 %vm1075_vm4, %v1893_v1 }
 0x186   : > { %v1181_v5 = vpop.f32.mrf.mxu1 }
 0x187   : > { %v1267_v4 = vpop.f32.mrf.mxu2  ;;  %v1396_v60 = vpop.f32.mrf.mxu3 }
 0x188   : > { %v1290_v62 = vadd.f32 %v1267_v4, %v1174_v2  ;;  %v3388_v7 = vadd.f32 %v1396_v60, %v1289_v0 }
 0x18b   : > { %v1105_v8 = vpop.f32.mrf.mxu0 }
 0x18c   : > { %v1177_v11 = vadd.f32 %v1176_v12, %v1105_v8 }
 0x18e   : > { %v1183_v14 = vpop.f32.mrf.mxu1 }
 0x18f   : > { %v1270_v13 = vpop.f32.mrf.mxu2  ;;  %v1398_v16 = vpop.f32.mrf.mxu3 }
 0x190   : > { %2647 = vmatmul.msk.bf16.gmra.mxu2 %vm1075_vm4, %v1753_v55  ;;  %v1291_v22 = vadd.f32 %v1270_v13, %v1177_v11  ;;  %v3391_v25 = vadd.f32 %v1398_v16, %v1290_v62 }
 0x192   : > { %2577 = vmatmul.msk.bf16.gmra.mxu0 %vm1075_vm4, %v1515_v23 }
 0x193   : > { %v1107_v26 = vpop.f32.mrf.mxu0 }
 0x194   : > { %v1179_v29 = vadd.f32 %v1178_v24, %v1107_v26  ;;  %2676 = vmatmul.msk.bf16.gmra.mxu3 %vm1075_vm4, %v1892_v21 }
 0x196   : > { %v1186_v61 = vpop.f32.mrf.mxu1 }
 0x197   : > { %v1272_v30 = vpop.f32.mrf.mxu2  ;;  %v1401_v32 = vpop.f32.mrf.mxu3 }
 0x198   : > { %v1292_v33 = vadd.f32 %v1272_v30, %v1179_v29  ;;  %v1422_v35 = vadd.f32 %v1401_v32, %v1291_v22 }
 0x19b   : > { %v1110_v36 = vpop.f32.mrf.mxu0 }
 0x19c   : > { %v1182_v37 = vadd.f32 %v1181_v5, %v1110_v36 }
 0x19e   : > { %v1188_v38 = vpop.f32.mrf.mxu1 }
 0x19f   : > { %v1275_v40 = vpop.f32.mrf.mxu2  ;;  %v1403_v41 = vpop.f32.mrf.mxu3 }
 0x1a0   : > { %v1293_v42 = vadd.f32 %v1275_v40, %v1182_v37  ;;  %v3395_v43 = vadd.f32 %v1403_v41, %v1292_v33 }
 0x1a2   : > { %2701 = vmatmul.msk.bf16.vlgmr.msrb.gmra.mxu0 %vm1075_vm4, %v3214_v45 }
 0x1a3   : > { %v1112_v44 = vpop.f32.mrf.mxu0 }
 0x1a4   : > { %v1184_v27 = vadd.f32 %v1183_v14, %v1112_v44 }
 0x1a6   : > { %v1191_v46 = vpop.f32.mrf.mxu1 }
 0x1a7   : > { %v1277_v19 = vpop.f32.mrf.mxu2  ;;  %v1406_v47 = vpop.f32.mrf.mxu3 }
 0x1a8   : > { %v1294_v15 = vadd.f32 %v1277_v19, %v1184_v27  ;;  %v3399_v48 = vadd.f32 %v1406_v47, %v1293_v42 }
 0x1ae   : > { %v1193_v50 = vpop.f32.mrf.mxu1 }
 0x1af   : > { %v1115_v49 = vpop.f32.mrf.mxu0  ;;  %v1408_v51 = vpop.f32.mrf.mxu3 }
 0x1b0   : > { %v1187_v18 = vadd.f32 %v1186_v61, %v1115_v49  ;;  %v3401_v12 = vadd.f32 %v1408_v51, %v1294_v15 }
 0x1b2   : > { %2702 = vmatmul.msk.bf16.gmra.mxu0 %vm1075_vm4, %v3255_v10 }
 0x1b3   : > { %v1280_v3 = vpop.f32.mrf.mxu2 }
 0x1b4   : > { %v1295_v52 = vadd.f32 %v1280_v3, %v1187_v18 }
 0x1b6   : > { %v1669_v53 = vpop.f32.mrf.mxu1 }
 0x1b7   : > { %v1117_v45 = vpop.f32.mrf.mxu0  ;;  %v1411_v28 = vpop.f32.mrf.mxu3 }
 0x1b8   : > { %v1189_v54 = vadd.f32 %v1188_v38, %v1117_v45  ;;  %v3405_v55 = vadd.f32 %v1411_v28, %v1295_v52 }
 0x1bb   : > { %v1282_v31 = vpop.f32.mrf.mxu2 }
 0x1bc   : > { %v1296_v56 = vadd.f32 %v1282_v31, %v1189_v54 }
 0x1be   : > { %v1671_v58 = vpop.f32.mrf.mxu1 }
 0x1bf   : > { %v1120_v57 = vpop.f32.mrf.mxu0  ;;  %v1413_v59 = vpop.f32.mrf.mxu3 }
 0x1c0   : > { %v1192_v23 = vadd.f32 %v1191_v46, %v1120_v57  ;;  %v3407_v24 = vadd.f32 %v1413_v59, %v1296_v56 }
 0x1c2   : > { %2703 = vmatmul.msk.bf16.gmra.mxu0 %vm1075_vm4, %v3299_v39 }
 0x1c3   : > { %v1285_v10 = vpop.f32.mrf.mxu2 }
 0x1c4   : > { %v1297_v9 = vadd.f32 %v1285_v10, %v1192_v23 }
 0x1c6   : > { %v1674_v63 = vpop.f32.mrf.mxu1 }
 0x1c7   : > { %v1122_v21 = vpop.f32.mrf.mxu0  ;;  %v1416_v0 = vpop.f32.mrf.mxu3 }
 0x1c8   : > { %v3411_v34 = vadd.f32 %v1416_v0, %v1297_v9 }
 0x1cb   : > { %v1287_v1 = vpop.f32.mrf.mxu2 }
 0x1ce   : > { %v1676_v5 = vpop.f32.mrf.mxu1 }
 0x1cf   : > { %v1565_v2 = vpop.f32.mrf.mxu0  ;;  %v1418_v60 = vpop.f32.mrf.mxu3 }
 0x1d0   : > { %v1589_v4 = vadd.f32 %v1565_v2, %v3388_v7 }
 0x1d2   : > { %2704 = vmatmul.msk.bf16.gmra.mxu0 %vm1075_vm4, %v3328_v6  ;;  %v1693_v62 = vadd.f32 %v1669_v53, %v1589_v4 }
 0x1d3   : > { %v1803_v8 = vpop.f32.mrf.mxu2 }
 0x1d4   : > { %v1827_v11 = vadd.f32 %v1803_v8, %v1693_v62 }
 0x1d6   : > { %v1679_v14 = vpop.f32.mrf.mxu1 }
 0x1d7   : > { %v1567_v39 = vpop.f32.mrf.mxu0  ;;  %v1942_v16 = vpop.f32.mrf.mxu3 }
 0x1d8   : > { %v1590_v13 = vadd.f32 %v1567_v39, %v3391_v25  ;;  %v3417_v22 = vadd.f32 %v1942_v16, %v1827_v11 }
 0x1da   : > { %v1694_v26 = vadd.f32 %v1671_v58, %v1590_v13 }
 0x1db   : > { %v1805_v29 = vpop.f32.mrf.mxu2 }
 0x1dc   : > { %v1828_v61 = vadd.f32 %v1805_v29, %v1694_v26 }
 0x1de   : > { %v1681_v32 = vpop.f32.mrf.mxu1 }
 0x1df   : > { %v1570_v30 = vpop.f32.mrf.mxu0  ;;  %v1944_v33 = vpop.f32.mrf.mxu3 }
 0x1e0   : > { %v1591_v7 = vadd.f32 %v1570_v30, %v1422_v35  ;;  %v3419_v36 = vadd.f32 %v1944_v33, %v1828_v61 }
 0x1e2   : > { %2705 = vmatmul.msk.bf16.gmra.mxu0 %vm1075_vm4, %v1996_v20  ;;  %v1695_v6 = vadd.f32 %v1674_v63, %v1591_v7 }
 0x1e3   : > { %v1808_v37 = vpop.f32.mrf.mxu2 }
 0x1e4   : > { %v1829_v38 = vadd.f32 %v1808_v37, %v1695_v6 }
 0x1e6   : > { %v1684_v40 = vpop.f32.mrf.mxu1 }
 0x1e7   : > { %v1572_v25 = vpop.f32.mrf.mxu0  ;;  %v1947_v42 = vpop.f32.mrf.mxu3 }
 0x1e8   : > { %v1592_v41 = vadd.f32 %v1572_v25, %v3395_v43  ;;  %v3425_v44 = vadd.f32 %v1947_v42, %v1829_v38 }
 0x1ea   : > { %v1696_v27 = vadd.f32 %v1676_v5, %v1592_v41 }
 0x1eb   : > { %v1810_v46 = vpop.f32.mrf.mxu2 }
 0x1ec   : > { %v1830_v35 = vadd.f32 %v1810_v46, %v1696_v27 }
 0x1ee   : > { %v1686_v47 = vpop.f32.mrf.mxu1 }
 0x1ef   : > { %v1575_v19 = vpop.f32.mrf.mxu0  ;;  %v1949_v17 = vpop.f32.mrf.mxu3 }
 0x1f0   : > { %v1593_v15 = vadd.f32 %v1575_v19, %v3399_v48  ;;  %v1969_v49 = vadd.f32 %v1949_v17, %v1830_v35 }
 0x1f2   : > { %v1697_v20 = vadd.f32 %v1679_v14, %v1593_v15 }
 0x1f3   : > { %v1813_v50 = vpop.f32.mrf.mxu2 }
 0x1f4   : > { %v1831_v18 = vadd.f32 %v1813_v50, %v1697_v20 }
 0x1f6   : > { %v1689_v3 = vpop.f32.mrf.mxu1 }
 0x1f7   : > { %v1577_v51 = vpop.f32.mrf.mxu0  ;;  %v1952_v43 = vpop.f32.mrf.mxu3 }
 0x1f8   : > { %v1594_v52 = vadd.f32 %v1577_v51, %v3401_v12  ;;  %v1970_v45 = vadd.f32 %v1952_v43, %v1831_v18 }
 0x1fa   : > { %v1698_v53 = vadd.f32 %v1681_v32, %v1594_v52 }
 0x1fb   : > { %v1815_v54 = vpop.f32.mrf.mxu2 }
 0x1fc   : > { %v1832_v28 = vadd.f32 %v1815_v54, %v1698_v53 }
 0x1fe   : > { %v1691_v56 = vpop.f32.mrf.mxu1 }
 0x1ff   : > { %v1580_v31 = vpop.f32.mrf.mxu0  ;;  %v1954_v58 = vpop.f32.mrf.mxu3 }
 0x200   : > { %v1595_v57 = vadd.f32 %v1580_v31, %v3405_v55  ;;  %v1971_v48 = vadd.f32 %v1954_v58, %v1832_v28 }
 0x202   : > { %v1699_v23 = vadd.f32 %v1684_v40, %v1595_v57 }
 0x203   : > { %v1818_v59 = vpop.f32.mrf.mxu2 }
 0x204   : > { %v1833_v10 = vadd.f32 %v1818_v59, %v1699_v23 }
 0x207   : > { %v1582_v9 = vpop.f32.mrf.mxu0  ;;  %v1957_v63 = vpop.f32.mrf.mxu3 }
 0x208   : > { %v1596_v21 = vadd.f32 %v1582_v9, %v3407_v24  ;;  %v1972_v0 = vadd.f32 %v1957_v63, %v1833_v10  ;;  %v2834_v24 = vld [vmem:[%s3468_s4] ss:$0 sm:$0xff] }
 0x20a   : > { %v1700_v12 = vadd.f32 %v1686_v47, %v1596_v21 }
 0x20b   : > { %v1820_v1 = vpop.f32.mrf.mxu2 }
 0x20c   : > { %v1834_v2 = vadd.f32 %v1820_v1, %v1700_v12 }
 0x20f   : > { %v1585_v5 = vpop.f32.mrf.mxu0  ;;  %v1959_v60 = vpop.f32.mrf.mxu3 }
 0x210   : > { %v1597_v4 = vadd.f32 %v1585_v5, %v3411_v34  ;;  %v1973_v62 = vadd.f32 %v1959_v60, %v1834_v2 }
 0x212   : > { %v1701_v55 = vadd.f32 %v1689_v3, %v1597_v4 }
 0x213   : > { %v1823_v8 = vpop.f32.mrf.mxu2 }
 0x214   : > { %v1835_v11 = vadd.f32 %v1823_v8, %v1701_v55 }
 0x217   : > { %v1587_v39 = vpop.f32.mrf.mxu0  ;;  %v1962_v14 = vpop.f32.mrf.mxu3 }
 0x218   : > { %v1974_v13 = vadd.f32 %v1962_v14, %v1835_v11 }
 0x21b   : > { %v1825_v16 = vpop.f32.mrf.mxu2 }
 0x21f   : > { %v2046_v26 = vpop.f32.mrf.mxu0  ;;  %v1964_v61 = vpop.f32.mrf.mxu3 }
 0x220   : > { %v2070_v29 = vadd.f32 %v2046_v26, %v3417_v22 }
 0x222   : > { %v2082_v30 = vadd.f32 %v2834_v24, %v2070_v29 }
 0x224   : > { %v2091_v34 = vmax.f32 %v2082_v30, 0.0 }
 0x226   : > { %v2100_v32 = vpack.c.bf16 %v2091_v34, %v2091_v34 }
 0x227   : > { %v2048_v7 = vpop.f32.mrf.mxu0 }
 0x228   : > { %2109 = vst.msk [vmem:[%s3440_s30] sm:$0xf] %vm228_vm3, %v2100_v32  ;;  %v2071_v33 = vadd.f32 %v2048_v7, %v3419_v36 }
 0x22a   : > { %v2083_v6 = vadd.f32 %v2834_v24, %v2071_v33 }
 0x22c   : > { %v2092_v22 = vmax.f32 %v2083_v6, 0.0 }
 0x22e   : > { %v2101_v37 = vpack.c.bf16 %v2092_v22, %v2092_v22 }
 0x22f   : > { %v2051_v38 = vpop.f32.mrf.mxu0 }
 0x230   : > { %2110 = vst.msk [vmem:[%s3440_s30 + $0x4] sm:$0xf] %vm228_vm3, %v2101_v37  ;;  %v2072_v25 = vadd.f32 %v2051_v38, %v3425_v44 }
 0x232   : > { %v2084_v40 = vadd.f32 %v2834_v24, %v2072_v25 }
 0x234   : > { %v2093_v41 = vmax.f32 %v2084_v40, 0.0 }
 0x236   : > { %v2102_v42 = vpack.c.bf16 %v2093_v41, %v2093_v41 }
 0x237   : > { %v2053_v27 = vpop.f32.mrf.mxu0 }
 0x238   : > { %2111 = vst.msk [vmem:[%s3440_s30 + $0x8] sm:$0xf] %vm228_vm3, %v2102_v42  ;;  %v2073_v46 = vadd.f32 %v2053_v27, %v1969_v49 }
 0x23a   : > { %v2085_v35 = vadd.f32 %v2834_v24, %v2073_v46 }
 0x23c   : > { %v2094_v36 = vmax.f32 %v2085_v35, 0.0 }
 0x23e   : > { %v2103_v19 = vpack.c.bf16 %v2094_v36, %v2094_v36 }
 0x23f   : > { %v2056_v47 = vpop.f32.mrf.mxu0 }
 0x240   : > { %2112 = vst.msk [vmem:[%s3440_s30 + $0xc] sm:$0xf] %vm228_vm3, %v2103_v19  ;;  %v2074_v15 = vadd.f32 %v2056_v47, %v1970_v45 }
 0x242   : > { %v2086_v17 = vadd.f32 %v2834_v24, %v2074_v15 }
 0x244   : > { %v2095_v20 = vmax.f32 %v2086_v17, 0.0 }
 0x246   : > { %v2104_v44 = vpack.c.bf16 %v2095_v20, %v2095_v20 }
 0x247   : > { %v2058_v50 = vpop.f32.mrf.mxu0 }
 0x248   : > { %2113 = vst.msk [vmem:[%s3440_s30 + $0x10] sm:$0xf] %vm228_vm3, %v2104_v44  ;;  %v2075_v18 = vadd.f32 %v2058_v50, %v1971_v48 }
 0x24a   : > { %v2087_v51 = vadd.f32 %v2834_v24, %v2075_v18 }
 0x24c   : > { %v2096_v3 = vmax.f32 %v2087_v51, 0.0 }
 0x24e   : > { %v2105_v49 = vpack.c.bf16 %v2096_v3, %v2096_v3 }
 0x24f   : > { %v2061_v52 = vpop.f32.mrf.mxu0 }
 0x250   : > { %2114 = vst.msk [vmem:[%s3440_s30 + $0x14] sm:$0xf] %vm228_vm3, %v2105_v49  ;;  %v2076_v43 = vadd.f32 %v2061_v52, %v1972_v0 }
 0x252   : > { %v2088_v53 = vadd.f32 %v2834_v24, %v2076_v43 }
 0x254   : > { %v2097_v54 = vmax.f32 %v2088_v53, 0.0 }
 0x256   : > { %v2106_v45 = vpack.c.bf16 %v2097_v54, %v2097_v54 }
 0x257   : > { %v2063_v28 = vpop.f32.mrf.mxu0 }
 0x258   : > { %2115 = vst.msk [vmem:[%s3440_s30 + $0x18] sm:$0xf] %vm228_vm3, %v2106_v45  ;;  %v2077_v31 = vadd.f32 %v2063_v28, %v1973_v62 }
 0x25a   : > { %v2089_v56 = vadd.f32 %v2834_v24, %v2077_v31 }
 0x25c   : > { %v2098_v57 = vmax.f32 %v2089_v56, 0.0 }
 0x25e   : > { %v2107_v58 = vpack.c.bf16 %v2098_v57, %v2098_v57 }
 0x25f   : > { %v2066_v48 = vpop.f32.mrf.mxu0 }
 0x260   : > { %2116 = vst.msk [vmem:[%s3440_s30 + $0x1c] sm:$0xf] %vm228_vm3, %v2107_v58  ;;  %v2078_v23 = vadd.f32 %v2066_v48, %v1974_v13 }
 0x262   : > { %v2090_v59 = vadd.f32 %v2834_v24, %v2078_v23 }
 0x264   : > { %v2099_v10 = vmax.f32 %v2090_v59, 0.0 }
 0x266   : > { %v2108_v9 = vpack.c.bf16 %v2099_v10, %v2099_v10 }
 0x267   : > { %v2068_v21 = vpop.f32.mrf.mxu0 }
 0x268   : > { %2118 = vst.msk [vmem:[%s3440_s30 + $0x20] sm:$0x7] %vm2117_vm9, %v2108_v9 }
 0x269 PF: > { %s15_s18 = sadd.s32 1, %s2841_s18  }
 0x26a   : > { %p12_p4 = scmp.ge.s32.totalorder %s15_s18, 4  }
 0x26c   :  { %14 = sbr.rel (!%p12_p4) target bundleno = 1 (0x1), region = 81 }

// kernel: qfunction_forward.5
= control target key start
LH: loop header
LB: loop body
LE: loop exit
PB: predicated region body
PF: predicated region fallthrough
CT: control target
= control target key end

     0   :  { %s21961_s0 = inlined_call_operand.vmem [shape: bf16[2,4480], index: 0, kind: input, shape index: {}]   ;;  %s21962_s1 = inlined_call_operand.vmem [shape: bf16[4480,512], index: 1, kind: input, shape index: {}]   ;;  %s21963_s2 = inlined_call_operand.vmem [shape: f32[1,512], index: 2, kind: input, shape index: {}]   ;;  %s21964_s3 = inlined_call_operand.vmem [shape: bf16[512,128], index: 3, kind: input, shape index: {}]   ;;  %s21965_s4 = inlined_call_operand.vmem [shape: f32[1,128], index: 4, kind: input, shape index: {}]   ;;  %s21966_s5 = inlined_call_operand.hbm [shape: f32[2,128], index: 5, kind: output, shape index: {}]  }
   0x1   :  { %v9107_v0 = vld [vmem:[%s21962_s1 + $0xe0] sm:$0xf]  ;;  %v13631_v1 = vld [vmem:[%s21962_s1 + $0xec] sm:$0xf0] }
   0x2   :  { %v9235_v2 = vld [vmem:[%s21962_s1 + $0x1e0] sm:$0xf]  ;;  %v9108_v3 = vor.u32 %v13631_v1, %v9107_v0  ;;  %v13663_v4 = vld [vmem:[%s21962_s1 + $0x1ec] sm:$0xf0] }
   0x3   :  { %v9363_v5 = vld [vmem:[%s21962_s1 + $0x2e0] sm:$0xf]  ;;  %v13695_v6 = vld [vmem:[%s21962_s1 + $0x2ec] sm:$0xf0]  ;;  %v9236_v7 = vor.u32 %v13663_v4, %v9235_v2 }
   0x4   :  { %v9364_v8 = vor.u32 %v13695_v6, %v9363_v5  ;;  %v9491_v9 = vld [vmem:[%s21962_s1 + $0x3e0] sm:$0xf]  ;;  %v13727_v10 = vld [vmem:[%s21962_s1 + $0x3ec] sm:$0xf0]  ;;  %6836 = vmatpush.bf16.msra.mxu0 %v9108_v3 }
   0x5   :  { %v9091_v11 = vld [vmem:[%s21962_s1 + $0xc0] sm:$0xf]  ;;  %v9492_v12 = vor.u32 %v13727_v10, %v9491_v9  ;;  %v13627_v13 = vld [vmem:[%s21962_s1 + $0xcc] sm:$0xf0]  ;;  %6849 = vmatpush.bf16.msra.mxu1 %v9236_v7 }
   0x6   :  { %v9219_v14 = vld [vmem:[%s21962_s1 + $0x1c0] sm:$0xf]  ;;  %v13659_v15 = vld [vmem:[%s21962_s1 + $0x1cc] sm:$0xf0]  ;;  %6862 = vmatpush.bf16.msra.mxu2 %v9364_v8  ;;  %v9092_v16 = vor.u32 %v13627_v13, %v9091_v11 }
   0x7   :  { %v9220_v17 = vor.u32 %v13659_v15, %v9219_v14  ;;  %v9347_v18 = vld [vmem:[%s21962_s1 + $0x2c0] sm:$0xf]  ;;  %v13691_v19 = vld [vmem:[%s21962_s1 + $0x2cc] sm:$0xf0]  ;;  %6875 = vmatpush.bf16.msra.mxu3 %v9492_v12 }
   0x8   :  { %v9475_v20 = vld [vmem:[%s21962_s1 + $0x3c0] sm:$0xf]  ;;  %v9348_v21 = vor.u32 %v13691_v19, %v9347_v18  ;;  %v13723_v22 = vld [vmem:[%s21962_s1 + $0x3cc] sm:$0xf0]  ;;  %6837 = vmatpush.bf16.msra.mxu0 %v9092_v16 }
   0x9   :  { %v9075_v23 = vld [vmem:[%s21962_s1 + $0xa0] sm:$0xf]  ;;  %v13623_v24 = vld [vmem:[%s21962_s1 + $0xac] sm:$0xf0]  ;;  %v9476_v25 = vor.u32 %v13723_v22, %v9475_v20  ;;  %6850 = vmatpush.bf16.msra.mxu1 %v9220_v17 }
   0xa   :  { %v9203_v26 = vld [vmem:[%s21962_s1 + $0x1a0] sm:$0xf]  ;;  %v13655_v27 = vld [vmem:[%s21962_s1 + $0x1ac] sm:$0xf0]  ;;  %v9076_v29 = vor.u32 %v13623_v24, %v9075_v23  ;;  %6863 = vmatpush.bf16.msra.mxu2 %v9348_v21 }
   0xb   :  { %v9331_v28 = vld [vmem:[%s21962_s1 + $0x2a0] sm:$0xf]  ;;  %v13687_v30 = vld [vmem:[%s21962_s1 + $0x2ac] sm:$0xf0]  ;;  %v9204_v33 = vor.u32 %v13655_v27, %v9203_v26  ;;  %6876 = vmatpush.bf16.msra.mxu3 %v9476_v25 }
   0xc   :  { %v9459_v31 = vld [vmem:[%s21962_s1 + $0x3a0] sm:$0xf]  ;;  %v13719_v32 = vld [vmem:[%s21962_s1 + $0x3ac] sm:$0xf0]  ;;  %v9332_v34 = vor.u32 %v13687_v30, %v9331_v28  ;;  %6838 = vmatpush.bf16.msra.mxu0 %v9076_v29 }
   0xd   :  { %v9059_v35 = vld [vmem:[%s21962_s1 + $0x80] sm:$0xf]  ;;  %v13619_v36 = vld [vmem:[%s21962_s1 + $0x8c] sm:$0xf0]  ;;  %v9460_v38 = vor.u32 %v13719_v32, %v9459_v31  ;;  %6851 = vmatpush.bf16.msra.mxu1 %v9204_v33 }
   0xe   :  { %v9187_v37 = vld [vmem:[%s21962_s1 + $0x180] sm:$0xf]  ;;  %v13651_v39 = vld [vmem:[%s21962_s1 + $0x18c] sm:$0xf0]  ;;  %v9060_v44 = vor.u32 %v13619_v36, %v9059_v35  ;;  %6864 = vmatpush.bf16.msra.mxu2 %v9332_v34 }
   0xf   :  { %v9315_v40 = vld [vmem:[%s21962_s1 + $0x280] sm:$0xf]  ;;  %v13683_v41 = vld [vmem:[%s21962_s1 + $0x28c] sm:$0xf0]  ;;  %v9188_v45 = vor.u32 %v13651_v39, %v9187_v37  ;;  %6877 = vmatpush.bf16.msra.mxu3 %v9460_v38 }
  0x10   :  { %v9443_v42 = vld [vmem:[%s21962_s1 + $0x380] sm:$0xf]  ;;  %v13715_v43 = vld [vmem:[%s21962_s1 + $0x38c] sm:$0xf0]  ;;  %v9316_v46 = vor.u32 %v13683_v41, %v9315_v40  ;;  %6839 = vmatpush.bf16.msra.mxu0 %v9060_v44 }
  0x11   :  { %v9043_v47 = vld [vmem:[%s21962_s1 + $0x60] sm:$0xf]  ;;  %v13615_v48 = vld [vmem:[%s21962_s1 + $0x6c] sm:$0xf0]  ;;  %v9444_v50 = vor.u32 %v13715_v43, %v9443_v42  ;;  %6852 = vmatpush.bf16.msra.mxu1 %v9188_v45 }
  0x12   :  { %v9171_v49 = vld [vmem:[%s21962_s1 + $0x160] sm:$0xf]  ;;  %v13647_v51 = vld [vmem:[%s21962_s1 + $0x16c] sm:$0xf0]  ;;  %v9044_v56 = vor.u32 %v13615_v48, %v9043_v47  ;;  %6865 = vmatpush.bf16.msra.mxu2 %v9316_v46 }
  0x13   :  { %v9299_v52 = vld [vmem:[%s21962_s1 + $0x260] sm:$0xf]  ;;  %v13679_v53 = vld [vmem:[%s21962_s1 + $0x26c] sm:$0xf0]  ;;  %v9172_v57 = vor.u32 %v13647_v51, %v9171_v49  ;;  %6878 = vmatpush.bf16.msra.mxu3 %v9444_v50 }
  0x14   :  { %v9427_v54 = vld [vmem:[%s21962_s1 + $0x360] sm:$0xf]  ;;  %v13711_v55 = vld [vmem:[%s21962_s1 + $0x36c] sm:$0xf0]  ;;  %v9300_v58 = vor.u32 %v13679_v53, %v9299_v52  ;;  %6840 = vmatpush.bf16.msra.mxu0 %v9044_v56 }
  0x15   :  { %v9027_v59 = vld [vmem:[%s21962_s1 + $0x40] sm:$0xf]  ;;  %v13611_v60 = vld [vmem:[%s21962_s1 + $0x4c] sm:$0xf0]  ;;  %v9428_v62 = vor.u32 %v13711_v55, %v9427_v54  ;;  %6853 = vmatpush.bf16.msra.mxu1 %v9172_v57 }
  0x16   :  { %v9155_v61 = vld [vmem:[%s21962_s1 + $0x140] sm:$0xf]  ;;  %v13643_v63 = vld [vmem:[%s21962_s1 + $0x14c] sm:$0xf0]  ;;  %v9028_v4 = vor.u32 %v13611_v60, %v9027_v59  ;;  %6866 = vmatpush.bf16.msra.mxu2 %v9300_v58 }
  0x17   :  { %v9283_v0 = vld [vmem:[%s21962_s1 + $0x240] sm:$0xf]  ;;  %v13675_v1 = vld [vmem:[%s21962_s1 + $0x24c] sm:$0xf0]  ;;  %v9156_v5 = vor.u32 %v13643_v63, %v9155_v61  ;;  %6879 = vmatpush.bf16.msra.mxu3 %v9428_v62 }
  0x18   :  { %v9411_v2 = vld [vmem:[%s21962_s1 + $0x340] sm:$0xf]  ;;  %v13707_v3 = vld [vmem:[%s21962_s1 + $0x34c] sm:$0xf0]  ;;  %v9284_v6 = vor.u32 %v13675_v1, %v9283_v0  ;;  %6841 = vmatpush.bf16.msra.mxu0 %v9028_v4 }
  0x19   :  { %v9011_v7 = vld [vmem:[%s21962_s1 + $0x20] sm:$0xf]  ;;  %v13607_v8 = vld [vmem:[%s21962_s1 + $0x2c] sm:$0xf0]  ;;  %v9412_v10 = vor.u32 %v13707_v3, %v9411_v2  ;;  %6854 = vmatpush.bf16.msra.mxu1 %v9156_v5 }
  0x1a   :  { %v9139_v9 = vld [vmem:[%s21962_s1 + $0x120] sm:$0xf]  ;;  %v13639_v11 = vld [vmem:[%s21962_s1 + $0x12c] sm:$0xf0]  ;;  %v9012_v16 = vor.u32 %v13607_v8, %v9011_v7  ;;  %6867 = vmatpush.bf16.msra.mxu2 %v9284_v6 }
  0x1b   :  { %v9267_v12 = vld [vmem:[%s21962_s1 + $0x220] sm:$0xf]  ;;  %v13671_v13 = vld [vmem:[%s21962_s1 + $0x22c] sm:$0xf0]  ;;  %v9140_v19 = vor.u32 %v13639_v11, %v9139_v9  ;;  %6880 = vmatpush.bf16.msra.mxu3 %v9412_v10 }
  0x1c   :  { %v9395_v14 = vld [vmem:[%s21962_s1 + $0x320] sm:$0xf]  ;;  %v13703_v15 = vld [vmem:[%s21962_s1 + $0x32c] sm:$0xf0]  ;;  %v9268_v20 = vor.u32 %v13671_v13, %v9267_v12  ;;  %6842 = vmatpush.bf16.msra.mxu0 %v9012_v16 }
  0x1d   :  { %v8995_v17 = vld [vmem:[%s21962_s1] sm:$0xf]  ;;  %v13603_v18 = vld [vmem:[%s21962_s1 + $0xc] sm:$0xf0]  ;;  %v9396_v24 = vor.u32 %v13703_v15, %v9395_v14  ;;  %6855 = vmatpush.bf16.msra.mxu1 %v9140_v19 }
  0x1e   :  { %v9123_v21 = vld [vmem:[%s21962_s1 + $0x100] sm:$0xf]  ;;  %v13635_v22 = vld [vmem:[%s21962_s1 + $0x10c] sm:$0xf0]  ;;  %v8996_v31 = vor.u32 %v13603_v18, %v8995_v17  ;;  %6868 = vmatpush.bf16.msra.mxu2 %v9268_v20 }
  0x1f   :  { %v9251_v23 = vld [vmem:[%s21962_s1 + $0x200] sm:$0xf]  ;;  %v13667_v25 = vld [vmem:[%s21962_s1 + $0x20c] sm:$0xf0]  ;;  %v9124_v35 = vor.u32 %v13635_v22, %v9123_v21  ;;  %6881 = vmatpush.bf16.msra.mxu3 %v9396_v24 }
  0x20   :  { %v9379_v26 = vld [vmem:[%s21962_s1 + $0x300] sm:$0xf]  ;;  %v13699_v27 = vld [vmem:[%s21962_s1 + $0x30c] sm:$0xf0]  ;;  %v9252_v36 = vor.u32 %v13667_v25, %v9251_v23  ;;  %6843 = vmatpush.bf16.msra.mxu0 %v8996_v31 }
  0x21   :  { %v9619_v28 = vld [vmem:[%s21962_s1 + $0x4e0] sm:$0xf]  ;;  %v13759_v29 = vld [vmem:[%s21962_s1 + $0x4ec] sm:$0xf0]  ;;  %v9380_v39 = vor.u32 %v13699_v27, %v9379_v26  ;;  %6856 = vmatpush.bf16.msra.mxu1 %v9124_v35 }
  0x22   :  { %v9747_v30 = vld [vmem:[%s21962_s1 + $0x5e0] sm:$0xf]  ;;  %v13791_v32 = vld [vmem:[%s21962_s1 + $0x5ec] sm:$0xf0]  ;;  %v9620_v40 = vor.u32 %v13759_v29, %v9619_v28  ;;  %6869 = vmatpush.bf16.msra.mxu2 %v9252_v36 }
  0x23   :  { %v9875_v33 = vld [vmem:[%s21962_s1 + $0x6e0] sm:$0xf]  ;;  %v13823_v34 = vld [vmem:[%s21962_s1 + $0x6ec] sm:$0xf0]  ;;  %v9748_v41 = vor.u32 %v13791_v32, %v9747_v30  ;;  %6882 = vmatpush.bf16.msra.mxu3 %v9380_v39 }
  0x24   :  { %v10003_v37 = vld [vmem:[%s21962_s1 + $0x7e0] sm:$0xf]  ;;  %v13855_v38 = vld [vmem:[%s21962_s1 + $0x7ec] sm:$0xf0]  ;;  %v9876_v42 = vor.u32 %v13823_v34, %v9875_v33  ;;  %6888 = vmatpush.bf16.msrb.mxu0 %v9620_v40 }
  0x25   :  { %v9603_v43 = vld [vmem:[%s21962_s1 + $0x4c0] sm:$0xf]  ;;  %v13755_v44 = vld [vmem:[%s21962_s1 + $0x4cc] sm:$0xf0]  ;;  %v10004_v46 = vor.u32 %v13855_v38, %v10003_v37  ;;  %6901 = vmatpush.bf16.msrb.mxu1 %v9748_v41 }
  0x26   :  { %v9731_v45 = vld [vmem:[%s21962_s1 + $0x5c0] sm:$0xf]  ;;  %v13787_v47 = vld [vmem:[%s21962_s1 + $0x5cc] sm:$0xf0]  ;;  %v9604_v52 = vor.u32 %v13755_v44, %v9603_v43  ;;  %6914 = vmatpush.bf16.msrb.mxu2 %v9876_v42 }
  0x27   :  { %v9859_v48 = vld [vmem:[%s21962_s1 + $0x6c0] sm:$0xf]  ;;  %v13819_v49 = vld [vmem:[%s21962_s1 + $0x6cc] sm:$0xf0]  ;;  %v9732_v53 = vor.u32 %v13787_v47, %v9731_v45  ;;  %6927 = vmatpush.bf16.msrb.mxu3 %v10004_v46 }
  0x28   :  { %v9987_v50 = vld [vmem:[%s21962_s1 + $0x7c0] sm:$0xf]  ;;  %v13851_v51 = vld [vmem:[%s21962_s1 + $0x7cc] sm:$0xf0]  ;;  %v9860_v54 = vor.u32 %v13819_v49, %v9859_v48  ;;  %6889 = vmatpush.bf16.msrb.mxu0 %v9604_v52 }
  0x29   :  { %v9587_v55 = vld [vmem:[%s21962_s1 + $0x4a0] sm:$0xf]  ;;  %v13751_v56 = vld [vmem:[%s21962_s1 + $0x4ac] sm:$0xf0]  ;;  %v9988_v58 = vor.u32 %v13851_v51, %v9987_v50  ;;  %6902 = vmatpush.bf16.msrb.mxu1 %v9732_v53 }
  0x2a   :  { %v9715_v57 = vld [vmem:[%s21962_s1 + $0x5a0] sm:$0xf]  ;;  %v13783_v59 = vld [vmem:[%s21962_s1 + $0x5ac] sm:$0xf0]  ;;  %v9588_v0 = vor.u32 %v13751_v56, %v9587_v55  ;;  %6915 = vmatpush.bf16.msrb.mxu2 %v9860_v54 }
  0x2b   :  { %v9843_v60 = vld [vmem:[%s21962_s1 + $0x6a0] sm:$0xf]  ;;  %v13815_v61 = vld [vmem:[%s21962_s1 + $0x6ac] sm:$0xf0]  ;;  %v9716_v3 = vor.u32 %v13783_v59, %v9715_v57  ;;  %6928 = vmatpush.bf16.msrb.mxu3 %v9988_v58 }
  0x2c   :  { %v9971_v62 = vld [vmem:[%s21962_s1 + $0x7a0] sm:$0xf]  ;;  %v13847_v63 = vld [vmem:[%s21962_s1 + $0x7ac] sm:$0xf0]  ;;  %v9844_v4 = vor.u32 %v13815_v61, %v9843_v60  ;;  %6890 = vmatpush.bf16.msrb.mxu0 %v9588_v0  ;;  %v22_v61 = vld [vmem:[%s21961_s0 + $0x8] sm:$0xff] }
  0x2d   :  { %v9571_v1 = vld [vmem:[%s21962_s1 + $0x480] sm:$0xf]  ;;  %v13747_v5 = vld [vmem:[%s21962_s1 + $0x48c] sm:$0xf0]  ;;  %v9972_v7 = vor.u32 %v13847_v63, %v9971_v62  ;;  %6903 = vmatpush.bf16.msrb.mxu1 %v9716_v3 }
  0x2e   :  { %v21_v2 = vld [vmem:[%s21961_s0] sm:$0xff]  ;;  %v13779_v8 = vld [vmem:[%s21962_s1 + $0x58c] sm:$0xf0]  ;;  %v9572_v13 = vor.u32 %v13747_v5, %v9571_v1  ;;  %6916 = vmatpush.bf16.msrb.mxu2 %v9844_v4 }
  0x2f   :  { %v9699_v6 = vld [vmem:[%s21962_s1 + $0x580] sm:$0xf]  ;;  %1157 = vst [vmem:[#allocation1] ss:$9 sm:$0xff] %v21_v2  ;;  %v13811_v10 = vld [vmem:[%s21962_s1 + $0x68c] sm:$0xf0]  ;;  %6929 = vmatpush.bf16.msrb.mxu3 %v9972_v7 }
  0x30   :  { %v9827_v9 = vld [vmem:[%s21962_s1 + $0x680] sm:$0xf]  ;;  %v13843_v12 = vld [vmem:[%s21962_s1 + $0x78c] sm:$0xf0]  ;;  %v9700_v14 = vor.u32 %v13779_v8, %v9699_v6  ;;  %6891 = vmatpush.bf16.msrb.mxu0 %v9572_v13 }
  0x31   :  { %v9955_v11 = vld [vmem:[%s21962_s1 + $0x780] sm:$0xf]  ;;  %v9828_v15 = vor.u32 %v13811_v10, %v9827_v9  ;;  %v13743_v17 = vld [vmem:[%s21962_s1 + $0x46c] sm:$0xf0] }
  0x32   :  { %v9555_v16 = vld [vmem:[%s21962_s1 + $0x460] sm:$0xf]  ;;  %v9956_v19 = vor.u32 %v13843_v12, %v9955_v11  ;;  %v13775_v20 = vld [vmem:[%s21962_s1 + $0x56c] sm:$0xf0]  ;;  %6904 = vmatpush.bf16.msrb.mxu1 %v9700_v14 }
  0x33   :  { %v9683_v18 = vld [vmem:[%s21962_s1 + $0x560] sm:$0xf]  ;;  %v13807_v22 = vld [vmem:[%s21962_s1 + $0x66c] sm:$0xf0]  ;;  %v9556_v26 = vor.u32 %v13743_v17, %v9555_v16  ;;  %6917 = vmatpush.bf16.msrb.mxu2 %v9828_v15 }
  0x34   :  { %v9811_v21 = vld [vmem:[%s21962_s1 + $0x660] sm:$0xf]  ;;  %v13839_v24 = vld [vmem:[%s21962_s1 + $0x76c] sm:$0xf0]  ;;  %v9684_v30 = vor.u32 %v13775_v20, %v9683_v18  ;;  %6930 = vmatpush.bf16.msrb.mxu3 %v9956_v19 }
  0x35   :  { %v9939_v23 = vld [vmem:[%s21962_s1 + $0x760] sm:$0xf]  ;;  %v9812_v31 = vor.u32 %v13807_v22, %v9811_v21  ;;  %v13739_v32 = vld [vmem:[%s21962_s1 + $0x44c] sm:$0xf0]  ;;  %6892 = vmatpush.bf16.msrb.mxu0 %v9556_v26 }
  0x36   :  { %v9539_v25 = vld [vmem:[%s21962_s1 + $0x440] sm:$0xf]  ;;  %v15142_v27 = vld [vmem:[#allocation1 + $0x12] sm:$0xff]  ;;  %v15154_v34 = vld [vmem:[#allocation1 + $0x9] sm:$0xff]  ;;  %v9940_v35 = vor.u32 %v13839_v24, %v9939_v23  ;;  %6905 = vmatpush.bf16.msrb.mxu1 %v9684_v30 }
  0x37   :  { %v15144_v28 = vld [vmem:[#allocation1] sm:$0xff]  ;;  %v13771_v36 = vld [vmem:[%s21962_s1 + $0x54c] sm:$0xf0]  ;;  %6870 = vmatmul.bf16.vlgmr.msra.gmra.mxu2 %v15142_v27  ;;  %v9540_v41 = vor.u32 %v13739_v32, %v9539_v25  ;;  %6857 = vmatmul.bf16.vlgmr.msra.gmra.mxu1 %v15154_v34  ;;  %v15217_v60 = vld [vmem:[#allocation1 + $0x36] sm:$0xff] }
  0x38   :  { %v15146_v29 = vld [vmem:[#allocation1 + $0x1b] sm:$0xff]  ;;  %v13803_v38 = vld [vmem:[%s21962_s1 + $0x64c] sm:$0xf0]  ;;  %6844 = vmatmul.bf16.vlgmr.msra.gmra.mxu0 %v15144_v28  ;;  %6918 = vmatpush.bf16.msrb.mxu2 %v9812_v31  ;;  %v15222_v0 = vld [vmem:[#allocation1 + $0x24] sm:$0xff] }
  0x39   :  { %v9667_v33 = vld [vmem:[%s21962_s1 + $0x540] sm:$0xf]  ;;  %v13835_v40 = vld [vmem:[%s21962_s1 + $0x74c] sm:$0xf0]  ;;  %6883 = vmatmul.bf16.vlgmr.msra.gmra.mxu3 %v15146_v29  ;;  %6893 = vmatpush.bf16.msrb.mxu0 %v9540_v41 }
  0x3a   :  { %v9795_v37 = vld [vmem:[%s21962_s1 + $0x640] sm:$0xf]  ;;  %v9668_v43 = vor.u32 %v13771_v36, %v9667_v33  ;;  %v13735_v45 = vld [vmem:[%s21962_s1 + $0x42c] sm:$0xf0]  ;;  %6931 = vmatpush.bf16.msrb.mxu3 %v9940_v35 }
  0x3b   :  { %v9923_v39 = vld [vmem:[%s21962_s1 + $0x740] sm:$0xf]  ;;  %v9796_v44 = vor.u32 %v13803_v38, %v9795_v37  ;;  %v13767_v47 = vld [vmem:[%s21962_s1 + $0x52c] sm:$0xf0] }
  0x3c   :  { %v9523_v42 = vld [vmem:[%s21962_s1 + $0x420] sm:$0xf]  ;;  %v9924_v48 = vor.u32 %v13835_v40, %v9923_v39  ;;  %v13799_v50 = vld [vmem:[%s21962_s1 + $0x62c] sm:$0xf0]  ;;  %6906 = vmatpush.bf16.msrb.mxu1 %v9668_v43 }
  0x3d   :  { %v9651_v46 = vld [vmem:[%s21962_s1 + $0x520] sm:$0xf]  ;;  %v13831_v52 = vld [vmem:[%s21962_s1 + $0x72c] sm:$0xf0]  ;;  %v9524_v55 = vor.u32 %v13735_v45, %v9523_v42  ;;  %6919 = vmatpush.bf16.msrb.mxu2 %v9796_v44 }
  0x3e   :  { %v9779_v49 = vld [vmem:[%s21962_s1 + $0x620] sm:$0xf]  ;;  %v13731_v54 = vld [vmem:[%s21962_s1 + $0x40c] sm:$0xf0]  ;;  %v9652_v62 = vor.u32 %v13767_v47, %v9651_v46  ;;  %6932 = vmatpush.bf16.msrb.mxu3 %v9924_v48 }
  0x3f   :  { %v9907_v51 = vld [vmem:[%s21962_s1 + $0x720] sm:$0xf]  ;;  %v13763_v57 = vld [vmem:[%s21962_s1 + $0x50c] sm:$0xf0]  ;;  %v9780_v63 = vor.u32 %v13799_v50, %v9779_v49  ;;  %6894 = vmatpush.bf16.msrb.mxu0 %v9524_v55 }
  0x40   :  { %v9507_v53 = vld [vmem:[%s21962_s1 + $0x400] sm:$0xf]  ;;  %v13795_v59 = vld [vmem:[%s21962_s1 + $0x60c] sm:$0xf0]  ;;  %v9908_v3 = vor.u32 %v13831_v52, %v9907_v51  ;;  %6907 = vmatpush.bf16.msrb.mxu1 %v9652_v62 }
  0x41   :  { %v9635_v56 = vld [vmem:[%s21962_s1 + $0x500] sm:$0xf]  ;;  %v15226_v2 = vld [vmem:[#allocation1 + $0x2d] sm:$0xff]  ;;  %v9508_v9 = vor.u32 %v13731_v54, %v9507_v53  ;;  %6920 = vmatpush.bf16.msrb.mxu2 %v9780_v63 }
  0x42   :  { %v9763_v58 = vld [vmem:[%s21962_s1 + $0x600] sm:$0xf]  ;;  %v13827_v5 = vld [vmem:[%s21962_s1 + $0x70c] sm:$0xf0]  ;;  %v9636_v13 = vor.u32 %v13763_v57, %v9635_v56  ;;  %6933 = vmatpush.bf16.msrb.mxu3 %v9908_v3 }
  0x43   :  { %v15224_v1 = vld [vmem:[#allocation1 + $0x3f] sm:$0xff]  ;;  %v13887_v7 = vld [vmem:[%s21962_s1 + $0x8ec] sm:$0xf0]  ;;  %v9764_v14 = vor.u32 %v13795_v59, %v9763_v58  ;;  %6895 = vmatpush.bf16.msrb.mxu0 %v9508_v9 }
  0x44   :  { %v9891_v4 = vld [vmem:[%s21962_s1 + $0x700] sm:$0xf]  ;;  %1167 = vst [vmem:[#allocation1] ss:$9 sm:$0xff] %v22_v61  ;;  %v13919_v10 = vld [vmem:[%s21962_s1 + $0x9ec] sm:$0xf0]  ;;  %6908 = vmatpush.bf16.msrb.mxu1 %v9636_v13 }
  0x45   :  { %v10131_v6 = vld [vmem:[%s21962_s1 + $0x8e0] sm:$0xf]  ;;  %v13951_v12 = vld [vmem:[%s21962_s1 + $0xaec] sm:$0xf0]  ;;  %v9892_v17 = vor.u32 %v13827_v5, %v9891_v4  ;;  %6921 = vmatpush.bf16.msrb.mxu2 %v9764_v14 }
  0x46   :  { %v10259_v8 = vld [vmem:[%s21962_s1 + $0x9e0] sm:$0xf]  ;;  %v13983_v16 = vld [vmem:[%s21962_s1 + $0xbec] sm:$0xf0]  ;;  %v10132_v18 = vor.u32 %v13887_v7, %v10131_v6 }
  0x47   :  { %v10387_v11 = vld [vmem:[%s21962_s1 + $0xae0] sm:$0xf]  ;;  %v10260_v19 = vor.u32 %v13919_v10, %v10259_v8  ;;  %v13883_v22 = vld [vmem:[%s21962_s1 + $0x8cc] sm:$0xf0]  ;;  %6934 = vmatpush.bf16.msrb.mxu3 %v9892_v17  ;;  %6909 = vmatmul.bf16.vlgmr.msrb.gmra.mxu1 %v15226_v2 }
  0x48   :  { %v10515_v15 = vld [vmem:[%s21962_s1 + $0xbe0] sm:$0xf]  ;;  %v10388_v20 = vor.u32 %v13951_v12, %v10387_v11  ;;  %v13915_v25 = vld [vmem:[%s21962_s1 + $0x9cc] sm:$0xf0]  ;;  %6940 = vmatpush.bf16.msra.mxu0 %v10132_v18  ;;  %6922 = vmatmul.bf16.vlgmr.msrb.gmra.mxu2 %v15217_v60 }
  0x49   :  { %v10115_v21 = vld [vmem:[%s21962_s1 + $0x8c0] sm:$0xf]  ;;  %v10516_v24 = vor.u32 %v13983_v16, %v10515_v15  ;;  %v13947_v30 = vld [vmem:[%s21962_s1 + $0xacc] sm:$0xf0]  ;;  %6953 = vmatpush.bf16.msra.mxu1 %v10260_v19  ;;  %6896 = vmatmul.bf16.vlgmr.msrb.gmra.mxu0 %v15222_v0 }
  0x4a   :  { %v10243_v23 = vld [vmem:[%s21962_s1 + $0x9c0] sm:$0xf]  ;;  %v13979_v32 = vld [vmem:[%s21962_s1 + $0xbcc] sm:$0xf0]  ;;  %v10116_v33 = vor.u32 %v13883_v22, %v10115_v21  ;;  %6966 = vmatpush.bf16.msra.mxu2 %v10388_v20  ;;  %6935 = vmatmul.bf16.vlgmr.msrb.gmra.mxu3 %v15224_v1 }
  0x4b   :  { %v10371_v26 = vld [vmem:[%s21962_s1 + $0xac0] sm:$0xf]  ;;  %v10244_v35 = vor.u32 %v13915_v25, %v10243_v23  ;;  %v13879_v38 = vld [vmem:[%s21962_s1 + $0x8ac] sm:$0xf0]  ;;  %6979 = vmatpush.bf16.msra.mxu3 %v10516_v24 }
  0x4c   :  { %v10499_v31 = vld [vmem:[%s21962_s1 + $0xbc0] sm:$0xf]  ;;  %v10372_v36 = vor.u32 %v13947_v30, %v10371_v26  ;;  %v13911_v41 = vld [vmem:[%s21962_s1 + $0x9ac] sm:$0xf0]  ;;  %6941 = vmatpush.bf16.msra.mxu0 %v10116_v33 }
  0x4d   :  { %v10099_v37 = vld [vmem:[%s21962_s1 + $0x8a0] sm:$0xf]  ;;  %v10500_v40 = vor.u32 %v13979_v32, %v10499_v31  ;;  %v13943_v43 = vld [vmem:[%s21962_s1 + $0xaac] sm:$0xf0]  ;;  %6954 = vmatpush.bf16.msra.mxu1 %v10244_v35 }
  0x4e   :  { %v10227_v39 = vld [vmem:[%s21962_s1 + $0x9a0] sm:$0xf]  ;;  %v13975_v45 = vld [vmem:[%s21962_s1 + $0xbac] sm:$0xf0]  ;;  %v10100_v46 = vor.u32 %v13879_v38, %v10099_v37  ;;  %6967 = vmatpush.bf16.msra.mxu2 %v10372_v36 }
  0x4f   :  { %v10355_v42 = vld [vmem:[%s21962_s1 + $0xaa0] sm:$0xf]  ;;  %v10228_v47 = vor.u32 %v13911_v41, %v10227_v39  ;;  %v13875_v50 = vld [vmem:[%s21962_s1 + $0x88c] sm:$0xf0]  ;;  %6980 = vmatpush.bf16.msra.mxu3 %v10500_v40 }
  0x50   :  { %v10483_v44 = vld [vmem:[%s21962_s1 + $0xba0] sm:$0xf]  ;;  %v10356_v48 = vor.u32 %v13943_v43, %v10355_v42  ;;  %v13907_v53 = vld [vmem:[%s21962_s1 + $0x98c] sm:$0xf0]  ;;  %6942 = vmatpush.bf16.msra.mxu0 %v10100_v46 }
  0x51   :  { %v10083_v49 = vld [vmem:[%s21962_s1 + $0x880] sm:$0xf]  ;;  %v10484_v52 = vor.u32 %v13975_v45, %v10483_v44  ;;  %v13939_v55 = vld [vmem:[%s21962_s1 + $0xa8c] sm:$0xf0]  ;;  %6955 = vmatpush.bf16.msra.mxu1 %v10228_v47 }
  0x52   :  { %v10211_v51 = vld [vmem:[%s21962_s1 + $0x980] sm:$0xf]  ;;  %v13971_v57 = vld [vmem:[%s21962_s1 + $0xb8c] sm:$0xf0]  ;;  %v10084_v58 = vor.u32 %v13875_v50, %v10083_v49  ;;  %6968 = vmatpush.bf16.msra.mxu2 %v10356_v48 }
  0x53   :  { %v10339_v54 = vld [vmem:[%s21962_s1 + $0xa80] sm:$0xf]  ;;  %v10212_v59 = vor.u32 %v13907_v53, %v10211_v51  ;;  %v13871_v63 = vld [vmem:[%s21962_s1 + $0x86c] sm:$0xf0]  ;;  %6981 = vmatpush.bf16.msra.mxu3 %v10484_v52 }
  0x54   :  { %v10467_v56 = vld [vmem:[%s21962_s1 + $0xb80] sm:$0xf]  ;;  %v10340_v61 = vor.u32 %v13939_v55, %v10339_v54  ;;  %v13903_v5 = vld [vmem:[%s21962_s1 + $0x96c] sm:$0xf0]  ;;  %6943 = vmatpush.bf16.msra.mxu0 %v10084_v58 }
  0x55   :  { %v10067_v62 = vld [vmem:[%s21962_s1 + $0x860] sm:$0xf]  ;;  %v10468_v4 = vor.u32 %v13971_v57, %v10467_v56  ;;  %v13935_v7 = vld [vmem:[%s21962_s1 + $0xa6c] sm:$0xf0]  ;;  %6956 = vmatpush.bf16.msra.mxu1 %v10212_v59 }
  0x56   :  { %v10195_v3 = vld [vmem:[%s21962_s1 + $0x960] sm:$0xf]  ;;  %v13967_v9 = vld [vmem:[%s21962_s1 + $0xb6c] sm:$0xf0]  ;;  %v10068_v10 = vor.u32 %v13871_v63, %v10067_v62  ;;  %6969 = vmatpush.bf16.msra.mxu2 %v10340_v61 }
  0x57   :  { %v10323_v6 = vld [vmem:[%s21962_s1 + $0xa60] sm:$0xf]  ;;  %v10196_v11 = vor.u32 %v13903_v5, %v10195_v3  ;;  %v13867_v14 = vld [vmem:[%s21962_s1 + $0x84c] sm:$0xf0]  ;;  %6982 = vmatpush.bf16.msra.mxu3 %v10468_v4 }
  0x58   :  { %v10451_v8 = vld [vmem:[%s21962_s1 + $0xb60] sm:$0xf]  ;;  %v10324_v12 = vor.u32 %v13935_v7, %v10323_v6  ;;  %v13899_v17 = vld [vmem:[%s21962_s1 + $0x94c] sm:$0xf0]  ;;  %6944 = vmatpush.bf16.msra.mxu0 %v10068_v10 }
  0x59   :  { %v10051_v13 = vld [vmem:[%s21962_s1 + $0x840] sm:$0xf]  ;;  %v10452_v16 = vor.u32 %v13967_v9, %v10451_v8  ;;  %v13931_v19 = vld [vmem:[%s21962_s1 + $0xa4c] sm:$0xf0]  ;;  %6957 = vmatpush.bf16.msra.mxu1 %v10196_v11 }
  0x5a   :  { %v10179_v15 = vld [vmem:[%s21962_s1 + $0x940] sm:$0xf]  ;;  %v13963_v21 = vld [vmem:[%s21962_s1 + $0xb4c] sm:$0xf0]  ;;  %v10052_v22 = vor.u32 %v13867_v14, %v10051_v13  ;;  %6970 = vmatpush.bf16.msra.mxu2 %v10324_v12 }
  0x5b   :  { %v10307_v18 = vld [vmem:[%s21962_s1 + $0xa40] sm:$0xf]  ;;  %v10180_v23 = vor.u32 %v13899_v17, %v10179_v15  ;;  %v13863_v26 = vld [vmem:[%s21962_s1 + $0x82c] sm:$0xf0]  ;;  %6983 = vmatpush.bf16.msra.mxu3 %v10452_v16 }
  0x5c   :  { %v10435_v20 = vld [vmem:[%s21962_s1 + $0xb40] sm:$0xf]  ;;  %v10308_v24 = vor.u32 %v13931_v19, %v10307_v18  ;;  %v13895_v32 = vld [vmem:[%s21962_s1 + $0x92c] sm:$0xf0]  ;;  %6945 = vmatpush.bf16.msra.mxu0 %v10052_v22 }
  0x5d   :  { %v10035_v25 = vld [vmem:[%s21962_s1 + $0x820] sm:$0xf]  ;;  %v10436_v31 = vor.u32 %v13963_v21, %v10435_v20  ;;  %v13927_v35 = vld [vmem:[%s21962_s1 + $0xa2c] sm:$0xf0]  ;;  %6958 = vmatpush.bf16.msra.mxu1 %v10180_v23 }
  0x5e   :  { %v10163_v30 = vld [vmem:[%s21962_s1 + $0x920] sm:$0xf]  ;;  %v13959_v37 = vld [vmem:[%s21962_s1 + $0xb2c] sm:$0xf0]  ;;  %v10036_v38 = vor.u32 %v13863_v26, %v10035_v25  ;;  %6971 = vmatpush.bf16.msra.mxu2 %v10308_v24 }
  0x5f   :  { %v10291_v33 = vld [vmem:[%s21962_s1 + $0xa20] sm:$0xf]  ;;  %v13859_v40 = vld [vmem:[%s21962_s1 + $0x80c] sm:$0xf0]  ;;  %v10164_v41 = vor.u32 %v13895_v32, %v10163_v30  ;;  %6984 = vmatpush.bf16.msra.mxu3 %v10436_v31 }
  0x60   :  { %v10419_v36 = vld [vmem:[%s21962_s1 + $0xb20] sm:$0xf]  ;;  %v10292_v42 = vor.u32 %v13927_v35, %v10291_v33  ;;  %v13891_v44 = vld [vmem:[%s21962_s1 + $0x90c] sm:$0xf0]  ;;  %6946 = vmatpush.bf16.msra.mxu0 %v10036_v38 }
  0x61   :  { %v10019_v39 = vld [vmem:[%s21962_s1 + $0x800] sm:$0xf]  ;;  %v10420_v46 = vor.u32 %v13959_v37, %v10419_v36  ;;  %v13923_v47 = vld [vmem:[%s21962_s1 + $0xa0c] sm:$0xf0]  ;;  %6959 = vmatpush.bf16.msra.mxu1 %v10164_v41 }
  0x62   :  { %v10147_v43 = vld [vmem:[%s21962_s1 + $0x900] sm:$0xf]  ;;  %v13955_v49 = vld [vmem:[%s21962_s1 + $0xb0c] sm:$0xf0]  ;;  %v10020_v53 = vor.u32 %v13859_v40, %v10019_v39  ;;  %6972 = vmatpush.bf16.msra.mxu2 %v10292_v42 }
  0x63   :  { %v10275_v45 = vld [vmem:[%s21962_s1 + $0xa00] sm:$0xf]  ;;  %v14015_v51 = vld [vmem:[%s21962_s1 + $0xcec] sm:$0xf0]  ;;  %v10148_v57 = vor.u32 %v13891_v44, %v10147_v43  ;;  %6985 = vmatpush.bf16.msra.mxu3 %v10420_v46 }
  0x64   :  { %v10403_v48 = vld [vmem:[%s21962_s1 + $0xb00] sm:$0xf]  ;;  %v14047_v54 = vld [vmem:[%s21962_s1 + $0xdec] sm:$0xf0]  ;;  %v10276_v58 = vor.u32 %v13923_v47, %v10275_v45  ;;  %6947 = vmatpush.bf16.msra.mxu0 %v10020_v53 }
  0x65   :  { %v10643_v50 = vld [vmem:[%s21962_s1 + $0xce0] sm:$0xf]  ;;  %v14079_v56 = vld [vmem:[%s21962_s1 + $0xeec] sm:$0xf0]  ;;  %v10404_v62 = vor.u32 %v13955_v49, %v10403_v48  ;;  %6960 = vmatpush.bf16.msra.mxu1 %v10148_v57 }
  0x66   :  { %v10771_v52 = vld [vmem:[%s21962_s1 + $0xde0] sm:$0xf]  ;;  %v14111_v61 = vld [vmem:[%s21962_s1 + $0xfec] sm:$0xf0]  ;;  %v10644_v63 = vor.u32 %v14015_v51, %v10643_v50  ;;  %6973 = vmatpush.bf16.msra.mxu2 %v10276_v58 }
  0x67   :  { %v10899_v55 = vld [vmem:[%s21962_s1 + $0xee0] sm:$0xf]  ;;  %v10772_v3 = vor.u32 %v14047_v54, %v10771_v52  ;;  %v14011_v6 = vld [vmem:[%s21962_s1 + $0xccc] sm:$0xf0]  ;;  %6986 = vmatpush.bf16.msra.mxu3 %v10404_v62 }
  0x68   :  { %v11027_v59 = vld [vmem:[%s21962_s1 + $0xfe0] sm:$0xf]  ;;  %v10900_v4 = vor.u32 %v14079_v56, %v10899_v55  ;;  %v14043_v9 = vld [vmem:[%s21962_s1 + $0xdcc] sm:$0xf0]  ;;  %6992 = vmatpush.bf16.msrb.mxu0 %v10644_v63 }
  0x69   :  { %v10627_v5 = vld [vmem:[%s21962_s1 + $0xcc0] sm:$0xf]  ;;  %v11028_v8 = vor.u32 %v14111_v61, %v11027_v59  ;;  %v14075_v11 = vld [vmem:[%s21962_s1 + $0xecc] sm:$0xf0]  ;;  %7005 = vmatpush.bf16.msrb.mxu1 %v10772_v3 }
  0x6a   :  { %v10755_v7 = vld [vmem:[%s21962_s1 + $0xdc0] sm:$0xf]  ;;  %v14107_v14 = vld [vmem:[%s21962_s1 + $0xfcc] sm:$0xf0]  ;;  %v10628_v18 = vor.u32 %v14011_v6, %v10627_v5  ;;  %7018 = vmatpush.bf16.msrb.mxu2 %v10900_v4 }
  0x6b   :  { %v10883_v10 = vld [vmem:[%s21962_s1 + $0xec0] sm:$0xf]  ;;  %v15480_v15 = vld [vmem:[#allocation1 + $0x12] sm:$0xff]  ;;  %v15482_v16 = vld [vmem:[#allocation1 + $0x9] sm:$0xff]  ;;  %v10756_v19 = vor.u32 %v14043_v9, %v10755_v7  ;;  %7031 = vmatpush.bf16.msrb.mxu3 %v11028_v8 }
  0x6c   :  { %v15472_v12 = vld [vmem:[#allocation1] sm:$0xff]  ;;  %v10884_v20 = vor.u32 %v14075_v11, %v10883_v10  ;;  %v14007_v22 = vld [vmem:[%s21962_s1 + $0xcac] sm:$0xf0]  ;;  %6974 = vmatmul.bf16.vlgmr.msra.gmra.mxu2 %v15480_v15  ;;  %6961 = vmatmul.bf16.vlgmr.msra.gmra.mxu1 %v15482_v16 }
  0x6d   :  { %v11011_v13 = vld [vmem:[%s21962_s1 + $0xfc0] sm:$0xf]  ;;  %6948 = vmatmul.bf16.vlgmr.msra.gmra.mxu0 %v15472_v12  ;;  %v14039_v25 = vld [vmem:[%s21962_s1 + $0xdac] sm:$0xf0]  ;;  %7006 = vmatpush.bf16.msrb.mxu1 %v10756_v19 }
  0x6e   :  { %v15484_v17 = vld [vmem:[#allocation1 + $0x1b] sm:$0xff]  ;;  %v11012_v24 = vor.u32 %v14107_v14, %v11011_v13  ;;  %v14071_v30 = vld [vmem:[%s21962_s1 + $0xeac] sm:$0xf0]  ;;  %6993 = vmatpush.bf16.msrb.mxu0 %v10628_v18  ;;  %7019 = vmatpush.bf16.msrb.mxu2 %v10884_v20 }
  0x6f   :  { %v10611_v21 = vld [vmem:[%s21962_s1 + $0xca0] sm:$0xf]  ;;  %v14103_v32 = vld [vmem:[%s21962_s1 + $0xfac] sm:$0xf0]  ;;  %6987 = vmatmul.bf16.vlgmr.msra.gmra.mxu3 %v15484_v17 }
  0x70   :  { %v10739_v23 = vld [vmem:[%s21962_s1 + $0xda0] sm:$0xf]  ;;  %v10612_v33 = vor.u32 %v14007_v22, %v10611_v21  ;;  %v14003_v38 = vld [vmem:[%s21962_s1 + $0xc8c] sm:$0xf0]  ;;  %7032 = vmatpush.bf16.msrb.mxu3 %v11012_v24 }
  0x71   :  { %v10867_v26 = vld [vmem:[%s21962_s1 + $0xea0] sm:$0xf]  ;;  %v10740_v36 = vor.u32 %v14039_v25, %v10739_v23  ;;  %v14035_v40 = vld [vmem:[%s21962_s1 + $0xd8c] sm:$0xf0] }
  0x72   :  { %v10995_v31 = vld [vmem:[%s21962_s1 + $0xfa0] sm:$0xf]  ;;  %v10868_v37 = vor.u32 %v14071_v30, %v10867_v26  ;;  %v14067_v43 = vld [vmem:[%s21962_s1 + $0xe8c] sm:$0xf0] }
  0x73   :  { %v10595_v35 = vld [vmem:[%s21962_s1 + $0xc80] sm:$0xf]  ;;  %v10996_v41 = vor.u32 %v14103_v32, %v10995_v31  ;;  %v14099_v45 = vld [vmem:[%s21962_s1 + $0xf8c] sm:$0xf0] }
  0x74   :  { %v10723_v39 = vld [vmem:[%s21962_s1 + $0xd80] sm:$0xf] }
  0x75   :  { %v10851_v42 = vld [vmem:[%s21962_s1 + $0xe80] sm:$0xf] }
  0x76   :  { %v10979_v44 = vld [vmem:[%s21962_s1 + $0xf80] sm:$0xf] }
  0x77   :  { %10 = vsyncpa [#allocation3], 0  ;;  %6994 = vmatpush.bf16.msrb.mxu0 %v10612_v33  ;;  %v10596_v46 = vor.u32 %v14003_v38, %v10595_v35  ;;  %7007 = vmatpush.bf16.msrb.mxu1 %v10740_v36  ;;  %v10724_v47 = vor.u32 %v14035_v40, %v10723_v39  ;;  %v10852_v48 = vor.u32 %v14067_v43, %v10851_v42  ;;  %v10579_v49 = vld [vmem:[%s21962_s1 + $0xc60] sm:$0xf]  ;;  %v13999_v50 = vld [vmem:[%s21962_s1 + $0xc6c] sm:$0xf0] }
  0x78   :  { %7020 = vmatpush.bf16.msrb.mxu2 %v10868_v37  ;;  %v10707_v51 = vld [vmem:[%s21962_s1 + $0xd60] sm:$0xf]  ;;  %7033 = vmatpush.bf16.msrb.mxu3 %v10996_v41  ;;  %v10980_v52 = vor.u32 %v14099_v45, %v10979_v44  ;;  %v14031_v53 = vld [vmem:[%s21962_s1 + $0xd6c] sm:$0xf0]  ;;  %v10580_v58 = vor.u32 %v13999_v50, %v10579_v49  ;;  %s14793_s24 = smov [#allocation2]   ;;  %s8984_s28 = sshll.u32 %s21966_s5, 4  ;;  %s8985_s28 = int_to_ptr.hbm [resolvable:$true] %s8984_s28 }
  0x79   :  { %v10835_v54 = vld [vmem:[%s21962_s1 + $0xe60] sm:$0xf]  ;;  %v14063_v55 = vld [vmem:[%s21962_s1 + $0xe6c] sm:$0xf0]  ;;  %v10708_v59 = vor.u32 %v14031_v53, %v10707_v51  ;;  %s8982_s25 = sshll.u32 %s14793_s24, 4  ;;  %s8983_s25 = int_to_ptr.vmem [resolvable:$true] %s8982_s25 }
  0x7a   :  { %v10963_v56 = vld [vmem:[%s21962_s1 + $0xf60] sm:$0xf]  ;;  %v14095_v57 = vld [vmem:[%s21962_s1 + $0xf6c] sm:$0xf0]  ;;  %v10836_v61 = vor.u32 %v14063_v55, %v10835_v54 }
  0x7b   :  { %6995 = vmatpush.bf16.msrb.mxu0 %v10596_v46  ;;  %7008 = vmatpush.bf16.msrb.mxu1 %v10724_v47  ;;  %v10563_v62 = vld [vmem:[%s21962_s1 + $0xc40] sm:$0xf]  ;;  %v13995_v63 = vld [vmem:[%s21962_s1 + $0xc4c] sm:$0xf0]  ;;  %v10964_v4 = vor.u32 %v14095_v57, %v10963_v56  ;;  %v15646_v46 = vld [vmem:[#allocation1 + $0x24] sm:$0xff] }
  0x7c   :  { %7021 = vmatpush.bf16.msrb.mxu2 %v10852_v48  ;;  %v10691_v3 = vld [vmem:[%s21962_s1 + $0xd40] sm:$0xf]  ;;  %7034 = vmatpush.bf16.msrb.mxu3 %v10980_v52  ;;  %v14027_v5 = vld [vmem:[%s21962_s1 + $0xd4c] sm:$0xf0]  ;;  %v10564_v10 = vor.u32 %v13995_v63, %v10563_v62  ;;  %v15648_v47 = vld [vmem:[#allocation1 + $0x36] sm:$0xff] }
  0x7d   :  { %v10819_v6 = vld [vmem:[%s21962_s1 + $0xe40] sm:$0xf]  ;;  %v14059_v7 = vld [vmem:[%s21962_s1 + $0xe4c] sm:$0xf0]  ;;  %v10692_v13 = vor.u32 %v14027_v5, %v10691_v3 }
  0x7e   :  { %v10947_v8 = vld [vmem:[%s21962_s1 + $0xf40] sm:$0xf]  ;;  %v14091_v9 = vld [vmem:[%s21962_s1 + $0xf4c] sm:$0xf0]  ;;  %v10820_v14 = vor.u32 %v14059_v7, %v10819_v6 }
  0x7f   :  { %6996 = vmatpush.bf16.msrb.mxu0 %v10580_v58  ;;  %v10547_v11 = vld [vmem:[%s21962_s1 + $0xc20] sm:$0xf]  ;;  %7009 = vmatpush.bf16.msrb.mxu1 %v10708_v59  ;;  %v13991_v18 = vld [vmem:[%s21962_s1 + $0xc2c] sm:$0xf0]  ;;  %v10948_v21 = vor.u32 %v14091_v9, %v10947_v8 }
  0x80   :  { %7022 = vmatpush.bf16.msrb.mxu2 %v10836_v61  ;;  %v10675_v19 = vld [vmem:[%s21962_s1 + $0xd20] sm:$0xf]  ;;  %v14023_v20 = vld [vmem:[%s21962_s1 + $0xd2c] sm:$0xf0]  ;;  %7035 = vmatpush.bf16.msrb.mxu3 %v10964_v4  ;;  %v10548_v31 = vor.u32 %v13991_v18, %v10547_v11 }
  0x81   :  { %v10803_v22 = vld [vmem:[%s21962_s1 + $0xe20] sm:$0xf]  ;;  %v14055_v23 = vld [vmem:[%s21962_s1 + $0xe2c] sm:$0xf0]  ;;  %v10676_v37 = vor.u32 %v14023_v20, %v10675_v19 }
  0x82   :  { %v10931_v24 = vld [vmem:[%s21962_s1 + $0xf20] sm:$0xf]  ;;  %v14087_v25 = vld [vmem:[%s21962_s1 + $0xf2c] sm:$0xf0]  ;;  %v10804_v38 = vor.u32 %v14055_v23, %v10803_v22 }
  0x83   :  { %v10531_v26 = vld [vmem:[%s21962_s1 + $0xc00] sm:$0xf]  ;;  %v13987_v30 = vld [vmem:[%s21962_s1 + $0xc0c] sm:$0xf0]  ;;  %6997 = vmatpush.bf16.msrb.mxu0 %v10564_v10  ;;  %7010 = vmatpush.bf16.msrb.mxu1 %v10692_v13  ;;  %v10932_v43 = vor.u32 %v14087_v25, %v10931_v24 }
  0x84   :  { %v10659_v32 = vld [vmem:[%s21962_s1 + $0xd00] sm:$0xf]  ;;  %v14019_v33 = vld [vmem:[%s21962_s1 + $0xd0c] sm:$0xf0]  ;;  %7023 = vmatpush.bf16.msrb.mxu2 %v10820_v14  ;;  %7036 = vmatpush.bf16.msrb.mxu3 %v10948_v21  ;;  %v10532_v51 = vor.u32 %v13987_v30, %v10531_v26 }
  0x85   :  { %v10787_v35 = vld [vmem:[%s21962_s1 + $0xe00] sm:$0xf]  ;;  %v14051_v36 = vld [vmem:[%s21962_s1 + $0xe0c] sm:$0xf0]  ;;  %v10660_v54 = vor.u32 %v14019_v33, %v10659_v32 }
  0x86   :  { %v10915_v39 = vld [vmem:[%s21962_s1 + $0xf00] sm:$0xf]  ;;  %v14083_v40 = vld [vmem:[%s21962_s1 + $0xf0c] sm:$0xf0]  ;;  %v10788_v55 = vor.u32 %v14051_v36, %v10787_v35 }
  0x87   :  { %v11155_v41 = vld [vmem:[%s21962_s1 + $0x10e0] sm:$0xf]  ;;  %v14143_v42 = vld [vmem:[%s21962_s1 + $0x10ec] sm:$0xf0]  ;;  %6998 = vmatpush.bf16.msrb.mxu0 %v10548_v31  ;;  %7011 = vmatpush.bf16.msrb.mxu1 %v10676_v37  ;;  %v10916_v58 = vor.u32 %v14083_v40, %v10915_v39 }
  0x88   :  { %v11283_v44 = vld [vmem:[%s21962_s1 + $0x11e0] sm:$0xf]  ;;  %v14175_v45 = vld [vmem:[%s21962_s1 + $0x11ec] sm:$0xf0]  ;;  %7024 = vmatpush.bf16.msrb.mxu2 %v10804_v38  ;;  %7037 = vmatpush.bf16.msrb.mxu3 %v10932_v43  ;;  %v11156_v59 = vor.u32 %v14143_v42, %v11155_v41 }
  0x89   :  { %v15650_v48 = vld [vmem:[#allocation1 + $0x2d] sm:$0xff]  ;;  %v15652_v49 = vld [vmem:[#allocation1 + $0x3f] sm:$0xff]  ;;  %v11284_v61 = vor.u32 %v14175_v45, %v11283_v44 }
  0x8a   :  { %v23_v50 = vld [vmem:[%s21961_s0 + $0x10] sm:$0xff]  ;;  %v11411_v52 = vld [vmem:[%s21962_s1 + $0x12e0] sm:$0xf] }
  0x8b   :  { %v14207_v53 = vld [vmem:[%s21962_s1 + $0x12ec] sm:$0xf0]  ;;  %1177 = vst [vmem:[#allocation1] ss:$9 sm:$0xff] %v23_v50  ;;  %v11539_v56 = vld [vmem:[%s21962_s1 + $0x13e0] sm:$0xf]  ;;  %6999 = vmatpush.bf16.msrb.mxu0 %v10532_v51  ;;  %7012 = vmatpush.bf16.msrb.mxu1 %v10660_v54 }
  0x8c   :  { %v14239_v57 = vld [vmem:[%s21962_s1 + $0x13ec] sm:$0xf0]  ;;  %v11412_v62 = vor.u32 %v14207_v53, %v11411_v52  ;;  %v11139_v63 = vld [vmem:[%s21962_s1 + $0x10c0] sm:$0xf]  ;;  %7025 = vmatpush.bf16.msrb.mxu2 %v10788_v55  ;;  %7038 = vmatpush.bf16.msrb.mxu3 %v10916_v58 }
  0x8d   :  { %v14139_v3 = vld [vmem:[%s21962_s1 + $0x10cc] sm:$0xf0]  ;;  %v11267_v4 = vld [vmem:[%s21962_s1 + $0x11c0] sm:$0xf]  ;;  %v11540_v5 = vor.u32 %v14239_v57, %v11539_v56 }
  0x8e   :  { %v14171_v6 = vld [vmem:[%s21962_s1 + $0x11cc] sm:$0xf0]  ;;  %v11395_v7 = vld [vmem:[%s21962_s1 + $0x12c0] sm:$0xf]  ;;  %v11140_v11 = vor.u32 %v14139_v3, %v11139_v63  ;;  %7000 = vmatmul.bf16.vlgmr.msrb.gmra.mxu0 %v15646_v46  ;;  %7013 = vmatmul.bf16.vlgmr.msrb.gmra.mxu1 %v15650_v48 }
  0x8f   :  { %v14203_v8 = vld [vmem:[%s21962_s1 + $0x12cc] sm:$0xf0]  ;;  %v11523_v9 = vld [vmem:[%s21962_s1 + $0x13c0] sm:$0xf]  ;;  %7044 = vmatpush.bf16.msra.mxu0 %v11156_v59  ;;  %7057 = vmatpush.bf16.msra.mxu1 %v11284_v61  ;;  %v11268_v13 = vor.u32 %v14171_v6, %v11267_v4 }
  0x90   :  { %v14235_v10 = vld [vmem:[%s21962_s1 + $0x13cc] sm:$0xf0]  ;;  %7070 = vmatpush.bf16.msra.mxu2 %v11412_v62  ;;  %v11396_v14 = vor.u32 %v14203_v8, %v11395_v7  ;;  %v11123_v18 = vld [vmem:[%s21962_s1 + $0x10a0] sm:$0xf]  ;;  %7083 = vmatpush.bf16.msra.mxu3 %v11540_v5 }
  0x91   :  { %v14135_v19 = vld [vmem:[%s21962_s1 + $0x10ac] sm:$0xf0]  ;;  %v11251_v20 = vld [vmem:[%s21962_s1 + $0x11a0] sm:$0xf]  ;;  %v11524_v21 = vor.u32 %v14235_v10, %v11523_v9  ;;  %7026 = vmatmul.bf16.vlgmr.msrb.gmra.mxu2 %v15648_v47  ;;  %7039 = vmatmul.bf16.vlgmr.msrb.gmra.mxu3 %v15652_v49 }
  0x92   :  { %v14167_v22 = vld [vmem:[%s21962_s1 + $0x11ac] sm:$0xf0]  ;;  %v11379_v23 = vld [vmem:[%s21962_s1 + $0x12a0] sm:$0xf]  ;;  %v11124_v30 = vor.u32 %v14135_v19, %v11123_v18 }
  0x93   :  { %v14199_v24 = vld [vmem:[%s21962_s1 + $0x12ac] sm:$0xf0]  ;;  %v11507_v25 = vld [vmem:[%s21962_s1 + $0x13a0] sm:$0xf]  ;;  %7045 = vmatpush.bf16.msra.mxu0 %v11140_v11  ;;  %7058 = vmatpush.bf16.msra.mxu1 %v11268_v13  ;;  %v11252_v31 = vor.u32 %v14167_v22, %v11251_v20 }
  0x94   :  { %v14231_v26 = vld [vmem:[%s21962_s1 + $0x13ac] sm:$0xf0]  ;;  %7071 = vmatpush.bf16.msra.mxu2 %v11396_v14  ;;  %v11380_v32 = vor.u32 %v14199_v24, %v11379_v23  ;;  %v11107_v33 = vld [vmem:[%s21962_s1 + $0x1080] sm:$0xf]  ;;  %7084 = vmatpush.bf16.msra.mxu3 %v11524_v21 }
  0x95   :  { %v14131_v35 = vld [vmem:[%s21962_s1 + $0x108c] sm:$0xf0]  ;;  %v11235_v36 = vld [vmem:[%s21962_s1 + $0x1180] sm:$0xf]  ;;  %v11508_v37 = vor.u32 %v14231_v26, %v11507_v25 }
  0x96   :  { %v14163_v38 = vld [vmem:[%s21962_s1 + $0x118c] sm:$0xf0]  ;;  %v11363_v39 = vld [vmem:[%s21962_s1 + $0x1280] sm:$0xf]  ;;  %v11108_v43 = vor.u32 %v14131_v35, %v11107_v33 }
  0x97   :  { %v14195_v40 = vld [vmem:[%s21962_s1 + $0x128c] sm:$0xf0]  ;;  %v11491_v41 = vld [vmem:[%s21962_s1 + $0x1380] sm:$0xf]  ;;  %7046 = vmatpush.bf16.msra.mxu0 %v11124_v30  ;;  %7059 = vmatpush.bf16.msra.mxu1 %v11252_v31  ;;  %v11236_v44 = vor.u32 %v14163_v38, %v11235_v36 }
  0x98   :  { %v14227_v42 = vld [vmem:[%s21962_s1 + $0x138c] sm:$0xf0]  ;;  %7072 = vmatpush.bf16.msra.mxu2 %v11380_v32  ;;  %v11364_v45 = vor.u32 %v14195_v40, %v11363_v39  ;;  %v11091_v50 = vld [vmem:[%s21962_s1 + $0x1060] sm:$0xf]  ;;  %7085 = vmatpush.bf16.msra.mxu3 %v11508_v37 }
  0x99   :  { %v14127_v51 = vld [vmem:[%s21962_s1 + $0x106c] sm:$0xf0]  ;;  %v11219_v52 = vld [vmem:[%s21962_s1 + $0x1160] sm:$0xf]  ;;  %v11492_v53 = vor.u32 %v14227_v42, %v11491_v41 }
  0x9a   :  { %v14159_v54 = vld [vmem:[%s21962_s1 + $0x116c] sm:$0xf0]  ;;  %v11347_v55 = vld [vmem:[%s21962_s1 + $0x1260] sm:$0xf]  ;;  %v11092_v59 = vor.u32 %v14127_v51, %v11091_v50 }
  0x9b   :  { %v14191_v56 = vld [vmem:[%s21962_s1 + $0x126c] sm:$0xf0]  ;;  %v11475_v57 = vld [vmem:[%s21962_s1 + $0x1360] sm:$0xf]  ;;  %7047 = vmatpush.bf16.msra.mxu0 %v11108_v43  ;;  %7060 = vmatpush.bf16.msra.mxu1 %v11236_v44  ;;  %v11220_v61 = vor.u32 %v14159_v54, %v11219_v52 }
  0x9c   :  { %v14223_v58 = vld [vmem:[%s21962_s1 + $0x136c] sm:$0xf0]  ;;  %7073 = vmatpush.bf16.msra.mxu2 %v11364_v45  ;;  %v11348_v62 = vor.u32 %v14191_v56, %v11347_v55  ;;  %v11075_v63 = vld [vmem:[%s21962_s1 + $0x1040] sm:$0xf]  ;;  %7086 = vmatpush.bf16.msra.mxu3 %v11492_v53 }
  0x9d   :  { %v14123_v3 = vld [vmem:[%s21962_s1 + $0x104c] sm:$0xf0]  ;;  %v11203_v4 = vld [vmem:[%s21962_s1 + $0x1140] sm:$0xf]  ;;  %v11476_v5 = vor.u32 %v14223_v58, %v11475_v57 }
  0x9e   :  { %v14155_v6 = vld [vmem:[%s21962_s1 + $0x114c] sm:$0xf0]  ;;  %v11331_v7 = vld [vmem:[%s21962_s1 + $0x1240] sm:$0xf]  ;;  %v11076_v11 = vor.u32 %v14123_v3, %v11075_v63 }
  0x9f   :  { %v14187_v8 = vld [vmem:[%s21962_s1 + $0x124c] sm:$0xf0]  ;;  %v11459_v9 = vld [vmem:[%s21962_s1 + $0x1340] sm:$0xf]  ;;  %7048 = vmatpush.bf16.msra.mxu0 %v11092_v59  ;;  %7061 = vmatpush.bf16.msra.mxu1 %v11220_v61  ;;  %v11204_v13 = vor.u32 %v14155_v6, %v11203_v4 }
  0xa0   :  { %v14219_v10 = vld [vmem:[%s21962_s1 + $0x134c] sm:$0xf0]  ;;  %7074 = vmatpush.bf16.msra.mxu2 %v11348_v62  ;;  %v11332_v14 = vor.u32 %v14187_v8, %v11331_v7  ;;  %v11059_v18 = vld [vmem:[%s21962_s1 + $0x1020] sm:$0xf]  ;;  %7087 = vmatpush.bf16.msra.mxu3 %v11476_v5 }
  0xa1   :  { %v14119_v19 = vld [vmem:[%s21962_s1 + $0x102c] sm:$0xf0]  ;;  %v11187_v20 = vld [vmem:[%s21962_s1 + $0x1120] sm:$0xf]  ;;  %v11460_v21 = vor.u32 %v14219_v10, %v11459_v9 }
  0xa2   :  { %v14151_v22 = vld [vmem:[%s21962_s1 + $0x112c] sm:$0xf0]  ;;  %v11315_v23 = vld [vmem:[%s21962_s1 + $0x1220] sm:$0xf]  ;;  %v11060_v30 = vor.u32 %v14119_v19, %v11059_v18 }
  0xa3   :  { %v14183_v24 = vld [vmem:[%s21962_s1 + $0x122c] sm:$0xf0]  ;;  %v11443_v25 = vld [vmem:[%s21962_s1 + $0x1320] sm:$0xf]  ;;  %7049 = vmatpush.bf16.msra.mxu0 %v11076_v11  ;;  %7062 = vmatpush.bf16.msra.mxu1 %v11204_v13  ;;  %v11188_v33 = vor.u32 %v14151_v22, %v11187_v20 }
  0xa4   :  { %v14215_v26 = vld [vmem:[%s21962_s1 + $0x132c] sm:$0xf0]  ;;  %v11043_v31 = vld [vmem:[%s21962_s1 + $0x1000] sm:$0xf]  ;;  %7075 = vmatpush.bf16.msra.mxu2 %v11332_v14  ;;  %v11316_v35 = vor.u32 %v14183_v24, %v11315_v23  ;;  %7088 = vmatpush.bf16.msra.mxu3 %v11460_v21 }
  0xa5   :  { %v14115_v32 = vld [vmem:[%s21962_s1 + $0x100c] sm:$0xf0]  ;;  %v11171_v36 = vld [vmem:[%s21962_s1 + $0x1100] sm:$0xf]  ;;  %v11444_v39 = vor.u32 %v14215_v26, %v11443_v25 }
  0xa6   :  { %v14147_v37 = vld [vmem:[%s21962_s1 + $0x110c] sm:$0xf0]  ;;  %v11299_v38 = vld [vmem:[%s21962_s1 + $0x1200] sm:$0xf]  ;;  %v11044_v50 = vor.u32 %v14115_v32, %v11043_v31 }
  0xa7   :  { %v14179_v40 = vld [vmem:[%s21962_s1 + $0x120c] sm:$0xf0]  ;;  %v11427_v41 = vld [vmem:[%s21962_s1 + $0x1300] sm:$0xf]  ;;  %7050 = vmatpush.bf16.msra.mxu0 %v11060_v30  ;;  %7063 = vmatpush.bf16.msra.mxu1 %v11188_v33  ;;  %v11172_v54 = vor.u32 %v14147_v37, %v11171_v36 }
  0xa8   :  { %v14211_v42 = vld [vmem:[%s21962_s1 + $0x130c] sm:$0xf0]  ;;  %v11667_v43 = vld [vmem:[%s21962_s1 + $0x14e0] sm:$0xf]  ;;  %7076 = vmatpush.bf16.msra.mxu2 %v11316_v35  ;;  %v11300_v55 = vor.u32 %v14179_v40, %v11299_v38  ;;  %7089 = vmatpush.bf16.msra.mxu3 %v11444_v39 }
  0xa9   :  { %v14271_v44 = vld [vmem:[%s21962_s1 + $0x14ec] sm:$0xf0]  ;;  %v11795_v45 = vld [vmem:[%s21962_s1 + $0x15e0] sm:$0xf]  ;;  %v11428_v58 = vor.u32 %v14211_v42, %v11427_v41 }
  0xaa   :  { %v14303_v51 = vld [vmem:[%s21962_s1 + $0x15ec] sm:$0xf0]  ;;  %v11923_v52 = vld [vmem:[%s21962_s1 + $0x16e0] sm:$0xf]  ;;  %v11668_v59 = vor.u32 %v14271_v44, %v11667_v43 }
  0xab   :  { %v14335_v53 = vld [vmem:[%s21962_s1 + $0x16ec] sm:$0xf0]  ;;  %v12051_v56 = vld [vmem:[%s21962_s1 + $0x17e0] sm:$0xf]  ;;  %v11796_v61 = vor.u32 %v14303_v51, %v11795_v45  ;;  %7051 = vmatpush.bf16.msra.mxu0 %v11044_v50  ;;  %7064 = vmatpush.bf16.msra.mxu1 %v11172_v54 }
  0xac   :  { %v14367_v57 = vld [vmem:[%s21962_s1 + $0x17ec] sm:$0xf0]  ;;  %v11924_v62 = vor.u32 %v14335_v53, %v11923_v52  ;;  %v11651_v63 = vld [vmem:[%s21962_s1 + $0x14c0] sm:$0xf]  ;;  %7077 = vmatpush.bf16.msra.mxu2 %v11300_v55  ;;  %7090 = vmatpush.bf16.msra.mxu3 %v11428_v58 }
  0xad   :  { %v14267_v3 = vld [vmem:[%s21962_s1 + $0x14cc] sm:$0xf0]  ;;  %v11779_v4 = vld [vmem:[%s21962_s1 + $0x15c0] sm:$0xf]  ;;  %v12052_v5 = vor.u32 %v14367_v57, %v12051_v56 }
  0xae   :  { %v14299_v6 = vld [vmem:[%s21962_s1 + $0x15cc] sm:$0xf0]  ;;  %v11907_v7 = vld [vmem:[%s21962_s1 + $0x16c0] sm:$0xf]  ;;  %v11652_v19 = vor.u32 %v14267_v3, %v11651_v63 }
  0xaf   :  { %v14331_v8 = vld [vmem:[%s21962_s1 + $0x16cc] sm:$0xf0]  ;;  %v15883_v9 = vld [vmem:[#allocation1] sm:$0xff]  ;;  %7096 = vmatpush.bf16.msrb.mxu0 %v11668_v59  ;;  %7109 = vmatpush.bf16.msrb.mxu1 %v11796_v61  ;;  %v11780_v20 = vor.u32 %v14299_v6, %v11779_v4 }
  0xb0   :  { %v12035_v10 = vld [vmem:[%s21962_s1 + $0x17c0] sm:$0xf]  ;;  %v14363_v11 = vld [vmem:[%s21962_s1 + $0x17cc] sm:$0xf0]  ;;  %7122 = vmatpush.bf16.msrb.mxu2 %v11924_v62  ;;  %v11908_v21 = vor.u32 %v14331_v8, %v11907_v7  ;;  %7135 = vmatpush.bf16.msrb.mxu3 %v12052_v5 }
  0xb1   :  { %v15891_v13 = vld [vmem:[#allocation1 + $0x12] sm:$0xff]  ;;  %v15893_v14 = vld [vmem:[#allocation1 + $0x9] sm:$0xff]  ;;  %v15895_v18 = vld [vmem:[#allocation1 + $0x1b] sm:$0xff]  ;;  %7052 = vmatmul.bf16.vlgmr.msra.gmra.mxu0 %v15883_v9  ;;  %v12036_v25 = vor.u32 %v14363_v11, %v12035_v10 }
  0xb2   :  { %v11635_v22 = vld [vmem:[%s21962_s1 + $0x14a0] sm:$0xf]  ;;  %v14263_v23 = vld [vmem:[%s21962_s1 + $0x14ac] sm:$0xf0]  ;;  %7078 = vmatmul.bf16.vlgmr.msra.gmra.mxu2 %v15891_v13  ;;  %7065 = vmatmul.bf16.vlgmr.msra.gmra.mxu1 %v15893_v14 }
  0xb3   :  { %v11763_v24 = vld [vmem:[%s21962_s1 + $0x15a0] sm:$0xf]  ;;  %v14295_v26 = vld [vmem:[%s21962_s1 + $0x15ac] sm:$0xf0]  ;;  %7091 = vmatmul.bf16.vlgmr.msra.gmra.mxu3 %v15895_v18  ;;  %7097 = vmatpush.bf16.msrb.mxu0 %v11652_v19  ;;  %v11636_v35 = vor.u32 %v14263_v23, %v11635_v22 }
  0xb4   :  { %v11891_v30 = vld [vmem:[%s21962_s1 + $0x16a0] sm:$0xf]  ;;  %v14327_v31 = vld [vmem:[%s21962_s1 + $0x16ac] sm:$0xf0]  ;;  %7110 = vmatpush.bf16.msrb.mxu1 %v11780_v20  ;;  %7123 = vmatpush.bf16.msrb.mxu2 %v11908_v21  ;;  %v11764_v36 = vor.u32 %v14295_v26, %v11763_v24 }
  0xb5   :  { %v12019_v32 = vld [vmem:[%s21962_s1 + $0x17a0] sm:$0xf]  ;;  %v14359_v33 = vld [vmem:[%s21962_s1 + $0x17ac] sm:$0xf0]  ;;  %v11892_v37 = vor.u32 %v14327_v31, %v11891_v30  ;;  %7136 = vmatpush.bf16.msrb.mxu3 %v12036_v25 }
  0xb6   :  { %v11619_v38 = vld [vmem:[%s21962_s1 + $0x1480] sm:$0xf]  ;;  %v14259_v39 = vld [vmem:[%s21962_s1 + $0x148c] sm:$0xf0]  ;;  %v12020_v41 = vor.u32 %v14359_v33, %v12019_v32 }
  0xb7   :  { %v11747_v40 = vld [vmem:[%s21962_s1 + $0x1580] sm:$0xf]  ;;  %v14291_v42 = vld [vmem:[%s21962_s1 + $0x158c] sm:$0xf0]  ;;  %7098 = vmatpush.bf16.msrb.mxu0 %v11636_v35  ;;  %v11620_v51 = vor.u32 %v14259_v39, %v11619_v38 }
  0xb8   :  { %v11875_v43 = vld [vmem:[%s21962_s1 + $0x1680] sm:$0xf]  ;;  %v14323_v44 = vld [vmem:[%s21962_s1 + $0x168c] sm:$0xf0]  ;;  %7111 = vmatpush.bf16.msrb.mxu1 %v11764_v36  ;;  %7124 = vmatpush.bf16.msrb.mxu2 %v11892_v37  ;;  %v11748_v52 = vor.u32 %v14291_v42, %v11747_v40 }
  0xb9   :  { %v12003_v45 = vld [vmem:[%s21962_s1 + $0x1780] sm:$0xf]  ;;  %v14355_v50 = vld [vmem:[%s21962_s1 + $0x178c] sm:$0xf0]  ;;  %v11876_v53 = vor.u32 %v14323_v44, %v11875_v43  ;;  %7137 = vmatpush.bf16.msrb.mxu3 %v12020_v41 }
  0xba   :  { %v11603_v54 = vld [vmem:[%s21962_s1 + $0x1460] sm:$0xf]  ;;  %v14255_v55 = vld [vmem:[%s21962_s1 + $0x146c] sm:$0xf0]  ;;  %v12004_v57 = vor.u32 %v14355_v50, %v12003_v45 }
  0xbb   :  { %v11731_v56 = vld [vmem:[%s21962_s1 + $0x1560] sm:$0xf]  ;;  %v14287_v58 = vld [vmem:[%s21962_s1 + $0x156c] sm:$0xf0]  ;;  %7099 = vmatpush.bf16.msrb.mxu0 %v11620_v51  ;;  %v11604_v3 = vor.u32 %v14255_v55, %v11603_v54 }
  0xbc   :  { %v11859_v59 = vld [vmem:[%s21962_s1 + $0x1660] sm:$0xf]  ;;  %v14319_v61 = vld [vmem:[%s21962_s1 + $0x166c] sm:$0xf0]  ;;  %7112 = vmatpush.bf16.msrb.mxu1 %v11748_v52  ;;  %7125 = vmatpush.bf16.msrb.mxu2 %v11876_v53  ;;  %v11732_v5 = vor.u32 %v14287_v58, %v11731_v56  ;;  %v6845_v52 = vpop.f32.mrf.mxu0 }
  0xbd   :  { %v11987_v62 = vld [vmem:[%s21962_s1 + $0x1760] sm:$0xf]  ;;  %v14351_v63 = vld [vmem:[%s21962_s1 + $0x176c] sm:$0xf0]  ;;  %v11860_v6 = vor.u32 %v14319_v61, %v11859_v59  ;;  %7138 = vmatpush.bf16.msrb.mxu3 %v12004_v57  ;;  %v6858_v61 = vpop.f32.mrf.mxu1 }
  0xbe   :  { %v11587_v4 = vld [vmem:[%s21962_s1 + $0x1440] sm:$0xf]  ;;  %v14251_v7 = vld [vmem:[%s21962_s1 + $0x144c] sm:$0xf0]  ;;  %v11988_v11 = vor.u32 %v14351_v63, %v11987_v62 }
  0xbf   :  { %v11715_v8 = vld [vmem:[%s21962_s1 + $0x1540] sm:$0xf]  ;;  %v14283_v10 = vld [vmem:[%s21962_s1 + $0x154c] sm:$0xf0]  ;;  %7100 = vmatpush.bf16.msrb.mxu0 %v11604_v3  ;;  %v11588_v24 = vor.u32 %v14251_v7, %v11587_v4  ;;  %v16060_v4 = vld [vmem:[#allocation1 + $0x24] sm:$0xff] }
  0xc0   :  { %v11843_v19 = vld [vmem:[%s21962_s1 + $0x1640] sm:$0xf]  ;;  %v14315_v20 = vld [vmem:[%s21962_s1 + $0x164c] sm:$0xf0]  ;;  %7113 = vmatpush.bf16.msrb.mxu1 %v11732_v5  ;;  %7126 = vmatpush.bf16.msrb.mxu2 %v11860_v6  ;;  %v11716_v30 = vor.u32 %v14283_v10, %v11715_v8  ;;  %v16062_v5 = vld [vmem:[#allocation1 + $0x36] sm:$0xff] }
  0xc1   :  { %v1146_v21 = vld [vmem:[%s21963_s2] sm:$0xf]  ;;  %v14347_v23 = vld [vmem:[%s21962_s1 + $0x174c] sm:$0xf0]  ;;  %v11844_v31 = vor.u32 %v14315_v20, %v11843_v19  ;;  %7139 = vmatpush.bf16.msrb.mxu3 %v11988_v11  ;;  %v24_v10 = vld [vmem:[%s21961_s0 + $0x18] sm:$0xff] }
  0xc2   :  { %v11971_v22 = vld [vmem:[%s21962_s1 + $0x1740] sm:$0xf]  ;;  %v14247_v26 = vld [vmem:[%s21962_s1 + $0x142c] sm:$0xf0]  ;;  %v1148_v35 = vperm.slane %v1146_v21, 0 }
  0xc3   :  { %v11571_v25 = vld [vmem:[%s21962_s1 + $0x1420] sm:$0xf]  ;;  %v14279_v33 = vld [vmem:[%s21962_s1 + $0x152c] sm:$0xf0]  ;;  %v11972_v36 = vor.u32 %v14347_v23, %v11971_v22  ;;  %7101 = vmatpush.bf16.msrb.mxu0 %v11588_v24 }
  0xc4   :  { %v11699_v32 = vld [vmem:[%s21962_s1 + $0x1520] sm:$0xf]  ;;  %v14311_v38 = vld [vmem:[%s21962_s1 + $0x162c] sm:$0xf0]  ;;  %v11572_v43 = vor.u32 %v14247_v26, %v11571_v25  ;;  %7114 = vmatpush.bf16.msrb.mxu1 %v11716_v30  ;;  %7127 = vmatpush.bf16.msrb.mxu2 %v11844_v31  ;;  %v6846_v59 = vadd.f32 %v6845_v52, %v1148_v35  ;;  %v6871_v25 = vpop.f32.mrf.mxu2 }
  0xc5   :  { %v11827_v37 = vld [vmem:[%s21962_s1 + $0x1620] sm:$0xf]  ;;  %v14343_v40 = vld [vmem:[%s21962_s1 + $0x172c] sm:$0xf0]  ;;  %v11700_v53 = vor.u32 %v14279_v33, %v11699_v32  ;;  %7140 = vmatpush.bf16.msrb.mxu3 %v11972_v36  ;;  %v6884_v32 = vpop.f32.mrf.mxu3 }
  0xc6   :  { %v11955_v39 = vld [vmem:[%s21962_s1 + $0x1720] sm:$0xf]  ;;  %v14243_v42 = vld [vmem:[%s21962_s1 + $0x140c] sm:$0xf0]  ;;  %v11828_v54 = vor.u32 %v14311_v38, %v11827_v37  ;;  %v6859_v8 = vadd.f32 %v6858_v61, %v6846_v59 }
  0xc7   :  { %v11555_v41 = vld [vmem:[%s21962_s1 + $0x1400] sm:$0xf]  ;;  %v14275_v45 = vld [vmem:[%s21962_s1 + $0x150c] sm:$0xf0]  ;;  %v11956_v62 = vor.u32 %v14343_v40, %v11955_v39  ;;  %7102 = vmatpush.bf16.msrb.mxu0 %v11572_v43 }
  0xc8   :  { %v11683_v44 = vld [vmem:[%s21962_s1 + $0x1500] sm:$0xf]  ;;  %v14307_v51 = vld [vmem:[%s21962_s1 + $0x160c] sm:$0xf0]  ;;  %v11556_v11 = vor.u32 %v14243_v42, %v11555_v41  ;;  %7115 = vmatpush.bf16.msrb.mxu1 %v11700_v53  ;;  %7128 = vmatpush.bf16.msrb.mxu2 %v11828_v54  ;;  %v6872_v31 = vadd.f32 %v6871_v25, %v6859_v8 }
  0xc9   :  { %v11811_v50 = vld [vmem:[%s21962_s1 + $0x1600] sm:$0xf]  ;;  %v14339_v56 = vld [vmem:[%s21962_s1 + $0x170c] sm:$0xf0]  ;;  %v11684_v21 = vor.u32 %v14275_v45, %v11683_v44  ;;  %7141 = vmatpush.bf16.msrb.mxu3 %v11956_v62  ;;  %v6847_v44 = vpop.f32.mrf.mxu0 }
  0xca   :  { %v11939_v55 = vld [vmem:[%s21962_s1 + $0x1700] sm:$0xf]  ;;  %v14399_v58 = vld [vmem:[%s21962_s1 + $0x18ec] sm:$0xf0]  ;;  %v11812_v22 = vor.u32 %v14307_v51, %v11811_v50  ;;  %v6885_v43 = vadd.f32 %v6884_v32, %v6872_v31  ;;  %v6860_v51 = vpop.f32.mrf.mxu1 }
  0xcb   :  { %v12179_v57 = vld [vmem:[%s21962_s1 + $0x18e0] sm:$0xf]  ;;  %v14431_v3 = vld [vmem:[%s21962_s1 + $0x19ec] sm:$0xf0]  ;;  %v11940_v26 = vor.u32 %v14339_v56, %v11939_v55  ;;  %7103 = vmatpush.bf16.msrb.mxu0 %v11556_v11 }
  0xcc   :  { %v12307_v63 = vld [vmem:[%s21962_s1 + $0x19e0] sm:$0xf]  ;;  %v16064_v6 = vld [vmem:[#allocation1 + $0x2d] sm:$0xff]  ;;  %v12180_v30 = vor.u32 %v14399_v58, %v12179_v57  ;;  %7116 = vmatpush.bf16.msrb.mxu1 %v11684_v21  ;;  %7129 = vmatpush.bf16.msrb.mxu2 %v11812_v22  ;;  %v6873_v8 = vpop.f32.mrf.mxu2 }
  0xcd   :  { %v16066_v7 = vld [vmem:[#allocation1 + $0x3f] sm:$0xff]  ;;  %v14463_v20 = vld [vmem:[%s21962_s1 + $0x1aec] sm:$0xf0]  ;;  %v12308_v33 = vor.u32 %v14431_v3, %v12307_v63  ;;  %7142 = vmatpush.bf16.msrb.mxu3 %v11940_v26  ;;  %v6886_v11 = vpop.f32.mrf.mxu3 }
  0xce   :  { %v12435_v19 = vld [vmem:[%s21962_s1 + $0x1ae0] sm:$0xf]  ;;  %1187 = vst [vmem:[#allocation1] ss:$9 sm:$0xff] %v24_v10  ;;  %v14495_v24 = vld [vmem:[%s21962_s1 + $0x1bec] sm:$0xf0]  ;;  %7104 = vmatmul.bf16.vlgmr.msrb.gmra.mxu0 %v16060_v4 }
  0xcf   :  { %v12563_v23 = vld [vmem:[%s21962_s1 + $0x1be0] sm:$0xf]  ;;  %v12436_v35 = vor.u32 %v14463_v20, %v12435_v19  ;;  %v14395_v37 = vld [vmem:[%s21962_s1 + $0x18cc] sm:$0xf0]  ;;  %7148 = vmatpush.bf16.msra.mxu0 %v12180_v30  ;;  %7130 = vmatmul.bf16.vlgmr.msrb.gmra.mxu2 %v16062_v5 }
  0xd0   :  { %v12163_v36 = vld [vmem:[%s21962_s1 + $0x18c0] sm:$0xf]  ;;  %v12564_v39 = vor.u32 %v14495_v24, %v12563_v23  ;;  %v14427_v40 = vld [vmem:[%s21962_s1 + $0x19cc] sm:$0xf0]  ;;  %7161 = vmatpush.bf16.msra.mxu1 %v12308_v33  ;;  %7143 = vmatmul.bf16.vlgmr.msrb.gmra.mxu3 %v16066_v7 }
  0xd1   :  { %v12291_v38 = vld [vmem:[%s21962_s1 + $0x19c0] sm:$0xf]  ;;  %v14459_v42 = vld [vmem:[%s21962_s1 + $0x1acc] sm:$0xf0]  ;;  %v12164_v52 = vor.u32 %v14395_v37, %v12163_v36  ;;  %7174 = vmatpush.bf16.msra.mxu2 %v12436_v35  ;;  %7117 = vmatmul.bf16.vlgmr.msrb.gmra.mxu1 %v16064_v6  ;;  %v6897_v35 = vpop.f32.mrf.mxu0 }
  0xd2   :  { %v12419_v41 = vld [vmem:[%s21962_s1 + $0x1ac0] sm:$0xf]  ;;  %v14491_v50 = vld [vmem:[%s21962_s1 + $0x1bcc] sm:$0xf0]  ;;  %v12292_v53 = vor.u32 %v14427_v40, %v12291_v38  ;;  %7187 = vmatpush.bf16.msra.mxu3 %v12564_v39 }
  0xd3   :  { %v12547_v45 = vld [vmem:[%s21962_s1 + $0x1bc0] sm:$0xf]  ;;  %v12420_v54 = vor.u32 %v14459_v42, %v12419_v41  ;;  %v14391_v56 = vld [vmem:[%s21962_s1 + $0x18ac] sm:$0xf0]  ;;  %7149 = vmatpush.bf16.msra.mxu0 %v12164_v52  ;;  %v6898_v41 = vadd.f32 %v6897_v35, %v6885_v43  ;;  %v6910_v42 = vpop.f32.mrf.mxu1 }
  0xd4   :  { %v12147_v55 = vld [vmem:[%s21962_s1 + $0x18a0] sm:$0xf]  ;;  %v12548_v58 = vor.u32 %v14491_v50, %v12547_v45  ;;  %v14423_v59 = vld [vmem:[%s21962_s1 + $0x19ac] sm:$0xf0]  ;;  %7162 = vmatpush.bf16.msra.mxu1 %v12292_v53 }
  0xd5   :  { %v12275_v57 = vld [vmem:[%s21962_s1 + $0x19a0] sm:$0xf]  ;;  %v14455_v62 = vld [vmem:[%s21962_s1 + $0x1aac] sm:$0xf0]  ;;  %v12148_v10 = vor.u32 %v14391_v56, %v12147_v55  ;;  %7175 = vmatpush.bf16.msra.mxu2 %v12420_v54  ;;  %v6911_v53 = vadd.f32 %v6910_v42, %v6898_v41  ;;  %v6936_v11 = vpop.f32.mrf.mxu3 }
  0xd6   :  { %v12403_v61 = vld [vmem:[%s21962_s1 + $0x1aa0] sm:$0xf]  ;;  %v14487_v3 = vld [vmem:[%s21962_s1 + $0x1bac] sm:$0xf0]  ;;  %v12276_v19 = vor.u32 %v14423_v59, %v12275_v57  ;;  %7188 = vmatpush.bf16.msra.mxu3 %v12548_v58 }
  0xd7   :  { %v12531_v63 = vld [vmem:[%s21962_s1 + $0x1ba0] sm:$0xf]  ;;  %v12404_v20 = vor.u32 %v14455_v62, %v12403_v61  ;;  %v14387_v22 = vld [vmem:[%s21962_s1 + $0x188c] sm:$0xf0]  ;;  %7150 = vmatpush.bf16.msra.mxu0 %v12148_v10  ;;  %v6923_v61 = vpop.f32.mrf.mxu2 }
  0xd8   :  { %v12131_v21 = vld [vmem:[%s21962_s1 + $0x1880] sm:$0xf]  ;;  %v12532_v24 = vor.u32 %v14487_v3, %v12531_v63  ;;  %v14419_v25 = vld [vmem:[%s21962_s1 + $0x198c] sm:$0xf0]  ;;  %7163 = vmatpush.bf16.msra.mxu1 %v12276_v19  ;;  %v6924_v10 = vadd.f32 %v6923_v61, %v6911_v53 }
  0xd9   :  { %v12259_v23 = vld [vmem:[%s21962_s1 + $0x1980] sm:$0xf]  ;;  %v14451_v30 = vld [vmem:[%s21962_s1 + $0x1a8c] sm:$0xf0]  ;;  %v12132_v33 = vor.u32 %v14387_v22, %v12131_v21  ;;  %7176 = vmatpush.bf16.msra.mxu2 %v12404_v20 }
  0xda   :  { %v12387_v26 = vld [vmem:[%s21962_s1 + $0x1a80] sm:$0xf]  ;;  %v14483_v32 = vld [vmem:[%s21962_s1 + $0x1b8c] sm:$0xf0]  ;;  %v12260_v36 = vor.u32 %v14419_v25, %v12259_v23  ;;  %7189 = vmatpush.bf16.msra.mxu3 %v12532_v24  ;;  %v16207_v22 = vadd.f32 %v6936_v11, %v6924_v10  ;;  %v6899_v23 = vpop.f32.mrf.mxu0 }
  0xdb   :  { %v12515_v31 = vld [vmem:[%s21962_s1 + $0x1b80] sm:$0xf]  ;;  %v12388_v37 = vor.u32 %v14451_v30, %v12387_v26  ;;  %v14383_v39 = vld [vmem:[%s21962_s1 + $0x186c] sm:$0xf0]  ;;  %7151 = vmatpush.bf16.msra.mxu0 %v12132_v33 }
  0xdc   :  { %v12115_v38 = vld [vmem:[%s21962_s1 + $0x1860] sm:$0xf]  ;;  %v12516_v44 = vor.u32 %v14483_v32, %v12515_v31  ;;  %v14415_v45 = vld [vmem:[%s21962_s1 + $0x196c] sm:$0xf0]  ;;  %7164 = vmatpush.bf16.msra.mxu1 %v12260_v36  ;;  %v6912_v32 = vpop.f32.mrf.mxu1 }
  0xdd   :  { %v12243_v40 = vld [vmem:[%s21962_s1 + $0x1960] sm:$0xf]  ;;  %v14447_v51 = vld [vmem:[%s21962_s1 + $0x1a6c] sm:$0xf0]  ;;  %v12116_v54 = vor.u32 %v14383_v39, %v12115_v38  ;;  %7177 = vmatpush.bf16.msra.mxu2 %v12388_v37 }
  0xde   :  { %v12371_v50 = vld [vmem:[%s21962_s1 + $0x1a60] sm:$0xf]  ;;  %v14479_v43 = vld [vmem:[%s21962_s1 + $0x1b6c] sm:$0xf0]  ;;  %v12244_v55 = vor.u32 %v14415_v45, %v12243_v40  ;;  %7190 = vmatpush.bf16.msra.mxu3 %v12516_v44 }
  0xdf   :  { %v12499_v52 = vld [vmem:[%s21962_s1 + $0x1b60] sm:$0xf]  ;;  %v12372_v56 = vor.u32 %v14447_v51, %v12371_v50  ;;  %v14379_v58 = vld [vmem:[%s21962_s1 + $0x184c] sm:$0xf0]  ;;  %7152 = vmatpush.bf16.msra.mxu0 %v12116_v54 }
  0xe0   :  { %v12099_v57 = vld [vmem:[%s21962_s1 + $0x1840] sm:$0xf]  ;;  %v12500_v62 = vor.u32 %v14479_v43, %v12499_v52  ;;  %v14411_v63 = vld [vmem:[%s21962_s1 + $0x194c] sm:$0xf0]  ;;  %7165 = vmatpush.bf16.msra.mxu1 %v12244_v55  ;;  %v6925_v43 = vpop.f32.mrf.mxu2 }
  0xe1   :  { %v12227_v59 = vld [vmem:[%s21962_s1 + $0x1940] sm:$0xf]  ;;  %v14443_v8 = vld [vmem:[%s21962_s1 + $0x1a4c] sm:$0xf0]  ;;  %v12100_v21 = vor.u32 %v14379_v58, %v12099_v57  ;;  %7178 = vmatpush.bf16.msra.mxu2 %v12372_v56  ;;  %v6938_v57 = vpop.f32.mrf.mxu3 }
  0xe2   :  { %v12355_v3 = vld [vmem:[%s21962_s1 + $0x1a40] sm:$0xf]  ;;  %v14475_v20 = vld [vmem:[%s21962_s1 + $0x1b4c] sm:$0xf0]  ;;  %v12228_v24 = vor.u32 %v14411_v63, %v12227_v59  ;;  %7191 = vmatpush.bf16.msra.mxu3 %v12500_v62 }
  0xe3   :  { %v12483_v19 = vld [vmem:[%s21962_s1 + $0x1b40] sm:$0xf]  ;;  %v12356_v25 = vor.u32 %v14443_v8, %v12355_v3  ;;  %v14375_v30 = vld [vmem:[%s21962_s1 + $0x182c] sm:$0xf0]  ;;  %7153 = vmatpush.bf16.msra.mxu0 %v12100_v21 }
  0xe4   :  { %v12083_v26 = vld [vmem:[%s21962_s1 + $0x1820] sm:$0xf]  ;;  %v12484_v33 = vor.u32 %v14475_v20, %v12483_v19  ;;  %v14407_v35 = vld [vmem:[%s21962_s1 + $0x192c] sm:$0xf0]  ;;  %7166 = vmatpush.bf16.msra.mxu1 %v12228_v24 }
  0xe5   :  { %v12211_v31 = vld [vmem:[%s21962_s1 + $0x1920] sm:$0xf]  ;;  %v14439_v37 = vld [vmem:[%s21962_s1 + $0x1a2c] sm:$0xf0]  ;;  %v12084_v40 = vor.u32 %v14375_v30, %v12083_v26  ;;  %7179 = vmatpush.bf16.msra.mxu2 %v12356_v25 }
  0xe6   :  { %v12339_v36 = vld [vmem:[%s21962_s1 + $0x1a20] sm:$0xf]  ;;  %v14471_v39 = vld [vmem:[%s21962_s1 + $0x1b2c] sm:$0xf0]  ;;  %v12212_v44 = vor.u32 %v14407_v35, %v12211_v31  ;;  %7192 = vmatpush.bf16.msra.mxu3 %v12484_v33 }
  0xe7   :  { %v12467_v38 = vld [vmem:[%s21962_s1 + $0x1b20] sm:$0xf]  ;;  %v14371_v42 = vld [vmem:[%s21962_s1 + $0x180c] sm:$0xf0]  ;;  %v12340_v45 = vor.u32 %v14439_v37, %v12339_v36  ;;  %7154 = vmatpush.bf16.msra.mxu0 %v12084_v40 }
  0xe8   :  { %v12067_v41 = vld [vmem:[%s21962_s1 + $0x1800] sm:$0xf]  ;;  %v14403_v51 = vld [vmem:[%s21962_s1 + $0x190c] sm:$0xf0]  ;;  %v12468_v53 = vor.u32 %v14471_v39, %v12467_v38  ;;  %7167 = vmatpush.bf16.msra.mxu1 %v12212_v44 }
  0xe9   :  { %v12195_v50 = vld [vmem:[%s21962_s1 + $0x1900] sm:$0xf]  ;;  %v14435_v54 = vld [vmem:[%s21962_s1 + $0x1a0c] sm:$0xf0]  ;;  %v12068_v62 = vor.u32 %v14371_v42, %v12067_v41  ;;  %7180 = vmatpush.bf16.msra.mxu2 %v12340_v45 }
  0xea   :  { %v12323_v52 = vld [vmem:[%s21962_s1 + $0x1a00] sm:$0xf]  ;;  %v14467_v56 = vld [vmem:[%s21962_s1 + $0x1b0c] sm:$0xf0]  ;;  %v12196_v10 = vor.u32 %v14403_v51, %v12195_v50  ;;  %7193 = vmatpush.bf16.msra.mxu3 %v12468_v53 }
  0xeb   :  { %v12451_v55 = vld [vmem:[%s21962_s1 + $0x1b00] sm:$0xf]  ;;  %v14527_v59 = vld [vmem:[%s21962_s1 + $0x1cec] sm:$0xf0]  ;;  %v12324_v11 = vor.u32 %v14435_v54, %v12323_v52  ;;  %7155 = vmatpush.bf16.msra.mxu0 %v12068_v62 }
  0xec   :  { %v12691_v58 = vld [vmem:[%s21962_s1 + $0x1ce0] sm:$0xf]  ;;  %v14559_v63 = vld [vmem:[%s21962_s1 + $0x1dec] sm:$0xf0]  ;;  %v12452_v21 = vor.u32 %v14467_v56, %v12451_v55  ;;  %7168 = vmatpush.bf16.msra.mxu1 %v12196_v10 }
  0xed   :  { %v12819_v61 = vld [vmem:[%s21962_s1 + $0x1de0] sm:$0xf]  ;;  %v14591_v8 = vld [vmem:[%s21962_s1 + $0x1eec] sm:$0xf0]  ;;  %v12692_v23 = vor.u32 %v14527_v59, %v12691_v58  ;;  %7181 = vmatpush.bf16.msra.mxu2 %v12324_v11 }
  0xee   :  { %v12947_v3 = vld [vmem:[%s21962_s1 + $0x1ee0] sm:$0xf]  ;;  %v14623_v20 = vld [vmem:[%s21962_s1 + $0x1fec] sm:$0xf0]  ;;  %v12820_v24 = vor.u32 %v14559_v63, %v12819_v61  ;;  %7194 = vmatpush.bf16.msra.mxu3 %v12452_v21  ;;  %v6949_v21 = vpop.f32.mrf.mxu0 }
  0xef   :  { %v13075_v19 = vld [vmem:[%s21962_s1 + $0x1fe0] sm:$0xf]  ;;  %v12948_v25 = vor.u32 %v14591_v8, %v12947_v3  ;;  %v14523_v30 = vld [vmem:[%s21962_s1 + $0x1ccc] sm:$0xf0]  ;;  %7200 = vmatpush.bf16.msrb.mxu0 %v12692_v23 }
  0xf0   :  { %v12675_v26 = vld [vmem:[%s21962_s1 + $0x1cc0] sm:$0xf]  ;;  %v13076_v32 = vor.u32 %v14623_v20, %v13075_v19  ;;  %v14555_v33 = vld [vmem:[%s21962_s1 + $0x1dcc] sm:$0xf0]  ;;  %7213 = vmatpush.bf16.msrb.mxu1 %v12820_v24 }
  0xf1   :  { %v12803_v31 = vld [vmem:[%s21962_s1 + $0x1dc0] sm:$0xf]  ;;  %v14587_v36 = vld [vmem:[%s21962_s1 + $0x1ecc] sm:$0xf0]  ;;  %v12676_v44 = vor.u32 %v14523_v30, %v12675_v26  ;;  %7226 = vmatpush.bf16.msrb.mxu2 %v12948_v25  ;;  %v6950_v25 = vadd.f32 %v6949_v21, %v16207_v22  ;;  %v6962_v30 = vpop.f32.mrf.mxu1 }
  0xf2   :  { %v12931_v35 = vld [vmem:[%s21962_s1 + $0x1ec0] sm:$0xf]  ;;  %v14619_v39 = vld [vmem:[%s21962_s1 + $0x1fcc] sm:$0xf0]  ;;  %v12804_v45 = vor.u32 %v14555_v33, %v12803_v31  ;;  %7239 = vmatpush.bf16.msrb.mxu3 %v13076_v32 }
  0xf3   :  { %v16299_v37 = vld [vmem:[#allocation1] sm:$0xff]  ;;  %v16307_v40 = vld [vmem:[#allocation1 + $0x12] sm:$0xff]  ;;  %v16309_v41 = vld [vmem:[#allocation1 + $0x9] sm:$0xff]  ;;  %v12932_v50 = vor.u32 %v14587_v36, %v12931_v35  ;;  %7201 = vmatpush.bf16.msrb.mxu0 %v12676_v44 }
  0xf4   :  { %v13059_v38 = vld [vmem:[%s21962_s1 + $0x1fc0] sm:$0xf]  ;;  %v14519_v52 = vld [vmem:[%s21962_s1 + $0x1cac] sm:$0xf0]  ;;  %7156 = vmatmul.bf16.vlgmr.msra.gmra.mxu0 %v16299_v37  ;;  %7182 = vmatmul.bf16.vlgmr.msra.gmra.mxu2 %v16307_v40 }
  0xf5   :  { %v16311_v42 = vld [vmem:[#allocation1 + $0x1b] sm:$0xff]  ;;  %v13060_v53 = vor.u32 %v14619_v39, %v13059_v38  ;;  %v14551_v54 = vld [vmem:[%s21962_s1 + $0x1dac] sm:$0xf0]  ;;  %7169 = vmatmul.bf16.vlgmr.msra.gmra.mxu1 %v16309_v41  ;;  %7227 = vmatpush.bf16.msrb.mxu2 %v12932_v50  ;;  %v6963_v38 = vadd.f32 %v6962_v30, %v6950_v25 }
  0xf6   :  { %v12659_v51 = vld [vmem:[%s21962_s1 + $0x1ca0] sm:$0xf]  ;;  %v14583_v56 = vld [vmem:[%s21962_s1 + $0x1eac] sm:$0xf0]  ;;  %7195 = vmatmul.bf16.vlgmr.msra.gmra.mxu3 %v16311_v42  ;;  %7214 = vmatpush.bf16.msrb.mxu1 %v12804_v45 }
  0xf7   :  { %v12787_v43 = vld [vmem:[%s21962_s1 + $0x1da0] sm:$0xf]  ;;  %v14615_v58 = vld [vmem:[%s21962_s1 + $0x1fac] sm:$0xf0]  ;;  %v12660_v59 = vor.u32 %v14519_v52, %v12659_v51  ;;  %7240 = vmatpush.bf16.msrb.mxu3 %v13060_v53 }
  0xf8   :  { %v12915_v55 = vld [vmem:[%s21962_s1 + $0x1ea0] sm:$0xf]  ;;  %v12788_v61 = vor.u32 %v14551_v54, %v12787_v43  ;;  %v14515_v3 = vld [vmem:[%s21962_s1 + $0x1c8c] sm:$0xf0] }
  0xf9   :  { %v13043_v57 = vld [vmem:[%s21962_s1 + $0x1fa0] sm:$0xf]  ;;  %v12916_v62 = vor.u32 %v14583_v56, %v12915_v55  ;;  %v14547_v11 = vld [vmem:[%s21962_s1 + $0x1d8c] sm:$0xf0]  ;;  %7202 = vmatpush.bf16.msrb.mxu0 %v12660_v59  ;;  %v6964_v21 = vpop.f32.mrf.mxu1 }
  0xfa   :  { %v12643_v63 = vld [vmem:[%s21962_s1 + $0x1c80] sm:$0xf]  ;;  %v13044_v10 = vor.u32 %v14615_v58, %v13043_v57  ;;  %v14579_v20 = vld [vmem:[%s21962_s1 + $0x1e8c] sm:$0xf0]  ;;  %7215 = vmatpush.bf16.msrb.mxu1 %v12788_v61  ;;  %v6975_v58 = vpop.f32.mrf.mxu2 }
  0xfb   :  { %v12771_v8 = vld [vmem:[%s21962_s1 + $0x1d80] sm:$0xf]  ;;  %v14611_v24 = vld [vmem:[%s21962_s1 + $0x1f8c] sm:$0xf0]  ;;  %v12644_v26 = vor.u32 %v14515_v3, %v12643_v63  ;;  %7228 = vmatpush.bf16.msrb.mxu2 %v12916_v62  ;;  %v6976_v63 = vadd.f32 %v6975_v58, %v6963_v38  ;;  %v6988_v3 = vpop.f32.mrf.mxu3 }
  0xfc   :  { %v12899_v19 = vld [vmem:[%s21962_s1 + $0x1e80] sm:$0xf]  ;;  %v12772_v31 = vor.u32 %v14547_v11, %v12771_v8  ;;  %v14511_v35 = vld [vmem:[%s21962_s1 + $0x1c6c] sm:$0xf0]  ;;  %7241 = vmatpush.bf16.msrb.mxu3 %v13044_v10  ;;  %v6951_v11 = vpop.f32.mrf.mxu0 }
  0xfd   :  { %v13027_v23 = vld [vmem:[%s21962_s1 + $0x1f80] sm:$0xf]  ;;  %v12900_v32 = vor.u32 %v14579_v20, %v12899_v19  ;;  %v14543_v39 = vld [vmem:[%s21962_s1 + $0x1d6c] sm:$0xf0]  ;;  %7203 = vmatpush.bf16.msrb.mxu0 %v12644_v26 }
  0xfe   :  { %v12627_v33 = vld [vmem:[%s21962_s1 + $0x1c60] sm:$0xf]  ;;  %v13028_v22 = vor.u32 %v14611_v24, %v13027_v23  ;;  %v14575_v45 = vld [vmem:[%s21962_s1 + $0x1e6c] sm:$0xf0]  ;;  %7216 = vmatpush.bf16.msrb.mxu1 %v12772_v31  ;;  %v16417_v23 = vadd.f32 %v6988_v3, %v6976_v63  ;;  %v16478_v63 = vld [vmem:[#allocation1 + $0x36] sm:$0xff] }
  0xff   :  { %v12755_v36 = vld [vmem:[%s21962_s1 + $0x1d60] sm:$0xf]  ;;  %v14607_v51 = vld [vmem:[%s21962_s1 + $0x1f6c] sm:$0xf0]  ;;  %v12628_v52 = vor.u32 %v14511_v35, %v12627_v33  ;;  %7229 = vmatpush.bf16.msrb.mxu2 %v12900_v32 }
 0x100   :  { %v12883_v44 = vld [vmem:[%s21962_s1 + $0x1e60] sm:$0xf]  ;;  %v12756_v43 = vor.u32 %v14543_v39, %v12755_v36  ;;  %v14507_v55 = vld [vmem:[%s21962_s1 + $0x1c4c] sm:$0xf0]  ;;  %7242 = vmatpush.bf16.msrb.mxu3 %v13028_v22 }
 0x101   :  { %v13011_v50 = vld [vmem:[%s21962_s1 + $0x1f60] sm:$0xf]  ;;  %v12884_v53 = vor.u32 %v14575_v45, %v12883_v44  ;;  %v14539_v59 = vld [vmem:[%s21962_s1 + $0x1d4c] sm:$0xf0]  ;;  %7204 = vmatpush.bf16.msrb.mxu0 %v12628_v52 }
 0x102   :  { %v12611_v54 = vld [vmem:[%s21962_s1 + $0x1c40] sm:$0xf]  ;;  %v13012_v57 = vor.u32 %v14607_v51, %v13011_v50  ;;  %v14571_v62 = vld [vmem:[%s21962_s1 + $0x1e4c] sm:$0xf0]  ;;  %7217 = vmatpush.bf16.msrb.mxu1 %v12756_v43  ;;  %v6977_v3 = vpop.f32.mrf.mxu2 }
 0x103   :  { %v12739_v56 = vld [vmem:[%s21962_s1 + $0x1d40] sm:$0xf]  ;;  %v14603_v10 = vld [vmem:[%s21962_s1 + $0x1f4c] sm:$0xf0]  ;;  %v12612_v19 = vor.u32 %v14507_v55, %v12611_v54  ;;  %7230 = vmatpush.bf16.msrb.mxu2 %v12884_v53  ;;  %v6990_v11 = vpop.f32.mrf.mxu3 }
 0x104   :  { %v12867_v61 = vld [vmem:[%s21962_s1 + $0x1e40] sm:$0xf]  ;;  %v12740_v24 = vor.u32 %v14539_v59, %v12739_v56  ;;  %v14503_v26 = vld [vmem:[%s21962_s1 + $0x1c2c] sm:$0xf0]  ;;  %7243 = vmatpush.bf16.msrb.mxu3 %v13012_v57 }
 0x105   :  { %v12995_v8 = vld [vmem:[%s21962_s1 + $0x1f40] sm:$0xf]  ;;  %v12868_v25 = vor.u32 %v14571_v62, %v12867_v61  ;;  %v14535_v31 = vld [vmem:[%s21962_s1 + $0x1d2c] sm:$0xf0]  ;;  %7205 = vmatpush.bf16.msrb.mxu0 %v12612_v19  ;;  %v16476_v62 = vld [vmem:[#allocation1 + $0x24] sm:$0xff] }
 0x106   :  { %v12595_v20 = vld [vmem:[%s21962_s1 + $0x1c20] sm:$0xf]  ;;  %v12996_v32 = vor.u32 %v14603_v10, %v12995_v8  ;;  %v14567_v35 = vld [vmem:[%s21962_s1 + $0x1e2c] sm:$0xf0]  ;;  %7218 = vmatpush.bf16.msrb.mxu1 %v12740_v24 }
 0x107   :  { %v12723_v30 = vld [vmem:[%s21962_s1 + $0x1d20] sm:$0xf]  ;;  %v14599_v22 = vld [vmem:[%s21962_s1 + $0x1f2c] sm:$0xf0]  ;;  %v12596_v44 = vor.u32 %v14503_v26, %v12595_v20  ;;  %7231 = vmatpush.bf16.msrb.mxu2 %v12868_v25 }
 0x108   :  { %v12851_v33 = vld [vmem:[%s21962_s1 + $0x1e20] sm:$0xf]  ;;  %v14499_v39 = vld [vmem:[%s21962_s1 + $0x1c0c] sm:$0xf0]  ;;  %v12724_v43 = vor.u32 %v14535_v31, %v12723_v30  ;;  %7244 = vmatpush.bf16.msrb.mxu3 %v12996_v32  ;;  %v13629_v30 = vld [vmem:[%s21962_s1 + $0xe4] sm:$0xf] }
 0x109   :  { %v12979_v36 = vld [vmem:[%s21962_s1 + $0x1f20] sm:$0xf]  ;;  %v14531_v50 = vld [vmem:[%s21962_s1 + $0x1d0c] sm:$0xf0]  ;;  %v12852_v53 = vor.u32 %v14567_v35, %v12851_v33  ;;  %7206 = vmatpush.bf16.msrb.mxu0 %v12596_v44  ;;  %v9109_v31 = vld [vmem:[%s21962_s1 + $0xf0] sm:$0xf0] }
 0x10a   :  { %v12579_v38 = vld [vmem:[%s21962_s1 + $0x1c00] sm:$0xf]  ;;  %v14563_v52 = vld [vmem:[%s21962_s1 + $0x1e0c] sm:$0xf0]  ;;  %v12980_v58 = vor.u32 %v14599_v22, %v12979_v36  ;;  %7219 = vmatpush.bf16.msrb.mxu1 %v12724_v43  ;;  %v9112_v44 = vor.u32 %v13629_v30, %v9109_v31  ;;  %v9093_v43 = vld [vmem:[%s21962_s1 + $0xd0] sm:$0xf0] }
 0x10b   :  { %v12707_v45 = vld [vmem:[%s21962_s1 + $0x1d00] sm:$0xf]  ;;  %v14595_v55 = vld [vmem:[%s21962_s1 + $0x1f0c] sm:$0xf0]  ;;  %v12580_v20 = vor.u32 %v14499_v39, %v12579_v38  ;;  %7232 = vmatpush.bf16.msrb.mxu2 %v12852_v53 }
 0x10c   :  { %v12835_v51 = vld [vmem:[%s21962_s1 + $0x1e00] sm:$0xf]  ;;  %v14655_v57 = vld [vmem:[%s21962_s1 + $0x20ec] sm:$0xf0]  ;;  %v12708_v25 = vor.u32 %v14531_v50, %v12707_v45  ;;  %7245 = vmatpush.bf16.msrb.mxu3 %v12980_v58 }
 0x10d   :  { %v12963_v54 = vld [vmem:[%s21962_s1 + $0x1f00] sm:$0xf]  ;;  %v14687_v61 = vld [vmem:[%s21962_s1 + $0x21ec] sm:$0xf0]  ;;  %v12836_v26 = vor.u32 %v14563_v52, %v12835_v51  ;;  %7207 = vmatpush.bf16.msrb.mxu0 %v12580_v20  ;;  %v13625_v52 = vld [vmem:[%s21962_s1 + $0xc4] sm:$0xf] }
 0x10e   :  { %v13203_v56 = vld [vmem:[%s21962_s1 + $0x20e0] sm:$0xf]  ;;  %v16480_v8 = vld [vmem:[#allocation1 + $0x2d] sm:$0xff]  ;;  %v12964_v32 = vor.u32 %v14595_v55, %v12963_v54  ;;  %7220 = vmatpush.bf16.msrb.mxu1 %v12708_v25 }
 0x10f   :  { %v13331_v59 = vld [vmem:[%s21962_s1 + $0x21e0] sm:$0xf]  ;;  %v14719_v24 = vld [vmem:[%s21962_s1 + $0x22ec] sm:$0xf0]  ;;  %v13204_v33 = vor.u32 %v14655_v57, %v13203_v56  ;;  %7233 = vmatpush.bf16.msrb.mxu2 %v12836_v26  ;;  %v9077_v20 = vld [vmem:[%s21962_s1 + $0xb0] sm:$0xf0] }
 0x110   :  { %v16482_v10 = vld [vmem:[#allocation1 + $0x3f] sm:$0xff]  ;;  %v13332_v35 = vor.u32 %v14687_v61, %v13331_v59  ;;  %v14651_v38 = vld [vmem:[%s21962_s1 + $0x20cc] sm:$0xf0]  ;;  %7246 = vmatpush.bf16.msrb.mxu3 %v12964_v32  ;;  %7208 = vmatmul.bf16.vlgmr.msrb.gmra.mxu0 %v16476_v62  ;;  %v9096_v59 = vor.u32 %v13625_v52, %v9093_v43 }
 0x111   :  { %v25_v19 = vld [vmem:[%s21961_s0 + $0x20] sm:$0x7]  ;;  %v14683_v45 = vld [vmem:[%s21962_s1 + $0x21cc] sm:$0xf0]  ;;  %7252 = vmatpush.bf16.msra.mxu0 %v13204_v33  ;;  %7221 = vmatmul.bf16.vlgmr.msrb.gmra.mxu1 %v16480_v8 }
 0x112   :  { %v13459_v21 = vld [vmem:[%s21962_s1 + $0x22e0] sm:$0xf]  ;;  %1197 = vst [vmem:[#allocation1] ss:$9 sm:$0xff] %v25_v19  ;;  %v14715_v51 = vld [vmem:[%s21962_s1 + $0x22cc] sm:$0xf0]  ;;  %7265 = vmatpush.bf16.msra.mxu1 %v13332_v35  ;;  %7234 = vmatmul.bf16.vlgmr.msrb.gmra.mxu2 %v16478_v63 }
 0x113   :  { %v13460_v36 = vor.u32 %v14719_v24, %v13459_v21  ;;  %v13187_v22 = vld [vmem:[%s21962_s1 + $0x20c0] sm:$0xf]  ;;  %v14647_v57 = vld [vmem:[%s21962_s1 + $0x20ac] sm:$0xf0]  ;;  %v13621_v19 = vld [vmem:[%s21962_s1 + $0xa4] sm:$0xf]  ;;  %7247 = vmatmul.bf16.vlgmr.msrb.gmra.mxu3 %v16482_v10 }
 0x114   :  { %v13315_v39 = vld [vmem:[%s21962_s1 + $0x21c0] sm:$0xf]  ;;  %v13188_v53 = vor.u32 %v14651_v38, %v13187_v22  ;;  %7291 = vmatpush.bf16.msra.mxu3 %v9112_v44  ;;  %v14679_v61 = vld [vmem:[%s21962_s1 + $0x21ac] sm:$0xf0]  ;;  %v9080_v32 = vor.u32 %v13621_v19, %v9077_v20  ;;  %v7001_v22 = vpop.f32.mrf.mxu0  ;;  %v13617_v38 = vld [vmem:[%s21962_s1 + $0x84] sm:$0xf] }
 0x115   :  { %v13443_v50 = vld [vmem:[%s21962_s1 + $0x22c0] sm:$0xf]  ;;  %7278 = vmatpush.bf16.msra.mxu2 %v13460_v36  ;;  %v13316_v54 = vor.u32 %v14683_v45, %v13315_v39  ;;  %v14711_v11 = vld [vmem:[%s21962_s1 + $0x22ac] sm:$0xf0]  ;;  %v9061_v39 = vld [vmem:[%s21962_s1 + $0x90] sm:$0xf0]  ;;  %v7002_v44 = vadd.f32 %v7001_v22, %v16417_v23 }
 0x116   :  { %v13444_v55 = vor.u32 %v14715_v51, %v13443_v50  ;;  %v13171_v56 = vld [vmem:[%s21962_s1 + $0x20a0] sm:$0xf]  ;;  %7253 = vmatpush.bf16.msra.mxu0 %v13188_v53  ;;  %v14643_v30 = vld [vmem:[%s21962_s1 + $0x208c] sm:$0xf0]  ;;  %v7014_v50 = vpop.f32.mrf.mxu1  ;;  %v9064_v23 = vor.u32 %v13617_v38, %v9061_v39  ;;  %v9029_v22 = vld [vmem:[%s21962_s1 + $0x50] sm:$0xf0] }
 0x117   :  { %v13299_v58 = vld [vmem:[%s21962_s1 + $0x21a0] sm:$0xf]  ;;  %v13172_v21 = vor.u32 %v14647_v57, %v13171_v56  ;;  %7266 = vmatpush.bf16.msra.mxu1 %v13316_v54  ;;  %v14675_v33 = vld [vmem:[%s21962_s1 + $0x218c] sm:$0xf0] }
 0x118   :  { %v13427_v3 = vld [vmem:[%s21962_s1 + $0x22a0] sm:$0xf]  ;;  %v13300_v24 = vor.u32 %v14679_v61, %v13299_v58  ;;  %7292 = vmatpush.bf16.msra.mxu3 %v9096_v59  ;;  %v14707_v36 = vld [vmem:[%s21962_s1 + $0x228c] sm:$0xf0]  ;;  %v13613_v59 = vld [vmem:[%s21962_s1 + $0x64] sm:$0xf] }
 0x119   :  { %7279 = vmatpush.bf16.msra.mxu2 %v13444_v55  ;;  %v13428_v25 = vor.u32 %v14711_v11, %v13427_v3  ;;  %v13155_v26 = vld [vmem:[%s21962_s1 + $0x2080] sm:$0xf]  ;;  %v14639_v53 = vld [vmem:[%s21962_s1 + $0x206c] sm:$0xf0]  ;;  %v7015_v55 = vadd.f32 %v7014_v50, %v7002_v44  ;;  %v9045_v61 = vld [vmem:[%s21962_s1 + $0x70] sm:$0xf0] }
 0x11a   :  { %v13283_v31 = vld [vmem:[%s21962_s1 + $0x2180] sm:$0xf]  ;;  %7254 = vmatpush.bf16.msra.mxu0 %v13172_v21  ;;  %v13156_v45 = vor.u32 %v14643_v30, %v13155_v26  ;;  %v14671_v56 = vld [vmem:[%s21962_s1 + $0x216c] sm:$0xf0]  ;;  %v7027_v26 = vpop.f32.mrf.mxu2 }
 0x11b   :  { %v13411_v35 = vld [vmem:[%s21962_s1 + $0x2280] sm:$0xf]  ;;  %7267 = vmatpush.bf16.msra.mxu1 %v13300_v24  ;;  %v13284_v51 = vor.u32 %v14675_v33, %v13283_v31  ;;  %v14703_v58 = vld [vmem:[%s21962_s1 + $0x226c] sm:$0xf0]  ;;  %v7028_v33 = vadd.f32 %v7027_v26, %v7015_v55 }
 0x11c   :  { %v13412_v52 = vor.u32 %v14707_v36, %v13411_v35  ;;  %v13139_v43 = vld [vmem:[%s21962_s1 + $0x2060] sm:$0xf]  ;;  %7293 = vmatpush.bf16.msra.mxu3 %v9080_v32  ;;  %v14635_v21 = vld [vmem:[%s21962_s1 + $0x204c] sm:$0xf0]  ;;  %v7040_v35 = vpop.f32.mrf.mxu3  ;;  %v13609_v36 = vld [vmem:[%s21962_s1 + $0x44] sm:$0xf]  ;;  %v7003_v38 = vpop.f32.mrf.mxu0 }
 0x11d   :  { %7280 = vmatpush.bf16.msra.mxu2 %v13428_v25  ;;  %v13267_v54 = vld [vmem:[%s21962_s1 + $0x2160] sm:$0xf]  ;;  %v13140_v3 = vor.u32 %v14639_v53, %v13139_v43  ;;  %v9048_v25 = vor.u32 %v13613_v59, %v9045_v61  ;;  %v14667_v30 = vld [vmem:[%s21962_s1 + $0x214c] sm:$0xf0] }
 0x11e   :  { %v13395_v57 = vld [vmem:[%s21962_s1 + $0x2260] sm:$0xf]  ;;  %7255 = vmatpush.bf16.msra.mxu0 %v13156_v45  ;;  %v13268_v11 = vor.u32 %v14671_v56, %v13267_v54  ;;  %v14699_v32 = vld [vmem:[%s21962_s1 + $0x224c] sm:$0xf0]  ;;  %v7016_v44 = vpop.f32.mrf.mxu1  ;;  %v16624_v45 = vadd.f32 %v7040_v35, %v7028_v33  ;;  %v9032_v54 = vor.u32 %v13609_v36, %v9029_v22  ;;  %v13661_v33 = vld [vmem:[%s21962_s1 + $0x1e4] sm:$0xf] }
 0x11f   :  { %7268 = vmatpush.bf16.msra.mxu1 %v13284_v51  ;;  %v13396_v19 = vor.u32 %v14703_v58, %v13395_v57  ;;  %v13123_v20 = vld [vmem:[%s21962_s1 + $0x2040] sm:$0xf]  ;;  %v14631_v43 = vld [vmem:[%s21962_s1 + $0x202c] sm:$0xf0]  ;;  %v13605_v57 = vld [vmem:[%s21962_s1 + $0x24] sm:$0xf] }
 0x120   :  { %v13251_v24 = vld [vmem:[%s21962_s1 + $0x2140] sm:$0xf]  ;;  %7294 = vmatpush.bf16.msra.mxu3 %v9064_v23  ;;  %v13124_v39 = vor.u32 %v14635_v21, %v13123_v20  ;;  %v14663_v23 = vld [vmem:[%s21962_s1 + $0x212c] sm:$0xf0]  ;;  %v9013_v58 = vld [vmem:[%s21962_s1 + $0x30] sm:$0xf0] }
 0x121   :  { %7281 = vmatpush.bf16.msra.mxu2 %v13412_v52  ;;  %v13379_v31 = vld [vmem:[%s21962_s1 + $0x2240] sm:$0xf]  ;;  %v13252_v50 = vor.u32 %v14667_v30, %v13251_v24  ;;  %v14695_v56 = vld [vmem:[%s21962_s1 + $0x222c] sm:$0xf0]  ;;  %v13601_v30 = vld [vmem:[%s21962_s1 + $0x4] sm:$0xf] }
 0x122   :  { %7256 = vmatpush.bf16.msra.mxu0 %v13140_v3  ;;  %v13380_v51 = vor.u32 %v14699_v32, %v13379_v31  ;;  %v13107_v52 = vld [vmem:[%s21962_s1 + $0x2020] sm:$0xf]  ;;  %v14627_v3 = vld [vmem:[%s21962_s1 + $0x200c] sm:$0xf0]  ;;  %v8997_v31 = vld [vmem:[%s21962_s1 + $0x10] sm:$0xf0]  ;;  %v7029_v32 = vpop.f32.mrf.mxu2 }
 0x123   :  { %7269 = vmatpush.bf16.msra.mxu1 %v13268_v11  ;;  %v13235_v53 = vld [vmem:[%s21962_s1 + $0x2120] sm:$0xf]  ;;  %v13108_v59 = vor.u32 %v14631_v43, %v13107_v52  ;;  %v14659_v21 = vld [vmem:[%s21962_s1 + $0x210c] sm:$0xf0]  ;;  %v9237_v35 = vld [vmem:[%s21962_s1 + $0x1f0] sm:$0xf0] }
 0x124   :  { %7295 = vmatpush.bf16.msra.mxu3 %v9048_v25  ;;  %v13363_v55 = vld [vmem:[%s21962_s1 + $0x2220] sm:$0xf]  ;;  %v13236_v11 = vor.u32 %v14663_v23, %v13235_v53  ;;  %v9016_v25 = vor.u32 %v13605_v57, %v9013_v58  ;;  %v14691_v26 = vld [vmem:[%s21962_s1 + $0x220c] sm:$0xf0]  ;;  %v13693_v36 = vld [vmem:[%s21962_s1 + $0x2e4] sm:$0xf]  ;;  %v7042_v22 = vpop.f32.mrf.mxu3  ;;  %v9240_v23 = vor.u32 %v13661_v33, %v9237_v35 }
 0x125   :  { %7282 = vmatpush.bf16.msra.mxu2 %v13396_v19  ;;  %v13091_v61 = vld [vmem:[%s21962_s1 + $0x2000] sm:$0xf]  ;;  %v13364_v19 = vor.u32 %v14695_v56, %v13363_v55  ;;  %v13725_v44 = vld [vmem:[%s21962_s1 + $0x3e4] sm:$0xf]  ;;  %v9621_v53 = vld [vmem:[%s21962_s1 + $0x4f0] sm:$0xf0] }
 0x126   :  { %7257 = vmatpush.bf16.msra.mxu0 %v13124_v39  ;;  %v13219_v20 = vld [vmem:[%s21962_s1 + $0x2100] sm:$0xf]  ;;  %v13092_v38 = vor.u32 %v14627_v3, %v13091_v61  ;;  %v9365_v39 = vld [vmem:[%s21962_s1 + $0x2f0] sm:$0xf0]  ;;  %v13757_v43 = vld [vmem:[%s21962_s1 + $0x4e4] sm:$0xf] }
 0x127   :  { %7270 = vmatpush.bf16.msra.mxu1 %v13252_v50  ;;  %v13347_v24 = vld [vmem:[%s21962_s1 + $0x2200] sm:$0xf]  ;;  %v9493_v50 = vld [vmem:[%s21962_s1 + $0x3f0] sm:$0xf0]  ;;  %v9368_v55 = vor.u32 %v13693_v36, %v9365_v39  ;;  %v13657_v57 = vld [vmem:[%s21962_s1 + $0x1c4] sm:$0xf]  ;;  %v9624_v61 = vor.u32 %v13757_v43, %v9621_v53 }
 0x128   :  { %7296 = vmatpush.bf16.msra.mxu3 %v9032_v54  ;;  %v13348_v52 = vor.u32 %v14691_v26, %v13347_v24  ;;  %v9000_v54 = vor.u32 %v13601_v30, %v8997_v31  ;;  %v9496_v56 = vor.u32 %v13725_v44, %v9493_v50  ;;  %v9221_v58 = vld [vmem:[%s21962_s1 + $0x1d0] sm:$0xf0]  ;;  %v1199_v26 = vld [vmem:[#allocation1 + $0x9] sm:$0xff]  ;;  %v13653_v33 = vld [vmem:[%s21962_s1 + $0x1a4] sm:$0xf] }
 0x129   :  { %7283 = vmatpush.bf16.msra.mxu2 %v13380_v51  ;;  %v13220_v51 = vor.u32 %v14659_v21, %v13219_v20  ;;  %v9349_v3 = vld [vmem:[%s21962_s1 + $0x2d0] sm:$0xf0]  ;;  %v1198_v20 = vld [vmem:[#allocation1] sm:$0xff]  ;;  %v9224_v30 = vor.u32 %v13657_v57, %v9221_v58 }
 0x12a   :  { %7258 = vmatpush.bf16.msra.mxu0 %v13108_v59  ;;  %v13689_v59 = vld [vmem:[%s21962_s1 + $0x2c4] sm:$0xf]  ;;  %v9605_v24 = vld [vmem:[%s21962_s1 + $0x4d0] sm:$0xf0] }
 0x12b   :  { %7271 = vmatpush.bf16.msra.mxu1 %v13236_v11  ;;  %v13721_v11 = vld [vmem:[%s21962_s1 + $0x3c4] sm:$0xf]  ;;  %v9352_v31 = vor.u32 %v13689_v59, %v9349_v3  ;;  %v9205_v35 = vld [vmem:[%s21962_s1 + $0x1b0] sm:$0xf0] }
 0x12c   :  { %7297 = vmatpush.bf16.msra.mxu3 %v9016_v25  ;;  %v13753_v21 = vld [vmem:[%s21962_s1 + $0x4c4] sm:$0xf]  ;;  %v1200_v25 = vld [vmem:[#allocation1 + $0x12] sm:$0xff] }
 0x12d   :  { %7284 = vmatpush.bf16.msra.mxu2 %v13364_v19  ;;  %v9477_v19 = vld [vmem:[%s21962_s1 + $0x3d0] sm:$0xf0]  ;;  %v13685_v36 = vld [vmem:[%s21962_s1 + $0x2a4] sm:$0xf]  ;;  %v9608_v22 = vor.u32 %v13753_v21, %v9605_v24 }
 0x12e   :  { %7259 = vmatpush.bf16.msra.mxu0 %v13092_v38  ;;  %v9480_v32 = vor.u32 %v13721_v11, %v9477_v19  ;;  %v9333_v38 = vld [vmem:[%s21962_s1 + $0x2b0] sm:$0xf0]  ;;  %v13717_v39 = vld [vmem:[%s21962_s1 + $0x3a4] sm:$0xf] }
 0x12f   :  { %7272 = vmatpush.bf16.msra.mxu1 %v13220_v51  ;;  %v9461_v44 = vld [vmem:[%s21962_s1 + $0x3b0] sm:$0xf0]  ;;  %v13749_v50 = vld [vmem:[%s21962_s1 + $0x4a4] sm:$0xf]  ;;  %v9336_v43 = vor.u32 %v13685_v36, %v9333_v38  ;;  %v7066_v21 = vpop.f32.mrf.mxu1 }
 0x130   :  { %7298 = vmatpush.bf16.msra.mxu3 %v9000_v54  ;;  %v9589_v51 = vld [vmem:[%s21962_s1 + $0x4b0] sm:$0xf0]  ;;  %v9464_v53 = vor.u32 %v13717_v39, %v9461_v44  ;;  %v13649_v54 = vld [vmem:[%s21962_s1 + $0x184] sm:$0xf] }
 0x131   :  { %7285 = vmatpush.bf16.msra.mxu2 %v13348_v52  ;;  %7260 = vmatmul.bf16.vlgmr.msra.gmra.mxu0 %v1198_v20  ;;  %v9208_v52 = vor.u32 %v13653_v33, %v9205_v35  ;;  %v9317_v57 = vld [vmem:[%s21962_s1 + $0x290] sm:$0xf0]  ;;  %v13713_v58 = vld [vmem:[%s21962_s1 + $0x384] sm:$0xf] }
 0x132   :  { %7304 = vmatpush.bf16.msrb.mxu0 %v9240_v23  ;;  %7273 = vmatmul.bf16.vlgmr.msra.gmra.mxu1 %v1199_v26  ;;  %v9189_v23 = vld [vmem:[%s21962_s1 + $0x190] sm:$0xf0]  ;;  %v13745_v3 = vld [vmem:[%s21962_s1 + $0x484] sm:$0xf] }
 0x133   :  { %7317 = vmatpush.bf16.msrb.mxu1 %v9368_v55  ;;  %7299 = vmatmul.bf16.vlgmr.msra.gmra.mxu3 %v15144_v28  ;;  %v13681_v55 = vld [vmem:[%s21962_s1 + $0x284] sm:$0xf]  ;;  %v9445_v59 = vld [vmem:[%s21962_s1 + $0x390] sm:$0xf0]  ;;  %v9192_v20 = vor.u32 %v13649_v54, %v9189_v23 }
 0x134   :  { %7343 = vmatpush.bf16.msrb.mxu3 %v9624_v61  ;;  %7286 = vmatmul.bf16.vlgmr.msra.gmra.mxu2 %v1200_v25  ;;  %v7053_v61 = vpop.f32.mrf.mxu0  ;;  %v9573_v11 = vld [vmem:[%s21962_s1 + $0x490] sm:$0xf0]  ;;  %v9320_v24 = vor.u32 %v13681_v55, %v9317_v57  ;;  %v9448_v25 = vor.u32 %v13713_v58, %v9445_v59  ;;  %v13645_v26 = vld [vmem:[%s21962_s1 + $0x164] sm:$0xf] }
 0x135   :  { %7330 = vmatpush.bf16.msrb.mxu2 %v9496_v56  ;;  %v9592_v56 = vor.u32 %v13749_v50, %v9589_v51  ;;  %v7054_v19 = vadd.f32 %v7053_v61, %v16624_v45  ;;  %v9576_v45 = vor.u32 %v13745_v3, %v9573_v11  ;;  %v9301_v33 = vld [vmem:[%s21962_s1 + $0x270] sm:$0xf0]  ;;  %v13709_v35 = vld [vmem:[%s21962_s1 + $0x364] sm:$0xf]  ;;  %v7079_v54 = vpop.f32.mrf.mxu2 }
 0x136   :  { %7305 = vmatpush.bf16.msrb.mxu0 %v9224_v30  ;;  %v9173_v30 = vld [vmem:[%s21962_s1 + $0x170] sm:$0xf0]  ;;  %v13641_v51 = vld [vmem:[%s21962_s1 + $0x144] sm:$0xf]  ;;  %v7092_v58 = vpop.f32.mrf.mxu3 }
 0x137   :  { %7318 = vmatpush.bf16.msrb.mxu1 %v9352_v31  ;;  %v13677_v31 = vld [vmem:[%s21962_s1 + $0x264] sm:$0xf]  ;;  %v9429_v36 = vld [vmem:[%s21962_s1 + $0x370] sm:$0xf0]  ;;  %v9176_v39 = vor.u32 %v13645_v26, %v9173_v30 }
 0x138   :  { %7344 = vmatpush.bf16.msrb.mxu3 %v9608_v22  ;;  %v13741_v22 = vld [vmem:[%s21962_s1 + $0x464] sm:$0xf]  ;;  %v9557_v38 = vld [vmem:[%s21962_s1 + $0x470] sm:$0xf0]  ;;  %v9304_v44 = vor.u32 %v13677_v31, %v9301_v33  ;;  %v9432_v50 = vor.u32 %v13709_v35, %v9429_v36 }
 0x139   :  { %7331 = vmatpush.bf16.msrb.mxu2 %v9480_v32  ;;  %v7067_v32 = vadd.f32 %v7066_v21, %v7054_v19  ;;  %v9285_v23 = vld [vmem:[%s21962_s1 + $0x250] sm:$0xf0]  ;;  %v13705_v55 = vld [vmem:[%s21962_s1 + $0x344] sm:$0xf]  ;;  %v7068_v19 = vpop.f32.mrf.mxu1 }
 0x13a   :  { %7306 = vmatpush.bf16.msrb.mxu0 %v9208_v52  ;;  %v9157_v52 = vld [vmem:[%s21962_s1 + $0x150] sm:$0xf0]  ;;  %v13737_v59 = vld [vmem:[%s21962_s1 + $0x444] sm:$0xf] }
 0x13b   :  { %7319 = vmatpush.bf16.msrb.mxu1 %v9336_v43  ;;  %v13673_v43 = vld [vmem:[%s21962_s1 + $0x244] sm:$0xf]  ;;  %v7080_v57 = vadd.f32 %v7079_v54, %v7067_v32  ;;  %v9541_v61 = vld [vmem:[%s21962_s1 + $0x450] sm:$0xf0]  ;;  %v9160_v11 = vor.u32 %v13641_v51, %v9157_v52 }
 0x13c   :  { %7345 = vmatpush.bf16.msrb.mxu3 %v9592_v56  ;;  %v9413_v56 = vld [vmem:[%s21962_s1 + $0x350] sm:$0xf0]  ;;  %v7055_v3 = vpop.f32.mrf.mxu0  ;;  %v9288_v21 = vor.u32 %v13673_v43, %v9285_v23  ;;  %v13669_v30 = vld [vmem:[%s21962_s1 + $0x224] sm:$0xf]  ;;  %v9544_v31 = vor.u32 %v13737_v59, %v9541_v61 }
 0x13d   :  { %7332 = vmatpush.bf16.msrb.mxu2 %v9464_v53  ;;  %v9560_v53 = vor.u32 %v13741_v22, %v9557_v38  ;;  %v9141_v26 = vld [vmem:[%s21962_s1 + $0x130] sm:$0xf0]  ;;  %v13701_v32 = vld [vmem:[%s21962_s1 + $0x324] sm:$0xf] }
 0x13e   :  { %7307 = vmatpush.bf16.msrb.mxu0 %v9192_v20  ;;  %v16820_v20 = vadd.f32 %v7092_v58, %v7080_v57  ;;  %v9397_v33 = vld [vmem:[%s21962_s1 + $0x330] sm:$0xf0]  ;;  %v13733_v35 = vld [vmem:[%s21962_s1 + $0x424] sm:$0xf]  ;;  %v7094_v61 = vpop.f32.mrf.mxu3 }
 0x13f   :  { %7320 = vmatpush.bf16.msrb.mxu1 %v9320_v24  ;;  %v9416_v24 = vor.u32 %v13705_v55, %v9413_v56  ;;  %v9525_v36 = vld [vmem:[%s21962_s1 + $0x430] sm:$0xf0]  ;;  %v13633_v38 = vld [vmem:[%s21962_s1 + $0x104] sm:$0xf]  ;;  %v7081_v56 = vpop.f32.mrf.mxu2 }
 0x140   :  { %7346 = vmatpush.bf16.msrb.mxu3 %v9576_v45  ;;  %v9269_v45 = vld [vmem:[%s21962_s1 + $0x230] sm:$0xf0]  ;;  %v13665_v51 = vld [vmem:[%s21962_s1 + $0x204] sm:$0xf] }
 0x141   :  { %7333 = vmatpush.bf16.msrb.mxu2 %v9448_v25  ;;  %v13637_v25 = vld [vmem:[%s21962_s1 + $0x124] sm:$0xf]  ;;  %v9253_v52 = vld [vmem:[%s21962_s1 + $0x210] sm:$0xf0] }
 0x142   :  { %7308 = vmatpush.bf16.msrb.mxu0 %v9176_v39  ;;  %v9144_v22 = vor.u32 %v13637_v25, %v9141_v26  ;;  %v9125_v39 = vld [vmem:[%s21962_s1 + $0x110] sm:$0xf0]  ;;  %v13697_v43 = vld [vmem:[%s21962_s1 + $0x304] sm:$0xf] }
 0x143   :  { %7321 = vmatpush.bf16.msrb.mxu1 %v9304_v44  ;;  %v9272_v44 = vor.u32 %v13669_v30, %v9269_v45  ;;  %v9381_v54 = vld [vmem:[%s21962_s1 + $0x310] sm:$0xf0]  ;;  %v13729_v23 = vld [vmem:[%s21962_s1 + $0x404] sm:$0xf]  ;;  %v9128_v3 = vor.u32 %v13633_v38, %v9125_v39 }
 0x144   :  { %7347 = vmatpush.bf16.msrb.mxu3 %v9560_v53  ;;  %v9528_v53 = vor.u32 %v13733_v35, %v9525_v36  ;;  %v9509_v55 = vld [vmem:[%s21962_s1 + $0x410] sm:$0xf0]  ;;  %v13789_v57 = vld [vmem:[%s21962_s1 + $0x5e4] sm:$0xf]  ;;  %v9384_v25 = vor.u32 %v13697_v43, %v9381_v54 }
 0x145   :  { %7334 = vmatpush.bf16.msrb.mxu2 %v9432_v50  ;;  %v9400_v50 = vor.u32 %v13701_v32, %v9397_v33  ;;  %v9749_v58 = vld [vmem:[%s21962_s1 + $0x5f0] sm:$0xf0]  ;;  %v13821_v59 = vld [vmem:[%s21962_s1 + $0x6e4] sm:$0xf] }
 0x146   :  { %7309 = vmatpush.bf16.msrb.mxu0 %v9160_v11  ;;  %v9877_v11 = vld [vmem:[%s21962_s1 + $0x6f0] sm:$0xf0]  ;;  %v13853_v19 = vld [vmem:[%s21962_s1 + $0x7e4] sm:$0xf]  ;;  %v9752_v45 = vor.u32 %v13789_v57, %v9749_v58 }
 0x147   :  { %7322 = vmatpush.bf16.msrb.mxu1 %v9288_v21  ;;  %v10005_v21 = vld [vmem:[%s21962_s1 + $0x7f0] sm:$0xf0]  ;;  %v13885_v26 = vld [vmem:[%s21962_s1 + $0x8e4] sm:$0xf]  ;;  %v9880_v32 = vor.u32 %v13821_v59, %v9877_v11 }
 0x148   :  { %7348 = vmatpush.bf16.msrb.mxu3 %v9544_v31  ;;  %v10133_v30 = vld [vmem:[%s21962_s1 + $0x8f0] sm:$0xf0]  ;;  %v9512_v31 = vor.u32 %v13729_v23, %v9509_v55  ;;  %v10008_v33 = vor.u32 %v13853_v19, %v10005_v21  ;;  %v13785_v35 = vld [vmem:[%s21962_s1 + $0x5c4] sm:$0xf] }
 0x149   :  { %7335 = vmatpush.bf16.msrb.mxu2 %v9416_v24  ;;  %v9256_v24 = vor.u32 %v13665_v51, %v9253_v52  ;;  %v9733_v36 = vld [vmem:[%s21962_s1 + $0x5d0] sm:$0xf0]  ;;  %v10136_v38 = vor.u32 %v13885_v26, %v10133_v30  ;;  %v13881_v51 = vld [vmem:[%s21962_s1 + $0x8c4] sm:$0xf] }
 0x14a   :  { %7310 = vmatpush.bf16.msrb.mxu0 %v9144_v22  ;;  %v13817_v22 = vld [vmem:[%s21962_s1 + $0x6c4] sm:$0xf]  ;;  %v9861_v39 = vld [vmem:[%s21962_s1 + $0x6d0] sm:$0xf0]  ;;  %v9736_v43 = vor.u32 %v13785_v35, %v9733_v36 }
 0x14b   :  { %7323 = vmatpush.bf16.msrb.mxu1 %v9272_v44  ;;  %v13849_v44 = vld [vmem:[%s21962_s1 + $0x7c4] sm:$0xf]  ;;  %v10117_v52 = vld [vmem:[%s21962_s1 + $0x8d0] sm:$0xf0]  ;;  %v7105_v35 = vpop.f32.mrf.mxu0 }
 0x14c   :  { %7349 = vmatpush.bf16.msrb.mxu3 %v9528_v53  ;;  %v9864_v53 = vor.u32 %v13817_v22, %v9861_v39  ;;  %v13781_v23 = vld [vmem:[%s21962_s1 + $0x5a4] sm:$0xf]  ;;  %v9717_v55 = vld [vmem:[%s21962_s1 + $0x5b0] sm:$0xf0]  ;;  %v10120_v57 = vor.u32 %v13881_v51, %v10117_v52 }
 0x14d   :  { %7336 = vmatpush.bf16.msrb.mxu2 %v9400_v50  ;;  %v9989_v50 = vld [vmem:[%s21962_s1 + $0x7d0] sm:$0xf0]  ;;  %v13813_v56 = vld [vmem:[%s21962_s1 + $0x6a4] sm:$0xf]  ;;  %v9720_v19 = vor.u32 %v13781_v23, %v9717_v55 }
 0x14e   :  { %7311 = vmatpush.bf16.msrb.mxu0 %v9128_v3  ;;  %v9992_v54 = vor.u32 %v13849_v44, %v9989_v50  ;;  %v9845_v58 = vld [vmem:[%s21962_s1 + $0x6b0] sm:$0xf0]  ;;  %v13845_v59 = vld [vmem:[%s21962_s1 + $0x7a4] sm:$0xf]  ;;  %v7118_v44 = vpop.f32.mrf.mxu1 }
 0x14f   :  { %7324 = vmatpush.bf16.msrb.mxu1 %v9256_v24  ;;  %v9973_v61 = vld [vmem:[%s21962_s1 + $0x7b0] sm:$0xf0]  ;;  %v13877_v3 = vld [vmem:[%s21962_s1 + $0x8a4] sm:$0xf]  ;;  %v9848_v21 = vor.u32 %v13813_v56, %v9845_v58 }
 0x150   :  { %7350 = vmatpush.bf16.msrb.mxu3 %v9512_v31  ;;  %v10101_v11 = vld [vmem:[%s21962_s1 + $0x8b0] sm:$0xf0]  ;;  %v9976_v24 = vor.u32 %v13845_v59, %v9973_v61  ;;  %v13809_v30 = vld [vmem:[%s21962_s1 + $0x684] sm:$0xf] }
 0x151   :  { %7337 = vmatpush.bf16.msrb.mxu2 %v9384_v25  ;;  %7312 = vmatmul.bf16.vlgmr.msrb.gmra.mxu0 %v15154_v34  ;;  %v13777_v25 = vld [vmem:[%s21962_s1 + $0x584] sm:$0xf]  ;;  %v9701_v26 = vld [vmem:[%s21962_s1 + $0x590] sm:$0xf0]  ;;  %v10104_v31 = vor.u32 %v13877_v3, %v10101_v11 }
 0x152   :  { %7356 = vmatpush.bf16.msra.mxu0 %v9752_v45  ;;  %7325 = vmatmul.bf16.vlgmr.msrb.gmra.mxu1 %v15142_v27  ;;  %v9829_v45 = vld [vmem:[%s21962_s1 + $0x690] sm:$0xf0]  ;;  %v13873_v36 = vld [vmem:[%s21962_s1 + $0x884] sm:$0xf]  ;;  %v9704_v39 = vor.u32 %v13777_v25, %v9701_v26  ;;  %v7131_v25 = vpop.f32.mrf.mxu2 }
 0x153   :  { %7369 = vmatpush.bf16.msra.mxu1 %v9880_v32  ;;  %7351 = vmatmul.bf16.vlgmr.msrb.gmra.mxu3 %v15222_v0  ;;  %v13841_v32 = vld [vmem:[%s21962_s1 + $0x784] sm:$0xf]  ;;  %v10085_v22 = vld [vmem:[%s21962_s1 + $0x890] sm:$0xf0]  ;;  %v9832_v50 = vor.u32 %v13809_v30, %v9829_v45 }
 0x154   :  { %7395 = vmatpush.bf16.msra.mxu3 %v10136_v38  ;;  %7338 = vmatmul.bf16.vlgmr.msrb.gmra.mxu2 %v15146_v29  ;;  %v7106_v38 = vadd.f32 %v7105_v35, %v16820_v20  ;;  %v13773_v52 = vld [vmem:[%s21962_s1 + $0x564] sm:$0xf]  ;;  %v10088_v20 = vor.u32 %v13873_v36, %v10085_v22  ;;  %v9813_v23 = vld [vmem:[%s21962_s1 + $0x670] sm:$0xf0]  ;;  %v7107_v36 = vpop.f32.mrf.mxu0 }
 0x155   :  { %7382 = vmatpush.bf16.msra.mxu2 %v10008_v33  ;;  %v9957_v33 = vld [vmem:[%s21962_s1 + $0x790] sm:$0xf0]  ;;  %v13837_v55 = vld [vmem:[%s21962_s1 + $0x764] sm:$0xf] }
 0x156   :  { %7357 = vmatpush.bf16.msra.mxu0 %v9736_v43  ;;  %v9960_v51 = vor.u32 %v13841_v32, %v9957_v33  ;;  %v9685_v43 = vld [vmem:[%s21962_s1 + $0x570] sm:$0xf0]  ;;  %v13769_v11 = vld [vmem:[%s21962_s1 + $0x544] sm:$0xf]  ;;  %v7144_v32 = vpop.f32.mrf.mxu3 }
 0x157   :  { %7370 = vmatpush.bf16.msra.mxu1 %v9864_v53  ;;  %v13805_v53 = vld [vmem:[%s21962_s1 + $0x664] sm:$0xf]  ;;  %v9941_v56 = vld [vmem:[%s21962_s1 + $0x770] sm:$0xf0]  ;;  %v9688_v59 = vor.u32 %v13773_v52, %v9685_v43 }
 0x158   :  { %7396 = vmatpush.bf16.msra.mxu3 %v10120_v57  ;;  %v13869_v57 = vld [vmem:[%s21962_s1 + $0x864] sm:$0xf]  ;;  %v10069_v58 = vld [vmem:[%s21962_s1 + $0x870] sm:$0xf0]  ;;  %v9816_v61 = vor.u32 %v13805_v53, %v9813_v23  ;;  %v9944_v3 = vor.u32 %v13837_v55, %v9941_v56 }
 0x159   :  { %7383 = vmatpush.bf16.msra.mxu2 %v9992_v54  ;;  %v7119_v54 = vadd.f32 %v7118_v44, %v7106_v38  ;;  %v9797_v26 = vld [vmem:[%s21962_s1 + $0x650] sm:$0xf0]  ;;  %v13833_v30 = vld [vmem:[%s21962_s1 + $0x744] sm:$0xf]  ;;  %v7120_v38 = vpop.f32.mrf.mxu1 }
 0x15a   :  { %7358 = vmatpush.bf16.msra.mxu0 %v9720_v19  ;;  %v9669_v19 = vld [vmem:[%s21962_s1 + $0x550] sm:$0xf0]  ;;  %v13865_v33 = vld [vmem:[%s21962_s1 + $0x844] sm:$0xf] }
 0x15b   :  { %7371 = vmatpush.bf16.msra.mxu1 %v9848_v21  ;;  %v13801_v21 = vld [vmem:[%s21962_s1 + $0x644] sm:$0xf]  ;;  %v7132_v45 = vadd.f32 %v7131_v25, %v7119_v54  ;;  %v10053_v35 = vld [vmem:[%s21962_s1 + $0x850] sm:$0xf0]  ;;  %v9672_v22 = vor.u32 %v13769_v11, %v9669_v19 }
 0x15c   :  { %7397 = vmatpush.bf16.msra.mxu3 %v10104_v31  ;;  %v9925_v31 = vld [vmem:[%s21962_s1 + $0x750] sm:$0xf0]  ;;  %v9800_v44 = vor.u32 %v13801_v21, %v9797_v26  ;;  %v13797_v43 = vld [vmem:[%s21962_s1 + $0x624] sm:$0xf]  ;;  %v10056_v53 = vor.u32 %v13865_v33, %v10053_v35 }
 0x15d   :  { %7384 = vmatpush.bf16.msra.mxu2 %v9976_v24  ;;  %v10072_v24 = vor.u32 %v13869_v57, %v10069_v58  ;;  %v9653_v52 = vld [vmem:[%s21962_s1 + $0x530] sm:$0xf0]  ;;  %v13829_v54 = vld [vmem:[%s21962_s1 + $0x724] sm:$0xf] }
 0x15e   :  { %7359 = vmatpush.bf16.msra.mxu0 %v9704_v39  ;;  %v17019_v39 = vadd.f32 %v7144_v32, %v7132_v45  ;;  %v9909_v23 = vld [vmem:[%s21962_s1 + $0x730] sm:$0xf0]  ;;  %v13861_v55 = vld [vmem:[%s21962_s1 + $0x824] sm:$0xf]  ;;  %v7146_v35 = vpop.f32.mrf.mxu3 }
 0x15f   :  { %7372 = vmatpush.bf16.msra.mxu1 %v9832_v50  ;;  %v9928_v50 = vor.u32 %v13833_v30, %v9925_v31  ;;  %v10037_v56 = vld [vmem:[%s21962_s1 + $0x830] sm:$0xf0]  ;;  %v13761_v58 = vld [vmem:[%s21962_s1 + $0x504] sm:$0xf]  ;;  %v7133_v31 = vpop.f32.mrf.mxu2 }
 0x160   :  { %7398 = vmatpush.bf16.msra.mxu3 %v10088_v20  ;;  %v9781_v20 = vld [vmem:[%s21962_s1 + $0x630] sm:$0xf0]  ;;  %v13793_v11 = vld [vmem:[%s21962_s1 + $0x604] sm:$0xf] }
 0x161   :  { %7385 = vmatpush.bf16.msra.mxu2 %v9960_v51  ;;  %v13765_v51 = vld [vmem:[%s21962_s1 + $0x524] sm:$0xf]  ;;  %v9765_v19 = vld [vmem:[%s21962_s1 + $0x610] sm:$0xf0] }
 0x162   :  { %7360 = vmatpush.bf16.msra.mxu0 %v9688_v59  ;;  %v9656_v57 = vor.u32 %v13765_v51, %v9653_v52  ;;  %v9637_v59 = vld [vmem:[%s21962_s1 + $0x510] sm:$0xf0]  ;;  %v13825_v21 = vld [vmem:[%s21962_s1 + $0x704] sm:$0xf] }
 0x163   :  { %7373 = vmatpush.bf16.msra.mxu1 %v9816_v61  ;;  %v9784_v61 = vor.u32 %v13797_v43, %v9781_v20  ;;  %v9893_v25 = vld [vmem:[%s21962_s1 + $0x710] sm:$0xf0]  ;;  %v13857_v26 = vld [vmem:[%s21962_s1 + $0x804] sm:$0xf]  ;;  %v9640_v36 = vor.u32 %v13761_v58, %v9637_v59 }
 0x164   :  { %7399 = vmatpush.bf16.msra.mxu3 %v10072_v24  ;;  %v10040_v24 = vor.u32 %v13861_v55, %v10037_v56  ;;  %v10021_v30 = vld [vmem:[%s21962_s1 + $0x810] sm:$0xf0]  ;;  %v13917_v45 = vld [vmem:[%s21962_s1 + $0x9e4] sm:$0xf]  ;;  %v9896_v51 = vor.u32 %v13825_v21, %v9893_v25 }
 0x165   :  { %7386 = vmatpush.bf16.msra.mxu2 %v9944_v3  ;;  %v9912_v3 = vor.u32 %v13829_v54, %v9909_v23  ;;  %v10261_v32 = vld [vmem:[%s21962_s1 + $0x9f0] sm:$0xf0]  ;;  %v13949_v33 = vld [vmem:[%s21962_s1 + $0xae4] sm:$0xf] }
 0x166   :  { %7361 = vmatpush.bf16.msra.mxu0 %v9672_v22  ;;  %v10389_v22 = vld [vmem:[%s21962_s1 + $0xaf0] sm:$0xf0]  ;;  %v13981_v38 = vld [vmem:[%s21962_s1 + $0xbe4] sm:$0xf]  ;;  %v10264_v20 = vor.u32 %v13917_v45, %v10261_v32 }
 0x167   :  { %7374 = vmatpush.bf16.msra.mxu1 %v9800_v44  ;;  %v10517_v44 = vld [vmem:[%s21962_s1 + $0xbf0] sm:$0xf0]  ;;  %v14013_v52 = vld [vmem:[%s21962_s1 + $0xce4] sm:$0xf]  ;;  %v10392_v54 = vor.u32 %v13949_v33, %v10389_v22 }
 0x168   :  { %7400 = vmatpush.bf16.msra.mxu3 %v10056_v53  ;;  %v10645_v43 = vld [vmem:[%s21962_s1 + $0xcf0] sm:$0xf0]  ;;  %v10024_v53 = vor.u32 %v13857_v26, %v10021_v30  ;;  %v10520_v23 = vor.u32 %v13981_v38, %v10517_v44  ;;  %v13913_v55 = vld [vmem:[%s21962_s1 + $0x9c4] sm:$0xf] }
 0x169   :  { %7387 = vmatpush.bf16.msra.mxu2 %v9928_v50  ;;  %v9768_v50 = vor.u32 %v13793_v11, %v9765_v19  ;;  %v10245_v56 = vld [vmem:[%s21962_s1 + $0x9d0] sm:$0xf0]  ;;  %v10648_v58 = vor.u32 %v14013_v52, %v10645_v43  ;;  %v14009_v11 = vld [vmem:[%s21962_s1 + $0xcc4] sm:$0xf] }
 0x16a   :  { %7362 = vmatpush.bf16.msra.mxu0 %v9656_v57  ;;  %v13945_v57 = vld [vmem:[%s21962_s1 + $0xac4] sm:$0xf]  ;;  %v10373_v59 = vld [vmem:[%s21962_s1 + $0xad0] sm:$0xf0]  ;;  %v10248_v21 = vor.u32 %v13913_v55, %v10245_v56 }
 0x16b   :  { %7375 = vmatpush.bf16.msra.mxu1 %v9784_v61  ;;  %v13977_v61 = vld [vmem:[%s21962_s1 + $0xbc4] sm:$0xf]  ;;  %v10629_v19 = vld [vmem:[%s21962_s1 + $0xcd0] sm:$0xf0] }
 0x16c   :  { %7401 = vmatpush.bf16.msra.mxu3 %v10040_v24  ;;  %v10376_v24 = vor.u32 %v13945_v57, %v10373_v59  ;;  %v13909_v26 = vld [vmem:[%s21962_s1 + $0x9a4] sm:$0xf]  ;;  %v10229_v30 = vld [vmem:[%s21962_s1 + $0x9b0] sm:$0xf0]  ;;  %v10632_v45 = vor.u32 %v14009_v11, %v10629_v19 }
 0x16d   :  { %7388 = vmatpush.bf16.msra.mxu2 %v9912_v3  ;;  %v10501_v3 = vld [vmem:[%s21962_s1 + $0xbd0] sm:$0xf0]  ;;  %v13941_v31 = vld [vmem:[%s21962_s1 + $0xaa4] sm:$0xf]  ;;  %v10232_v38 = vor.u32 %v13909_v26, %v10229_v30 }
 0x16e   :  { %7363 = vmatpush.bf16.msra.mxu0 %v9640_v36  ;;  %v10504_v25 = vor.u32 %v13977_v61, %v10501_v3  ;;  %v10357_v32 = vld [vmem:[%s21962_s1 + $0xab0] sm:$0xf0]  ;;  %v13973_v33 = vld [vmem:[%s21962_s1 + $0xba4] sm:$0xf] }
 0x16f   :  { %7376 = vmatpush.bf16.msra.mxu1 %v9768_v50  ;;  %v10485_v35 = vld [vmem:[%s21962_s1 + $0xbb0] sm:$0xf0]  ;;  %v14005_v36 = vld [vmem:[%s21962_s1 + $0xca4] sm:$0xf]  ;;  %v10360_v44 = vor.u32 %v13941_v31, %v10357_v32 }
 0x170   :  { %7402 = vmatpush.bf16.msra.mxu3 %v10024_v53  ;;  %v10613_v22 = vld [vmem:[%s21962_s1 + $0xcb0] sm:$0xf0]  ;;  %v10488_v50 = vor.u32 %v13973_v33, %v10485_v35  ;;  %v13937_v43 = vld [vmem:[%s21962_s1 + $0xa84] sm:$0xf] }
 0x171   :  { %7389 = vmatpush.bf16.msra.mxu2 %v9896_v51  ;;  %7364 = vmatmul.bf16.vlgmr.msra.gmra.mxu0 %v15226_v2  ;;  %v13905_v51 = vld [vmem:[%s21962_s1 + $0x984] sm:$0xf]  ;;  %v10213_v52 = vld [vmem:[%s21962_s1 + $0x990] sm:$0xf0]  ;;  %v10616_v53 = vor.u32 %v14005_v36, %v10613_v22  ;;  %v7157_v55 = vpop.f32.mrf.mxu0 }
 0x172   :  { %7408 = vmatpush.bf16.msrb.mxu0 %v10264_v20  ;;  %7377 = vmatmul.bf16.vlgmr.msra.gmra.mxu1 %v15217_v60  ;;  %v10341_v20 = vld [vmem:[%s21962_s1 + $0xa90] sm:$0xf0]  ;;  %v14001_v56 = vld [vmem:[%s21962_s1 + $0xc84] sm:$0xf]  ;;  %v10216_v59 = vor.u32 %v13905_v51, %v10213_v52  ;;  %v7170_v61 = vpop.f32.mrf.mxu1 }
 0x173   :  { %7421 = vmatpush.bf16.msrb.mxu1 %v10392_v54  ;;  %7403 = vmatmul.bf16.vlgmr.msra.gmra.mxu3 %v15472_v12  ;;  %v13969_v54 = vld [vmem:[%s21962_s1 + $0xb84] sm:$0xf]  ;;  %v10597_v57 = vld [vmem:[%s21962_s1 + $0xc90] sm:$0xf0]  ;;  %v10344_v3 = vor.u32 %v13937_v43, %v10341_v20 }
 0x174   :  { %7447 = vmatpush.bf16.msrb.mxu3 %v10648_v58  ;;  %7390 = vmatmul.bf16.vlgmr.msra.gmra.mxu2 %v15224_v1  ;;  %v7158_v58 = vadd.f32 %v7157_v55, %v17019_v39  ;;  %v13901_v19 = vld [vmem:[%s21962_s1 + $0x964] sm:$0xf]  ;;  %v10600_v39 = vor.u32 %v14001_v56, %v10597_v57  ;;  %v10325_v26 = vld [vmem:[%s21962_s1 + $0xa70] sm:$0xf0] }
 0x175   :  { %7434 = vmatpush.bf16.msrb.mxu2 %v10520_v23  ;;  %v10469_v23 = vld [vmem:[%s21962_s1 + $0xb90] sm:$0xf0]  ;;  %v13965_v30 = vld [vmem:[%s21962_s1 + $0xb64] sm:$0xf] }
 0x176   :  { %7409 = vmatpush.bf16.msrb.mxu0 %v10248_v21  ;;  %v10472_v11 = vor.u32 %v13969_v54, %v10469_v23  ;;  %v10197_v21 = vld [vmem:[%s21962_s1 + $0x970] sm:$0xf0]  ;;  %v13897_v22 = vld [vmem:[%s21962_s1 + $0x944] sm:$0xf] }
 0x177   :  { %7422 = vmatpush.bf16.msrb.mxu1 %v10376_v24  ;;  %v13933_v24 = vld [vmem:[%s21962_s1 + $0xa64] sm:$0xf]  ;;  %v10453_v31 = vld [vmem:[%s21962_s1 + $0xb70] sm:$0xf0]  ;;  %v10200_v33 = vor.u32 %v13901_v19, %v10197_v21  ;;  %v7183_v51 = vpop.f32.mrf.mxu2 }
 0x178   :  { %7448 = vmatpush.bf16.msrb.mxu3 %v10632_v45  ;;  %v13997_v45 = vld [vmem:[%s21962_s1 + $0xc64] sm:$0xf]  ;;  %v10581_v32 = vld [vmem:[%s21962_s1 + $0xc70] sm:$0xf0]  ;;  %v10328_v35 = vor.u32 %v13933_v24, %v10325_v26  ;;  %v10456_v36 = vor.u32 %v13965_v30, %v10453_v31 }
 0x179   :  { %7435 = vmatpush.bf16.msrb.mxu2 %v10504_v25  ;;  %v7171_v25 = vadd.f32 %v7170_v61, %v7158_v58  ;;  %v10309_v52 = vld [vmem:[%s21962_s1 + $0xa50] sm:$0xf0]  ;;  %v13961_v43 = vld [vmem:[%s21962_s1 + $0xb44] sm:$0xf]  ;;  %v7196_v54 = vpop.f32.mrf.mxu3  ;;  %v7159_v56 = vpop.f32.mrf.mxu0 }
 0x17a   :  { %7410 = vmatpush.bf16.msrb.mxu0 %v10232_v38  ;;  %v10181_v38 = vld [vmem:[%s21962_s1 + $0x950] sm:$0xf0]  ;;  %v13993_v23 = vld [vmem:[%s21962_s1 + $0xc44] sm:$0xf]  ;;  %v7172_v58 = vpop.f32.mrf.mxu1 }
 0x17b   :  { %7423 = vmatpush.bf16.msrb.mxu1 %v10360_v44  ;;  %v13929_v44 = vld [vmem:[%s21962_s1 + $0xa44] sm:$0xf]  ;;  %v7184_v20 = vadd.f32 %v7183_v51, %v7171_v25  ;;  %v10565_v55 = vld [vmem:[%s21962_s1 + $0xc50] sm:$0xf0]  ;;  %v10184_v57 = vor.u32 %v13897_v22, %v10181_v38 }
 0x17c   :  { %7449 = vmatpush.bf16.msrb.mxu3 %v10616_v53  ;;  %v10437_v53 = vld [vmem:[%s21962_s1 + $0xb50] sm:$0xf0]  ;;  %v10312_v61 = vor.u32 %v13929_v44, %v10309_v52  ;;  %v13925_v21 = vld [vmem:[%s21962_s1 + $0xa24] sm:$0xf]  ;;  %v10568_v24 = vor.u32 %v13993_v23, %v10565_v55 }
 0x17d   :  { %7436 = vmatpush.bf16.msrb.mxu2 %v10488_v50  ;;  %v10584_v50 = vor.u32 %v13997_v45, %v10581_v32  ;;  %v10165_v19 = vld [vmem:[%s21962_s1 + $0x930] sm:$0xf0]  ;;  %v13957_v25 = vld [vmem:[%s21962_s1 + $0xb24] sm:$0xf] }
 0x17e   :  { %7411 = vmatpush.bf16.msrb.mxu0 %v10216_v59  ;;  %v17218_v59 = vadd.f32 %v7196_v54, %v7184_v20  ;;  %v10421_v26 = vld [vmem:[%s21962_s1 + $0xb30] sm:$0xf0]  ;;  %v13989_v30 = vld [vmem:[%s21962_s1 + $0xc24] sm:$0xf] }
 0x17f   :  { %7424 = vmatpush.bf16.msrb.mxu1 %v10344_v3  ;;  %v10440_v3 = vor.u32 %v13961_v43, %v10437_v53  ;;  %v10549_v31 = vld [vmem:[%s21962_s1 + $0xc30] sm:$0xf0]  ;;  %v13889_v32 = vld [vmem:[%s21962_s1 + $0x904] sm:$0xf]  ;;  %v7185_v53 = vpop.f32.mrf.mxu2 }
 0x180   :  { %7450 = vmatpush.bf16.msrb.mxu3 %v10600_v39  ;;  %v10293_v39 = vld [vmem:[%s21962_s1 + $0xa30] sm:$0xf0]  ;;  %v13921_v22 = vld [vmem:[%s21962_s1 + $0xa04] sm:$0xf] }
 0x181   :  { %7437 = vmatpush.bf16.msrb.mxu2 %v10472_v11  ;;  %v13893_v11 = vld [vmem:[%s21962_s1 + $0x924] sm:$0xf]  ;;  %v10277_v38 = vld [vmem:[%s21962_s1 + $0xa10] sm:$0xf0]  ;;  %v7198_v55 = vpop.f32.mrf.mxu3 }
 0x182   :  { %7412 = vmatpush.bf16.msrb.mxu0 %v10200_v33  ;;  %v10168_v45 = vor.u32 %v13893_v11, %v10165_v19  ;;  %v10149_v33 = vld [vmem:[%s21962_s1 + $0x910] sm:$0xf0]  ;;  %v13953_v44 = vld [vmem:[%s21962_s1 + $0xb04] sm:$0xf] }
 0x183   :  { %7425 = vmatpush.bf16.msrb.mxu1 %v10328_v35  ;;  %v10296_v35 = vor.u32 %v13925_v21, %v10293_v39  ;;  %v10405_v51 = vld [vmem:[%s21962_s1 + $0xb10] sm:$0xf0]  ;;  %v13985_v52 = vld [vmem:[%s21962_s1 + $0xc04] sm:$0xf]  ;;  %v10152_v56 = vor.u32 %v13889_v32, %v10149_v33 }
 0x184   :  { %7451 = vmatpush.bf16.msrb.mxu3 %v10584_v50  ;;  %v10552_v50 = vor.u32 %v13989_v30, %v10549_v31  ;;  %v10533_v43 = vld [vmem:[%s21962_s1 + $0xc10] sm:$0xf0]  ;;  %v14045_v20 = vld [vmem:[%s21962_s1 + $0xde4] sm:$0xf]  ;;  %v10408_v11 = vor.u32 %v13953_v44, %v10405_v51 }
 0x185   :  { %7438 = vmatpush.bf16.msrb.mxu2 %v10456_v36  ;;  %v10424_v36 = vor.u32 %v13957_v25, %v10421_v26  ;;  %v10773_v54 = vld [vmem:[%s21962_s1 + $0xdf0] sm:$0xf0]  ;;  %v14077_v23 = vld [vmem:[%s21962_s1 + $0xee4] sm:$0xf] }
 0x186   :  { %7413 = vmatpush.bf16.msrb.mxu0 %v10184_v57  ;;  %v10901_v57 = vld [vmem:[%s21962_s1 + $0xef0] sm:$0xf0]  ;;  %v14109_v58 = vld [vmem:[%s21962_s1 + $0xfe4] sm:$0xf]  ;;  %v10776_v39 = vor.u32 %v14045_v20, %v10773_v54 }
 0x187   :  { %7426 = vmatpush.bf16.msrb.mxu1 %v10312_v61  ;;  %v11029_v61 = vld [vmem:[%s21962_s1 + $0xff0] sm:$0xf0]  ;;  %v14141_v19 = vld [vmem:[%s21962_s1 + $0x10e4] sm:$0xf]  ;;  %v10904_v25 = vor.u32 %v14077_v23, %v10901_v57 }
 0x188   :  { %7452 = vmatpush.bf16.msrb.mxu3 %v10568_v24  ;;  %v11157_v21 = vld [vmem:[%s21962_s1 + $0x10f0] sm:$0xf0]  ;;  %v10536_v24 = vor.u32 %v13985_v52, %v10533_v43  ;;  %v11032_v26 = vor.u32 %v14109_v58, %v11029_v61  ;;  %v14041_v30 = vld [vmem:[%s21962_s1 + $0xdc4] sm:$0xf] }
 0x189   :  { %7439 = vmatpush.bf16.msrb.mxu2 %v10440_v3  ;;  %v10280_v3 = vor.u32 %v13921_v22, %v10277_v38  ;;  %v10757_v31 = vld [vmem:[%s21962_s1 + $0xdd0] sm:$0xf0]  ;;  %v11160_v32 = vor.u32 %v14141_v19, %v11157_v21  ;;  %v14137_v22 = vld [vmem:[%s21962_s1 + $0x10c4] sm:$0xf] }
 0x18a   :  { %7414 = vmatpush.bf16.msrb.mxu0 %v10168_v45  ;;  %v14073_v45 = vld [vmem:[%s21962_s1 + $0xec4] sm:$0xf]  ;;  %v10885_v33 = vld [vmem:[%s21962_s1 + $0xed0] sm:$0xf0]  ;;  %v10760_v44 = vor.u32 %v14041_v30, %v10757_v31 }
 0x18b   :  { %7427 = vmatpush.bf16.msrb.mxu1 %v10296_v35  ;;  %v14105_v35 = vld [vmem:[%s21962_s1 + $0xfc4] sm:$0xf]  ;;  %v11141_v38 = vld [vmem:[%s21962_s1 + $0x10d0] sm:$0xf0] }
 0x18c   :  { %7453 = vmatpush.bf16.msrb.mxu3 %v10552_v50  ;;  %v10888_v50 = vor.u32 %v14073_v45, %v10885_v33  ;;  %v14037_v52 = vld [vmem:[%s21962_s1 + $0xda4] sm:$0xf]  ;;  %v10741_v43 = vld [vmem:[%s21962_s1 + $0xdb0] sm:$0xf0]  ;;  %v11144_v20 = vor.u32 %v14137_v22, %v11141_v38 }
 0x18d   :  { %7440 = vmatpush.bf16.msrb.mxu2 %v10424_v36  ;;  %v11013_v36 = vld [vmem:[%s21962_s1 + $0xfd0] sm:$0xf0]  ;;  %v14069_v53 = vld [vmem:[%s21962_s1 + $0xea4] sm:$0xf]  ;;  %v10744_v58 = vor.u32 %v14037_v52, %v10741_v43  ;;  %v7209_v30 = vpop.f32.mrf.mxu0 }
 0x18e   :  { %7415 = vmatpush.bf16.msrb.mxu0 %v10152_v56  ;;  %v11016_v51 = vor.u32 %v14105_v35, %v11013_v36  ;;  %v10869_v54 = vld [vmem:[%s21962_s1 + $0xeb0] sm:$0xf0]  ;;  %v14101_v23 = vld [vmem:[%s21962_s1 + $0xfa4] sm:$0xf]  ;;  %v7222_v35 = vpop.f32.mrf.mxu1 }
 0x18f   :  { %7428 = vmatpush.bf16.msrb.mxu1 %v10280_v3  ;;  %v10997_v55 = vld [vmem:[%s21962_s1 + $0xfb0] sm:$0xf0]  ;;  %v14133_v56 = vld [vmem:[%s21962_s1 + $0x10a4] sm:$0xf]  ;;  %v10872_v61 = vor.u32 %v14069_v53, %v10869_v54 }
 0x190   :  { %7454 = vmatpush.bf16.msrb.mxu3 %v10536_v24  ;;  %v11125_v57 = vld [vmem:[%s21962_s1 + $0x10b0] sm:$0xf0]  ;;  %v11000_v3 = vor.u32 %v14101_v23, %v10997_v55  ;;  %v14065_v21 = vld [vmem:[%s21962_s1 + $0xe84] sm:$0xf] }
 0x191   :  { %7441 = vmatpush.bf16.msrb.mxu2 %v10408_v11  ;;  %7416 = vmatmul.bf16.vlgmr.msrb.gmra.mxu0 %v15482_v16  ;;  %v14033_v11 = vld [vmem:[%s21962_s1 + $0xd84] sm:$0xf]  ;;  %v10725_v19 = vld [vmem:[%s21962_s1 + $0xd90] sm:$0xf0]  ;;  %v11128_v24 = vor.u32 %v14133_v56, %v11125_v57 }
 0x192   :  { %7460 = vmatpush.bf16.msra.mxu0 %v10776_v39  ;;  %7429 = vmatmul.bf16.vlgmr.msrb.gmra.mxu1 %v15480_v15  ;;  %v10853_v39 = vld [vmem:[%s21962_s1 + $0xe90] sm:$0xf0]  ;;  %v14129_v31 = vld [vmem:[%s21962_s1 + $0x1084] sm:$0xf]  ;;  %v10728_v33 = vor.u32 %v14033_v11, %v10725_v19 }
 0x193   :  { %7473 = vmatpush.bf16.msra.mxu1 %v10904_v25  ;;  %7455 = vmatmul.bf16.vlgmr.msrb.gmra.mxu3 %v15646_v46  ;;  %v14097_v25 = vld [vmem:[%s21962_s1 + $0xf84] sm:$0xf]  ;;  %v11109_v45 = vld [vmem:[%s21962_s1 + $0x1090] sm:$0xf0]  ;;  %v10856_v36 = vor.u32 %v14065_v21, %v10853_v39 }
 0x194   :  { %7499 = vmatpush.bf16.msra.mxu3 %v11160_v32  ;;  %7442 = vmatmul.bf16.vlgmr.msrb.gmra.mxu2 %v15484_v17  ;;  %v7210_v32 = vadd.f32 %v7209_v30, %v17218_v59  ;;  %v14029_v38 = vld [vmem:[%s21962_s1 + $0xd64] sm:$0xf]  ;;  %v11112_v59 = vor.u32 %v14129_v31, %v11109_v45  ;;  %v10837_v52 = vld [vmem:[%s21962_s1 + $0xe70] sm:$0xf0] }
 0x195   :  { %7486 = vmatpush.bf16.msra.mxu2 %v11032_v26  ;;  %v10981_v26 = vld [vmem:[%s21962_s1 + $0xf90] sm:$0xf0]  ;;  %v14093_v43 = vld [vmem:[%s21962_s1 + $0xf64] sm:$0xf]  ;;  %v7235_v11 = vpop.f32.mrf.mxu2  ;;  %v7211_v31 = vpop.f32.mrf.mxu0 }
 0x196   :  { %7461 = vmatpush.bf16.msra.mxu0 %v10760_v44  ;;  %v10984_v22 = vor.u32 %v14097_v25, %v10981_v26  ;;  %v10709_v44 = vld [vmem:[%s21962_s1 + $0xd70] sm:$0xf0]  ;;  %v14025_v57 = vld [vmem:[%s21962_s1 + $0xd44] sm:$0xf]  ;;  %v7248_v25 = vpop.f32.mrf.mxu3 }
 0x197   :  { %7474 = vmatpush.bf16.msra.mxu1 %v10888_v50  ;;  %v14061_v50 = vld [vmem:[%s21962_s1 + $0xe64] sm:$0xf]  ;;  %v10965_v53 = vld [vmem:[%s21962_s1 + $0xf70] sm:$0xf0]  ;;  %v10712_v23 = vor.u32 %v14029_v38, %v10709_v44 }
 0x198   :  { %7500 = vmatpush.bf16.msra.mxu3 %v11144_v20  ;;  %v14125_v20 = vld [vmem:[%s21962_s1 + $0x1064] sm:$0xf]  ;;  %v11093_v54 = vld [vmem:[%s21962_s1 + $0x1070] sm:$0xf0]  ;;  %v10840_v55 = vor.u32 %v14061_v50, %v10837_v52  ;;  %v10968_v56 = vor.u32 %v14093_v43, %v10965_v53 }
 0x199   :  { %7487 = vmatpush.bf16.msra.mxu2 %v11016_v51  ;;  %v7223_v51 = vadd.f32 %v7222_v35, %v7210_v32  ;;  %v10821_v19 = vld [vmem:[%s21962_s1 + $0xe50] sm:$0xf0]  ;;  %v14089_v21 = vld [vmem:[%s21962_s1 + $0xf44] sm:$0xf]  ;;  %v7224_v32 = vpop.f32.mrf.mxu1 }
 0x19a   :  { %7462 = vmatpush.bf16.msra.mxu0 %v10744_v58  ;;  %v10693_v58 = vld [vmem:[%s21962_s1 + $0xd50] sm:$0xf0]  ;;  %v14121_v26 = vld [vmem:[%s21962_s1 + $0x1044] sm:$0xf] }
 0x19b   :  { %7475 = vmatpush.bf16.msra.mxu1 %v10872_v61  ;;  %v14057_v61 = vld [vmem:[%s21962_s1 + $0xe44] sm:$0xf]  ;;  %v7236_v39 = vadd.f32 %v7235_v11, %v7223_v51  ;;  %v11077_v30 = vld [vmem:[%s21962_s1 + $0x1050] sm:$0xf0]  ;;  %v10696_v45 = vor.u32 %v14025_v57, %v10693_v58 }
 0x19c   :  { %7501 = vmatpush.bf16.msra.mxu3 %v11128_v24  ;;  %v10949_v24 = vld [vmem:[%s21962_s1 + $0xf50] sm:$0xf0]  ;;  %v10824_v35 = vor.u32 %v14057_v61, %v10821_v19  ;;  %v14053_v44 = vld [vmem:[%s21962_s1 + $0xe24] sm:$0xf]  ;;  %v11080_v50 = vor.u32 %v14121_v26, %v11077_v30 }
 0x19d   :  { %7488 = vmatpush.bf16.msra.mxu2 %v11000_v3  ;;  %v11096_v3 = vor.u32 %v14125_v20, %v11093_v54  ;;  %v10677_v38 = vld [vmem:[%s21962_s1 + $0xd30] sm:$0xf0]  ;;  %v14085_v51 = vld [vmem:[%s21962_s1 + $0xf24] sm:$0xf] }
 0x19e   :  { %7463 = vmatpush.bf16.msra.mxu0 %v10728_v33  ;;  %v17417_v33 = vadd.f32 %v7248_v25, %v7236_v39  ;;  %v10933_v52 = vld [vmem:[%s21962_s1 + $0xf30] sm:$0xf0]  ;;  %v14117_v43 = vld [vmem:[%s21962_s1 + $0x1024] sm:$0xf]  ;;  %v7250_v30 = vpop.f32.mrf.mxu3 }
 0x19f   :  { %7476 = vmatpush.bf16.msra.mxu1 %v10856_v36  ;;  %v10952_v36 = vor.u32 %v14089_v21, %v10949_v24  ;;  %v11061_v53 = vld [vmem:[%s21962_s1 + $0x1030] sm:$0xf0]  ;;  %v14017_v54 = vld [vmem:[%s21962_s1 + $0xd04] sm:$0xf]  ;;  %v7237_v24 = vpop.f32.mrf.mxu2 }
 0x1a0   :  { %7502 = vmatpush.bf16.msra.mxu3 %v11112_v59  ;;  %v10805_v59 = vld [vmem:[%s21962_s1 + $0xe30] sm:$0xf0]  ;;  %v14049_v57 = vld [vmem:[%s21962_s1 + $0xe04] sm:$0xf] }
 0x1a1   :  { %7489 = vmatpush.bf16.msra.mxu2 %v10984_v22  ;;  %v14021_v22 = vld [vmem:[%s21962_s1 + $0xd24] sm:$0xf]  ;;  %v10789_v58 = vld [vmem:[%s21962_s1 + $0xe10] sm:$0xf0] }
 0x1a2   :  { %7464 = vmatpush.bf16.msra.mxu0 %v10712_v23  ;;  %v10680_v20 = vor.u32 %v14021_v22, %v10677_v38  ;;  %v10661_v23 = vld [vmem:[%s21962_s1 + $0xd10] sm:$0xf0]  ;;  %v14081_v61 = vld [vmem:[%s21962_s1 + $0xf04] sm:$0xf] }
 0x1a3   :  { %7477 = vmatpush.bf16.msra.mxu1 %v10840_v55  ;;  %v10808_v55 = vor.u32 %v14053_v44, %v10805_v59  ;;  %v10917_v11 = vld [vmem:[%s21962_s1 + $0xf10] sm:$0xf0]  ;;  %v14113_v19 = vld [vmem:[%s21962_s1 + $0x1004] sm:$0xf]  ;;  %v10664_v31 = vor.u32 %v14017_v54, %v10661_v23 }
 0x1a4   :  { %7503 = vmatpush.bf16.msra.mxu3 %v11096_v3  ;;  %v11064_v3 = vor.u32 %v14117_v43, %v11061_v53  ;;  %v11045_v21 = vld [vmem:[%s21962_s1 + $0x1010] sm:$0xf0]  ;;  %v14173_v39 = vld [vmem:[%s21962_s1 + $0x11e4] sm:$0xf]  ;;  %v10920_v22 = vor.u32 %v14081_v61, %v10917_v11 }
 0x1a5   :  { %7490 = vmatpush.bf16.msra.mxu2 %v10968_v56  ;;  %v10936_v56 = vor.u32 %v14085_v51, %v10933_v52  ;;  %v11285_v25 = vld [vmem:[%s21962_s1 + $0x11f0] sm:$0xf0]  ;;  %v14205_v26 = vld [vmem:[%s21962_s1 + $0x12e4] sm:$0xf] }
 0x1a6   :  { %7465 = vmatpush.bf16.msra.mxu0 %v10696_v45  ;;  %v11413_v45 = vld [vmem:[%s21962_s1 + $0x12f0] sm:$0xf0]  ;;  %v14237_v32 = vld [vmem:[%s21962_s1 + $0x13e4] sm:$0xf]  ;;  %v11288_v59 = vor.u32 %v14173_v39, %v11285_v25 }
 0x1a7   :  { %7478 = vmatpush.bf16.msra.mxu1 %v10824_v35  ;;  %v11541_v35 = vld [vmem:[%s21962_s1 + $0x13f0] sm:$0xf0]  ;;  %v14269_v38 = vld [vmem:[%s21962_s1 + $0x14e4] sm:$0xf]  ;;  %v11416_v51 = vor.u32 %v14205_v26, %v11413_v45 }
 0x1a8   :  { %7504 = vmatpush.bf16.msra.mxu3 %v11080_v50  ;;  %v11669_v44 = vld [vmem:[%s21962_s1 + $0x14f0] sm:$0xf0]  ;;  %v11048_v50 = vor.u32 %v14113_v19, %v11045_v21  ;;  %v11544_v52 = vor.u32 %v14237_v32, %v11541_v35  ;;  %v14169_v43 = vld [vmem:[%s21962_s1 + $0x11c4] sm:$0xf] }
 0x1a9   :  { %7491 = vmatpush.bf16.msra.mxu2 %v10952_v36  ;;  %v10792_v36 = vor.u32 %v14049_v57, %v10789_v58  ;;  %v11269_v53 = vld [vmem:[%s21962_s1 + $0x11d0] sm:$0xf0]  ;;  %v11672_v54 = vor.u32 %v14269_v38, %v11669_v44  ;;  %v14265_v57 = vld [vmem:[%s21962_s1 + $0x14c4] sm:$0xf] }
 0x1aa   :  { %7466 = vmatpush.bf16.msra.mxu0 %v10680_v20  ;;  %v14201_v20 = vld [vmem:[%s21962_s1 + $0x12c4] sm:$0xf]  ;;  %v11397_v23 = vld [vmem:[%s21962_s1 + $0x12d0] sm:$0xf0]  ;;  %v11272_v61 = vor.u32 %v14169_v43, %v11269_v53 }
 0x1ab   :  { %7479 = vmatpush.bf16.msra.mxu1 %v10808_v55  ;;  %v14233_v55 = vld [vmem:[%s21962_s1 + $0x13c4] sm:$0xf]  ;;  %v11653_v58 = vld [vmem:[%s21962_s1 + $0x14d0] sm:$0xf0] }
 0x1ac   :  { %7505 = vmatpush.bf16.msra.mxu3 %v11064_v3  ;;  %v11400_v3 = vor.u32 %v14201_v20, %v11397_v23  ;;  %v14165_v19 = vld [vmem:[%s21962_s1 + $0x11a4] sm:$0xf]  ;;  %v11253_v21 = vld [vmem:[%s21962_s1 + $0x11b0] sm:$0xf0]  ;;  %v11656_v39 = vor.u32 %v14265_v57, %v11653_v58 }
 0x1ad   :  { %7492 = vmatpush.bf16.msra.mxu2 %v10936_v56  ;;  %v11525_v56 = vld [vmem:[%s21962_s1 + $0x13d0] sm:$0xf0]  ;;  %v14197_v24 = vld [vmem:[%s21962_s1 + $0x12a4] sm:$0xf]  ;;  %v11256_v32 = vor.u32 %v14165_v19, %v11253_v21 }
 0x1ae   :  { %7467 = vmatpush.bf16.msra.mxu0 %v10664_v31  ;;  %v11528_v11 = vor.u32 %v14233_v55, %v11525_v56  ;;  %v11381_v25 = vld [vmem:[%s21962_s1 + $0x12b0] sm:$0xf0]  ;;  %v14229_v26 = vld [vmem:[%s21962_s1 + $0x13a4] sm:$0xf]  ;;  %v7261_v43 = vpop.f32.mrf.mxu0 }
 0x1af   :  { %7480 = vmatpush.bf16.msra.mxu1 %v10792_v36  ;;  %v11509_v30 = vld [vmem:[%s21962_s1 + $0x13b0] sm:$0xf0]  ;;  %v14261_v31 = vld [vmem:[%s21962_s1 + $0x14a4] sm:$0xf]  ;;  %v11384_v35 = vor.u32 %v14197_v24, %v11381_v25  ;;  %v7274_v55 = vpop.f32.mrf.mxu1 }
 0x1b0   :  { %7506 = vmatpush.bf16.msra.mxu3 %v11048_v50  ;;  %v11637_v45 = vld [vmem:[%s21962_s1 + $0x14b0] sm:$0xf0]  ;;  %v11512_v36 = vor.u32 %v14229_v26, %v11509_v30  ;;  %v14193_v44 = vld [vmem:[%s21962_s1 + $0x1284] sm:$0xf] }
 0x1b1   :  { %7493 = vmatpush.bf16.msra.mxu2 %v10920_v22  ;;  %7468 = vmatmul.bf16.vlgmr.msra.gmra.mxu0 %v15650_v48  ;;  %v14161_v22 = vld [vmem:[%s21962_s1 + $0x1184] sm:$0xf]  ;;  %v11237_v38 = vld [vmem:[%s21962_s1 + $0x1190] sm:$0xf0]  ;;  %v11640_v50 = vor.u32 %v14261_v31, %v11637_v45 }
 0x1b2   :  { %7512 = vmatpush.bf16.msrb.mxu0 %v11288_v59  ;;  %7481 = vmatmul.bf16.vlgmr.msra.gmra.mxu1 %v15648_v47  ;;  %v11365_v59 = vld [vmem:[%s21962_s1 + $0x1290] sm:$0xf0]  ;;  %v14257_v53 = vld [vmem:[%s21962_s1 + $0x1484] sm:$0xf]  ;;  %v11240_v23 = vor.u32 %v14161_v22, %v11237_v38 }
 0x1b3   :  { %7525 = vmatpush.bf16.msrb.mxu1 %v11416_v51  ;;  %7507 = vmatmul.bf16.vlgmr.msra.gmra.mxu3 %v15883_v9  ;;  %v14225_v51 = vld [vmem:[%s21962_s1 + $0x1384] sm:$0xf]  ;;  %v11621_v20 = vld [vmem:[%s21962_s1 + $0x1490] sm:$0xf0]  ;;  %v11368_v56 = vor.u32 %v14193_v44, %v11365_v59 }
 0x1b4   :  { %7551 = vmatpush.bf16.msrb.mxu3 %v11672_v54  ;;  %7494 = vmatmul.bf16.vlgmr.msra.gmra.mxu2 %v15652_v49  ;;  %v7262_v54 = vadd.f32 %v7261_v43, %v17417_v33  ;;  %v14157_v58 = vld [vmem:[%s21962_s1 + $0x1164] sm:$0xf]  ;;  %v11624_v33 = vor.u32 %v14257_v53, %v11621_v20  ;;  %v11349_v19 = vld [vmem:[%s21962_s1 + $0x1270] sm:$0xf0] }
 0x1b5   :  { %7538 = vmatpush.bf16.msrb.mxu2 %v11544_v52  ;;  %v11493_v52 = vld [vmem:[%s21962_s1 + $0x1390] sm:$0xf0]  ;;  %v14221_v21 = vld [vmem:[%s21962_s1 + $0x1364] sm:$0xf] }
 0x1b6   :  { %7513 = vmatpush.bf16.msrb.mxu0 %v11272_v61  ;;  %v11496_v57 = vor.u32 %v14225_v51, %v11493_v52  ;;  %v11221_v61 = vld [vmem:[%s21962_s1 + $0x1170] sm:$0xf0]  ;;  %v14153_v45 = vld [vmem:[%s21962_s1 + $0x1144] sm:$0xf]  ;;  %v17618_v43 = vpop.f32.mrf.mxu3  ;;  %v7263_v53 = vpop.f32.mrf.mxu0 }
 0x1b7   :  { %7526 = vmatpush.bf16.msrb.mxu1 %v11400_v3  ;;  %v14189_v3 = vld [vmem:[%s21962_s1 + $0x1264] sm:$0xf]  ;;  %v11477_v24 = vld [vmem:[%s21962_s1 + $0x1370] sm:$0xf0]  ;;  %v11224_v26 = vor.u32 %v14157_v58, %v11221_v61  ;;  %v7287_v22 = vpop.f32.mrf.mxu2 }
 0x1b8   :  { %7552 = vmatpush.bf16.msrb.mxu3 %v11656_v39  ;;  %v14253_v39 = vld [vmem:[%s21962_s1 + $0x1464] sm:$0xf]  ;;  %v11605_v25 = vld [vmem:[%s21962_s1 + $0x1470] sm:$0xf0]  ;;  %v11352_v30 = vor.u32 %v14189_v3, %v11349_v19  ;;  %v11480_v31 = vor.u32 %v14221_v21, %v11477_v24 }
 0x1b9   :  { %7539 = vmatpush.bf16.msrb.mxu2 %v11528_v11  ;;  %v7275_v11 = vadd.f32 %v7274_v55, %v7262_v54  ;;  %v11333_v38 = vld [vmem:[%s21962_s1 + $0x1250] sm:$0xf0]  ;;  %v14217_v44 = vld [vmem:[%s21962_s1 + $0x1344] sm:$0xf]  ;;  %v7276_v54 = vpop.f32.mrf.mxu1 }
 0x1ba   :  { %7514 = vmatpush.bf16.msrb.mxu0 %v11256_v32  ;;  %v11205_v32 = vld [vmem:[%s21962_s1 + $0x1150] sm:$0xf0]  ;;  %v14249_v51 = vld [vmem:[%s21962_s1 + $0x1444] sm:$0xf] }
 0x1bb   :  { %7527 = vmatpush.bf16.msrb.mxu1 %v11384_v35  ;;  %v14185_v35 = vld [vmem:[%s21962_s1 + $0x1244] sm:$0xf]  ;;  %v17610_v59 = vadd.f32 %v7287_v22, %v7275_v11  ;;  %v11589_v52 = vld [vmem:[%s21962_s1 + $0x1450] sm:$0xf0]  ;;  %v11208_v20 = vor.u32 %v14153_v45, %v11205_v32 }
 0x1bc   :  { %7553 = vmatpush.bf16.msrb.mxu3 %v11640_v50  ;;  %v11461_v50 = vld [vmem:[%s21962_s1 + $0x1350] sm:$0xf0]  ;;  %v14181_v58 = vld [vmem:[%s21962_s1 + $0x1224] sm:$0xf]  ;;  %v11592_v61 = vor.u32 %v14249_v51, %v11589_v52 }
 0x1bd   :  { %7540 = vmatpush.bf16.msrb.mxu2 %v11512_v36  ;;  %v11608_v36 = vor.u32 %v14253_v39, %v11605_v25  ;;  %v11464_v55 = vor.u32 %v14217_v44, %v11461_v50  ;;  %v11317_v3 = vld [vmem:[%s21962_s1 + $0x1230] sm:$0xf0]  ;;  %v14245_v19 = vld [vmem:[%s21962_s1 + $0x1424] sm:$0xf] }
 0x1be   :  { %7515 = vmatpush.bf16.msrb.mxu0 %v11240_v23  ;;  %v11336_v23 = vor.u32 %v14185_v35, %v11333_v38  ;;  %v11445_v11 = vld [vmem:[%s21962_s1 + $0x1330] sm:$0xf0]  ;;  %v14145_v39 = vld [vmem:[%s21962_s1 + $0x1104] sm:$0xf]  ;;  %v7302_v53 = vpop.f32.mrf.mxu3 }
 0x1bf   :  { %7528 = vmatpush.bf16.msrb.mxu1 %v11368_v56  ;;  %v14149_v56 = vld [vmem:[%s21962_s1 + $0x1124] sm:$0xf]  ;;  %v11573_v21 = vld [vmem:[%s21962_s1 + $0x1430] sm:$0xf0]  ;;  %v7289_v44 = vpop.f32.mrf.mxu2 }
 0x1c0   :  { %7554 = vmatpush.bf16.msrb.mxu3 %v11624_v33  ;;  %v14213_v33 = vld [vmem:[%s21962_s1 + $0x1324] sm:$0xf]  ;;  %v11173_v25 = vld [vmem:[%s21962_s1 + $0x1110] sm:$0xf0]  ;;  %v11576_v35 = vor.u32 %v14245_v19, %v11573_v21 }
 0x1c1   :  { %7541 = vmatpush.bf16.msrb.mxu2 %v11496_v57  ;;  %v11189_v57 = vld [vmem:[%s21962_s1 + $0x1130] sm:$0xf0]  ;;  %v14209_v32 = vld [vmem:[%s21962_s1 + $0x1304] sm:$0xf] }
 0x1c2   :  { %7516 = vmatpush.bf16.msrb.mxu0 %v11224_v26  ;;  %v11192_v24 = vor.u32 %v14149_v56, %v11189_v57  ;;  %v11320_v26 = vor.u32 %v14181_v58, %v11317_v3  ;;  %v11301_v45 = vld [vmem:[%s21962_s1 + $0x1210] sm:$0xf0]  ;;  %v14241_v22 = vld [vmem:[%s21962_s1 + $0x1404] sm:$0xf] }
 0x1c3   :  { %7529 = vmatpush.bf16.msrb.mxu1 %v11352_v30  ;;  %v11448_v30 = vor.u32 %v14213_v33, %v11445_v11  ;;  %v11557_v38 = vld [vmem:[%s21962_s1 + $0x1410] sm:$0xf0]  ;;  %v14301_v50 = vld [vmem:[%s21962_s1 + $0x15e4] sm:$0xf] }
 0x1c4   :  { %7555 = vmatpush.bf16.msrb.mxu3 %v11608_v36  ;;  %v11429_v36 = vld [vmem:[%s21962_s1 + $0x1310] sm:$0xf0]  ;;  %v14333_v52 = vld [vmem:[%s21962_s1 + $0x16e4] sm:$0xf]  ;;  %v11560_v3 = vor.u32 %v14241_v22, %v11557_v38 }
 0x1c5   :  { %7542 = vmatpush.bf16.msrb.mxu2 %v11480_v31  ;;  %v14177_v31 = vld [vmem:[%s21962_s1 + $0x1204] sm:$0xf]  ;;  %v11797_v51 = vld [vmem:[%s21962_s1 + $0x15f0] sm:$0xf0]  ;;  %v11432_v57 = vor.u32 %v14209_v32, %v11429_v36 }
 0x1c6   :  { %7517 = vmatpush.bf16.msrb.mxu0 %v11208_v20  ;;  %v11176_v20 = vor.u32 %v14145_v39, %v11173_v25  ;;  %v11925_v54 = vld [vmem:[%s21962_s1 + $0x16f0] sm:$0xf0]  ;;  %v11304_v56 = vor.u32 %v14177_v31, %v11301_v45  ;;  %v14397_v58 = vld [vmem:[%s21962_s1 + $0x18e4] sm:$0xf]  ;;  %v11800_v33 = vor.u32 %v14301_v50, %v11797_v51  ;;  %v14755_v51 = vld [vmem:[%s21963_s2] sm:$0xf] }
 0x1c7   :  { %7530 = vmatpush.bf16.msrb.mxu1 %v11336_v23  ;;  %v14365_v23 = vld [vmem:[%s21962_s1 + $0x17e4] sm:$0xf]  ;;  %v11928_v11 = vor.u32 %v14333_v52, %v11925_v54  ;;  %v12037_v31 = vld [vmem:[%s21962_s1 + $0x17d0] sm:$0xf0]  ;;  %v1149_v52 = vperm.slane %v14755_v51, 1 }
 0x1c8   :  { %7556 = vmatpush.bf16.msrb.mxu3 %v11592_v61  ;;  %v12181_v61 = vld [vmem:[%s21962_s1 + $0x18f0] sm:$0xf0]  ;;  %v14297_v21 = vld [vmem:[%s21962_s1 + $0x15c4] sm:$0xf] }
 0x1c9   :  { %7543 = vmatpush.bf16.msrb.mxu2 %v11464_v55  ;;  %v12053_v55 = vld [vmem:[%s21962_s1 + $0x17f0] sm:$0xf0]  ;;  %v14329_v39 = vld [vmem:[%s21962_s1 + $0x16c4] sm:$0xf]  ;;  %v12184_v25 = vor.u32 %v14397_v58, %v12181_v61 }
 0x1ca   :  { %7518 = vmatpush.bf16.msrb.mxu0 %v11192_v24  ;;  %v12056_v19 = vor.u32 %v14365_v23, %v12053_v55  ;;  %v11781_v24 = vld [vmem:[%s21962_s1 + $0x15d0] sm:$0xf0]  ;;  %v14393_v45 = vld [vmem:[%s21962_s1 + $0x18c4] sm:$0xf] }
 0x1cb   :  { %7531 = vmatpush.bf16.msrb.mxu1 %v11320_v26  ;;  %v11909_v26 = vld [vmem:[%s21962_s1 + $0x16d0] sm:$0xf0]  ;;  %v14293_v36 = vld [vmem:[%s21962_s1 + $0x15a4] sm:$0xf] }
 0x1cc   :  { %7557 = vmatpush.bf16.msrb.mxu3 %v11576_v35  ;;  %v12165_v32 = vld [vmem:[%s21962_s1 + $0x18d0] sm:$0xf0]  ;;  %v11784_v35 = vor.u32 %v14297_v21, %v11781_v24  ;;  %v11912_v22 = vor.u32 %v14329_v39, %v11909_v26  ;;  %v14325_v50 = vld [vmem:[%s21962_s1 + $0x16a4] sm:$0xf] }
 0x1cd   :  { %7544 = vmatpush.bf16.msrb.mxu2 %v11448_v30  ;;  %v14361_v30 = vld [vmem:[%s21962_s1 + $0x17c4] sm:$0xf]  ;;  %v11765_v44 = vld [vmem:[%s21962_s1 + $0x15b0] sm:$0xf0]  ;;  %v12168_v53 = vor.u32 %v14393_v45, %v12165_v32 }
 0x1ce   :  { %7519 = vmatpush.bf16.msrb.mxu0 %v11176_v20  ;;  %v12040_v38 = vor.u32 %v14361_v30, %v12037_v31  ;;  %v11893_v20 = vld [vmem:[%s21962_s1 + $0x16b0] sm:$0xf0]  ;;  %v14357_v54 = vld [vmem:[%s21962_s1 + $0x17a4] sm:$0xf]  ;;  %v7313_v31 = vpop.f32.mrf.mxu0 }
 0x1cf   :  { %7532 = vmatpush.bf16.msrb.mxu1 %v11304_v56  ;;  %v12021_v23 = vld [vmem:[%s21962_s1 + $0x17b0] sm:$0xf0]  ;;  %v14389_v55 = vld [vmem:[%s21962_s1 + $0x18a4] sm:$0xf]  ;;  %v11896_v58 = vor.u32 %v14325_v50, %v11893_v20 }
 0x1d0   :  { %7558 = vmatpush.bf16.msrb.mxu3 %v11560_v3  ;;  %v12149_v56 = vld [vmem:[%s21962_s1 + $0x18b0] sm:$0xf0]  ;;  %v12024_v61 = vor.u32 %v14357_v54, %v12021_v23  ;;  %v7301_v3 = vadd.f32 %v17618_v43, %v1149_v52  ;;  %v14353_v43 = vld [vmem:[%s21962_s1 + $0x1784] sm:$0xf] }
 0x1d1   :  { %7545 = vmatpush.bf16.msrb.mxu2 %v11432_v57  ;;  %7520 = vmatmul.bf16.vlgmr.msrb.gmra.mxu0 %v15893_v14  ;;  %v11768_v57 = vor.u32 %v14293_v36, %v11765_v44  ;;  %v12152_v21 = vor.u32 %v14389_v55, %v12149_v56  ;;  %v11877_v24 = vld [vmem:[%s21962_s1 + $0x1690] sm:$0xf0]  ;;  %v7326_v44 = vpop.f32.mrf.mxu1  ;;  %v14349_v52 = vld [vmem:[%s21962_s1 + $0x1764] sm:$0xf] }
 0x1d2   :  { %7564 = vmatpush.bf16.msra.mxu0 %v11800_v33  ;;  %7533 = vmatmul.bf16.vlgmr.msrb.gmra.mxu1 %v15891_v13  ;;  %v14289_v33 = vld [vmem:[%s21962_s1 + $0x1584] sm:$0xf]  ;;  %v12005_v39 = vld [vmem:[%s21962_s1 + $0x1790] sm:$0xf0] }
 0x1d3   :  { %7577 = vmatpush.bf16.msra.mxu1 %v11928_v11  ;;  %7559 = vmatmul.bf16.vlgmr.msrb.gmra.mxu3 %v16060_v4  ;;  %v11749_v11 = vld [vmem:[%s21962_s1 + $0x1590] sm:$0xf0]  ;;  %v12008_v32 = vor.u32 %v14353_v43, %v12005_v39  ;;  %v14381_v20 = vld [vmem:[%s21962_s1 + $0x1864] sm:$0xf] }
 0x1d4   :  { %7603 = vmatpush.bf16.msra.mxu3 %v12184_v25  ;;  %7546 = vmatmul.bf16.vlgmr.msrb.gmra.mxu2 %v15895_v18  ;;  %v14385_v25 = vld [vmem:[%s21962_s1 + $0x1884] sm:$0xf]  ;;  %v12133_v26 = vld [vmem:[%s21962_s1 + $0x1890] sm:$0xf0]  ;;  %v11752_v30 = vor.u32 %v14289_v33, %v11749_v11 }
 0x1d5   :  { %7590 = vmatpush.bf16.msra.mxu2 %v12056_v19  ;;  %v14321_v19 = vld [vmem:[%s21962_s1 + $0x1684] sm:$0xf]  ;;  %v11733_v36 = vld [vmem:[%s21962_s1 + $0x1570] sm:$0xf0]  ;;  %v12136_v50 = vor.u32 %v14385_v25, %v12133_v26 }
 0x1d6   :  { %7565 = vmatpush.bf16.msra.mxu0 %v11784_v35  ;;  %v11880_v45 = vor.u32 %v14321_v19, %v11877_v24  ;;  %v14285_v35 = vld [vmem:[%s21962_s1 + $0x1564] sm:$0xf]  ;;  %v11861_v51 = vld [vmem:[%s21962_s1 + $0x1670] sm:$0xf0]  ;;  %v7352_v39 = vpop.f32.mrf.mxu3 }
 0x1d7   :  { %7578 = vmatpush.bf16.msra.mxu1 %v11912_v22  ;;  %v14317_v22 = vld [vmem:[%s21962_s1 + $0x1664] sm:$0xf]  ;;  %v12117_v54 = vld [vmem:[%s21962_s1 + $0x1870] sm:$0xf0]  ;;  %v11736_v55 = vor.u32 %v14285_v35, %v11733_v36  ;;  %v7339_v33 = vpop.f32.mrf.mxu2 }
 0x1d8   :  { %7604 = vmatpush.bf16.msra.mxu3 %v12168_v53  ;;  %v11989_v53 = vld [vmem:[%s21962_s1 + $0x1770] sm:$0xf0]  ;;  %v11864_v56 = vor.u32 %v14317_v22, %v11861_v51  ;;  %v12120_v11 = vor.u32 %v14381_v20, %v12117_v54  ;;  %v14377_v25 = vld [vmem:[%s21962_s1 + $0x1844] sm:$0xf] }
 0x1d9   :  { %7591 = vmatpush.bf16.msra.mxu2 %v12040_v38  ;;  %v7314_v38 = vadd.f32 %v7313_v31, %v7301_v3  ;;  %v14313_v3 = vld [vmem:[%s21962_s1 + $0x1644] sm:$0xf]  ;;  %v11845_v19 = vld [vmem:[%s21962_s1 + $0x1650] sm:$0xf0] }
 0x1da   :  { %7566 = vmatpush.bf16.msra.mxu0 %v11768_v57  ;;  %v11992_v57 = vor.u32 %v14349_v52, %v11989_v53  ;;  %v11973_v24 = vld [vmem:[%s21962_s1 + $0x1750] sm:$0xf0]  ;;  %v14277_v36 = vld [vmem:[%s21962_s1 + $0x1524] sm:$0xf] }
 0x1db   :  { %7579 = vmatpush.bf16.msra.mxu1 %v11896_v58  ;;  %v7327_v23 = vadd.f32 %v7326_v44, %v7314_v38  ;;  %v14281_v58 = vld [vmem:[%s21962_s1 + $0x1544] sm:$0xf]  ;;  %v12101_v26 = vld [vmem:[%s21962_s1 + $0x1850] sm:$0xf0]  ;;  %v7328_v44 = vpop.f32.mrf.mxu1 }
 0x1dc   :  { %7605 = vmatpush.bf16.msra.mxu3 %v12152_v21  ;;  %v14345_v21 = vld [vmem:[%s21962_s1 + $0x1744] sm:$0xf]  ;;  %v11701_v22 = vld [vmem:[%s21962_s1 + $0x1530] sm:$0xf0] }
 0x1dd   :  { %7592 = vmatpush.bf16.msra.mxu2 %v12024_v61  ;;  %v11717_v61 = vld [vmem:[%s21962_s1 + $0x1550] sm:$0xf0]  ;;  %v7340_v43 = vadd.f32 %v7339_v33, %v7327_v23  ;;  %v11976_v35 = vor.u32 %v14345_v21, %v11973_v24  ;;  %v14309_v38 = vld [vmem:[%s21962_s1 + $0x1624] sm:$0xf]  ;;  %v11704_v23 = vor.u32 %v14277_v36, %v11701_v22 }
 0x1de   :  { %7567 = vmatpush.bf16.msra.mxu0 %v11752_v30  ;;  %v11720_v30 = vor.u32 %v14281_v58, %v11717_v61  ;;  %v11829_v51 = vld [vmem:[%s21962_s1 + $0x1630] sm:$0xf0]  ;;  %v14341_v52 = vld [vmem:[%s21962_s1 + $0x1724] sm:$0xf] }
 0x1df   :  { %7580 = vmatpush.bf16.msra.mxu1 %v11880_v45  ;;  %v17820_v31 = vadd.f32 %v7352_v39, %v7340_v43  ;;  %v7315_v45 = vpop.f32.mrf.mxu0  ;;  %v11957_v53 = vld [vmem:[%s21962_s1 + $0x1730] sm:$0xf0]  ;;  %v14373_v20 = vld [vmem:[%s21962_s1 + $0x1824] sm:$0xf]  ;;  %v7354_v39 = vpop.f32.mrf.mxu3 }
 0x1e0   :  { %7606 = vmatpush.bf16.msra.mxu3 %v12136_v50  ;;  %v12104_v50 = vor.u32 %v14377_v25, %v12101_v26  ;;  %v12085_v54 = vld [vmem:[%s21962_s1 + $0x1830] sm:$0xf0]  ;;  %v11960_v58 = vor.u32 %v14341_v52, %v11957_v53  ;;  %v14305_v61 = vld [vmem:[%s21962_s1 + $0x1604] sm:$0xf] }
 0x1e1   :  { %7593 = vmatpush.bf16.msra.mxu2 %v12008_v32  ;;  %v11848_v32 = vor.u32 %v14313_v3, %v11845_v19  ;;  %v11813_v3 = vld [vmem:[%s21962_s1 + $0x1610] sm:$0xf0]  ;;  %v14337_v33 = vld [vmem:[%s21962_s1 + $0x1704] sm:$0xf]  ;;  %v12088_v19 = vor.u32 %v14373_v20, %v12085_v54 }
 0x1e2   :  { %7568 = vmatpush.bf16.msra.mxu0 %v11736_v55  ;;  %v14273_v55 = vld [vmem:[%s21962_s1 + $0x1504] sm:$0xf]  ;;  %v11941_v21 = vld [vmem:[%s21962_s1 + $0x1710] sm:$0xf0]  ;;  %v11816_v22 = vor.u32 %v14305_v61, %v11813_v3 }
 0x1e3   :  { %7581 = vmatpush.bf16.msra.mxu1 %v11864_v56  ;;  %v11685_v56 = vld [vmem:[%s21962_s1 + $0x1510] sm:$0xf0]  ;;  %v14369_v24 = vld [vmem:[%s21962_s1 + $0x1804] sm:$0xf] }
 0x1e4   :  { %7607 = vmatpush.bf16.msra.mxu3 %v12120_v11  ;;  %v7341_v11 = vpop.f32.mrf.mxu2  ;;  %v12069_v43 = vld [vmem:[%s21962_s1 + $0x1810] sm:$0xf0]  ;;  %v14429_v25 = vld [vmem:[%s21962_s1 + $0x19e4] sm:$0xf]  ;;  %v11688_v45 = vor.u32 %v14273_v55, %v11685_v56 }
 0x1e5   :  { %7594 = vmatpush.bf16.msra.mxu2 %v11992_v57  ;;  %v11832_v57 = vor.u32 %v14309_v38, %v11829_v51  ;;  %v12309_v26 = vld [vmem:[%s21962_s1 + $0x19f0] sm:$0xf0]  ;;  %v11944_v38 = vor.u32 %v14337_v33, %v11941_v21  ;;  %v14525_v44 = vld [vmem:[%s21962_s1 + $0x1ce4] sm:$0xf]  ;;  %v12072_v51 = vor.u32 %v14369_v24, %v12069_v43 }
 0x1e6   :  { %7569 = vmatpush.bf16.msra.mxu0 %v11720_v30  ;;  %v14461_v30 = vld [vmem:[%s21962_s1 + $0x1ae4] sm:$0xf]  ;;  %v12565_v36 = vld [vmem:[%s21962_s1 + $0x1bf0] sm:$0xf0]  ;;  %v12312_v52 = vor.u32 %v14429_v25, %v12309_v26 }
 0x1e7   :  { %7582 = vmatpush.bf16.msra.mxu1 %v11848_v32  ;;  %v12437_v32 = vld [vmem:[%s21962_s1 + $0x1af0] sm:$0xf0]  ;;  %v14425_v54 = vld [vmem:[%s21962_s1 + $0x19c4] sm:$0xf] }
 0x1e8   :  { %7608 = vmatpush.bf16.msra.mxu3 %v12104_v50  ;;  %v12693_v50 = vld [vmem:[%s21962_s1 + $0x1cf0] sm:$0xf0]  ;;  %v12440_v53 = vor.u32 %v14461_v30, %v12437_v32  ;;  %v14457_v55 = vld [vmem:[%s21962_s1 + $0x1ac4] sm:$0xf] }
 0x1e9   :  { %7595 = vmatpush.bf16.msra.mxu2 %v11976_v35  ;;  %v14493_v35 = vld [vmem:[%s21962_s1 + $0x1be4] sm:$0xf]  ;;  %v12696_v56 = vor.u32 %v14525_v44, %v12693_v50  ;;  %v12549_v61 = vld [vmem:[%s21962_s1 + $0x1bd0] sm:$0xf0] }
 0x1ea   :  { %7570 = vmatpush.bf16.msra.mxu0 %v11704_v23  ;;  %v12568_v20 = vor.u32 %v14493_v35, %v12565_v36  ;;  %v12293_v23 = vld [vmem:[%s21962_s1 + $0x19d0] sm:$0xf0]  ;;  %v14521_v3 = vld [vmem:[%s21962_s1 + $0x1cc4] sm:$0xf] }
 0x1eb   :  { %7583 = vmatpush.bf16.msra.mxu1 %v11832_v57  ;;  %v12421_v57 = vld [vmem:[%s21962_s1 + $0x1ad0] sm:$0xf0]  ;;  %v12296_v11 = vor.u32 %v14425_v54, %v12293_v23  ;;  %v14421_v24 = vld [vmem:[%s21962_s1 + $0x19a4] sm:$0xf] }
 0x1ec   :  { %7609 = vmatpush.bf16.msra.mxu3 %v12088_v19  ;;  %v12677_v33 = vld [vmem:[%s21962_s1 + $0x1cd0] sm:$0xf0]  ;;  %v12424_v19 = vor.u32 %v14457_v55, %v12421_v57  ;;  %v14453_v39 = vld [vmem:[%s21962_s1 + $0x1aa4] sm:$0xf] }
 0x1ed   :  { %7596 = vmatpush.bf16.msra.mxu2 %v11960_v58  ;;  %v14489_v58 = vld [vmem:[%s21962_s1 + $0x1bc4] sm:$0xf]  ;;  %v12277_v43 = vld [vmem:[%s21962_s1 + $0x19b0] sm:$0xf0]  ;;  %v12680_v25 = vor.u32 %v14521_v3, %v12677_v33 }
 0x1ee   :  { %7571 = vmatpush.bf16.msra.mxu0 %v11688_v45  ;;  %v12552_v21 = vor.u32 %v14489_v58, %v12549_v61  ;;  %v12405_v26 = vld [vmem:[%s21962_s1 + $0x1ab0] sm:$0xf0]  ;;  %v14485_v30 = vld [vmem:[%s21962_s1 + $0x1ba4] sm:$0xf]  ;;  %v12280_v36 = vor.u32 %v14421_v24, %v12277_v43  ;;  %v7365_v23 = vpop.f32.mrf.mxu0 }
 0x1ef   :  { %7584 = vmatpush.bf16.msra.mxu1 %v11816_v22  ;;  %v12533_v45 = vld [vmem:[%s21962_s1 + $0x1bb0] sm:$0xf0]  ;;  %v14517_v32 = vld [vmem:[%s21962_s1 + $0x1ca4] sm:$0xf]  ;;  %v12408_v22 = vor.u32 %v14453_v39, %v12405_v26  ;;  %v7366_v57 = vadd.f32 %v7365_v23, %v17820_v31  ;;  %v7378_v61 = vpop.f32.mrf.mxu1 }
 0x1f0   :  { %7610 = vmatpush.bf16.msra.mxu3 %v12072_v51  ;;  %v12661_v35 = vld [vmem:[%s21962_s1 + $0x1cb0] sm:$0xf0]  ;;  %v14417_v44 = vld [vmem:[%s21962_s1 + $0x1984] sm:$0xf] }
 0x1f1   :  { %7597 = vmatpush.bf16.msra.mxu2 %v11944_v38  ;;  %7572 = vmatmul.bf16.vlgmr.msra.gmra.mxu0 %v16064_v6  ;;  %v12536_v38 = vor.u32 %v14485_v30, %v12533_v45  ;;  %v12261_v50 = vld [vmem:[%s21962_s1 + $0x1990] sm:$0xf0]  ;;  %v14449_v51 = vld [vmem:[%s21962_s1 + $0x1a84] sm:$0xf]  ;;  %v7379_v24 = vadd.f32 %v7378_v61, %v7366_v57 }
 0x1f2   :  { %7616 = vmatpush.bf16.msrb.mxu0 %v12312_v52  ;;  %7585 = vmatmul.bf16.vlgmr.msra.gmra.mxu1 %v16062_v5  ;;  %v12664_v52 = vor.u32 %v14517_v32, %v12661_v35  ;;  %v12517_v54 = vld [vmem:[%s21962_s1 + $0x1b90] sm:$0xf0]  ;;  %v14513_v55 = vld [vmem:[%s21962_s1 + $0x1c84] sm:$0xf]  ;;  %v12264_v58 = vor.u32 %v14417_v44, %v12261_v50 }
 0x1f3   :  { %7629 = vmatpush.bf16.msrb.mxu1 %v12440_v53  ;;  %7611 = vmatmul.bf16.vlgmr.msra.gmra.mxu3 %v16299_v37  ;;  %v12389_v53 = vld [vmem:[%s21962_s1 + $0x1a90] sm:$0xf0]  ;;  %v14477_v39 = vld [vmem:[%s21962_s1 + $0x1b64] sm:$0xf] }
 0x1f4   :  { %7655 = vmatpush.bf16.msrb.mxu3 %v12696_v56  ;;  %7598 = vmatmul.bf16.vlgmr.msra.gmra.mxu2 %v16066_v7  ;;  %v12645_v56 = vld [vmem:[%s21962_s1 + $0x1c90] sm:$0xf0]  ;;  %v12392_v3 = vor.u32 %v14449_v51, %v12389_v53  ;;  %v14509_v26 = vld [vmem:[%s21962_s1 + $0x1c64] sm:$0xf] }
 0x1f5   :  { %7642 = vmatpush.bf16.msrb.mxu2 %v12568_v20  ;;  %v14481_v20 = vld [vmem:[%s21962_s1 + $0x1b84] sm:$0xf]  ;;  %v12648_v31 = vor.u32 %v14513_v55, %v12645_v56  ;;  %v12373_v43 = vld [vmem:[%s21962_s1 + $0x1a70] sm:$0xf0] }
 0x1f6   :  { %7617 = vmatpush.bf16.msrb.mxu0 %v12296_v11  ;;  %v12520_v33 = vor.u32 %v14481_v20, %v12517_v54  ;;  %v14413_v11 = vld [vmem:[%s21962_s1 + $0x1964] sm:$0xf]  ;;  %v12629_v30 = vld [vmem:[%s21962_s1 + $0x1c70] sm:$0xf0]  ;;  %v7404_v54 = vpop.f32.mrf.mxu3  ;;  %v7367_v56 = vpop.f32.mrf.mxu0 }
 0x1f7   :  { %7630 = vmatpush.bf16.msrb.mxu1 %v12424_v19  ;;  %v12245_v19 = vld [vmem:[%s21962_s1 + $0x1970] sm:$0xf0]  ;;  %v12632_v44 = vor.u32 %v14509_v26, %v12629_v30  ;;  %v7391_v50 = vpop.f32.mrf.mxu2  ;;  %v14505_v23 = vld [vmem:[%s21962_s1 + $0x1c44] sm:$0xf] }
 0x1f8   :  { %7656 = vmatpush.bf16.msrb.mxu3 %v12680_v25  ;;  %v12501_v25 = vld [vmem:[%s21962_s1 + $0x1b70] sm:$0xf0]  ;;  %v12248_v45 = vor.u32 %v14413_v11, %v12245_v19  ;;  %v7392_v20 = vadd.f32 %v7391_v50, %v7379_v24  ;;  %v14405_v11 = vld [vmem:[%s21962_s1 + $0x1924] sm:$0xf] }
 0x1f9   :  { %7643 = vmatpush.bf16.msrb.mxu2 %v12552_v21  ;;  %v14445_v21 = vld [vmem:[%s21962_s1 + $0x1a64] sm:$0xf]  ;;  %v12504_v35 = vor.u32 %v14477_v39, %v12501_v25  ;;  %v12357_v51 = vld [vmem:[%s21962_s1 + $0x1a50] sm:$0xf0] }
 0x1fa   :  { %7618 = vmatpush.bf16.msrb.mxu0 %v12280_v36  ;;  %v12376_v32 = vor.u32 %v14445_v21, %v12373_v43  ;;  %v14409_v36 = vld [vmem:[%s21962_s1 + $0x1944] sm:$0xf]  ;;  %v12485_v53 = vld [vmem:[%s21962_s1 + $0x1b50] sm:$0xf0]  ;;  %v18019_v61 = vadd.f32 %v7404_v54, %v7392_v20 }
 0x1fb   :  { %7631 = vmatpush.bf16.msrb.mxu1 %v12408_v22  ;;  %v12229_v22 = vld [vmem:[%s21962_s1 + $0x1950] sm:$0xf0]  ;;  %v14437_v21 = vld [vmem:[%s21962_s1 + $0x1a24] sm:$0xf] }
 0x1fc   :  { %7657 = vmatpush.bf16.msrb.mxu3 %v12664_v52  ;;  %v14473_v52 = vld [vmem:[%s21962_s1 + $0x1b44] sm:$0xf]  ;;  %v12613_v55 = vld [vmem:[%s21962_s1 + $0x1c50] sm:$0xf0]  ;;  %v12232_v57 = vor.u32 %v14409_v36, %v12229_v22 }
 0x1fd   :  { %7644 = vmatpush.bf16.msrb.mxu2 %v12536_v38  ;;  %v14441_v38 = vld [vmem:[%s21962_s1 + $0x1a44] sm:$0xf]  ;;  %v12213_v19 = vld [vmem:[%s21962_s1 + $0x1930] sm:$0xf0] }
 0x1fe   :  { %7619 = vmatpush.bf16.msrb.mxu0 %v12264_v58  ;;  %v7380_v58 = vpop.f32.mrf.mxu1  ;;  %v12341_v24 = vld [vmem:[%s21962_s1 + $0x1a30] sm:$0xf0]  ;;  %v14469_v43 = vld [vmem:[%s21962_s1 + $0x1b24] sm:$0xf]  ;;  %v12216_v30 = vor.u32 %v14405_v11, %v12213_v19  ;;  %v7406_v56 = vpop.f32.mrf.mxu3 }
 0x1ff   :  { %7632 = vmatpush.bf16.msrb.mxu1 %v12392_v3  ;;  %v12360_v3 = vor.u32 %v14441_v38, %v12357_v51  ;;  %v12469_v39 = vld [vmem:[%s21962_s1 + $0x1b30] sm:$0xf0]  ;;  %v14501_v25 = vld [vmem:[%s21962_s1 + $0x1c24] sm:$0xf]  ;;  %v7393_v20 = vpop.f32.mrf.mxu2 }
 0x200   :  { %7658 = vmatpush.bf16.msrb.mxu3 %v12648_v31  ;;  %v12616_v31 = vor.u32 %v14505_v23, %v12613_v55  ;;  %v12597_v26 = vld [vmem:[%s21962_s1 + $0x1c30] sm:$0xf0]  ;;  %v12472_v36 = vor.u32 %v14469_v43, %v12469_v39  ;;  %v14433_v22 = vld [vmem:[%s21962_s1 + $0x1a04] sm:$0xf] }
 0x201   :  { %7645 = vmatpush.bf16.msrb.mxu2 %v12520_v33  ;;  %v12488_v33 = vor.u32 %v14473_v52, %v12485_v53  ;;  %v12325_v38 = vld [vmem:[%s21962_s1 + $0x1a10] sm:$0xf0]  ;;  %v12600_v50 = vor.u32 %v14501_v25, %v12597_v26  ;;  %v14497_v52 = vld [vmem:[%s21962_s1 + $0x1c04] sm:$0xf] }
 0x202   :  { %7620 = vmatpush.bf16.msrb.mxu0 %v12248_v45  ;;  %v14401_v45 = vld [vmem:[%s21962_s1 + $0x1904] sm:$0xf]  ;;  %v12453_v51 = vld [vmem:[%s21962_s1 + $0x1b10] sm:$0xf0]  ;;  %v12328_v11 = vor.u32 %v14433_v22, %v12325_v38 }
 0x203   :  { %7633 = vmatpush.bf16.msrb.mxu1 %v12376_v32  ;;  %v12197_v32 = vld [vmem:[%s21962_s1 + $0x1910] sm:$0xf0]  ;;  %v14557_v54 = vld [vmem:[%s21962_s1 + $0x1de4] sm:$0xf] }
 0x204   :  { %7659 = vmatpush.bf16.msrb.mxu3 %v12632_v44  ;;  %v14465_v44 = vld [vmem:[%s21962_s1 + $0x1b04] sm:$0xf]  ;;  %v12581_v53 = vld [vmem:[%s21962_s1 + $0x1c10] sm:$0xf0] }
 0x205   :  { %7646 = vmatpush.bf16.msrb.mxu2 %v12504_v35  ;;  %v12344_v35 = vor.u32 %v14437_v21, %v12341_v24  ;;  %v12821_v23 = vld [vmem:[%s21962_s1 + $0x1df0] sm:$0xf0]  ;;  %v14589_v55 = vld [vmem:[%s21962_s1 + $0x1ee4] sm:$0xf]  ;;  %v12456_v19 = vor.u32 %v14465_v44, %v12453_v51  ;;  %v12584_v24 = vor.u32 %v14497_v52, %v12581_v53 }
 0x206   :  { %7621 = vmatpush.bf16.msrb.mxu0 %v12232_v57  ;;  %v12200_v57 = vor.u32 %v14401_v45, %v12197_v32  ;;  %v12949_v58 = vld [vmem:[%s21962_s1 + $0x1ef0] sm:$0xf0]  ;;  %v14653_v21 = vld [vmem:[%s21962_s1 + $0x20e4] sm:$0xf]  ;;  %v12824_v43 = vor.u32 %v14557_v54, %v12821_v23 }
 0x207   :  { %7634 = vmatpush.bf16.msrb.mxu1 %v12360_v3  ;;  %v14621_v3 = vld [vmem:[%s21962_s1 + $0x1fe4] sm:$0xf]  ;;  %v12952_v39 = vor.u32 %v14589_v55, %v12949_v58  ;;  %v13061_v22 = vld [vmem:[%s21962_s1 + $0x1fd0] sm:$0xf0] }
 0x208   :  { %7660 = vmatpush.bf16.msrb.mxu3 %v12616_v31  ;;  %v13205_v31 = vld [vmem:[%s21962_s1 + $0x20f0] sm:$0xf0]  ;;  %v14553_v26 = vld [vmem:[%s21962_s1 + $0x1dc4] sm:$0xf] }
 0x209   :  { %7647 = vmatpush.bf16.msrb.mxu2 %v12488_v33  ;;  %v13077_v33 = vld [vmem:[%s21962_s1 + $0x1ff0] sm:$0xf0]  ;;  %v14585_v45 = vld [vmem:[%s21962_s1 + $0x1ec4] sm:$0xf]  ;;  %v13208_v32 = vor.u32 %v14653_v21, %v13205_v31 }
 0x20a   :  { %7622 = vmatpush.bf16.msrb.mxu0 %v12216_v30  ;;  %v13080_v25 = vor.u32 %v14621_v3, %v13077_v33  ;;  %v12805_v30 = vld [vmem:[%s21962_s1 + $0x1dd0] sm:$0xf0]  ;;  %v14649_v38 = vld [vmem:[%s21962_s1 + $0x20c4] sm:$0xf] }
 0x20b   :  { %7635 = vmatpush.bf16.msrb.mxu1 %v12344_v35  ;;  %v12933_v35 = vld [vmem:[%s21962_s1 + $0x1ed0] sm:$0xf0]  ;;  %v14549_v53 = vld [vmem:[%s21962_s1 + $0x1da4] sm:$0xf] }
 0x20c   :  { %7661 = vmatpush.bf16.msrb.mxu3 %v12600_v50  ;;  %v13189_v44 = vld [vmem:[%s21962_s1 + $0x20d0] sm:$0xf0]  ;;  %v12808_v50 = vor.u32 %v14553_v26, %v12805_v30  ;;  %v12936_v51 = vor.u32 %v14585_v45, %v12933_v35  ;;  %v14581_v54 = vld [vmem:[%s21962_s1 + $0x1ea4] sm:$0xf] }
 0x20d   :  { %7648 = vmatpush.bf16.msrb.mxu2 %v12472_v36  ;;  %v14617_v36 = vld [vmem:[%s21962_s1 + $0x1fc4] sm:$0xf]  ;;  %v12789_v20 = vld [vmem:[%s21962_s1 + $0x1db0] sm:$0xf0]  ;;  %v13192_v23 = vor.u32 %v14649_v38, %v13189_v44 }
 0x20e   :  { %7623 = vmatpush.bf16.msrb.mxu0 %v12200_v57  ;;  %v13064_v52 = vor.u32 %v14617_v36, %v13061_v22  ;;  %v12917_v55 = vld [vmem:[%s21962_s1 + $0x1eb0] sm:$0xf0]  ;;  %v14613_v56 = vld [vmem:[%s21962_s1 + $0x1fa4] sm:$0xf]  ;;  %v12792_v33 = vor.u32 %v14549_v53, %v12789_v20  ;;  %v7417_v30 = vpop.f32.mrf.mxu0 }
 0x20f   :  { %7636 = vmatpush.bf16.msrb.mxu1 %v12328_v11  ;;  %v13045_v57 = vld [vmem:[%s21962_s1 + $0x1fb0] sm:$0xf0]  ;;  %v14645_v58 = vld [vmem:[%s21962_s1 + $0x20a4] sm:$0xf]  ;;  %v12920_v11 = vor.u32 %v14581_v54, %v12917_v55  ;;  %v7418_v35 = vadd.f32 %v7417_v30, %v18019_v61  ;;  %v7430_v22 = vpop.f32.mrf.mxu1 }
 0x210   :  { %7662 = vmatpush.bf16.msrb.mxu3 %v12584_v24  ;;  %v13173_v3 = vld [vmem:[%s21962_s1 + $0x20b0] sm:$0xf0]  ;;  %v14545_v21 = vld [vmem:[%s21962_s1 + $0x1d84] sm:$0xf] }
 0x211   :  { %7649 = vmatpush.bf16.msrb.mxu2 %v12456_v19  ;;  %7624 = vmatmul.bf16.vlgmr.msrb.gmra.mxu0 %v16309_v41  ;;  %v13048_v19 = vor.u32 %v14613_v56, %v13045_v57  ;;  %v12773_v31 = vld [vmem:[%s21962_s1 + $0x1d90] sm:$0xf0]  ;;  %v14577_v24 = vld [vmem:[%s21962_s1 + $0x1e84] sm:$0xf]  ;;  %v7431_v53 = vadd.f32 %v7430_v22, %v7418_v35 }
 0x212   :  { %7668 = vmatpush.bf16.msra.mxu0 %v12824_v43  ;;  %7637 = vmatmul.bf16.vlgmr.msrb.gmra.mxu1 %v16307_v40  ;;  %v13176_v43 = vor.u32 %v14645_v58, %v13173_v3  ;;  %v13029_v26 = vld [vmem:[%s21962_s1 + $0x1f90] sm:$0xf0]  ;;  %v14641_v45 = vld [vmem:[%s21962_s1 + $0x2084] sm:$0xf]  ;;  %v12776_v36 = vor.u32 %v14545_v21, %v12773_v31 }
 0x213   :  { %7681 = vmatpush.bf16.msra.mxu1 %v12952_v39  ;;  %7663 = vmatmul.bf16.vlgmr.msrb.gmra.mxu3 %v16476_v62  ;;  %v12901_v39 = vld [vmem:[%s21962_s1 + $0x1e90] sm:$0xf0]  ;;  %v14605_v54 = vld [vmem:[%s21962_s1 + $0x1f64] sm:$0xf] }
 0x214   :  { %7707 = vmatpush.bf16.msra.mxu3 %v13208_v32  ;;  %7650 = vmatmul.bf16.vlgmr.msrb.gmra.mxu2 %v16311_v42  ;;  %v13157_v32 = vld [vmem:[%s21962_s1 + $0x2090] sm:$0xf0]  ;;  %v12904_v38 = vor.u32 %v14577_v24, %v12901_v39  ;;  %v14637_v55 = vld [vmem:[%s21962_s1 + $0x2064] sm:$0xf] }
 0x215   :  { %7694 = vmatpush.bf16.msra.mxu2 %v13080_v25  ;;  %v14609_v25 = vld [vmem:[%s21962_s1 + $0x1f84] sm:$0xf]  ;;  %v13160_v61 = vor.u32 %v14641_v45, %v13157_v32  ;;  %v12885_v20 = vld [vmem:[%s21962_s1 + $0x1e70] sm:$0xf0] }
 0x216   :  { %7669 = vmatpush.bf16.msra.mxu0 %v12808_v50  ;;  %v13032_v44 = vor.u32 %v14609_v25, %v13029_v26  ;;  %v14541_v50 = vld [vmem:[%s21962_s1 + $0x1d64] sm:$0xf]  ;;  %v13141_v56 = vld [vmem:[%s21962_s1 + $0x2070] sm:$0xf0]  ;;  %v7456_v26 = vpop.f32.mrf.mxu3  ;;  %v7419_v32 = vpop.f32.mrf.mxu0 }
 0x217   :  { %7682 = vmatpush.bf16.msra.mxu1 %v12936_v51  ;;  %v12757_v51 = vld [vmem:[%s21962_s1 + $0x1d70] sm:$0xf0]  ;;  %v13144_v21 = vor.u32 %v14637_v55, %v13141_v56  ;;  %v7443_v31 = vpop.f32.mrf.mxu2  ;;  %v14633_v30 = vld [vmem:[%s21962_s1 + $0x2044] sm:$0xf] }
 0x218   :  { %7708 = vmatpush.bf16.msra.mxu3 %v13192_v23  ;;  %v13013_v23 = vld [vmem:[%s21962_s1 + $0x1f70] sm:$0xf0]  ;;  %v12760_v57 = vor.u32 %v14541_v50, %v12757_v51  ;;  %v7444_v25 = vadd.f32 %v7443_v31, %v7431_v53  ;;  %v14533_v50 = vld [vmem:[%s21962_s1 + $0x1d24] sm:$0xf] }
 0x219   :  { %7695 = vmatpush.bf16.msra.mxu2 %v13064_v52  ;;  %v14573_v52 = vld [vmem:[%s21962_s1 + $0x1e64] sm:$0xf]  ;;  %v13016_v3 = vor.u32 %v14605_v54, %v13013_v23  ;;  %v12869_v24 = vld [vmem:[%s21962_s1 + $0x1e50] sm:$0xf0] }
 0x21a   :  { %7670 = vmatpush.bf16.msra.mxu0 %v12792_v33  ;;  %v12888_v58 = vor.u32 %v14573_v52, %v12885_v20  ;;  %v14537_v33 = vld [vmem:[%s21962_s1 + $0x1d44] sm:$0xf]  ;;  %v12997_v39 = vld [vmem:[%s21962_s1 + $0x1f50] sm:$0xf0]  ;;  %v18218_v22 = vadd.f32 %v7456_v26, %v7444_v25 }
 0x21b   :  { %7683 = vmatpush.bf16.msra.mxu1 %v12920_v11  ;;  %v12741_v11 = vld [vmem:[%s21962_s1 + $0x1d50] sm:$0xf0]  ;;  %v14565_v52 = vld [vmem:[%s21962_s1 + $0x1e24] sm:$0xf] }
 0x21c   :  { %7709 = vmatpush.bf16.msra.mxu3 %v13176_v43  ;;  %v14601_v43 = vld [vmem:[%s21962_s1 + $0x1f44] sm:$0xf]  ;;  %v13125_v45 = vld [vmem:[%s21962_s1 + $0x2050] sm:$0xf0]  ;;  %v12744_v35 = vor.u32 %v14537_v33, %v12741_v11 }
 0x21d   :  { %7696 = vmatpush.bf16.msra.mxu2 %v13048_v19  ;;  %v14569_v19 = vld [vmem:[%s21962_s1 + $0x1e44] sm:$0xf]  ;;  %v12725_v51 = vld [vmem:[%s21962_s1 + $0x1d30] sm:$0xf0] }
 0x21e   :  { %7671 = vmatpush.bf16.msra.mxu0 %v12776_v36  ;;  %v7432_v36 = vpop.f32.mrf.mxu1  ;;  %v12853_v53 = vld [vmem:[%s21962_s1 + $0x1e30] sm:$0xf0]  ;;  %v14597_v20 = vld [vmem:[%s21962_s1 + $0x1f24] sm:$0xf]  ;;  %v12728_v56 = vor.u32 %v14533_v50, %v12725_v51  ;;  %v7458_v32 = vpop.f32.mrf.mxu3 }
 0x21f   :  { %7684 = vmatpush.bf16.msra.mxu1 %v12904_v38  ;;  %v12872_v38 = vor.u32 %v14569_v19, %v12869_v24  ;;  %v12981_v54 = vld [vmem:[%s21962_s1 + $0x1f30] sm:$0xf0]  ;;  %v14629_v23 = vld [vmem:[%s21962_s1 + $0x2024] sm:$0xf]  ;;  %v7445_v25 = vpop.f32.mrf.mxu2  ;;  %v9083_v32 = vld [vmem:[%s21962_s1 + $0xa8] sm:$0xf] }
 0x220   :  { %7710 = vmatpush.bf16.msra.mxu3 %v13160_v61  ;;  %v13128_v61 = vor.u32 %v14633_v30, %v13125_v45  ;;  %v13109_v55 = vld [vmem:[%s21962_s1 + $0x2030] sm:$0xf0]  ;;  %v12984_v33 = vor.u32 %v14597_v20, %v12981_v54  ;;  %v14561_v11 = vld [vmem:[%s21962_s1 + $0x1e04] sm:$0xf] }
 0x221   :  { %7697 = vmatpush.bf16.msra.mxu2 %v13032_v44  ;;  %v13000_v44 = vor.u32 %v14601_v43, %v12997_v39  ;;  %v12837_v19 = vld [vmem:[%s21962_s1 + $0x1e10] sm:$0xf0]  ;;  %v13112_v31 = vor.u32 %v14629_v23, %v13109_v55  ;;  %v14625_v43 = vld [vmem:[%s21962_s1 + $0x2004] sm:$0xf] }
 0x222   :  { %7672 = vmatpush.bf16.msra.mxu0 %v12760_v57  ;;  %v14529_v57 = vld [vmem:[%s21962_s1 + $0x1d04] sm:$0xf]  ;;  %v12965_v24 = vld [vmem:[%s21962_s1 + $0x1f10] sm:$0xf0]  ;;  %v12840_v50 = vor.u32 %v14561_v11, %v12837_v19  ;;  %v13628_v11 = vld [vmem:[%s21962_s1 + $0xd4] sm:$0xf0] }
 0x223   :  { %7685 = vmatpush.bf16.msra.mxu1 %v12888_v58  ;;  %v12709_v58 = vld [vmem:[%s21962_s1 + $0x1d10] sm:$0xf0]  ;;  %v14685_v26 = vld [vmem:[%s21962_s1 + $0x21e4] sm:$0xf]  ;;  %v9227_v19 = vld [vmem:[%s21962_s1 + $0x1c8] sm:$0xf] }
 0x224   :  { %7711 = vmatpush.bf16.msra.mxu3 %v13144_v21  ;;  %v14593_v21 = vld [vmem:[%s21962_s1 + $0x1f04] sm:$0xf]  ;;  %v13093_v39 = vld [vmem:[%s21962_s1 + $0x2010] sm:$0xf0] }
 0x225   :  { %7698 = vmatpush.bf16.msra.mxu2 %v13016_v3  ;;  %v12856_v3 = vor.u32 %v14565_v52, %v12853_v53  ;;  %v13333_v30 = vld [vmem:[%s21962_s1 + $0x21f0] sm:$0xf0]  ;;  %v14717_v45 = vld [vmem:[%s21962_s1 + $0x22e4] sm:$0xf]  ;;  %v12968_v51 = vor.u32 %v14593_v21, %v12965_v24  ;;  %v9243_v52 = vld [vmem:[%s21962_s1 + $0x1e8] sm:$0xf]  ;;  %v13096_v53 = vor.u32 %v14625_v43, %v13093_v39 }
 0x226   :  { %7673 = vmatpush.bf16.msra.mxu0 %v12744_v35  ;;  %v12712_v35 = vor.u32 %v14529_v57, %v12709_v58  ;;  %v13461_v36 = vld [vmem:[%s21962_s1 + $0x22f0] sm:$0xf0]  ;;  %v13336_v20 = vor.u32 %v14685_v26, %v13333_v30  ;;  %v14681_v55 = vld [vmem:[%s21962_s1 + $0x21c4] sm:$0xf]  ;;  %v13660_v21 = vld [vmem:[%s21962_s1 + $0x1d4] sm:$0xf0] }
 0x227   :  { %7686 = vmatpush.bf16.msra.mxu1 %v12872_v38  ;;  %v9115_v38 = vld [vmem:[%s21962_s1 + $0xe8] sm:$0xf]  ;;  %v13464_v54 = vor.u32 %v14717_v45, %v13461_v36  ;;  %v14713_v57 = vld [vmem:[%s21962_s1 + $0x22c4] sm:$0xf]  ;;  %v13301_v25 = vld [vmem:[%s21962_s1 + $0x21b0] sm:$0xf0]  ;;  %v9228_v30 = vor.u32 %v13660_v21, %v9227_v19 }
 0x228   :  { %7712 = vmatpush.bf16.msra.mxu3 %v13128_v61  ;;  %v13664_v61 = vld [vmem:[%s21962_s1 + $0x1f4] sm:$0xf0]  ;;  %v14677_v39 = vld [vmem:[%s21962_s1 + $0x21a4] sm:$0xf]  ;;  %v13429_v45 = vld [vmem:[%s21962_s1 + $0x22b0] sm:$0xf0] }
 0x229   :  { %7699 = vmatpush.bf16.msra.mxu2 %v13000_v44  ;;  %v13632_v44 = vld [vmem:[%s21962_s1 + $0xf4] sm:$0xf0]  ;;  %v9244_v58 = vor.u32 %v13664_v61, %v9243_v52  ;;  %v14709_v26 = vld [vmem:[%s21962_s1 + $0x22a4] sm:$0xf]  ;;  %v9211_v36 = vld [vmem:[%s21962_s1 + $0x1a8] sm:$0xf] }
 0x22a   :  { %7674 = vmatpush.bf16.msra.mxu0 %v12728_v56  ;;  %v9116_v23 = vor.u32 %v13632_v44, %v9115_v38  ;;  %v13317_v56 = vld [vmem:[%s21962_s1 + $0x21d0] sm:$0xf0]  ;;  %v13656_v38 = vld [vmem:[%s21962_s1 + $0x1b4] sm:$0xf0]  ;;  %v14756_v44 = vld [vmem:[#allocation1] sm:$0xff] }
 0x22b   :  { %7687 = vmatpush.bf16.msra.mxu1 %v12856_v3  ;;  %v13445_v3 = vld [vmem:[%s21962_s1 + $0x22d0] sm:$0xf0]  ;;  %v14673_v61 = vld [vmem:[%s21962_s1 + $0x2184] sm:$0xf] }
 0x22c   :  { %7713 = vmatpush.bf16.msra.mxu3 %v13112_v31  ;;  %v13320_v31 = vor.u32 %v14681_v55, %v13317_v56  ;;  %v13448_v24 = vor.u32 %v14713_v57, %v13445_v3  ;;  %v9067_v55 = vld [vmem:[%s21962_s1 + $0x88] sm:$0xf]  ;;  %v13620_v56 = vld [vmem:[%s21962_s1 + $0x94] sm:$0xf0] }
 0x22d   :  { %7700 = vmatpush.bf16.msra.mxu2 %v12984_v33  ;;  %v9099_v33 = vld [vmem:[%s21962_s1 + $0xc8] sm:$0xf]  ;;  %v13652_v3 = vld [vmem:[%s21962_s1 + $0x194] sm:$0xf0] }
 0x22e   :  { %7675 = vmatpush.bf16.msra.mxu0 %v12712_v35  ;;  %v9100_v43 = vor.u32 %v13628_v11, %v9099_v33  ;;  %v13624_v35 = vld [vmem:[%s21962_s1 + $0xb4] sm:$0xf0]  ;;  %v7469_v57 = vpop.f32.mrf.mxu0 }
 0x22f   :  { %7688 = vmatpush.bf16.msra.mxu1 %v12840_v50  ;;  %v13304_v50 = vor.u32 %v14677_v39, %v13301_v25  ;;  %v9084_v52 = vor.u32 %v13624_v35, %v9083_v32  ;;  %v7470_v33 = vadd.f32 %v7469_v57, %v18218_v22  ;;  %v7482_v19 = vpop.f32.mrf.mxu1  ;;  %v14701_v39 = vld [vmem:[%s21962_s1 + $0x2264] sm:$0xf]  ;;  %v9179_v32 = vld [vmem:[%s21962_s1 + $0x168] sm:$0xf]  ;;  %v13648_v35 = vld [vmem:[%s21962_s1 + $0x174] sm:$0xf0] }
 0x230   :  { %7714 = vmatpush.bf16.msra.mxu3 %v13096_v53  ;;  %v13285_v53 = vld [vmem:[%s21962_s1 + $0x2190] sm:$0xf0]  ;;  %v9163_v57 = vld [vmem:[%s21962_s1 + $0x148] sm:$0xf] }
 0x231   :  { %7701 = vmatpush.bf16.msra.mxu2 %v12968_v51  ;;  %7676 = vmatmul.bf16.vlgmr.msra.gmra.mxu0 %v16480_v8  ;;  %v13432_v51 = vor.u32 %v14709_v26, %v13429_v45  ;;  %v13288_v11 = vor.u32 %v14673_v61, %v13285_v53  ;;  %v7483_v25 = vadd.f32 %v7482_v19, %v7470_v33  ;;  %v13397_v26 = vld [vmem:[%s21962_s1 + $0x2270] sm:$0xf0]  ;;  %v13616_v45 = vld [vmem:[%s21962_s1 + $0x74] sm:$0xf0] }
 0x232   :  { %7720 = vmatpush.bf16.msrb.mxu0 %v13336_v20  ;;  %7689 = vmatmul.bf16.vlgmr.msra.gmra.mxu1 %v16478_v63  ;;  %v14705_v20 = vld [vmem:[%s21962_s1 + $0x2284] sm:$0xf]  ;;  %v9180_v61 = vor.u32 %v13648_v35, %v9179_v32  ;;  %v13640_v32 = vld [vmem:[%s21962_s1 + $0x134] sm:$0xf0] }
 0x233   :  { %7733 = vmatpush.bf16.msrb.mxu1 %v13464_v54  ;;  %7715 = vmatmul.bf16.vlgmr.msra.gmra.mxu3 %v14756_v44  ;;  %v9212_v54 = vor.u32 %v13656_v38, %v9211_v36  ;;  %v13400_v38 = vor.u32 %v14701_v39, %v13397_v26  ;;  %v14693_v39 = vld [vmem:[%s21962_s1 + $0x2224] sm:$0xf]  ;;  %v9019_v26 = vld [vmem:[%s21962_s1 + $0x28] sm:$0xf] }
 0x234   :  { %7759 = vmatpush.bf16.msrb.mxu3 %v9244_v58  ;;  %7702 = vmatmul.bf16.vlgmr.msra.gmra.mxu2 %v16482_v10  ;;  %v9195_v58 = vld [vmem:[%s21962_s1 + $0x188] sm:$0xf] }
 0x235   :  { %7746 = vmatpush.bf16.msrb.mxu2 %v9116_v23  ;;  %v13413_v23 = vld [vmem:[%s21962_s1 + $0x2290] sm:$0xf0]  ;;  %v9196_v22 = vor.u32 %v13652_v3, %v9195_v58  ;;  %v13644_v58 = vld [vmem:[%s21962_s1 + $0x154] sm:$0xf0] }
 0x236   :  { %7721 = vmatpush.bf16.msrb.mxu0 %v13320_v31  ;;  %v13416_v21 = vor.u32 %v14705_v20, %v13413_v23  ;;  %v9068_v31 = vor.u32 %v13620_v56, %v9067_v55  ;;  %v13381_v20 = vld [vmem:[%s21962_s1 + $0x2250] sm:$0xf0]  ;;  %v13612_v23 = vld [vmem:[%s21962_s1 + $0x54] sm:$0xf0]  ;;  %v7508_v56 = vpop.f32.mrf.mxu3  ;;  %v7471_v3 = vpop.f32.mrf.mxu0 }
 0x237   :  { %7734 = vmatpush.bf16.msrb.mxu1 %v13448_v24  ;;  %v14669_v24 = vld [vmem:[%s21962_s1 + $0x2164] sm:$0xf]  ;;  %v7495_v53 = vpop.f32.mrf.mxu2 }
 0x238   :  { %7760 = vmatpush.bf16.msrb.mxu3 %v9228_v30  ;;  %v9051_v30 = vld [vmem:[%s21962_s1 + $0x68] sm:$0xf]  ;;  %v7496_v55 = vadd.f32 %v7495_v53, %v7483_v25  ;;  %v13365_v25 = vld [vmem:[%s21962_s1 + $0x2230] sm:$0xf0] }
 0x239   :  { %7747 = vmatpush.bf16.msrb.mxu2 %v9100_v43  ;;  %v13269_v43 = vld [vmem:[%s21962_s1 + $0x2170] sm:$0xf0]  ;;  %v9052_v44 = vor.u32 %v13616_v45, %v9051_v30  ;;  %v13608_v30 = vld [vmem:[%s21962_s1 + $0x34] sm:$0xf0]  ;;  %v9147_v45 = vld [vmem:[%s21962_s1 + $0x128] sm:$0xf] }
 0x23a   :  { %7722 = vmatpush.bf16.msrb.mxu0 %v13304_v50  ;;  %v13272_v36 = vor.u32 %v14669_v24, %v13269_v43  ;;  %v14665_v50 = vld [vmem:[%s21962_s1 + $0x2144] sm:$0xf]  ;;  %v18416_v19 = vadd.f32 %v7508_v56, %v7496_v55  ;;  %v13237_v43 = vld [vmem:[%s21962_s1 + $0x2130] sm:$0xf0]  ;;  %v9148_v53 = vor.u32 %v13640_v32, %v9147_v45  ;;  %v9371_v56 = vld [vmem:[%s21962_s1 + $0x2e8] sm:$0xf] }
 0x23b   :  { %7735 = vmatpush.bf16.msrb.mxu1 %v13432_v51  ;;  %v13253_v51 = vld [vmem:[%s21962_s1 + $0x2150] sm:$0xf0]  ;;  %v14661_v24 = vld [vmem:[%s21962_s1 + $0x2124] sm:$0xf]  ;;  %v9355_v32 = vld [vmem:[%s21962_s1 + $0x2c8] sm:$0xf] }
 0x23c   :  { %7761 = vmatpush.bf16.msrb.mxu3 %v9212_v54  ;;  %v9035_v54 = vld [vmem:[%s21962_s1 + $0x48] sm:$0xf]  ;;  %v13256_v33 = vor.u32 %v14665_v50, %v13253_v51  ;;  %v13240_v35 = vor.u32 %v14661_v24, %v13237_v43  ;;  %v9020_v50 = vor.u32 %v13608_v30, %v9019_v26  ;;  %v14689_v51 = vld [vmem:[%s21962_s1 + $0x2204] sm:$0xf] }
 0x23d   :  { %7748 = vmatpush.bf16.msrb.mxu2 %v9084_v52  ;;  %v14697_v52 = vld [vmem:[%s21962_s1 + $0x2244] sm:$0xf] }
 0x23e   :  { %7723 = vmatpush.bf16.msrb.mxu0 %v13288_v11  ;;  %v7484_v11 = vpop.f32.mrf.mxu1  ;;  %v7510_v3 = vpop.f32.mrf.mxu3 }
 0x23f   :  { %7736 = vmatpush.bf16.msrb.mxu1 %v13416_v21  ;;  %v13384_v21 = vor.u32 %v14697_v52, %v13381_v20  ;;  %v13349_v52 = vld [vmem:[%s21962_s1 + $0x2210] sm:$0xf0]  ;;  %v13604_v20 = vld [vmem:[%s21962_s1 + $0x14] sm:$0xf0]  ;;  %v7497_v55 = vpop.f32.mrf.mxu2 }
 0x240   :  { %7762 = vmatpush.bf16.msrb.mxu3 %v9196_v22  ;;  %v9164_v22 = vor.u32 %v13644_v58, %v9163_v57  ;;  %v13696_v57 = vld [vmem:[%s21962_s1 + $0x2f4] sm:$0xf0]  ;;  %v9499_v58 = vld [vmem:[%s21962_s1 + $0x3e8] sm:$0xf]  ;;  %v13352_v24 = vor.u32 %v14689_v51, %v13349_v52 }
 0x241   :  { %7749 = vmatpush.bf16.msrb.mxu2 %v9068_v31  ;;  %v9036_v31 = vor.u32 %v13612_v23, %v9035_v54  ;;  %v9131_v54 = vld [vmem:[%s21962_s1 + $0x108] sm:$0xf]  ;;  %v13636_v23 = vld [vmem:[%s21962_s1 + $0x114] sm:$0xf0]  ;;  %v9372_v26 = vor.u32 %v13696_v57, %v9371_v56 }
 0x242   :  { %7724 = vmatpush.bf16.msrb.mxu0 %v13272_v36  ;;  %v14657_v36 = vld [vmem:[%s21962_s1 + $0x2104] sm:$0xf]  ;;  %v13728_v11 = vld [vmem:[%s21962_s1 + $0x3f4] sm:$0xf0]  ;;  %v9739_v52 = vld [vmem:[%s21962_s1 + $0x5c8] sm:$0xf] }
 0x243   :  { %7737 = vmatpush.bf16.msrb.mxu1 %v13400_v38  ;;  %v13221_v38 = vld [vmem:[%s21962_s1 + $0x2110] sm:$0xf0]  ;;  %v9500_v30 = vor.u32 %v13728_v11, %v9499_v58  ;;  %v13756_v51 = vld [vmem:[%s21962_s1 + $0x4d4] sm:$0xf0]  ;;  %v9467_v56 = vld [vmem:[%s21962_s1 + $0x3a8] sm:$0xf] }
 0x244   :  { %7763 = vmatpush.bf16.msrb.mxu3 %v9180_v61  ;;  %v9003_v61 = vld [vmem:[%s21962_s1 + $0x8] sm:$0xf]  ;;  %v13688_v55 = vld [vmem:[%s21962_s1 + $0x2b4] sm:$0xf0] }
 0x245   :  { %7750 = vmatpush.bf16.msrb.mxu2 %v9052_v44  ;;  %v13368_v44 = vor.u32 %v14693_v39, %v13365_v25  ;;  %v9004_v43 = vor.u32 %v13604_v20, %v9003_v61  ;;  %v9755_v39 = vld [vmem:[%s21962_s1 + $0x5e8] sm:$0xf]  ;;  %v9132_v25 = vor.u32 %v13636_v23, %v9131_v54  ;;  %v13788_v61 = vld [vmem:[%s21962_s1 + $0x5d4] sm:$0xf0] }
 0x246   :  { %7725 = vmatpush.bf16.msrb.mxu0 %v13256_v33  ;;  %v13224_v33 = vor.u32 %v14657_v36, %v13221_v38  ;;  %v9483_v36 = vld [vmem:[%s21962_s1 + $0x3c8] sm:$0xf]  ;;  %v9740_v58 = vor.u32 %v13788_v61, %v9739_v52  ;;  %v13720_v3 = vld [vmem:[%s21962_s1 + $0x3b4] sm:$0xf0] }
 0x247   :  { %7738 = vmatpush.bf16.msrb.mxu1 %v13384_v21  ;;  %v9627_v21 = vld [vmem:[%s21962_s1 + $0x4e8] sm:$0xf]  ;;  %v13752_v11 = vld [vmem:[%s21962_s1 + $0x4b4] sm:$0xf0] }
 0x248   :  { %7764 = vmatpush.bf16.msrb.mxu3 %v9164_v22  ;;  %v13792_v22 = vld [vmem:[%s21962_s1 + $0x5f4] sm:$0xf0]  ;;  %v9339_v23 = vld [vmem:[%s21962_s1 + $0x2a8] sm:$0xf] }
 0x249   :  { %7751 = vmatpush.bf16.msrb.mxu2 %v9036_v31  ;;  %v13760_v31 = vld [vmem:[%s21962_s1 + $0x4f4] sm:$0xf0]  ;;  %v9756_v38 = vor.u32 %v13792_v22, %v9755_v39  ;;  %v14757_v57 = vld [vmem:[#allocation1 + $0x9] sm:$0xff]  ;;  %v9468_v39 = vor.u32 %v13720_v3, %v9467_v56 }
 0x24a   :  { %7726 = vmatpush.bf16.msrb.mxu0 %v13240_v35  ;;  %v9628_v45 = vor.u32 %v13760_v31, %v9627_v21  ;;  %v13692_v35 = vld [vmem:[%s21962_s1 + $0x2d4] sm:$0xf0]  ;;  %v9723_v31 = vld [vmem:[%s21962_s1 + $0x5a8] sm:$0xf] }
 0x24b   :  { %7739 = vmatpush.bf16.msrb.mxu1 %v13368_v44  ;;  %v13724_v44 = vld [vmem:[%s21962_s1 + $0x3d4] sm:$0xf0] }
 0x24c   :  { %7765 = vmatpush.bf16.msrb.mxu3 %v9148_v53  ;;  %v9356_v53 = vor.u32 %v13692_v35, %v9355_v32  ;;  %v9484_v20 = vor.u32 %v13724_v44, %v9483_v36  ;;  %v14758_v21 = vld [vmem:[#allocation1 + $0x12] sm:$0xff]  ;;  %v9579_v35 = vld [vmem:[%s21962_s1 + $0x488] sm:$0xf] }
 0x24d   :  { %7752 = vmatpush.bf16.msrb.mxu2 %v9020_v50  ;;  %v9611_v50 = vld [vmem:[%s21962_s1 + $0x4c8] sm:$0xf]  ;;  %v13716_v32 = vld [vmem:[%s21962_s1 + $0x394] sm:$0xf0] }
 0x24e   :  { %7727 = vmatpush.bf16.msrb.mxu0 %v13224_v33  ;;  %v9612_v54 = vor.u32 %v13756_v51, %v9611_v50  ;;  %v9595_v33 = vld [vmem:[%s21962_s1 + $0x4a8] sm:$0xf]  ;;  %v13748_v36 = vld [vmem:[%s21962_s1 + $0x494] sm:$0xf0] }
 0x24f   :  { %7740 = vmatpush.bf16.msrb.mxu1 %v13352_v24  ;;  %v13784_v24 = vld [vmem:[%s21962_s1 + $0x5b4] sm:$0xf0]  ;;  %v9596_v22 = vor.u32 %v13752_v11, %v9595_v33  ;;  %v9707_v44 = vld [vmem:[%s21962_s1 + $0x588] sm:$0xf]  ;;  %v7534_v61 = vpop.f32.mrf.mxu1 }
 0x250   :  { %7766 = vmatpush.bf16.msrb.mxu3 %v9132_v25  ;;  %v9323_v25 = vld [vmem:[%s21962_s1 + $0x288] sm:$0xf]  ;;  %v13780_v50 = vld [vmem:[%s21962_s1 + $0x594] sm:$0xf0] }
 0x251   :  { %7753 = vmatpush.bf16.msrb.mxu2 %v9004_v43  ;;  %7728 = vmatmul.bf16.vlgmr.msrb.gmra.mxu0 %v14757_v57  ;;  %v9340_v43 = vor.u32 %v13688_v55, %v9339_v23  ;;  %v13680_v23 = vld [vmem:[%s21962_s1 + $0x274] sm:$0xf0]  ;;  %v9435_v55 = vld [vmem:[%s21962_s1 + $0x368] sm:$0xf] }
 0x252   :  { %7772 = vmatpush.bf16.msra.mxu0 %v9372_v26  ;;  %7741 = vmatmul.bf16.vlgmr.msrb.gmra.mxu1 %v14758_v21  ;;  %v13684_v26 = vld [vmem:[%s21962_s1 + $0x294] sm:$0xf0]  ;;  %v9691_v33 = vld [vmem:[%s21962_s1 + $0x568] sm:$0xf] }
 0x253   :  { %7785 = vmatpush.bf16.msra.mxu1 %v9500_v30  ;;  %7767 = vmatmul.bf16.vlgmr.msrb.gmra.mxu3 %v15154_v34  ;;  %v9451_v30 = vld [vmem:[%s21962_s1 + $0x388] sm:$0xf]  ;;  %v9324_v52 = vor.u32 %v13684_v26, %v9323_v25  ;;  %v13712_v57 = vld [vmem:[%s21962_s1 + $0x374] sm:$0xf0] }
 0x254   :  { %7811 = vmatpush.bf16.msra.mxu3 %v9756_v38  ;;  %7754 = vmatmul.bf16.vlgmr.msrb.gmra.mxu2 %v15144_v28  ;;  %v7521_v38 = vpop.f32.mrf.mxu0  ;;  %v13744_v3 = vld [vmem:[%s21962_s1 + $0x474] sm:$0xf0] }
 0x255   :  { %7798 = vmatpush.bf16.msra.mxu2 %v9628_v45  ;;  %v9724_v45 = vor.u32 %v13784_v24, %v9723_v31  ;;  %v7522_v51 = vadd.f32 %v7521_v38, %v18416_v19  ;;  %v9708_v19 = vor.u32 %v13780_v50, %v9707_v44  ;;  %v13776_v11 = vld [vmem:[%s21962_s1 + $0x574] sm:$0xf0]  ;;  %v9436_v31 = vor.u32 %v13712_v57, %v9435_v55  ;;  %v9675_v38 = vld [vmem:[%s21962_s1 + $0x548] sm:$0xf] }
 0x256   :  { %7773 = vmatpush.bf16.msra.mxu0 %v9356_v53  ;;  %v9452_v53 = vor.u32 %v13716_v32, %v9451_v30  ;;  %v9692_v25 = vor.u32 %v13776_v11, %v9691_v33  ;;  %v13708_v30 = vld [vmem:[%s21962_s1 + $0x354] sm:$0xf0]  ;;  %v9403_v55 = vld [vmem:[%s21962_s1 + $0x328] sm:$0xf] }
 0x257   :  { %7786 = vmatpush.bf16.msra.mxu1 %v9484_v20  ;;  %v9580_v20 = vor.u32 %v13748_v36, %v9579_v35  ;;  %v7535_v56 = vadd.f32 %v7534_v61, %v7522_v51  ;;  %v7547_v26 = vpop.f32.mrf.mxu2  ;;  %v13740_v32 = vld [vmem:[%s21962_s1 + $0x454] sm:$0xf0]  ;;  %v7560_v36 = vpop.f32.mrf.mxu3  ;;  %v9531_v57 = vld [vmem:[%s21962_s1 + $0x428] sm:$0xf] }
 0x258   :  { %7812 = vmatpush.bf16.msra.mxu3 %v9740_v58  ;;  %v9563_v58 = vld [vmem:[%s21962_s1 + $0x468] sm:$0xf]  ;;  %v13772_v44 = vld [vmem:[%s21962_s1 + $0x554] sm:$0xf0] }
 0x259   :  { %7799 = vmatpush.bf16.msra.mxu2 %v9612_v54  ;;  %v9307_v54 = vld [vmem:[%s21962_s1 + $0x268] sm:$0xf]  ;;  %v9564_v24 = vor.u32 %v13744_v3, %v9563_v58  ;;  %v7548_v35 = vadd.f32 %v7547_v26, %v7535_v56  ;;  %v13704_v56 = vld [vmem:[%s21962_s1 + $0x334] sm:$0xf0] }
 0x25a   :  { %7774 = vmatpush.bf16.msra.mxu0 %v9340_v43  ;;  %v9308_v21 = vor.u32 %v13680_v23, %v9307_v54  ;;  %v9291_v43 = vld [vmem:[%s21962_s1 + $0x248] sm:$0xf]  ;;  %v13672_v23 = vld [vmem:[%s21962_s1 + $0x234] sm:$0xf0] }
 0x25b   :  { %7787 = vmatpush.bf16.msra.mxu1 %v9468_v39  ;;  %v13676_v39 = vld [vmem:[%s21962_s1 + $0x254] sm:$0xf0]  ;;  %v18613_v61 = vadd.f32 %v7560_v36, %v7548_v35  ;;  %v9275_v54 = vld [vmem:[%s21962_s1 + $0x228] sm:$0xf] }
 0x25c   :  { %7813 = vmatpush.bf16.msra.mxu3 %v9724_v45  ;;  %v9547_v45 = vld [vmem:[%s21962_s1 + $0x448] sm:$0xf]  ;;  %v7523_v50 = vpop.f32.mrf.mxu0  ;;  %v9292_v51 = vor.u32 %v13676_v39, %v9291_v43  ;;  %v13736_v58 = vld [vmem:[%s21962_s1 + $0x434] sm:$0xf0]  ;;  %v9276_v11 = vor.u32 %v13672_v23, %v9275_v54 }
 0x25d   :  { %7800 = vmatpush.bf16.msra.mxu2 %v9596_v22  ;;  %v9419_v22 = vld [vmem:[%s21962_s1 + $0x348] sm:$0xf]  ;;  %v13768_v33 = vld [vmem:[%s21962_s1 + $0x534] sm:$0xf0]  ;;  %v9532_v43 = vor.u32 %v13736_v58, %v9531_v57 }
 0x25e   :  { %7775 = vmatpush.bf16.msra.mxu0 %v9324_v52  ;;  %v7536_v52 = vpop.f32.mrf.mxu1  ;;  %v9659_v3 = vld [vmem:[%s21962_s1 + $0x528] sm:$0xf] }
 0x25f   :  { %7788 = vmatpush.bf16.msra.mxu1 %v9452_v53  ;;  %v9420_v53 = vor.u32 %v13708_v30, %v9419_v22  ;;  %v9387_v39 = vld [vmem:[%s21962_s1 + $0x308] sm:$0xf]  ;;  %v13700_v22 = vld [vmem:[%s21962_s1 + $0x314] sm:$0xf0]  ;;  %v9660_v26 = vor.u32 %v13768_v33, %v9659_v3  ;;  %v7549_v35 = vpop.f32.mrf.mxu2  ;;  %v7562_v50 = vpop.f32.mrf.mxu3 }
 0x260   :  { %7814 = vmatpush.bf16.msra.mxu3 %v9708_v19  ;;  %v9676_v19 = vor.u32 %v13772_v44, %v9675_v38  ;;  %v13732_v30 = vld [vmem:[%s21962_s1 + $0x414] sm:$0xf0]  ;;  %v9883_v36 = vld [vmem:[%s21962_s1 + $0x6e8] sm:$0xf]  ;;  %v9388_v54 = vor.u32 %v13700_v22, %v9387_v39 }
 0x261   :  { %7801 = vmatpush.bf16.msra.mxu2 %v9580_v20  ;;  %v9548_v20 = vor.u32 %v13740_v32, %v9547_v45  ;;  %v9643_v45 = vld [vmem:[%s21962_s1 + $0x508] sm:$0xf]  ;;  %v13764_v32 = vld [vmem:[%s21962_s1 + $0x514] sm:$0xf0] }
 0x262   :  { %7776 = vmatpush.bf16.msra.mxu0 %v9308_v21  ;;  %v9259_v21 = vld [vmem:[%s21962_s1 + $0x208] sm:$0xf]  ;;  %v13824_v38 = vld [vmem:[%s21962_s1 + $0x6f4] sm:$0xf0] }
 0x263   :  { %7789 = vmatpush.bf16.msra.mxu1 %v9436_v31  ;;  %v13668_v31 = vld [vmem:[%s21962_s1 + $0x214] sm:$0xf0]  ;;  %v10011_v44 = vld [vmem:[%s21962_s1 + $0x7e8] sm:$0xf]  ;;  %v9884_v57 = vor.u32 %v13824_v38, %v9883_v36 }
 0x264   :  { %7815 = vmatpush.bf16.msra.mxu3 %v9692_v25  ;;  %v9515_v25 = vld [vmem:[%s21962_s1 + $0x408] sm:$0xf]  ;;  %v13856_v52 = vld [vmem:[%s21962_s1 + $0x7f4] sm:$0xf0] }
 0x265   :  { %7802 = vmatpush.bf16.msra.mxu2 %v9564_v24  ;;  %v9404_v24 = vor.u32 %v13704_v56, %v9403_v55  ;;  %v9516_v23 = vor.u32 %v13732_v30, %v9515_v25  ;;  %v10267_v55 = vld [vmem:[%s21962_s1 + $0x9e8] sm:$0xf]  ;;  %v9644_v56 = vor.u32 %v13764_v32, %v9643_v45  ;;  %v10012_v58 = vor.u32 %v13856_v52, %v10011_v44  ;;  %v13884_v39 = vld [vmem:[%s21962_s1 + $0x8d4] sm:$0xf0] }
 0x266   :  { %7777 = vmatpush.bf16.msra.mxu0 %v9292_v51  ;;  %v9260_v51 = vor.u32 %v13668_v31, %v9259_v21  ;;  %v9867_v33 = vld [vmem:[%s21962_s1 + $0x6c8] sm:$0xf]  ;;  %v13916_v25 = vld [vmem:[%s21962_s1 + $0x9d4] sm:$0xf0] }
 0x267   :  { %7790 = vmatpush.bf16.msra.mxu1 %v9420_v53  ;;  %v10139_v53 = vld [vmem:[%s21962_s1 + $0x8e8] sm:$0xf]  ;;  %v13816_v35 = vld [vmem:[%s21962_s1 + $0x6b4] sm:$0xf0] }
 0x268   :  { %7816 = vmatpush.bf16.msra.mxu3 %v9676_v19  ;;  %v13920_v19 = vld [vmem:[%s21962_s1 + $0x9f4] sm:$0xf0]  ;;  %v9995_v21 = vld [vmem:[%s21962_s1 + $0x7c8] sm:$0xf] }
 0x269   :  { %7803 = vmatpush.bf16.msra.mxu2 %v9548_v20  ;;  %v13888_v20 = vld [vmem:[%s21962_s1 + $0x8f4] sm:$0xf0]  ;;  %v10268_v31 = vor.u32 %v13920_v19, %v10267_v55  ;;  %v10251_v22 = vld [vmem:[%s21962_s1 + $0x9c8] sm:$0xf] }
 0x26a   :  { %7778 = vmatpush.bf16.msra.mxu0 %v9276_v11  ;;  %v10140_v3 = vor.u32 %v13888_v20, %v10139_v53  ;;  %v13820_v11 = vld [vmem:[%s21962_s1 + $0x6d4] sm:$0xf0]  ;;  %v9851_v32 = vld [vmem:[%s21962_s1 + $0x6a8] sm:$0xf]  ;;  %v10252_v38 = vor.u32 %v13916_v25, %v10251_v22 }
 0x26b   :  { %7791 = vmatpush.bf16.msra.mxu1 %v9404_v24  ;;  %v13852_v24 = vld [vmem:[%s21962_s1 + $0x7d4] sm:$0xf0]  ;;  %v9979_v36 = vld [vmem:[%s21962_s1 + $0x7a8] sm:$0xf]  ;;  %v9852_v20 = vor.u32 %v13816_v35, %v9851_v32 }
 0x26c   :  { %7817 = vmatpush.bf16.msra.mxu3 %v9660_v26  ;;  %v9868_v26 = vor.u32 %v13820_v11, %v9867_v33  ;;  %v9996_v30 = vor.u32 %v13852_v24, %v9995_v21  ;;  %v13848_v44 = vld [vmem:[%s21962_s1 + $0x7b4] sm:$0xf0]  ;;  %v10107_v50 = vld [vmem:[%s21962_s1 + $0x8a8] sm:$0xf] }
 0x26d   :  { %7804 = vmatpush.bf16.msra.mxu2 %v9532_v43  ;;  %v10123_v43 = vld [vmem:[%s21962_s1 + $0x8c8] sm:$0xf]  ;;  %v13912_v53 = vld [vmem:[%s21962_s1 + $0x9b4] sm:$0xf0] }
 0x26e   :  { %7779 = vmatpush.bf16.msra.mxu0 %v9260_v51  ;;  %v10124_v45 = vor.u32 %v13884_v39, %v10123_v43  ;;  %v13880_v51 = vld [vmem:[%s21962_s1 + $0x8b4] sm:$0xf0]  ;;  %v10235_v52 = vld [vmem:[%s21962_s1 + $0x9a8] sm:$0xf]  ;;  %v7573_v11 = vpop.f32.mrf.mxu0 }
 0x26f   :  { %7792 = vmatpush.bf16.msra.mxu1 %v9388_v54  ;;  %v9980_v54 = vor.u32 %v13848_v44, %v9979_v36  ;;  %v9835_v55 = vld [vmem:[%s21962_s1 + $0x688] sm:$0xf]  ;;  %v13812_v19 = vld [vmem:[%s21962_s1 + $0x694] sm:$0xf0]  ;;  %v7574_v24 = vadd.f32 %v7573_v11, %v18613_v61  ;;  %v7586_v39 = vpop.f32.mrf.mxu1 }
 0x270   :  { %7818 = vmatpush.bf16.msra.mxu3 %v9644_v56  ;;  %v9963_v56 = vld [vmem:[%s21962_s1 + $0x788] sm:$0xf]  ;;  %v13876_v33 = vld [vmem:[%s21962_s1 + $0x894] sm:$0xf0]  ;;  %v9836_v43 = vor.u32 %v13812_v19, %v9835_v55 }
 0x271   :  { %7805 = vmatpush.bf16.msra.mxu2 %v9516_v23  ;;  %7780 = vmatmul.bf16.vlgmr.msra.gmra.mxu0 %v15142_v27  ;;  %v10108_v23 = vor.u32 %v13880_v51, %v10107_v50  ;;  %v10219_v21 = vld [vmem:[%s21962_s1 + $0x988] sm:$0xf]  ;;  %v7587_v32 = vadd.f32 %v7586_v39, %v7574_v24  ;;  %v13840_v35 = vld [vmem:[%s21962_s1 + $0x774] sm:$0xf0] }
 0x272   :  { %7824 = vmatpush.bf16.msrb.mxu0 %v9884_v57  ;;  %7793 = vmatmul.bf16.vlgmr.msra.gmra.mxu1 %v15146_v29  ;;  %v10236_v57 = vor.u32 %v13912_v53, %v10235_v52  ;;  %v10075_v36 = vld [vmem:[%s21962_s1 + $0x868] sm:$0xf]  ;;  %v13904_v50 = vld [vmem:[%s21962_s1 + $0x974] sm:$0xf0] }
 0x273   :  { %7837 = vmatpush.bf16.msrb.mxu1 %v10012_v58  ;;  %7819 = vmatmul.bf16.vlgmr.msra.gmra.mxu3 %v15226_v2  ;;  %v13844_v58 = vld [vmem:[%s21962_s1 + $0x794] sm:$0xf0]  ;;  %v10203_v44 = vld [vmem:[%s21962_s1 + $0x968] sm:$0xf] }
 0x274   :  { %7863 = vmatpush.bf16.msrb.mxu3 %v10268_v31  ;;  %7806 = vmatmul.bf16.vlgmr.msra.gmra.mxu2 %v15222_v0  ;;  %v13908_v31 = vld [vmem:[%s21962_s1 + $0x994] sm:$0xf0]  ;;  %v9964_v22 = vor.u32 %v13844_v58, %v9963_v56  ;;  %v10204_v55 = vor.u32 %v13904_v50, %v10203_v44  ;;  %v10187_v11 = vld [vmem:[%s21962_s1 + $0x948] sm:$0xf] }
 0x275   :  { %7850 = vmatpush.bf16.msrb.mxu2 %v10140_v3  ;;  %v10091_v3 = vld [vmem:[%s21962_s1 + $0x888] sm:$0xf]  ;;  %v10220_v61 = vor.u32 %v13908_v31, %v10219_v21  ;;  %v13836_v56 = vld [vmem:[%s21962_s1 + $0x754] sm:$0xf0] }
 0x276   :  { %7825 = vmatpush.bf16.msrb.mxu0 %v9868_v26  ;;  %v10092_v25 = vor.u32 %v13876_v33, %v10091_v3  ;;  %v9819_v26 = vld [vmem:[%s21962_s1 + $0x668] sm:$0xf]  ;;  %v13868_v58 = vld [vmem:[%s21962_s1 + $0x854] sm:$0xf0]  ;;  %v7612_v33 = vpop.f32.mrf.mxu3  ;;  %v7575_v31 = vpop.f32.mrf.mxu0 }
 0x277   :  { %7838 = vmatpush.bf16.msrb.mxu1 %v9996_v30  ;;  %v13808_v30 = vld [vmem:[%s21962_s1 + $0x674] sm:$0xf0]  ;;  %v7599_v19 = vpop.f32.mrf.mxu2 }
 0x278   :  { %7864 = vmatpush.bf16.msrb.mxu3 %v10252_v38  ;;  %v13872_v38 = vld [vmem:[%s21962_s1 + $0x874] sm:$0xf0]  ;;  %v9820_v51 = vor.u32 %v13808_v30, %v9819_v26  ;;  %v7600_v3 = vadd.f32 %v7599_v19, %v7587_v32  ;;  %v9787_v26 = vld [vmem:[%s21962_s1 + $0x628] sm:$0xf] }
 0x279   :  { %7851 = vmatpush.bf16.msrb.mxu2 %v10124_v45  ;;  %v9947_v45 = vld [vmem:[%s21962_s1 + $0x768] sm:$0xf]  ;;  %v10076_v53 = vor.u32 %v13872_v38, %v10075_v36  ;;  %v13900_v21 = vld [vmem:[%s21962_s1 + $0x954] sm:$0xf0] }
 0x27a   :  { %7826 = vmatpush.bf16.msrb.mxu0 %v9852_v20  ;;  %v9948_v52 = vor.u32 %v13840_v35, %v9947_v45  ;;  %v9803_v20 = vld [vmem:[%s21962_s1 + $0x648] sm:$0xf]  ;;  %v18812_v39 = vadd.f32 %v7612_v33, %v7600_v3  ;;  %v13800_v30 = vld [vmem:[%s21962_s1 + $0x634] sm:$0xf0] }
 0x27b   :  { %7839 = vmatpush.bf16.msrb.mxu1 %v9980_v54  ;;  %v13804_v54 = vld [vmem:[%s21962_s1 + $0x654] sm:$0xf0]  ;;  %v9915_v45 = vld [vmem:[%s21962_s1 + $0x728] sm:$0xf]  ;;  %v9788_v50 = vor.u32 %v13800_v30, %v9787_v26 }
 0x27c   :  { %7865 = vmatpush.bf16.msrb.mxu3 %v10236_v57  ;;  %v10059_v57 = vld [vmem:[%s21962_s1 + $0x848] sm:$0xf]  ;;  %v9804_v24 = vor.u32 %v13804_v54, %v9803_v20  ;;  %v13832_v32 = vld [vmem:[%s21962_s1 + $0x734] sm:$0xf0] }
 0x27d   :  { %7852 = vmatpush.bf16.msrb.mxu2 %v10108_v23  ;;  %v9931_v23 = vld [vmem:[%s21962_s1 + $0x748] sm:$0xf]  ;;  %v13864_v36 = vld [vmem:[%s21962_s1 + $0x834] sm:$0xf0] }
 0x27e   :  { %7827 = vmatpush.bf16.msrb.mxu0 %v9836_v43  ;;  %v7588_v43 = vpop.f32.mrf.mxu1  ;;  %v10043_v35 = vld [vmem:[%s21962_s1 + $0x828] sm:$0xf]  ;;  %v13896_v44 = vld [vmem:[%s21962_s1 + $0x934] sm:$0xf0]  ;;  %v7614_v31 = vpop.f32.mrf.mxu3 }
 0x27f   :  { %7840 = vmatpush.bf16.msrb.mxu1 %v9964_v22  ;;  %v9932_v22 = vor.u32 %v13836_v56, %v9931_v23  ;;  %v10171_v38 = vld [vmem:[%s21962_s1 + $0x928] sm:$0xf]  ;;  %v10044_v20 = vor.u32 %v13864_v36, %v10043_v35  ;;  %v13828_v23 = vld [vmem:[%s21962_s1 + $0x714] sm:$0xf0]  ;;  %v7601_v3 = vpop.f32.mrf.mxu2 }
 0x280   :  { %7866 = vmatpush.bf16.msrb.mxu3 %v10220_v61  ;;  %v10188_v61 = vor.u32 %v13900_v21, %v10187_v11  ;;  %v9899_v54 = vld [vmem:[%s21962_s1 + $0x708] sm:$0xf]  ;;  %v10172_v19 = vor.u32 %v13896_v44, %v10171_v38  ;;  %v13860_v56 = vld [vmem:[%s21962_s1 + $0x814] sm:$0xf0] }
 0x281   :  { %7853 = vmatpush.bf16.msrb.mxu2 %v10092_v25  ;;  %v10060_v25 = vor.u32 %v13868_v58, %v10059_v57  ;;  %v10155_v57 = vld [vmem:[%s21962_s1 + $0x908] sm:$0xf]  ;;  %v13892_v58 = vld [vmem:[%s21962_s1 + $0x914] sm:$0xf0]  ;;  %v9900_v26 = vor.u32 %v13828_v23, %v9899_v54 }
 0x282   :  { %7828 = vmatpush.bf16.msrb.mxu0 %v9820_v51  ;;  %v9771_v51 = vld [vmem:[%s21962_s1 + $0x608] sm:$0xf]  ;;  %v13952_v11 = vld [vmem:[%s21962_s1 + $0xaf4] sm:$0xf0] }
 0x283   :  { %7841 = vmatpush.bf16.msrb.mxu1 %v9948_v52  ;;  %v13796_v52 = vld [vmem:[%s21962_s1 + $0x614] sm:$0xf0]  ;;  %v10395_v33 = vld [vmem:[%s21962_s1 + $0xae8] sm:$0xf] }
 0x284   :  { %7867 = vmatpush.bf16.msrb.mxu3 %v10204_v55  ;;  %v10027_v55 = vld [vmem:[%s21962_s1 + $0x808] sm:$0xf]  ;;  %v13984_v43 = vld [vmem:[%s21962_s1 + $0xbf4] sm:$0xf0]  ;;  %v10396_v35 = vor.u32 %v13952_v11, %v10395_v33 }
 0x285   :  { %7854 = vmatpush.bf16.msrb.mxu2 %v10076_v53  ;;  %v9916_v53 = vor.u32 %v13832_v32, %v9915_v45  ;;  %v10523_v21 = vld [vmem:[%s21962_s1 + $0xbe8] sm:$0xf]  ;;  %v10028_v30 = vor.u32 %v13860_v56, %v10027_v55  ;;  %v10156_v32 = vor.u32 %v13892_v58, %v10155_v57  ;;  %v14012_v54 = vld [vmem:[%s21962_s1 + $0xcd4] sm:$0xf0] }
 0x286   :  { %7829 = vmatpush.bf16.msrb.mxu0 %v9804_v24  ;;  %v9772_v24 = vor.u32 %v13796_v52, %v9771_v51  ;;  %v10779_v45 = vld [vmem:[%s21962_s1 + $0xde8] sm:$0xf]  ;;  %v10524_v36 = vor.u32 %v13984_v43, %v10523_v21  ;;  %v14044_v55 = vld [vmem:[%s21962_s1 + $0xdd4] sm:$0xf0] }
 0x287   :  { %7842 = vmatpush.bf16.msrb.mxu1 %v9932_v22  ;;  %v10651_v22 = vld [vmem:[%s21962_s1 + $0xce8] sm:$0xf]  ;;  %v13944_v3 = vld [vmem:[%s21962_s1 + $0xab4] sm:$0xf0] }
 0x288   :  { %7868 = vmatpush.bf16.msrb.mxu3 %v10188_v61  ;;  %v14048_v61 = vld [vmem:[%s21962_s1 + $0xdf4] sm:$0xf0]  ;;  %v10379_v44 = vld [vmem:[%s21962_s1 + $0xac8] sm:$0xf] }
 0x289   :  { %7855 = vmatpush.bf16.msrb.mxu2 %v10060_v25  ;;  %v14016_v25 = vld [vmem:[%s21962_s1 + $0xcf4] sm:$0xf0]  ;;  %v10507_v51 = vld [vmem:[%s21962_s1 + $0xbc8] sm:$0xf]  ;;  %v10780_v52 = vor.u32 %v14048_v61, %v10779_v45 }
 0x28a   :  { %7830 = vmatpush.bf16.msrb.mxu0 %v9788_v50  ;;  %v10652_v38 = vor.u32 %v14016_v25, %v10651_v22  ;;  %v13948_v50 = vld [vmem:[%s21962_s1 + $0xad4] sm:$0xf0]  ;;  %v10763_v23 = vld [vmem:[%s21962_s1 + $0xdc8] sm:$0xf] }
 0x28b   :  { %7843 = vmatpush.bf16.msrb.mxu1 %v9916_v53  ;;  %v13980_v53 = vld [vmem:[%s21962_s1 + $0xbd4] sm:$0xf0]  ;;  %v10363_v58 = vld [vmem:[%s21962_s1 + $0xaa8] sm:$0xf]  ;;  %v10764_v11 = vor.u32 %v14044_v55, %v10763_v23 }
 0x28c   :  { %7869 = vmatpush.bf16.msrb.mxu3 %v10172_v19  ;;  %v10380_v19 = vor.u32 %v13948_v50, %v10379_v44  ;;  %v10508_v56 = vor.u32 %v13980_v53, %v10507_v51  ;;  %v10491_v33 = vld [vmem:[%s21962_s1 + $0xba8] sm:$0xf]  ;;  %v13976_v21 = vld [vmem:[%s21962_s1 + $0xbb4] sm:$0xf0]  ;;  %v10364_v25 = vor.u32 %v13944_v3, %v10363_v58 }
 0x28d   :  { %7856 = vmatpush.bf16.msrb.mxu2 %v10044_v20  ;;  %v10635_v20 = vld [vmem:[%s21962_s1 + $0xcc8] sm:$0xf]  ;;  %v14040_v22 = vld [vmem:[%s21962_s1 + $0xdb4] sm:$0xf0] }
 0x28e   :  { %7831 = vmatpush.bf16.msrb.mxu0 %v9772_v24  ;;  %v10636_v57 = vor.u32 %v14012_v54, %v10635_v20  ;;  %v10619_v31 = vld [vmem:[%s21962_s1 + $0xca8] sm:$0xf]  ;;  %v14008_v24 = vld [vmem:[%s21962_s1 + $0xcb4] sm:$0xf0]  ;;  %v7625_v50 = vpop.f32.mrf.mxu0 }
 0x28f   :  { %7844 = vmatpush.bf16.msrb.mxu1 %v9900_v26  ;;  %v10747_v43 = vld [vmem:[%s21962_s1 + $0xda8] sm:$0xf]  ;;  %v10492_v26 = vor.u32 %v13976_v21, %v10491_v33  ;;  %v13940_v61 = vld [vmem:[%s21962_s1 + $0xa94] sm:$0xf0]  ;;  %v7626_v53 = vadd.f32 %v7625_v50, %v18812_v39  ;;  %v7638_v54 = vpop.f32.mrf.mxu1 }
 0x290   :  { %7870 = vmatpush.bf16.msrb.mxu3 %v10156_v32  ;;  %v10347_v45 = vld [vmem:[%s21962_s1 + $0xa88] sm:$0xf]  ;;  %v14004_v44 = vld [vmem:[%s21962_s1 + $0xc94] sm:$0xf0] }
 0x291   :  { %7857 = vmatpush.bf16.msrb.mxu2 %v10028_v30  ;;  %7832 = vmatmul.bf16.vlgmr.msrb.gmra.mxu0 %v15217_v60  ;;  %v10620_v30 = vor.u32 %v14008_v24, %v10619_v31  ;;  %v10475_v32 = vld [vmem:[%s21962_s1 + $0xb88] sm:$0xf]  ;;  %v10348_v20 = vor.u32 %v13940_v61, %v10347_v45  ;;  %v7639_v58 = vadd.f32 %v7638_v54, %v7626_v53  ;;  %v13968_v3 = vld [vmem:[%s21962_s1 + $0xb74] sm:$0xf0] }
 0x292   :  { %7876 = vmatpush.bf16.msra.mxu0 %v10396_v35  ;;  %7845 = vmatmul.bf16.vlgmr.msrb.gmra.mxu1 %v15224_v1  ;;  %v10748_v35 = vor.u32 %v14040_v22, %v10747_v43  ;;  %v10731_v51 = vld [vmem:[%s21962_s1 + $0xd88] sm:$0xf]  ;;  %v14032_v31 = vld [vmem:[%s21962_s1 + $0xd74] sm:$0xf0] }
 0x293   :  { %7889 = vmatpush.bf16.msra.mxu1 %v10524_v36  ;;  %7871 = vmatmul.bf16.vlgmr.msrb.gmra.mxu3 %v15482_v16  ;;  %v13972_v36 = vld [vmem:[%s21962_s1 + $0xb94] sm:$0xf0]  ;;  %v10587_v33 = vld [vmem:[%s21962_s1 + $0xc68] sm:$0xf] }
 0x294   :  { %7915 = vmatpush.bf16.msra.mxu3 %v10780_v52  ;;  %7858 = vmatmul.bf16.vlgmr.msrb.gmra.mxu2 %v15472_v12  ;;  %v14036_v52 = vld [vmem:[%s21962_s1 + $0xd94] sm:$0xf0]  ;;  %v10476_v23 = vor.u32 %v13972_v36, %v10475_v32  ;;  %v10715_v21 = vld [vmem:[%s21962_s1 + $0xd68] sm:$0xf] }
 0x295   :  { %7902 = vmatpush.bf16.msra.mxu2 %v10652_v38  ;;  %v10603_v38 = vld [vmem:[%s21962_s1 + $0xc88] sm:$0xf]  ;;  %v10732_v39 = vor.u32 %v14036_v52, %v10731_v51  ;;  %v10716_v45 = vor.u32 %v14032_v31, %v10715_v21  ;;  %v13964_v32 = vld [vmem:[%s21962_s1 + $0xb54] sm:$0xf0] }
 0x296   :  { %7877 = vmatpush.bf16.msra.mxu0 %v10380_v19  ;;  %v10604_v55 = vor.u32 %v14004_v44, %v10603_v38  ;;  %v10331_v19 = vld [vmem:[%s21962_s1 + $0xa68] sm:$0xf]  ;;  %v13996_v36 = vld [vmem:[%s21962_s1 + $0xc54] sm:$0xf0]  ;;  %v7664_v44 = vpop.f32.mrf.mxu3  ;;  %v7627_v52 = vpop.f32.mrf.mxu0 }
 0x297   :  { %7890 = vmatpush.bf16.msra.mxu1 %v10508_v56  ;;  %v13936_v56 = vld [vmem:[%s21962_s1 + $0xa74] sm:$0xf0]  ;;  %v7651_v61 = vpop.f32.mrf.mxu2  ;;  %v10699_v50 = vld [vmem:[%s21962_s1 + $0xd48] sm:$0xf] }
 0x298   :  { %7916 = vmatpush.bf16.msra.mxu3 %v10764_v11  ;;  %v14000_v11 = vld [vmem:[%s21962_s1 + $0xc74] sm:$0xf0]  ;;  %v10332_v24 = vor.u32 %v13936_v56, %v10331_v19  ;;  %v7652_v38 = vadd.f32 %v7651_v61, %v7639_v58  ;;  %v10299_v19 = vld [vmem:[%s21962_s1 + $0xa28] sm:$0xf] }
 0x299   :  { %7903 = vmatpush.bf16.msra.mxu2 %v10636_v57  ;;  %v10459_v57 = vld [vmem:[%s21962_s1 + $0xb68] sm:$0xf]  ;;  %v10588_v22 = vor.u32 %v14000_v11, %v10587_v33  ;;  %v14028_v51 = vld [vmem:[%s21962_s1 + $0xd54] sm:$0xf0] }
 0x29a   :  { %7878 = vmatpush.bf16.msra.mxu0 %v10364_v25  ;;  %v10460_v43 = vor.u32 %v13968_v3, %v10459_v57  ;;  %v10315_v25 = vld [vmem:[%s21962_s1 + $0xa48] sm:$0xf]  ;;  %v19011_v54 = vadd.f32 %v7664_v44, %v7652_v38  ;;  %v13928_v56 = vld [vmem:[%s21962_s1 + $0xa34] sm:$0xf0] }
 0x29b   :  { %7891 = vmatpush.bf16.msra.mxu1 %v10492_v26  ;;  %v13932_v26 = vld [vmem:[%s21962_s1 + $0xa54] sm:$0xf0]  ;;  %v10427_v57 = vld [vmem:[%s21962_s1 + $0xb28] sm:$0xf]  ;;  %v10300_v31 = vor.u32 %v13928_v56, %v10299_v19 }
 0x29c   :  { %7917 = vmatpush.bf16.msra.mxu3 %v10748_v35  ;;  %v10571_v35 = vld [vmem:[%s21962_s1 + $0xc48] sm:$0xf]  ;;  %v10316_v53 = vor.u32 %v13932_v26, %v10315_v25  ;;  %v13960_v58 = vld [vmem:[%s21962_s1 + $0xb34] sm:$0xf0] }
 0x29d   :  { %7904 = vmatpush.bf16.msra.mxu2 %v10620_v30  ;;  %v10443_v30 = vld [vmem:[%s21962_s1 + $0xb48] sm:$0xf]  ;;  %v13992_v33 = vld [vmem:[%s21962_s1 + $0xc34] sm:$0xf0] }
 0x29e   :  { %7879 = vmatpush.bf16.msra.mxu0 %v10348_v20  ;;  %v7640_v20 = vpop.f32.mrf.mxu1  ;;  %v10555_v3 = vld [vmem:[%s21962_s1 + $0xc28] sm:$0xf]  ;;  %v14024_v21 = vld [vmem:[%s21962_s1 + $0xd34] sm:$0xf0]  ;;  %v7666_v52 = vpop.f32.mrf.mxu3 }
 0x29f   :  { %7892 = vmatpush.bf16.msra.mxu1 %v10476_v23  ;;  %v10444_v23 = vor.u32 %v13964_v32, %v10443_v30  ;;  %v10683_v11 = vld [vmem:[%s21962_s1 + $0xd28] sm:$0xf]  ;;  %v10556_v25 = vor.u32 %v13992_v33, %v10555_v3  ;;  %v13956_v30 = vld [vmem:[%s21962_s1 + $0xb14] sm:$0xf0]  ;;  %v7653_v38 = vpop.f32.mrf.mxu2 }
 0x2a0   :  { %7918 = vmatpush.bf16.msra.mxu3 %v10732_v39  ;;  %v10700_v39 = vor.u32 %v14028_v51, %v10699_v50  ;;  %v10411_v26 = vld [vmem:[%s21962_s1 + $0xb08] sm:$0xf]  ;;  %v10684_v61 = vor.u32 %v14024_v21, %v10683_v11  ;;  %v13988_v32 = vld [vmem:[%s21962_s1 + $0xc14] sm:$0xf0] }
 0x2a1   :  { %7905 = vmatpush.bf16.msra.mxu2 %v10604_v55  ;;  %v10572_v55 = vor.u32 %v13996_v36, %v10571_v35  ;;  %v10667_v35 = vld [vmem:[%s21962_s1 + $0xd08] sm:$0xf]  ;;  %v14020_v36 = vld [vmem:[%s21962_s1 + $0xd14] sm:$0xf0]  ;;  %v10412_v19 = vor.u32 %v13956_v30, %v10411_v26 }
 0x2a2   :  { %7880 = vmatpush.bf16.msra.mxu0 %v10332_v24  ;;  %v10283_v24 = vld [vmem:[%s21962_s1 + $0xa08] sm:$0xf]  ;;  %v14080_v50 = vld [vmem:[%s21962_s1 + $0xef4] sm:$0xf0] }
 0x2a3   :  { %7893 = vmatpush.bf16.msra.mxu1 %v10460_v43  ;;  %v13924_v43 = vld [vmem:[%s21962_s1 + $0xa14] sm:$0xf0]  ;;  %v10907_v44 = vld [vmem:[%s21962_s1 + $0xee8] sm:$0xf] }
 0x2a4   :  { %7919 = vmatpush.bf16.msra.mxu3 %v10716_v45  ;;  %v10539_v45 = vld [vmem:[%s21962_s1 + $0xc08] sm:$0xf]  ;;  %v14112_v20 = vld [vmem:[%s21962_s1 + $0xff4] sm:$0xf0]  ;;  %v10908_v3 = vor.u32 %v14080_v50, %v10907_v44 }
 0x2a5   :  { %7906 = vmatpush.bf16.msra.mxu2 %v10588_v22  ;;  %v10428_v22 = vor.u32 %v13960_v58, %v10427_v57  ;;  %v11035_v51 = vld [vmem:[%s21962_s1 + $0xfe8] sm:$0xf]  ;;  %v10540_v56 = vor.u32 %v13988_v32, %v10539_v45  ;;  %v10668_v58 = vor.u32 %v14020_v36, %v10667_v35  ;;  %v14140_v26 = vld [vmem:[%s21962_s1 + $0x10d4] sm:$0xf0] }
 0x2a6   :  { %7881 = vmatpush.bf16.msra.mxu0 %v10316_v53  ;;  %v10284_v53 = vor.u32 %v13924_v43, %v10283_v24  ;;  %v11291_v57 = vld [vmem:[%s21962_s1 + $0x11e8] sm:$0xf]  ;;  %v11036_v33 = vor.u32 %v14112_v20, %v11035_v51  ;;  %v14172_v45 = vld [vmem:[%s21962_s1 + $0x11d4] sm:$0xf0] }
 0x2a7   :  { %7894 = vmatpush.bf16.msra.mxu1 %v10444_v23  ;;  %v11163_v23 = vld [vmem:[%s21962_s1 + $0x10e8] sm:$0xf]  ;;  %v14072_v38 = vld [vmem:[%s21962_s1 + $0xeb4] sm:$0xf0] }
 0x2a8   :  { %7920 = vmatpush.bf16.msra.mxu3 %v10700_v39  ;;  %v14176_v39 = vld [vmem:[%s21962_s1 + $0x11f4] sm:$0xf0]  ;;  %v10891_v21 = vld [vmem:[%s21962_s1 + $0xec8] sm:$0xf] }
 0x2a9   :  { %7907 = vmatpush.bf16.msra.mxu2 %v10572_v55  ;;  %v14144_v55 = vld [vmem:[%s21962_s1 + $0x10f4] sm:$0xf0]  ;;  %v11019_v24 = vld [vmem:[%s21962_s1 + $0xfc8] sm:$0xf]  ;;  %v11292_v43 = vor.u32 %v14176_v39, %v11291_v57 }
 0x2aa   :  { %7882 = vmatpush.bf16.msra.mxu0 %v10300_v31  ;;  %v11164_v11 = vor.u32 %v14144_v55, %v11163_v23  ;;  %v14076_v31 = vld [vmem:[%s21962_s1 + $0xed4] sm:$0xf0]  ;;  %v11275_v30 = vld [vmem:[%s21962_s1 + $0x11c8] sm:$0xf] }
 0x2ab   :  { %7895 = vmatpush.bf16.msra.mxu1 %v10428_v22  ;;  %v14108_v22 = vld [vmem:[%s21962_s1 + $0xfd4] sm:$0xf0]  ;;  %v10875_v36 = vld [vmem:[%s21962_s1 + $0xea8] sm:$0xf]  ;;  %v11276_v50 = vor.u32 %v14172_v45, %v11275_v30 }
 0x2ac   :  { %7921 = vmatpush.bf16.msra.mxu3 %v10684_v61  ;;  %v10892_v61 = vor.u32 %v14076_v31, %v10891_v21  ;;  %v11020_v32 = vor.u32 %v14108_v22, %v11019_v24  ;;  %v11003_v44 = vld [vmem:[%s21962_s1 + $0xfa8] sm:$0xf]  ;;  %v14104_v51 = vld [vmem:[%s21962_s1 + $0xfb4] sm:$0xf0]  ;;  %v10876_v55 = vor.u32 %v14072_v38, %v10875_v36 }
 0x2ad   :  { %7908 = vmatpush.bf16.msra.mxu2 %v10556_v25  ;;  %v11147_v25 = vld [vmem:[%s21962_s1 + $0x10c8] sm:$0xf]  ;;  %v14168_v23 = vld [vmem:[%s21962_s1 + $0x11b4] sm:$0xf0] }
 0x2ae   :  { %7883 = vmatpush.bf16.msra.mxu0 %v10284_v53  ;;  %v11148_v35 = vor.u32 %v14140_v26, %v11147_v25  ;;  %v11131_v52 = vld [vmem:[%s21962_s1 + $0x10a8] sm:$0xf]  ;;  %v14136_v53 = vld [vmem:[%s21962_s1 + $0x10b4] sm:$0xf0]  ;;  %v7677_v31 = vpop.f32.mrf.mxu0 }
 0x2af   :  { %7896 = vmatpush.bf16.msra.mxu1 %v10412_v19  ;;  %v11259_v20 = vld [vmem:[%s21962_s1 + $0x11a8] sm:$0xf]  ;;  %v11004_v19 = vor.u32 %v14104_v51, %v11003_v44  ;;  %v14068_v39 = vld [vmem:[%s21962_s1 + $0xe94] sm:$0xf0]  ;;  %v7678_v22 = vadd.f32 %v7677_v31, %v19011_v54  ;;  %v7690_v26 = vpop.f32.mrf.mxu1 }
 0x2b0   :  { %7922 = vmatpush.bf16.msra.mxu3 %v10668_v58  ;;  %v10859_v57 = vld [vmem:[%s21962_s1 + $0xe88] sm:$0xf]  ;;  %v14132_v21 = vld [vmem:[%s21962_s1 + $0x1094] sm:$0xf0] }
 0x2b1   :  { %7909 = vmatpush.bf16.msra.mxu2 %v10540_v56  ;;  %7884 = vmatmul.bf16.vlgmr.msra.gmra.mxu0 %v15480_v15  ;;  %v11132_v56 = vor.u32 %v14136_v53, %v11131_v52  ;;  %v10987_v58 = vld [vmem:[%s21962_s1 + $0xf88] sm:$0xf]  ;;  %v10860_v25 = vor.u32 %v14068_v39, %v10859_v57  ;;  %v7691_v36 = vadd.f32 %v7690_v26, %v7678_v22  ;;  %v14096_v38 = vld [vmem:[%s21962_s1 + $0xf74] sm:$0xf0] }
 0x2b2   :  { %7928 = vmatpush.bf16.msrb.mxu0 %v10908_v3  ;;  %7897 = vmatmul.bf16.vlgmr.msra.gmra.mxu1 %v15484_v17  ;;  %v11260_v3 = vor.u32 %v14168_v23, %v11259_v20  ;;  %v11243_v24 = vld [vmem:[%s21962_s1 + $0x1188] sm:$0xf]  ;;  %v14160_v52 = vld [vmem:[%s21962_s1 + $0x1174] sm:$0xf0] }
 0x2b3   :  { %7941 = vmatpush.bf16.msrb.mxu1 %v11036_v33  ;;  %7923 = vmatmul.bf16.vlgmr.msra.gmra.mxu3 %v15650_v48  ;;  %v14100_v33 = vld [vmem:[%s21962_s1 + $0xf94] sm:$0xf0]  ;;  %v11099_v44 = vld [vmem:[%s21962_s1 + $0x1068] sm:$0xf] }
 0x2b4   :  { %7967 = vmatpush.bf16.msrb.mxu3 %v11292_v43  ;;  %7910 = vmatmul.bf16.vlgmr.msra.gmra.mxu2 %v15646_v46  ;;  %v14164_v43 = vld [vmem:[%s21962_s1 + $0x1194] sm:$0xf0]  ;;  %v10988_v30 = vor.u32 %v14100_v33, %v10987_v58  ;;  %v11227_v51 = vld [vmem:[%s21962_s1 + $0x1168] sm:$0xf] }
 0x2b5   :  { %7954 = vmatpush.bf16.msrb.mxu2 %v11164_v11  ;;  %v11115_v11 = vld [vmem:[%s21962_s1 + $0x1088] sm:$0xf]  ;;  %v11244_v54 = vor.u32 %v14164_v43, %v11243_v24  ;;  %v11228_v57 = vor.u32 %v14160_v52, %v11227_v51  ;;  %v14092_v58 = vld [vmem:[%s21962_s1 + $0xf54] sm:$0xf0] }
 0x2b6   :  { %7929 = vmatpush.bf16.msrb.mxu0 %v10892_v61  ;;  %v11116_v45 = vor.u32 %v14132_v21, %v11115_v11  ;;  %v10843_v61 = vld [vmem:[%s21962_s1 + $0xe68] sm:$0xf]  ;;  %v14124_v33 = vld [vmem:[%s21962_s1 + $0x1054] sm:$0xf0]  ;;  %v7716_v21 = vpop.f32.mrf.mxu3  ;;  %v7679_v43 = vpop.f32.mrf.mxu0 }
 0x2b7   :  { %7942 = vmatpush.bf16.msrb.mxu1 %v11020_v32  ;;  %v14064_v32 = vld [vmem:[%s21962_s1 + $0xe74] sm:$0xf0]  ;;  %v7703_v39 = vpop.f32.mrf.mxu2  ;;  %v11211_v31 = vld [vmem:[%s21962_s1 + $0x1148] sm:$0xf] }
 0x2b8   :  { %7968 = vmatpush.bf16.msrb.mxu3 %v11276_v50  ;;  %v14128_v50 = vld [vmem:[%s21962_s1 + $0x1074] sm:$0xf0]  ;;  %v10844_v53 = vor.u32 %v14064_v32, %v10843_v61  ;;  %v7704_v11 = vadd.f32 %v7703_v39, %v7691_v36  ;;  %v10811_v61 = vld [vmem:[%s21962_s1 + $0xe28] sm:$0xf] }
 0x2b9   :  { %7955 = vmatpush.bf16.msrb.mxu2 %v11148_v35  ;;  %v10971_v35 = vld [vmem:[%s21962_s1 + $0xf68] sm:$0xf]  ;;  %v11100_v23 = vor.u32 %v14128_v50, %v11099_v44  ;;  %v14156_v24 = vld [vmem:[%s21962_s1 + $0x1154] sm:$0xf0] }
 0x2ba   :  { %7930 = vmatpush.bf16.msrb.mxu0 %v10876_v55  ;;  %v10972_v20 = vor.u32 %v14096_v38, %v10971_v35  ;;  %v10827_v55 = vld [vmem:[%s21962_s1 + $0xe48] sm:$0xf]  ;;  %v19210_v26 = vadd.f32 %v7716_v21, %v7704_v11  ;;  %v14056_v32 = vld [vmem:[%s21962_s1 + $0xe34] sm:$0xf0] }
 0x2bb   :  { %7943 = vmatpush.bf16.msrb.mxu1 %v11004_v19  ;;  %v14060_v19 = vld [vmem:[%s21962_s1 + $0xe54] sm:$0xf0]  ;;  %v10939_v35 = vld [vmem:[%s21962_s1 + $0xf28] sm:$0xf]  ;;  %v10812_v52 = vor.u32 %v14056_v32, %v10811_v61 }
 0x2bc   :  { %7969 = vmatpush.bf16.msrb.mxu3 %v11260_v3  ;;  %v11083_v3 = vld [vmem:[%s21962_s1 + $0x1048] sm:$0xf]  ;;  %v10828_v22 = vor.u32 %v14060_v19, %v10827_v55  ;;  %v14088_v36 = vld [vmem:[%s21962_s1 + $0xf34] sm:$0xf0] }
 0x2bd   :  { %7956 = vmatpush.bf16.msrb.mxu2 %v11132_v56  ;;  %v10955_v56 = vld [vmem:[%s21962_s1 + $0xf48] sm:$0xf]  ;;  %v14120_v44 = vld [vmem:[%s21962_s1 + $0x1034] sm:$0xf0] }
 0x2be   :  { %7931 = vmatpush.bf16.msrb.mxu0 %v10860_v25  ;;  %v7692_v25 = vpop.f32.mrf.mxu1  ;;  %v11067_v38 = vld [vmem:[%s21962_s1 + $0x1028] sm:$0xf]  ;;  %v14152_v51 = vld [vmem:[%s21962_s1 + $0x1134] sm:$0xf0]  ;;  %v7718_v43 = vpop.f32.mrf.mxu3 }
 0x2bf   :  { %7944 = vmatpush.bf16.msrb.mxu1 %v10988_v30  ;;  %v10956_v30 = vor.u32 %v14092_v58, %v10955_v56  ;;  %v11195_v50 = vld [vmem:[%s21962_s1 + $0x1128] sm:$0xf]  ;;  %v11068_v55 = vor.u32 %v14120_v44, %v11067_v38  ;;  %v14084_v56 = vld [vmem:[%s21962_s1 + $0xf14] sm:$0xf0]  ;;  %v7705_v11 = vpop.f32.mrf.mxu2 }
 0x2c0   :  { %7970 = vmatpush.bf16.msrb.mxu3 %v11244_v54  ;;  %v11212_v54 = vor.u32 %v14156_v24, %v11211_v31  ;;  %v10923_v19 = vld [vmem:[%s21962_s1 + $0xf08] sm:$0xf]  ;;  %v11196_v39 = vor.u32 %v14152_v51, %v11195_v50  ;;  %v14116_v58 = vld [vmem:[%s21962_s1 + $0x1014] sm:$0xf0] }
 0x2c1   :  { %7957 = vmatpush.bf16.msrb.mxu2 %v11116_v45  ;;  %v11084_v45 = vor.u32 %v14124_v33, %v11083_v3  ;;  %v11179_v3 = vld [vmem:[%s21962_s1 + $0x1108] sm:$0xf]  ;;  %v14148_v33 = vld [vmem:[%s21962_s1 + $0x1114] sm:$0xf0]  ;;  %v10924_v61 = vor.u32 %v14084_v56, %v10923_v19 }
 0x2c2   :  { %7932 = vmatpush.bf16.msrb.mxu0 %v10844_v53  ;;  %v10795_v53 = vld [vmem:[%s21962_s1 + $0xe08] sm:$0xf]  ;;  %v14208_v31 = vld [vmem:[%s21962_s1 + $0x12f4] sm:$0xf0] }
 0x2c3   :  { %7945 = vmatpush.bf16.msrb.mxu1 %v10972_v20  ;;  %v14052_v20 = vld [vmem:[%s21962_s1 + $0xe14] sm:$0xf0]  ;;  %v11419_v21 = vld [vmem:[%s21962_s1 + $0x12e8] sm:$0xf] }
 0x2c4   :  { %7971 = vmatpush.bf16.msrb.mxu3 %v11228_v57  ;;  %v11051_v57 = vld [vmem:[%s21962_s1 + $0x1008] sm:$0xf]  ;;  %v14240_v25 = vld [vmem:[%s21962_s1 + $0x13f4] sm:$0xf0]  ;;  %v11420_v38 = vor.u32 %v14208_v31, %v11419_v21 }
 0x2c5   :  { %7958 = vmatpush.bf16.msrb.mxu2 %v11100_v23  ;;  %v10940_v23 = vor.u32 %v14088_v36, %v10939_v35  ;;  %v11547_v24 = vld [vmem:[%s21962_s1 + $0x13e8] sm:$0xf]  ;;  %v11052_v32 = vor.u32 %v14116_v58, %v11051_v57  ;;  %v11180_v36 = vor.u32 %v14148_v33, %v11179_v3  ;;  %v14268_v19 = vld [vmem:[%s21962_s1 + $0x14d4] sm:$0xf0] }
 0x2c6   :  { %7933 = vmatpush.bf16.msrb.mxu0 %v10828_v22  ;;  %v10796_v22 = vor.u32 %v14052_v20, %v10795_v53  ;;  %v11803_v35 = vld [vmem:[%s21962_s1 + $0x15e8] sm:$0xf]  ;;  %v11548_v44 = vor.u32 %v14240_v25, %v11547_v24  ;;  %v14300_v57 = vld [vmem:[%s21962_s1 + $0x15d4] sm:$0xf0] }
 0x2c7   :  { %7946 = vmatpush.bf16.msrb.mxu1 %v10956_v30  ;;  %v11675_v30 = vld [vmem:[%s21962_s1 + $0x14e8] sm:$0xf]  ;;  %v14200_v11 = vld [vmem:[%s21962_s1 + $0x12b4] sm:$0xf0] }
 0x2c8   :  { %7972 = vmatpush.bf16.msrb.mxu3 %v11212_v54  ;;  %v14304_v54 = vld [vmem:[%s21962_s1 + $0x15f4] sm:$0xf0]  ;;  %v11403_v51 = vld [vmem:[%s21962_s1 + $0x12c8] sm:$0xf] }
 0x2c9   :  { %7959 = vmatpush.bf16.msrb.mxu2 %v11084_v45  ;;  %v14272_v45 = vld [vmem:[%s21962_s1 + $0x14f4] sm:$0xf0]  ;;  %v11531_v53 = vld [vmem:[%s21962_s1 + $0x13c8] sm:$0xf]  ;;  %v11804_v20 = vor.u32 %v14304_v54, %v11803_v35 }
 0x2ca   :  { %7934 = vmatpush.bf16.msrb.mxu0 %v10812_v52  ;;  %v11676_v50 = vor.u32 %v14272_v45, %v11675_v30  ;;  %v14204_v52 = vld [vmem:[%s21962_s1 + $0x12d4] sm:$0xf0]  ;;  %v11787_v56 = vld [vmem:[%s21962_s1 + $0x15c8] sm:$0xf] }
 0x2cb   :  { %7947 = vmatpush.bf16.msrb.mxu1 %v10940_v23  ;;  %v14236_v23 = vld [vmem:[%s21962_s1 + $0x13d4] sm:$0xf0]  ;;  %v11387_v33 = vld [vmem:[%s21962_s1 + $0x12a8] sm:$0xf]  ;;  %v11788_v31 = vor.u32 %v14300_v57, %v11787_v56 }
 0x2cc   :  { %7973 = vmatpush.bf16.msrb.mxu3 %v11196_v39  ;;  %v11404_v39 = vor.u32 %v14204_v52, %v11403_v51  ;;  %v11532_v58 = vor.u32 %v14236_v23, %v11531_v53  ;;  %v11515_v21 = vld [vmem:[%s21962_s1 + $0x13a8] sm:$0xf]  ;;  %v14232_v24 = vld [vmem:[%s21962_s1 + $0x13b4] sm:$0xf0]  ;;  %v11388_v45 = vor.u32 %v14200_v11, %v11387_v33 }
 0x2cd   :  { %7960 = vmatpush.bf16.msrb.mxu2 %v11068_v55  ;;  %v11659_v55 = vld [vmem:[%s21962_s1 + $0x14c8] sm:$0xf]  ;;  %v14296_v30 = vld [vmem:[%s21962_s1 + $0x15b4] sm:$0xf0] }
 0x2ce   :  { %7935 = vmatpush.bf16.msrb.mxu0 %v10796_v22  ;;  %v11660_v3 = vor.u32 %v14268_v19, %v11659_v55  ;;  %v11643_v43 = vld [vmem:[%s21962_s1 + $0x14a8] sm:$0xf]  ;;  %v14264_v22 = vld [vmem:[%s21962_s1 + $0x14b4] sm:$0xf0]  ;;  %v7729_v52 = vpop.f32.mrf.mxu0 }
 0x2cf   :  { %7948 = vmatpush.bf16.msrb.mxu1 %v10924_v61  ;;  %v11771_v25 = vld [vmem:[%s21962_s1 + $0x15a8] sm:$0xf]  ;;  %v11516_v61 = vor.u32 %v14232_v24, %v11515_v21  ;;  %v14196_v54 = vld [vmem:[%s21962_s1 + $0x1294] sm:$0xf0]  ;;  %v7730_v23 = vadd.f32 %v7729_v52, %v19210_v26  ;;  %v7742_v19 = vpop.f32.mrf.mxu1 }
 0x2d0   :  { %7974 = vmatpush.bf16.msrb.mxu3 %v11180_v36  ;;  %v11371_v35 = vld [vmem:[%s21962_s1 + $0x1288] sm:$0xf]  ;;  %v14260_v51 = vld [vmem:[%s21962_s1 + $0x1494] sm:$0xf0] }
 0x2d1   :  { %7961 = vmatpush.bf16.msrb.mxu2 %v11052_v32  ;;  %7936 = vmatmul.bf16.vlgmr.msrb.gmra.mxu0 %v15648_v47  ;;  %v11644_v32 = vor.u32 %v14264_v22, %v11643_v43  ;;  %v11499_v36 = vld [vmem:[%s21962_s1 + $0x1388] sm:$0xf]  ;;  %v11372_v55 = vor.u32 %v14196_v54, %v11371_v35  ;;  %v19370_v33 = vadd.f32 %v7742_v19, %v7730_v23  ;;  %v14224_v11 = vld [vmem:[%s21962_s1 + $0x1374] sm:$0xf0]  ;;  %v14759_v22 = vld [vmem:[%s21963_s2] sm:$0xf] }
 0x2d2   :  { %7980 = vmatpush.bf16.msra.mxu0 %v11420_v38  ;;  %7949 = vmatmul.bf16.vlgmr.msrb.gmra.mxu1 %v15652_v49  ;;  %v11772_v38 = vor.u32 %v14296_v30, %v11771_v25  ;;  %v11755_v53 = vld [vmem:[%s21962_s1 + $0x1588] sm:$0xf]  ;;  %v14288_v43 = vld [vmem:[%s21962_s1 + $0x1574] sm:$0xf0]  ;;  %v1150_v25 = vperm.slane %v14759_v22, 2 }
 0x2d3   :  { %7993 = vmatpush.bf16.msra.mxu1 %v11548_v44  ;;  %7975 = vmatmul.bf16.vlgmr.msrb.gmra.mxu3 %v15893_v14  ;;  %v14228_v44 = vld [vmem:[%s21962_s1 + $0x1394] sm:$0xf0]  ;;  %v11611_v21 = vld [vmem:[%s21962_s1 + $0x1468] sm:$0xf] }
 0x2d4   :  { %8019 = vmatpush.bf16.msra.mxu3 %v11804_v20  ;;  %7962 = vmatmul.bf16.vlgmr.msrb.gmra.mxu2 %v15883_v9  ;;  %v14292_v20 = vld [vmem:[%s21962_s1 + $0x1594] sm:$0xf0]  ;;  %v11500_v56 = vor.u32 %v14228_v44, %v11499_v36  ;;  %v11739_v24 = vld [vmem:[%s21962_s1 + $0x1568] sm:$0xf] }
 0x2d5   :  { %8006 = vmatpush.bf16.msra.mxu2 %v11676_v50  ;;  %v11627_v50 = vld [vmem:[%s21962_s1 + $0x1488] sm:$0xf]  ;;  %v11756_v26 = vor.u32 %v14292_v20, %v11755_v53  ;;  %v14188_v35 = vld [vmem:[%s21962_s1 + $0x1254] sm:$0xf0]  ;;  %v11740_v36 = vor.u32 %v14288_v43, %v11739_v24 }
 0x2d6   :  { %7981 = vmatpush.bf16.msra.mxu0 %v11404_v39  ;;  %v11628_v57 = vor.u32 %v14260_v51, %v11627_v50  ;;  %v11355_v39 = vld [vmem:[%s21962_s1 + $0x1268] sm:$0xf]  ;;  %v14252_v50 = vld [vmem:[%s21962_s1 + $0x1454] sm:$0xf0]  ;;  %v7768_v23 = vpop.f32.mrf.mxu3 }
 0x2d7   :  { %7994 = vmatpush.bf16.msra.mxu1 %v11532_v58  ;;  %v14192_v58 = vld [vmem:[%s21962_s1 + $0x1274] sm:$0xf0]  ;;  %v11467_v54 = vld [vmem:[%s21962_s1 + $0x1348] sm:$0xf]  ;;  %v7755_v51 = vpop.f32.mrf.mxu2 }
 0x2d8   :  { %8020 = vmatpush.bf16.msra.mxu3 %v11788_v31  ;;  %v14256_v31 = vld [vmem:[%s21962_s1 + $0x1474] sm:$0xf0]  ;;  %v11356_v30 = vor.u32 %v14192_v58, %v11355_v39  ;;  %v11595_v44 = vld [vmem:[%s21962_s1 + $0x1448] sm:$0xf]  ;;  %v7756_v20 = vadd.f32 %v7755_v51, %v1150_v25 }
 0x2d9   :  { %8007 = vmatpush.bf16.msra.mxu2 %v11660_v3  ;;  %v11483_v3 = vld [vmem:[%s21962_s1 + $0x1368] sm:$0xf]  ;;  %v14284_v53 = vld [vmem:[%s21962_s1 + $0x1554] sm:$0xf0]  ;;  %v11596_v39 = vor.u32 %v14252_v50, %v11595_v44 }
 0x2da   :  { %7982 = vmatpush.bf16.msra.mxu0 %v11388_v45  ;;  %v11484_v45 = vor.u32 %v14224_v11, %v11483_v3  ;;  %v11723_v52 = vld [vmem:[%s21962_s1 + $0x1548] sm:$0xf]  ;;  %v14184_v3 = vld [vmem:[%s21962_s1 + $0x1234] sm:$0xf0]  ;;  %v19423_v11 = vadd.f32 %v7768_v23, %v7756_v20 }
 0x2db   :  { %7995 = vmatpush.bf16.msra.mxu1 %v11516_v61  ;;  %v11612_v61 = vor.u32 %v14256_v31, %v11611_v21  ;;  %v11323_v58 = vld [vmem:[%s21962_s1 + $0x1228] sm:$0xf]  ;;  %v11724_v21 = vor.u32 %v14284_v53, %v11723_v52  ;;  %v14216_v31 = vld [vmem:[%s21962_s1 + $0x1334] sm:$0xf0] }
 0x2dc   :  { %8021 = vmatpush.bf16.msra.mxu3 %v11772_v38  ;;  %v14220_v38 = vld [vmem:[%s21962_s1 + $0x1354] sm:$0xf0]  ;;  %v11579_v24 = vld [vmem:[%s21962_s1 + $0x1428] sm:$0xf] }
 0x2dd   :  { %8008 = vmatpush.bf16.msra.mxu2 %v11644_v32  ;;  %v11339_v32 = vld [vmem:[%s21962_s1 + $0x1248] sm:$0xf]  ;;  %v14248_v43 = vld [vmem:[%s21962_s1 + $0x1434] sm:$0xf0] }
 0x2de   :  { %7983 = vmatpush.bf16.msra.mxu0 %v11372_v55  ;;  %v7731_v55 = vpop.f32.mrf.mxu0  ;;  %v11340_v19 = vor.u32 %v14188_v35, %v11339_v32  ;;  %v11707_v22 = vld [vmem:[%s21962_s1 + $0x1528] sm:$0xf]  ;;  %v14280_v25 = vld [vmem:[%s21962_s1 + $0x1534] sm:$0xf0]  ;;  %v11580_v35 = vor.u32 %v14248_v43, %v11579_v24 }
 0x2df   :  { %7996 = vmatpush.bf16.msra.mxu1 %v11500_v56  ;;  %v7744_v56 = vpop.f32.mrf.mxu1  ;;  %v11708_v44 = vor.u32 %v14280_v25, %v11707_v22  ;;  %v14244_v50 = vld [vmem:[%s21962_s1 + $0x1414] sm:$0xf0]  ;;  %v11691_v51 = vld [vmem:[%s21962_s1 + $0x1508] sm:$0xf]  ;;  %v7757_v53 = vpop.f32.mrf.mxu2 }
 0x2e0   :  { %8022 = vmatpush.bf16.msra.mxu3 %v11756_v26  ;;  %v11451_v26 = vld [vmem:[%s21962_s1 + $0x1328] sm:$0xf]  ;;  %v14276_v52 = vld [vmem:[%s21962_s1 + $0x1514] sm:$0xf0] }
 0x2e1   :  { %8009 = vmatpush.bf16.msra.mxu2 %v11628_v57  ;;  %v11468_v57 = vor.u32 %v14220_v38, %v11467_v54  ;;  %v11452_v32 = vor.u32 %v14216_v31, %v11451_v26  ;;  %v11435_v54 = vld [vmem:[%s21962_s1 + $0x1308] sm:$0xf]  ;;  %v14336_v23 = vld [vmem:[%s21962_s1 + $0x16f4] sm:$0xf0]  ;;  %v11692_v24 = vor.u32 %v14276_v52, %v11691_v51 }
 0x2e2   :  { %7984 = vmatpush.bf16.msra.mxu0 %v11356_v30  ;;  %v11324_v30 = vor.u32 %v14184_v3, %v11323_v58  ;;  %v11563_v38 = vld [vmem:[%s21962_s1 + $0x1408] sm:$0xf]  ;;  %v14400_v58 = vld [vmem:[%s21962_s1 + $0x18f4] sm:$0xf0] }
 0x2e3   :  { %7997 = vmatpush.bf16.msra.mxu1 %v11484_v45  ;;  %v11307_v45 = vld [vmem:[%s21962_s1 + $0x1208] sm:$0xf]  ;;  %v11564_v26 = vor.u32 %v14244_v50, %v11563_v38  ;;  %v14432_v31 = vld [vmem:[%s21962_s1 + $0x19f4] sm:$0xf0] }
 0x2e4   :  { %8023 = vmatpush.bf16.msra.mxu3 %v11740_v36  ;;  %v14212_v36 = vld [vmem:[%s21962_s1 + $0x1314] sm:$0xf0]  ;;  %v11931_v20 = vld [vmem:[%s21962_s1 + $0x16e8] sm:$0xf] }
 0x2e5   :  { %8010 = vmatpush.bf16.msra.mxu2 %v11612_v61  ;;  %v14180_v61 = vld [vmem:[%s21962_s1 + $0x1214] sm:$0xf0]  ;;  %v12059_v55 = vld [vmem:[%s21962_s1 + $0x17e8] sm:$0xf]  ;;  %v11436_v3 = vor.u32 %v14212_v36, %v11435_v54  ;;  %v11932_v43 = vor.u32 %v14336_v23, %v11931_v20 }
 0x2e6   :  { %7985 = vmatpush.bf16.msra.mxu0 %v11340_v19  ;;  %v7770_v19 = vpop.f32.mrf.mxu3  ;;  %v11308_v56 = vor.u32 %v14180_v61, %v11307_v45  ;;  %v14332_v45 = vld [vmem:[%s21962_s1 + $0x16d4] sm:$0xf0]  ;;  %v12043_v61 = vld [vmem:[%s21962_s1 + $0x17c8] sm:$0xf] }
 0x2e7   :  { %7998 = vmatpush.bf16.msra.mxu1 %v11468_v57  ;;  %v14368_v57 = vld [vmem:[%s21962_s1 + $0x17f4] sm:$0xf0]  ;;  %v12171_v54 = vld [vmem:[%s21962_s1 + $0x18c8] sm:$0xf] }
 0x2e8   :  { %8024 = vmatpush.bf16.msra.mxu3 %v11724_v21  ;;  %v12315_v21 = vld [vmem:[%s21962_s1 + $0x19e8] sm:$0xf]  ;;  %v12060_v22 = vor.u32 %v14368_v57, %v12059_v55  ;;  %v14396_v36 = vld [vmem:[%s21962_s1 + $0x18d4] sm:$0xf0] }
 0x2e9   :  { %8011 = vmatpush.bf16.msra.mxu2 %v11596_v39  ;;  %v12187_v39 = vld [vmem:[%s21962_s1 + $0x18e8] sm:$0xf]  ;;  %v12172_v52 = vor.u32 %v14396_v36, %v12171_v54  ;;  %v14328_v20 = vld [vmem:[%s21962_s1 + $0x16b4] sm:$0xf0] }
 0x2ea   :  { %7986 = vmatpush.bf16.msra.mxu0 %v11324_v30  ;;  %v12188_v25 = vor.u32 %v14400_v58, %v12187_v39  ;;  %v11915_v30 = vld [vmem:[%s21962_s1 + $0x16c8] sm:$0xf]  ;;  %v14360_v19 = vld [vmem:[%s21962_s1 + $0x17b4] sm:$0xf0] }
 0x2eb   :  { %7999 = vmatpush.bf16.msra.mxu1 %v11452_v32  ;;  %v12316_v32 = vor.u32 %v14432_v31, %v12315_v21  ;;  %v12299_v38 = vld [vmem:[%s21962_s1 + $0x19c8] sm:$0xf]  ;;  %v11916_v50 = vor.u32 %v14332_v45, %v11915_v30  ;;  %v14392_v57 = vld [vmem:[%s21962_s1 + $0x18b4] sm:$0xf0] }
 0x2ec   :  { %8025 = vmatpush.bf16.msra.mxu3 %v11708_v44  ;;  %v14428_v44 = vld [vmem:[%s21962_s1 + $0x19d4] sm:$0xf0]  ;;  %v11899_v53 = vld [vmem:[%s21962_s1 + $0x16a8] sm:$0xf] }
 0x2ed   :  { %8012 = vmatpush.bf16.msra.mxu2 %v11580_v35  ;;  %v14364_v35 = vld [vmem:[%s21962_s1 + $0x17d4] sm:$0xf0]  ;;  %v12027_v23 = vld [vmem:[%s21962_s1 + $0x17a8] sm:$0xf]  ;;  %v12300_v55 = vor.u32 %v14428_v44, %v12299_v38 }
 0x2ee   :  { %7987 = vmatpush.bf16.msra.mxu0 %v11308_v56  ;;  %v12044_v51 = vor.u32 %v14364_v35, %v12043_v61  ;;  %v12155_v56 = vld [vmem:[%s21962_s1 + $0x18a8] sm:$0xf]  ;;  %v14424_v58 = vld [vmem:[%s21962_s1 + $0x19b4] sm:$0xf0]  ;;  %v7781_v54 = vpop.f32.mrf.mxu0 }
 0x2ef   :  { %8000 = vmatpush.bf16.msra.mxu1 %v11436_v3  ;;  %v12283_v39 = vld [vmem:[%s21962_s1 + $0x19a8] sm:$0xf]  ;;  %v11900_v3 = vor.u32 %v14328_v20, %v11899_v53  ;;  %v12156_v21 = vor.u32 %v14392_v57, %v12155_v56  ;;  %v14388_v45 = vld [vmem:[%s21962_s1 + $0x1894] sm:$0xf0]  ;;  %v7794_v53 = vpop.f32.mrf.mxu1 }
 0x2f0   :  { %8026 = vmatpush.bf16.msra.mxu3 %v11692_v24  ;;  %v11883_v31 = vld [vmem:[%s21962_s1 + $0x1688] sm:$0xf]  ;;  %v14324_v24 = vld [vmem:[%s21962_s1 + $0x1694] sm:$0xf0] }
 0x2f1   :  { %8013 = vmatpush.bf16.msra.mxu2 %v11564_v26  ;;  %7988 = vmatmul.bf16.vlgmr.msra.gmra.mxu0 %v15891_v13  ;;  %v12028_v26 = vor.u32 %v14360_v19, %v12027_v23  ;;  %v12139_v30 = vld [vmem:[%s21962_s1 + $0x1888] sm:$0xf]  ;;  %v11884_v35 = vor.u32 %v14324_v24, %v11883_v31  ;;  %v14352_v23 = vld [vmem:[%s21962_s1 + $0x1774] sm:$0xf0] }
 0x2f2   :  { %8032 = vmatpush.bf16.msrb.mxu0 %v11932_v43  ;;  %8001 = vmatmul.bf16.vlgmr.msra.gmra.mxu1 %v15895_v18  ;;  %v12011_v43 = vld [vmem:[%s21962_s1 + $0x1788] sm:$0xf]  ;;  %v12140_v38 = vor.u32 %v14388_v45, %v12139_v30  ;;  %v14384_v19 = vld [vmem:[%s21962_s1 + $0x1874] sm:$0xf0] }
 0x2f3   :  { %8045 = vmatpush.bf16.msrb.mxu1 %v12060_v22  ;;  %8027 = vmatmul.bf16.vlgmr.msra.gmra.mxu3 %v16064_v6  ;;  %v12284_v22 = vor.u32 %v14424_v58, %v12283_v39  ;;  %v12267_v61 = vld [vmem:[%s21962_s1 + $0x1988] sm:$0xf]  ;;  %v14380_v30 = vld [vmem:[%s21962_s1 + $0x1854] sm:$0xf0] }
 0x2f4   :  { %8071 = vmatpush.bf16.msrb.mxu3 %v12316_v32  ;;  %8014 = vmatmul.bf16.vlgmr.msra.gmra.mxu2 %v16060_v4  ;;  %v14420_v32 = vld [vmem:[%s21962_s1 + $0x1994] sm:$0xf0]  ;;  %v11867_v44 = vld [vmem:[%s21962_s1 + $0x1668] sm:$0xf] }
 0x2f5   :  { %8058 = vmatpush.bf16.msrb.mxu2 %v12188_v25  ;;  %v14356_v25 = vld [vmem:[%s21962_s1 + $0x1794] sm:$0xf0]  ;;  %v12268_v20 = vor.u32 %v14420_v32, %v12267_v61  ;;  %v12251_v56 = vld [vmem:[%s21962_s1 + $0x1968] sm:$0xf] }
 0x2f6   :  { %8033 = vmatpush.bf16.msrb.mxu0 %v11916_v50  ;;  %v12012_v36 = vor.u32 %v14356_v25, %v12011_v43  ;;  %v14320_v50 = vld [vmem:[%s21962_s1 + $0x1674] sm:$0xf0]  ;;  %v11979_v31 = vld [vmem:[%s21962_s1 + $0x1748] sm:$0xf]  ;;  %v7820_v61 = vpop.f32.mrf.mxu3 }
 0x2f7   :  { %8046 = vmatpush.bf16.msrb.mxu1 %v12044_v51  ;;  %v11995_v51 = vld [vmem:[%s21962_s1 + $0x1768] sm:$0xf]  ;;  %v11868_v39 = vor.u32 %v14320_v50, %v11867_v44  ;;  %v7807_v24 = vpop.f32.mrf.mxu2 }
 0x2f8   :  { %8072 = vmatpush.bf16.msrb.mxu3 %v12300_v55  ;;  %v12123_v55 = vld [vmem:[%s21962_s1 + $0x1868] sm:$0xf]  ;;  %v11996_v58 = vor.u32 %v14352_v23, %v11995_v51 }
 0x2f9   :  { %8059 = vmatpush.bf16.msrb.mxu2 %v12172_v52  ;;  %v7782_v52 = vadd.f32 %v7781_v54, %v19423_v11  ;;  %v14416_v11 = vld [vmem:[%s21962_s1 + $0x1974] sm:$0xf0]  ;;  %v12107_v25 = vld [vmem:[%s21962_s1 + $0x1848] sm:$0xf] }
 0x2fa   :  { %8034 = vmatpush.bf16.msrb.mxu0 %v11900_v3  ;;  %v12124_v3 = vor.u32 %v14384_v19, %v12123_v55  ;;  %v12252_v43 = vor.u32 %v14416_v11, %v12251_v56  ;;  %v12235_v32 = vld [vmem:[%s21962_s1 + $0x1948] sm:$0xf]  ;;  %v12108_v50 = vor.u32 %v14380_v30, %v12107_v25  ;;  %v14344_v55 = vld [vmem:[%s21962_s1 + $0x1734] sm:$0xf0] }
 0x2fb   :  { %8047 = vmatpush.bf16.msrb.mxu1 %v12028_v26  ;;  %v7795_v57 = vadd.f32 %v7794_v53, %v7782_v52  ;;  %v11851_v26 = vld [vmem:[%s21962_s1 + $0x1648] sm:$0xf]  ;;  %v14312_v52 = vld [vmem:[%s21962_s1 + $0x1634] sm:$0xf0] }
 0x2fc   :  { %8073 = vmatpush.bf16.msrb.mxu3 %v12284_v22  ;;  %v14348_v22 = vld [vmem:[%s21962_s1 + $0x1754] sm:$0xf0]  ;;  %v11835_v51 = vld [vmem:[%s21962_s1 + $0x1628] sm:$0xf] }
 0x2fd   :  { %8060 = vmatpush.bf16.msrb.mxu2 %v12156_v21  ;;  %v14316_v21 = vld [vmem:[%s21962_s1 + $0x1654] sm:$0xf0]  ;;  %v7808_v45 = vadd.f32 %v7807_v24, %v7795_v57  ;;  %v11980_v44 = vor.u32 %v14348_v22, %v11979_v31  ;;  %v11963_v53 = vld [vmem:[%s21962_s1 + $0x1728] sm:$0xf] }
 0x2fe   :  { %8035 = vmatpush.bf16.msrb.mxu0 %v11884_v35  ;;  %v14412_v35 = vld [vmem:[%s21962_s1 + $0x1954] sm:$0xf0]  ;;  %v11852_v54 = vor.u32 %v14316_v21, %v11851_v26  ;;  %v12091_v19 = vld [vmem:[%s21962_s1 + $0x1828] sm:$0xf]  ;;  %v11964_v26 = vor.u32 %v14344_v55, %v11963_v53 }
 0x2ff   :  { %8048 = vmatpush.bf16.msrb.mxu1 %v12012_v36  ;;  %v19613_v36 = vadd.f32 %v7820_v61, %v7808_v45  ;;  %v12236_v23 = vor.u32 %v14412_v35, %v12235_v32  ;;  %v14376_v56 = vld [vmem:[%s21962_s1 + $0x1834] sm:$0xf0]  ;;  %v12219_v11 = vld [vmem:[%s21962_s1 + $0x1928] sm:$0xf]  ;;  %v7809_v22 = vpop.f32.mrf.mxu2  ;;  %v7822_v32 = vpop.f32.mrf.mxu3 }
 0x300   :  { %8074 = vmatpush.bf16.msrb.mxu3 %v12268_v20  ;;  %v7796_v20 = vpop.f32.mrf.mxu1  ;;  %v14408_v57 = vld [vmem:[%s21962_s1 + $0x1934] sm:$0xf0]  ;;  %v12092_v21 = vor.u32 %v14376_v56, %v12091_v19  ;;  %v11947_v31 = vld [vmem:[%s21962_s1 + $0x1708] sm:$0xf] }
 0x301   :  { %8061 = vmatpush.bf16.msrb.mxu2 %v12140_v38  ;;  %v7783_v38 = vpop.f32.mrf.mxu0  ;;  %v14340_v24 = vld [vmem:[%s21962_s1 + $0x1714] sm:$0xf0]  ;;  %v12220_v25 = vor.u32 %v14408_v57, %v12219_v11  ;;  %v12203_v45 = vld [vmem:[%s21962_s1 + $0x1908] sm:$0xf] }
 0x302   :  { %8036 = vmatpush.bf16.msrb.mxu0 %v11868_v39  ;;  %v11836_v39 = vor.u32 %v14312_v52, %v11835_v51  ;;  %v14372_v30 = vld [vmem:[%s21962_s1 + $0x1814] sm:$0xf0]  ;;  %v12443_v35 = vld [vmem:[%s21962_s1 + $0x1ae8] sm:$0xf]  ;;  %v11948_v53 = vor.u32 %v14340_v24, %v11947_v31 }
 0x303   :  { %8049 = vmatpush.bf16.msrb.mxu1 %v11996_v58  ;;  %v11819_v58 = vld [vmem:[%s21962_s1 + $0x1608] sm:$0xf]  ;;  %v14404_v61 = vld [vmem:[%s21962_s1 + $0x1914] sm:$0xf0] }
 0x304   :  { %8075 = vmatpush.bf16.msrb.mxu3 %v12252_v43  ;;  %v12075_v43 = vld [vmem:[%s21962_s1 + $0x1808] sm:$0xf]  ;;  %v14528_v52 = vld [vmem:[%s21962_s1 + $0x1cf4] sm:$0xf0]  ;;  %v12204_v19 = vor.u32 %v14404_v61, %v12203_v45 }
 0x305   :  { %8062 = vmatpush.bf16.msrb.mxu2 %v12124_v3  ;;  %v14308_v3 = vld [vmem:[%s21962_s1 + $0x1614] sm:$0xf0]  ;;  %v12571_v38 = vld [vmem:[%s21962_s1 + $0x1be8] sm:$0xf]  ;;  %v12076_v20 = vor.u32 %v14372_v30, %v12075_v43 }
 0x306   :  { %8037 = vmatpush.bf16.msrb.mxu0 %v11852_v54  ;;  %v14464_v54 = vld [vmem:[%s21962_s1 + $0x1af4] sm:$0xf0]  ;;  %v12699_v51 = vld [vmem:[%s21962_s1 + $0x1ce8] sm:$0xf] }
 0x307   :  { %8050 = vmatpush.bf16.msrb.mxu1 %v11980_v44  ;;  %v11820_v44 = vor.u32 %v14308_v3, %v11819_v58  ;;  %v14560_v55 = vld [vmem:[%s21962_s1 + $0x1df4] sm:$0xf0]  ;;  %v12444_v56 = vor.u32 %v14464_v54, %v12443_v35  ;;  %v12700_v57 = vor.u32 %v14528_v52, %v12699_v51  ;;  %v12555_v3 = vld [vmem:[%s21962_s1 + $0x1bc8] sm:$0xf] }
 0x308   :  { %8076 = vmatpush.bf16.msrb.mxu3 %v12236_v23  ;;  %v12827_v23 = vld [vmem:[%s21962_s1 + $0x1de8] sm:$0xf]  ;;  %v14460_v58 = vld [vmem:[%s21962_s1 + $0x1ad4] sm:$0xf0] }
 0x309   :  { %8063 = vmatpush.bf16.msrb.mxu2 %v12108_v50  ;;  %v14496_v50 = vld [vmem:[%s21962_s1 + $0x1bf4] sm:$0xf0]  ;;  %v12683_v31 = vld [vmem:[%s21962_s1 + $0x1cc8] sm:$0xf] }
 0x30a   :  { %8038 = vmatpush.bf16.msrb.mxu0 %v11836_v39  ;;  %v12572_v11 = vor.u32 %v14496_v50, %v12571_v38  ;;  %v12427_v39 = vld [vmem:[%s21962_s1 + $0x1ac8] sm:$0xf]  ;;  %v14524_v24 = vld [vmem:[%s21962_s1 + $0x1cd4] sm:$0xf0] }
 0x30b   :  { %8051 = vmatpush.bf16.msrb.mxu1 %v11964_v26  ;;  %v12828_v26 = vor.u32 %v14560_v55, %v12827_v23  ;;  %v12811_v43 = vld [vmem:[%s21962_s1 + $0x1dc8] sm:$0xf]  ;;  %v14556_v22 = vld [vmem:[%s21962_s1 + $0x1dd4] sm:$0xf0]  ;;  %v12684_v45 = vor.u32 %v14524_v24, %v12683_v31 }
 0x30c   :  { %8077 = vmatpush.bf16.msrb.mxu3 %v12220_v25  ;;  %v12428_v25 = vor.u32 %v14460_v58, %v12427_v39  ;;  %v12411_v61 = vld [vmem:[%s21962_s1 + $0x1aa8] sm:$0xf]  ;;  %v14456_v32 = vld [vmem:[%s21962_s1 + $0x1ab4] sm:$0xf0]  ;;  %v12812_v54 = vor.u32 %v14556_v22, %v12811_v43 }
 0x30d   :  { %8064 = vmatpush.bf16.msrb.mxu2 %v12092_v21  ;;  %v14492_v21 = vld [vmem:[%s21962_s1 + $0x1bd4] sm:$0xf0]  ;;  %v12539_v35 = vld [vmem:[%s21962_s1 + $0x1ba8] sm:$0xf] }
 0x30e   :  { %8039 = vmatpush.bf16.msrb.mxu0 %v11820_v44  ;;  %v12556_v30 = vor.u32 %v14492_v21, %v12555_v3  ;;  %v14488_v38 = vld [vmem:[%s21962_s1 + $0x1bb4] sm:$0xf0]  ;;  %v12667_v44 = vld [vmem:[%s21962_s1 + $0x1ca8] sm:$0xf]  ;;  %v7833_v3 = vpop.f32.mrf.mxu0 }
 0x30f   :  { %8052 = vmatpush.bf16.msrb.mxu1 %v11948_v53  ;;  %v14520_v50 = vld [vmem:[%s21962_s1 + $0x1cb4] sm:$0xf0]  ;;  %v12795_v51 = vld [vmem:[%s21962_s1 + $0x1da8] sm:$0xf]  ;;  %v12412_v53 = vor.u32 %v14456_v32, %v12411_v61  ;;  %v7834_v31 = vadd.f32 %v7833_v3, %v19613_v36  ;;  %v7846_v43 = vpop.f32.mrf.mxu1 }
 0x310   :  { %8078 = vmatpush.bf16.msrb.mxu3 %v12204_v19  ;;  %v14552_v52 = vld [vmem:[%s21962_s1 + $0x1db4] sm:$0xf0]  ;;  %v12668_v23 = vor.u32 %v14520_v50, %v12667_v44  ;;  %v12395_v55 = vld [vmem:[%s21962_s1 + $0x1a88] sm:$0xf] }
 0x311   :  { %8065 = vmatpush.bf16.msrb.mxu2 %v12076_v20  ;;  %8040 = vmatmul.bf16.vlgmr.msrb.gmra.mxu0 %v16062_v5  ;;  %v12540_v20 = vor.u32 %v14488_v38, %v12539_v35  ;;  %v14452_v19 = vld [vmem:[%s21962_s1 + $0x1a94] sm:$0xf0]  ;;  %v12651_v39 = vld [vmem:[%s21962_s1 + $0x1c88] sm:$0xf]  ;;  %v7847_v32 = vadd.f32 %v7846_v43, %v7834_v31 }
 0x312   :  { %8084 = vmatpush.bf16.msra.mxu0 %v12444_v56  ;;  %8053 = vmatmul.bf16.vlgmr.msrb.gmra.mxu1 %v16066_v7  ;;  %v12523_v56 = vld [vmem:[%s21962_s1 + $0x1b88] sm:$0xf]  ;;  %v14516_v58 = vld [vmem:[%s21962_s1 + $0x1c94] sm:$0xf0]  ;;  %v12396_v24 = vor.u32 %v14452_v19, %v12395_v55 }
 0x313   :  { %8097 = vmatpush.bf16.msra.mxu1 %v12572_v11  ;;  %8079 = vmatmul.bf16.vlgmr.msrb.gmra.mxu3 %v16309_v41  ;;  %v12796_v11 = vor.u32 %v14552_v52, %v12795_v51  ;;  %v14548_v21 = vld [vmem:[%s21962_s1 + $0x1d94] sm:$0xf0]  ;;  %v12507_v61 = vld [vmem:[%s21962_s1 + $0x1b68] sm:$0xf] }
 0x314   :  { %8123 = vmatpush.bf16.msra.mxu3 %v12828_v26  ;;  %8066 = vmatmul.bf16.vlgmr.msrb.gmra.mxu2 %v16299_v37  ;;  %v12779_v26 = vld [vmem:[%s21962_s1 + $0x1d88] sm:$0xf]  ;;  %v14480_v35 = vld [vmem:[%s21962_s1 + $0x1b74] sm:$0xf0] }
 0x315   :  { %8110 = vmatpush.bf16.msra.mxu2 %v12700_v57  ;;  %v14484_v57 = vld [vmem:[%s21962_s1 + $0x1b94] sm:$0xf0]  ;;  %v12780_v36 = vor.u32 %v14548_v21, %v12779_v26  ;;  %v12763_v44 = vld [vmem:[%s21962_s1 + $0x1d68] sm:$0xf]  ;;  %v12508_v52 = vor.u32 %v14480_v35, %v12507_v61 }
 0x316   :  { %8085 = vmatpush.bf16.msra.mxu0 %v12428_v25  ;;  %v12524_v22 = vor.u32 %v14484_v57, %v12523_v56  ;;  %v12652_v25 = vor.u32 %v14516_v58, %v12651_v39  ;;  %v14512_v38 = vld [vmem:[%s21962_s1 + $0x1c74] sm:$0xf0]  ;;  %v12491_v55 = vld [vmem:[%s21962_s1 + $0x1b48] sm:$0xf]  ;;  %v7872_v3 = vpop.f32.mrf.mxu3  ;;  %v7835_v31 = vpop.f32.mrf.mxu0 }
 0x317   :  { %8098 = vmatpush.bf16.msra.mxu1 %v12556_v30  ;;  %v12379_v30 = vld [vmem:[%s21962_s1 + $0x1a68] sm:$0xf]  ;;  %v14544_v50 = vld [vmem:[%s21962_s1 + $0x1d74] sm:$0xf0]  ;;  %v7859_v56 = vpop.f32.mrf.mxu2  ;;  %v7848_v43 = vpop.f32.mrf.mxu1 }
 0x318   :  { %8124 = vmatpush.bf16.msra.mxu3 %v12812_v54  ;;  %v12635_v54 = vld [vmem:[%s21962_s1 + $0x1c68] sm:$0xf]  ;;  %v12764_v19 = vor.u32 %v14544_v50, %v12763_v44  ;;  %v14508_v39 = vld [vmem:[%s21962_s1 + $0x1c54] sm:$0xf0]  ;;  %v7860_v58 = vadd.f32 %v7859_v56, %v7847_v32 }
 0x319   :  { %8111 = vmatpush.bf16.msra.mxu2 %v12684_v45  ;;  %v14448_v45 = vld [vmem:[%s21962_s1 + $0x1a74] sm:$0xf0]  ;;  %v12619_v57 = vld [vmem:[%s21962_s1 + $0x1c48] sm:$0xf] }
 0x31a   :  { %8086 = vmatpush.bf16.msra.mxu0 %v12412_v53  ;;  %v12380_v51 = vor.u32 %v14448_v45, %v12379_v30  ;;  %v12636_v53 = vor.u32 %v14512_v38, %v12635_v54  ;;  %v12747_v26 = vld [vmem:[%s21962_s1 + $0x1d48] sm:$0xf]  ;;  %v14540_v21 = vld [vmem:[%s21962_s1 + $0x1d54] sm:$0xf0]  ;;  %v12620_v30 = vor.u32 %v14508_v39, %v12619_v57 }
 0x31b   :  { %8099 = vmatpush.bf16.msra.mxu1 %v12540_v20  ;;  %v12363_v20 = vld [vmem:[%s21962_s1 + $0x1a48] sm:$0xf]  ;;  %v14440_v61 = vld [vmem:[%s21962_s1 + $0x1a34] sm:$0xf0]  ;;  %v12748_v32 = vor.u32 %v14540_v21, %v12747_v26 }
 0x31c   :  { %8125 = vmatpush.bf16.msra.mxu3 %v12796_v11  ;;  %v14476_v11 = vld [vmem:[%s21962_s1 + $0x1b54] sm:$0xf0]  ;;  %v12347_v45 = vld [vmem:[%s21962_s1 + $0x1a28] sm:$0xf] }
 0x31d   :  { %8112 = vmatpush.bf16.msra.mxu2 %v12668_v23  ;;  %v14444_v23 = vld [vmem:[%s21962_s1 + $0x1a54] sm:$0xf0]  ;;  %v12603_v54 = vld [vmem:[%s21962_s1 + $0x1c28] sm:$0xf] }
 0x31e   :  { %8087 = vmatpush.bf16.msra.mxu0 %v12396_v24  ;;  %v12364_v24 = vor.u32 %v14444_v23, %v12363_v20  ;;  %v14472_v35 = vld [vmem:[%s21962_s1 + $0x1b34] sm:$0xf0]  ;;  %v12731_v44 = vld [vmem:[%s21962_s1 + $0x1d28] sm:$0xf] }
 0x31f   :  { %8100 = vmatpush.bf16.msra.mxu1 %v12524_v22  ;;  %v19812_v22 = vadd.f32 %v7872_v3, %v7860_v58  ;;  %v14504_v38 = vld [vmem:[%s21962_s1 + $0x1c34] sm:$0xf0]  ;;  %v12587_v56 = vld [vmem:[%s21962_s1 + $0x1c08] sm:$0xf]  ;;  %v7861_v3 = vpop.f32.mrf.mxu2 }
 0x320   :  { %8126 = vmatpush.bf16.msra.mxu3 %v12780_v36  ;;  %v12475_v36 = vld [vmem:[%s21962_s1 + $0x1b28] sm:$0xf]  ;;  %v14536_v50 = vld [vmem:[%s21962_s1 + $0x1d34] sm:$0xf0]  ;;  %v12604_v23 = vor.u32 %v14504_v38, %v12603_v54 }
 0x321   :  { %8113 = vmatpush.bf16.msra.mxu2 %v12652_v25  ;;  %v12492_v25 = vor.u32 %v14476_v11, %v12491_v55  ;;  %v12476_v20 = vor.u32 %v14472_v35, %v12475_v36  ;;  %v12459_v55 = vld [vmem:[%s21962_s1 + $0x1b08] sm:$0xf]  ;;  %v12732_v11 = vor.u32 %v14536_v50, %v12731_v44  ;;  %v14500_v57 = vld [vmem:[%s21962_s1 + $0x1c14] sm:$0xf0] }
 0x322   :  { %8088 = vmatpush.bf16.msra.mxu0 %v12380_v51  ;;  %v12348_v51 = vor.u32 %v14440_v61, %v12347_v45  ;;  %v12715_v39 = vld [vmem:[%s21962_s1 + $0x1d08] sm:$0xf]  ;;  %v14532_v58 = vld [vmem:[%s21962_s1 + $0x1d14] sm:$0xf0]  ;;  %v12588_v36 = vor.u32 %v14500_v57, %v12587_v56 }
 0x323   :  { %8101 = vmatpush.bf16.msra.mxu1 %v12508_v52  ;;  %v12331_v52 = vld [vmem:[%s21962_s1 + $0x1a08] sm:$0xf]  ;;  %v14592_v21 = vld [vmem:[%s21962_s1 + $0x1ef4] sm:$0xf0]  ;;  %v12716_v54 = vor.u32 %v14532_v58, %v12715_v39 }
 0x324   :  { %8127 = vmatpush.bf16.msra.mxu3 %v12764_v19  ;;  %v14468_v19 = vld [vmem:[%s21962_s1 + $0x1b14] sm:$0xf0]  ;;  %v12955_v26 = vld [vmem:[%s21962_s1 + $0x1ee8] sm:$0xf] }
 0x325   :  { %8114 = vmatpush.bf16.msra.mxu2 %v12636_v53  ;;  %v14436_v53 = vld [vmem:[%s21962_s1 + $0x1a14] sm:$0xf0]  ;;  %v13083_v31 = vld [vmem:[%s21962_s1 + $0x1fe8] sm:$0xf]  ;;  %v12460_v61 = vor.u32 %v14468_v19, %v12459_v55  ;;  %v12956_v38 = vor.u32 %v14592_v21, %v12955_v26 }
 0x326   :  { %8089 = vmatpush.bf16.msra.mxu0 %v12364_v24  ;;  %v7874_v24 = vpop.f32.mrf.mxu3  ;;  %v12332_v43 = vor.u32 %v14436_v53, %v12331_v52  ;;  %v14656_v45 = vld [vmem:[%s21962_s1 + $0x20f4] sm:$0xf0]  ;;  %v13067_v53 = vld [vmem:[%s21962_s1 + $0x1fc8] sm:$0xf] }
 0x327   :  { %8102 = vmatpush.bf16.msra.mxu1 %v12492_v25  ;;  %v14624_v25 = vld [vmem:[%s21962_s1 + $0x1ff4] sm:$0xf0]  ;;  %v13195_v55 = vld [vmem:[%s21962_s1 + $0x20c8] sm:$0xf] }
 0x328   :  { %8128 = vmatpush.bf16.msra.mxu3 %v12748_v32  ;;  %v13339_v32 = vld [vmem:[%s21962_s1 + $0x21e8] sm:$0xf]  ;;  %v14688_v35 = vld [vmem:[%s21962_s1 + $0x21f4] sm:$0xf0]  ;;  %v13084_v44 = vor.u32 %v14624_v25, %v13083_v31 }
 0x329   :  { %8115 = vmatpush.bf16.msra.mxu2 %v12620_v30  ;;  %v13211_v30 = vld [vmem:[%s21962_s1 + $0x20e8] sm:$0xf]  ;;  %v14588_v52 = vld [vmem:[%s21962_s1 + $0x1ed4] sm:$0xf0] }
 0x32a   :  { %8090 = vmatpush.bf16.msra.mxu0 %v12348_v51  ;;  %v13212_v50 = vor.u32 %v14656_v45, %v13211_v30  ;;  %v12939_v51 = vld [vmem:[%s21962_s1 + $0x1ec8] sm:$0xf]  ;;  %v14652_v19 = vld [vmem:[%s21962_s1 + $0x20d4] sm:$0xf0] }
 0x32b   :  { %8103 = vmatpush.bf16.msra.mxu1 %v12476_v20  ;;  %v13340_v20 = vor.u32 %v14688_v35, %v13339_v32  ;;  %v13323_v56 = vld [vmem:[%s21962_s1 + $0x21c8] sm:$0xf]  ;;  %v12940_v57 = vor.u32 %v14588_v52, %v12939_v51  ;;  %v13196_v58 = vor.u32 %v14652_v19, %v13195_v55  ;;  %v14584_v26 = vld [vmem:[%s21962_s1 + $0x1eb4] sm:$0xf0] }
 0x32c   :  { %8129 = vmatpush.bf16.msra.mxu3 %v12732_v11  ;;  %v14684_v11 = vld [vmem:[%s21962_s1 + $0x21d4] sm:$0xf0]  ;;  %v12923_v3 = vld [vmem:[%s21962_s1 + $0x1ea8] sm:$0xf] }
 0x32d   :  { %8116 = vmatpush.bf16.msra.mxu2 %v12604_v23  ;;  %v14620_v23 = vld [vmem:[%s21962_s1 + $0x1fd4] sm:$0xf0]  ;;  %v13051_v21 = vld [vmem:[%s21962_s1 + $0x1fa8] sm:$0xf]  ;;  %v13324_v31 = vor.u32 %v14684_v11, %v13323_v56 }
 0x32e   :  { %8091 = vmatpush.bf16.msra.mxu0 %v12332_v43  ;;  %v13068_v39 = vor.u32 %v14620_v23, %v13067_v53  ;;  %v14616_v24 = vld [vmem:[%s21962_s1 + $0x1fb4] sm:$0xf0]  ;;  %v13179_v43 = vld [vmem:[%s21962_s1 + $0x20a8] sm:$0xf]  ;;  %v7885_v53 = vpop.f32.mrf.mxu0 }
 0x32f   :  { %8104 = vmatpush.bf16.msra.mxu1 %v12460_v61  ;;  %v14648_v25 = vld [vmem:[%s21962_s1 + $0x20b4] sm:$0xf0]  ;;  %v13307_v30 = vld [vmem:[%s21962_s1 + $0x21a8] sm:$0xf]  ;;  %v12924_v61 = vor.u32 %v14584_v26, %v12923_v3  ;;  %v7886_v55 = vadd.f32 %v7885_v53, %v19812_v22  ;;  %v7898_v56 = vpop.f32.mrf.mxu1 }
 0x330   :  { %8130 = vmatpush.bf16.msra.mxu3 %v12716_v54  ;;  %v14680_v45 = vld [vmem:[%s21962_s1 + $0x21b4] sm:$0xf0]  ;;  %v13180_v32 = vor.u32 %v14648_v25, %v13179_v43  ;;  %v12907_v35 = vld [vmem:[%s21962_s1 + $0x1e88] sm:$0xf] }
 0x331   :  { %8117 = vmatpush.bf16.msra.mxu2 %v12588_v36  ;;  %8092 = vmatmul.bf16.vlgmr.msra.gmra.mxu0 %v16307_v40  ;;  %v13052_v36 = vor.u32 %v14616_v24, %v13051_v21  ;;  %v14580_v54 = vld [vmem:[%s21962_s1 + $0x1e94] sm:$0xf0]  ;;  %v13163_v51 = vld [vmem:[%s21962_s1 + $0x2088] sm:$0xf]  ;;  %v7899_v26 = vadd.f32 %v7898_v56, %v7886_v55 }
 0x332   :  { %8136 = vmatpush.bf16.msrb.mxu0 %v12956_v38  ;;  %8105 = vmatmul.bf16.vlgmr.msra.gmra.mxu1 %v16311_v42  ;;  %v13035_v38 = vld [vmem:[%s21962_s1 + $0x1f88] sm:$0xf]  ;;  %v14644_v52 = vld [vmem:[%s21962_s1 + $0x2094] sm:$0xf0]  ;;  %v12908_v19 = vor.u32 %v14580_v54, %v12907_v35 }
 0x333   :  { %8149 = vmatpush.bf16.msrb.mxu1 %v13084_v44  ;;  %8131 = vmatmul.bf16.vlgmr.msra.gmra.mxu3 %v16480_v8  ;;  %v13308_v44 = vor.u32 %v14680_v45, %v13307_v30  ;;  %v14676_v23 = vld [vmem:[%s21962_s1 + $0x2194] sm:$0xf0]  ;;  %v13019_v3 = vld [vmem:[%s21962_s1 + $0x1f68] sm:$0xf] }
 0x334   :  { %8175 = vmatpush.bf16.msrb.mxu3 %v13340_v20  ;;  %8118 = vmatmul.bf16.vlgmr.msra.gmra.mxu2 %v16476_v62  ;;  %v13291_v20 = vld [vmem:[%s21962_s1 + $0x2188] sm:$0xf]  ;;  %v14608_v21 = vld [vmem:[%s21962_s1 + $0x1f74] sm:$0xf0] }
 0x335   :  { %8162 = vmatpush.bf16.msrb.mxu2 %v13212_v50  ;;  %v14612_v50 = vld [vmem:[%s21962_s1 + $0x1f94] sm:$0xf0]  ;;  %v13292_v22 = vor.u32 %v14676_v23, %v13291_v20  ;;  %v13275_v43 = vld [vmem:[%s21962_s1 + $0x2168] sm:$0xf]  ;;  %v13020_v45 = vor.u32 %v14608_v21, %v13019_v3 }
 0x336   :  { %8137 = vmatpush.bf16.msrb.mxu0 %v12940_v57  ;;  %v13036_v11 = vor.u32 %v14612_v50, %v13035_v38  ;;  %v13164_v57 = vor.u32 %v14644_v52, %v13163_v51  ;;  %v14640_v24 = vld [vmem:[%s21962_s1 + $0x2074] sm:$0xf0]  ;;  %v13003_v35 = vld [vmem:[%s21962_s1 + $0x1f48] sm:$0xf]  ;;  %v7924_v53 = vpop.f32.mrf.mxu3  ;;  %v7887_v55 = vpop.f32.mrf.mxu0 }
 0x337   :  { %8150 = vmatpush.bf16.msrb.mxu1 %v13068_v39  ;;  %v12891_v39 = vld [vmem:[%s21962_s1 + $0x1e68] sm:$0xf]  ;;  %v14672_v25 = vld [vmem:[%s21962_s1 + $0x2174] sm:$0xf0]  ;;  %v7911_v38 = vpop.f32.mrf.mxu2  ;;  %v7900_v56 = vpop.f32.mrf.mxu1  ;;  %v13630_v55 = vld [vmem:[%s21962_s1 + $0xec] sm:$0xf] }
 0x338   :  { %8176 = vmatpush.bf16.msrb.mxu3 %v13324_v31  ;;  %v13147_v31 = vld [vmem:[%s21962_s1 + $0x2068] sm:$0xf]  ;;  %v13276_v54 = vor.u32 %v14672_v25, %v13275_v43  ;;  %v14636_v51 = vld [vmem:[%s21962_s1 + $0x2054] sm:$0xf0]  ;;  %v7912_v52 = vadd.f32 %v7911_v38, %v7899_v26 }
 0x339   :  { %8163 = vmatpush.bf16.msrb.mxu2 %v13196_v58  ;;  %v14576_v58 = vld [vmem:[%s21962_s1 + $0x1e74] sm:$0xf0]  ;;  %v13131_v50 = vld [vmem:[%s21962_s1 + $0x2048] sm:$0xf] }
 0x33a   :  { %8138 = vmatpush.bf16.msrb.mxu0 %v12924_v61  ;;  %v12892_v30 = vor.u32 %v14576_v58, %v12891_v39  ;;  %v13148_v61 = vor.u32 %v14640_v24, %v13147_v31  ;;  %v13259_v20 = vld [vmem:[%s21962_s1 + $0x2148] sm:$0xf]  ;;  %v14668_v23 = vld [vmem:[%s21962_s1 + $0x2154] sm:$0xf0]  ;;  %v13132_v39 = vor.u32 %v14636_v51, %v13131_v50 }
 0x33b   :  { %8151 = vmatpush.bf16.msrb.mxu1 %v13052_v36  ;;  %v12875_v36 = vld [vmem:[%s21962_s1 + $0x1e48] sm:$0xf]  ;;  %v14568_v3 = vld [vmem:[%s21962_s1 + $0x1e34] sm:$0xf0]  ;;  %v13260_v26 = vor.u32 %v14668_v23, %v13259_v20 }
 0x33c   :  { %8177 = vmatpush.bf16.msrb.mxu3 %v13308_v44  ;;  %v14604_v44 = vld [vmem:[%s21962_s1 + $0x1f54] sm:$0xf0]  ;;  %v12859_v58 = vld [vmem:[%s21962_s1 + $0x1e28] sm:$0xf] }
 0x33d   :  { %8164 = vmatpush.bf16.msrb.mxu2 %v13180_v32  ;;  %v14572_v32 = vld [vmem:[%s21962_s1 + $0x1e54] sm:$0xf0]  ;;  %v13115_v31 = vld [vmem:[%s21962_s1 + $0x2028] sm:$0xf] }
 0x33e   :  { %8139 = vmatpush.bf16.msrb.mxu0 %v12908_v19  ;;  %v12876_v19 = vor.u32 %v14572_v32, %v12875_v36  ;;  %v14600_v21 = vld [vmem:[%s21962_s1 + $0x1f34] sm:$0xf0]  ;;  %v13243_v43 = vld [vmem:[%s21962_s1 + $0x2128] sm:$0xf] }
 0x33f   :  { %8152 = vmatpush.bf16.msrb.mxu1 %v13036_v11  ;;  %v20011_v11 = vadd.f32 %v7924_v53, %v7912_v52  ;;  %v14632_v24 = vld [vmem:[%s21962_s1 + $0x2034] sm:$0xf0]  ;;  %v13099_v38 = vld [vmem:[%s21962_s1 + $0x2008] sm:$0xf]  ;;  %v7913_v53 = vpop.f32.mrf.mxu2 }
 0x340   :  { %8178 = vmatpush.bf16.msrb.mxu3 %v13292_v22  ;;  %v12987_v22 = vld [vmem:[%s21962_s1 + $0x1f28] sm:$0xf]  ;;  %v14664_v25 = vld [vmem:[%s21962_s1 + $0x2134] sm:$0xf0]  ;;  %v13116_v32 = vor.u32 %v14632_v24, %v13115_v31 }
 0x341   :  { %8165 = vmatpush.bf16.msrb.mxu2 %v13164_v57  ;;  %v13004_v57 = vor.u32 %v14604_v44, %v13003_v35  ;;  %v12988_v36 = vor.u32 %v14600_v21, %v12987_v22  ;;  %v12971_v35 = vld [vmem:[%s21962_s1 + $0x1f08] sm:$0xf]  ;;  %v13244_v44 = vor.u32 %v14664_v25, %v13243_v43  ;;  %v14628_v50 = vld [vmem:[%s21962_s1 + $0x2014] sm:$0xf0]  ;;  %v9373_v21 = vld [vmem:[%s21962_s1 + $0x2f8] sm:$0xf0] }
 0x342   :  { %8140 = vmatpush.bf16.msrb.mxu0 %v12892_v30  ;;  %v12860_v30 = vor.u32 %v14568_v3, %v12859_v58  ;;  %v13227_v51 = vld [vmem:[%s21962_s1 + $0x2108] sm:$0xf]  ;;  %v14660_v52 = vld [vmem:[%s21962_s1 + $0x2114] sm:$0xf0]  ;;  %v9245_v58 = vld [vmem:[%s21962_s1 + $0x1f8] sm:$0xf0]  ;;  %v13100_v22 = vor.u32 %v14628_v50, %v13099_v38 }
 0x343   :  { %8153 = vmatpush.bf16.msrb.mxu1 %v13020_v45  ;;  %v12843_v45 = vld [vmem:[%s21962_s1 + $0x1e08] sm:$0xf]  ;;  %v14720_v23 = vld [vmem:[%s21962_s1 + $0x22f4] sm:$0xf0]  ;;  %v13228_v31 = vor.u32 %v14660_v52, %v13227_v51  ;;  %v13690_v38 = vld [vmem:[%s21962_s1 + $0x2cc] sm:$0xf] }
 0x344   :  { %8179 = vmatpush.bf16.msrb.mxu3 %v13276_v54  ;;  %v14596_v54 = vld [vmem:[%s21962_s1 + $0x1f14] sm:$0xf0]  ;;  %v13467_v20 = vld [vmem:[%s21962_s1 + $0x22e8] sm:$0xf] }
 0x345   :  { %8166 = vmatpush.bf16.msrb.mxu2 %v13148_v61  ;;  %v14564_v61 = vld [vmem:[%s21962_s1 + $0x1e14] sm:$0xf0]  ;;  %v12972_v3 = vor.u32 %v14596_v54, %v12971_v35  ;;  %v13468_v24 = vor.u32 %v14720_v23, %v13467_v20  ;;  %v13658_v35 = vld [vmem:[%s21962_s1 + $0x1cc] sm:$0xf]  ;;  %v9229_v54 = vld [vmem:[%s21962_s1 + $0x1d8] sm:$0xf0] }
 0x346   :  { %8141 = vmatpush.bf16.msrb.mxu0 %v12876_v19  ;;  %v7926_v19 = vpop.f32.mrf.mxu3  ;;  %v12844_v56 = vor.u32 %v14564_v61, %v12843_v45  ;;  %v14716_v45 = vld [vmem:[%s21962_s1 + $0x22d4] sm:$0xf0]  ;;  %v13626_v61 = vld [vmem:[%s21962_s1 + $0xcc] sm:$0xf]  ;;  %v9232_v52 = vor.u32 %v13658_v35, %v9229_v54  ;;  %v13435_v53 = vld [vmem:[%s21962_s1 + $0x22a8] sm:$0xf] }
 0x347   :  { %8154 = vmatpush.bf16.msrb.mxu1 %v13004_v57  ;;  %v9117_v57 = vld [vmem:[%s21962_s1 + $0xf8] sm:$0xf0]  ;;  %v14712_v20 = vld [vmem:[%s21962_s1 + $0x22b4] sm:$0xf0]  ;;  %v13622_v23 = vld [vmem:[%s21962_s1 + $0xac] sm:$0xf] }
 0x348   :  { %8180 = vmatpush.bf16.msrb.mxu3 %v13260_v26  ;;  %v13694_v26 = vld [vmem:[%s21962_s1 + $0x2ec] sm:$0xf]  ;;  %v9120_v43 = vor.u32 %v13630_v55, %v9117_v57  ;;  %v9085_v19 = vld [vmem:[%s21962_s1 + $0xb8] sm:$0xf0] }
 0x349   :  { %8167 = vmatpush.bf16.msrb.mxu2 %v13132_v39  ;;  %v13662_v39 = vld [vmem:[%s21962_s1 + $0x1ec] sm:$0xf]  ;;  %v9213_v57 = vld [vmem:[%s21962_s1 + $0x1b8] sm:$0xf0] }
 0x34a   :  { %8142 = vmatpush.bf16.msrb.mxu0 %v12860_v30  ;;  %v9248_v25 = vor.u32 %v13662_v39, %v9245_v58  ;;  %v13451_v30 = vld [vmem:[%s21962_s1 + $0x22c8] sm:$0xf]  ;;  %v14760_v39 = vld [vmem:[#allocation1] sm:$0xff]  ;;  %v13686_v58 = vld [vmem:[%s21962_s1 + $0x2ac] sm:$0xf] }
 0x34b   :  { %8155 = vmatpush.bf16.msrb.mxu1 %v12988_v36  ;;  %v9376_v36 = vor.u32 %v13694_v26, %v9373_v21  ;;  %v13452_v50 = vor.u32 %v14716_v45, %v13451_v30  ;;  %v13436_v26 = vor.u32 %v14712_v20, %v13435_v53  ;;  %v9088_v21 = vor.u32 %v13622_v23, %v9085_v19  ;;  %v9069_v45 = vld [vmem:[%s21962_s1 + $0x98] sm:$0xf0]  ;;  %v13682_v35 = vld [vmem:[%s21962_s1 + $0x28c] sm:$0xf]  ;;  %v13403_v53 = vld [vmem:[%s21962_s1 + $0x2268] sm:$0xf] }
 0x34c   :  { %8181 = vmatpush.bf16.msrb.mxu3 %v13244_v44  ;;  %v9357_v44 = vld [vmem:[%s21962_s1 + $0x2d8] sm:$0xf0]  ;;  %v14704_v20 = vld [vmem:[%s21962_s1 + $0x2274] sm:$0xf0]  ;;  %v13614_v23 = vld [vmem:[%s21962_s1 + $0x6c] sm:$0xf] }
 0x34d   :  { %8168 = vmatpush.bf16.msrb.mxu2 %v13116_v32  ;;  %v9101_v32 = vld [vmem:[%s21962_s1 + $0xd8] sm:$0xf0]  ;;  %v9360_v55 = vor.u32 %v13690_v38, %v9357_v44 }
 0x34e   :  { %8143 = vmatpush.bf16.msrb.mxu0 %v12844_v56  ;;  %v9104_v51 = vor.u32 %v13626_v61, %v9101_v32  ;;  %v13654_v56 = vld [vmem:[%s21962_s1 + $0x1ac] sm:$0xf]  ;;  %v7937_v32 = vpop.f32.mrf.mxu0  ;;  %v9325_v54 = vld [vmem:[%s21962_s1 + $0x298] sm:$0xf0] }
 0x34f   :  { %8156 = vmatpush.bf16.msrb.mxu1 %v12972_v3  ;;  %v9341_v3 = vld [vmem:[%s21962_s1 + $0x2b8] sm:$0xf0]  ;;  %v13650_v61 = vld [vmem:[%s21962_s1 + $0x18c] sm:$0xf]  ;;  %v7938_v38 = vadd.f32 %v7937_v32, %v20011_v11  ;;  %v9328_v11 = vor.u32 %v13682_v35, %v9325_v54 }
 0x350   :  { %8182 = vmatpush.bf16.msrb.mxu3 %v13228_v31  ;;  %v9216_v31 = vor.u32 %v13654_v56, %v9213_v57  ;;  %v9344_v30 = vor.u32 %v13686_v58, %v9341_v3  ;;  %v9053_v19 = vld [vmem:[%s21962_s1 + $0x78] sm:$0xf0]  ;;  %v13646_v56 = vld [vmem:[%s21962_s1 + $0x16c] sm:$0xf]  ;;  %v13404_v3 = vor.u32 %v14704_v20, %v13403_v53  ;;  %v13371_v20 = vld [vmem:[%s21962_s1 + $0x2228] sm:$0xf] }
 0x351   :  { %8169 = vmatpush.bf16.msrb.mxu2 %v13100_v22  ;;  %8144 = vmatmul.bf16.vlgmr.msrb.gmra.mxu0 %v16478_v63  ;;  %v14761_v22 = vld [vmem:[#allocation1 + $0x9] sm:$0xff]  ;;  %v9181_v57 = vld [vmem:[%s21962_s1 + $0x178] sm:$0xf0] }
 0x352   :  { %8188 = vmatpush.bf16.msra.mxu0 %v13468_v24  ;;  %8157 = vmatmul.bf16.vlgmr.msrb.gmra.mxu1 %v16482_v10  ;;  %v13419_v24 = vld [vmem:[%s21962_s1 + $0x2288] sm:$0xf]  ;;  %v9309_v58 = vld [vmem:[%s21962_s1 + $0x278] sm:$0xf0]  ;;  %v13674_v35 = vld [vmem:[%s21962_s1 + $0x24c] sm:$0xf] }
 0x353   :  { %8201 = vmatpush.bf16.msra.mxu1 %v9120_v43  ;;  %8183 = vmatmul.bf16.vlgmr.msrb.gmra.mxu3 %v14761_v22  ;;  %v14708_v43 = vld [vmem:[%s21962_s1 + $0x2294] sm:$0xf0]  ;;  %v9056_v22 = vor.u32 %v13614_v23, %v9053_v19  ;;  %v9293_v54 = vld [vmem:[%s21962_s1 + $0x258] sm:$0xf0] }
 0x354   :  { %8227 = vmatpush.bf16.msra.mxu3 %v9376_v36  ;;  %8170 = vmatmul.bf16.vlgmr.msrb.gmra.mxu2 %v14760_v39  ;;  %v9197_v36 = vld [vmem:[%s21962_s1 + $0x198] sm:$0xf0]  ;;  %v13420_v44 = vor.u32 %v14708_v43, %v13419_v24  ;;  %v13678_v39 = vld [vmem:[%s21962_s1 + $0x26c] sm:$0xf]  ;;  %v14696_v23 = vld [vmem:[%s21962_s1 + $0x2234] sm:$0xf0] }
 0x355   :  { %8214 = vmatpush.bf16.msra.mxu2 %v9248_v25  ;;  %v13618_v25 = vld [vmem:[%s21962_s1 + $0x8c] sm:$0xf]  ;;  %v9312_v43 = vor.u32 %v13678_v39, %v9309_v58  ;;  %v9021_v19 = vld [vmem:[%s21962_s1 + $0x38] sm:$0xf0] }
 0x356   :  { %8189 = vmatpush.bf16.msra.mxu0 %v13452_v50  ;;  %v7950_v50 = vpop.f32.mrf.mxu1  ;;  %v13610_v24 = vld [vmem:[%s21962_s1 + $0x4c] sm:$0xf]  ;;  %v7976_v32 = vpop.f32.mrf.mxu3  ;;  %v9277_v58 = vld [vmem:[%s21962_s1 + $0x238] sm:$0xf0] }
 0x357   :  { %8202 = vmatpush.bf16.msra.mxu1 %v9104_v51  ;;  %v9072_v51 = vor.u32 %v13618_v25, %v9069_v45  ;;  %v7963_v25 = vpop.f32.mrf.mxu2  ;;  %v13642_v45 = vld [vmem:[%s21962_s1 + $0x14c] sm:$0xf] }
 0x358   :  { %8228 = vmatpush.bf16.msra.mxu3 %v9360_v55  ;;  %v7951_v55 = vadd.f32 %v7950_v50, %v7938_v38  ;;  %v7939_v38 = vpop.f32.mrf.mxu0  ;;  %v13670_v39 = vld [vmem:[%s21962_s1 + $0x22c] sm:$0xf] }
 0x359   :  { %8215 = vmatpush.bf16.msra.mxu2 %v9232_v52  ;;  %v9200_v52 = vor.u32 %v13650_v61, %v9197_v36  ;;  %v9165_v61 = vld [vmem:[%s21962_s1 + $0x158] sm:$0xf0]  ;;  %v13758_v38 = vld [vmem:[%s21962_s1 + $0x4ec] sm:$0xf] }
 0x35a   :  { %8190 = vmatpush.bf16.msra.mxu0 %v13436_v26  ;;  %v9184_v26 = vor.u32 %v13646_v56, %v9181_v57  ;;  %v7964_v36 = vadd.f32 %v7963_v25, %v7951_v55  ;;  %v9168_v53 = vor.u32 %v13642_v45, %v9165_v61  ;;  %v9296_v55 = vor.u32 %v13674_v35, %v9293_v54  ;;  %v13638_v56 = vld [vmem:[%s21962_s1 + $0x12c] sm:$0xf]  ;;  %v9149_v57 = vld [vmem:[%s21962_s1 + $0x138] sm:$0xf0] }
 0x35b   :  { %8203 = vmatpush.bf16.msra.mxu1 %v9088_v21  ;;  %v13387_v21 = vld [vmem:[%s21962_s1 + $0x2248] sm:$0xf]  ;;  %v13634_v25 = vld [vmem:[%s21962_s1 + $0x10c] sm:$0xf]  ;;  %v9133_v45 = vld [vmem:[%s21962_s1 + $0x118] sm:$0xf0] }
 0x35c   :  { %8229 = vmatpush.bf16.msra.mxu3 %v9344_v30  ;;  %v9037_v30 = vld [vmem:[%s21962_s1 + $0x58] sm:$0xf0]  ;;  %v13666_v61 = vld [vmem:[%s21962_s1 + $0x20c] sm:$0xf] }
 0x35d   :  { %8216 = vmatpush.bf16.msra.mxu2 %v9216_v31  ;;  %v14700_v31 = vld [vmem:[%s21962_s1 + $0x2254] sm:$0xf0]  ;;  %v13726_v35 = vld [vmem:[%s21962_s1 + $0x3ec] sm:$0xf]  ;;  %v9501_v54 = vld [vmem:[%s21962_s1 + $0x3f8] sm:$0xf0] }
 0x35e   :  { %8191 = vmatpush.bf16.msra.mxu0 %v13420_v44  ;;  %v13388_v44 = vor.u32 %v14700_v31, %v13387_v21  ;;  %v7952_v50 = vpop.f32.mrf.mxu1  ;;  %v9152_v31 = vor.u32 %v13638_v56, %v9149_v57  ;;  %v9504_v57 = vor.u32 %v13726_v35, %v9501_v54  ;;  %v9469_v35 = vld [vmem:[%s21962_s1 + $0x3b8] sm:$0xf0]  ;;  %v13750_v54 = vld [vmem:[%s21962_s1 + $0x4ac] sm:$0xf] }
 0x35f   :  { %8204 = vmatpush.bf16.msra.mxu1 %v9072_v51  ;;  %v20208_v51 = vadd.f32 %v7976_v32, %v7964_v36  ;;  %v9261_v36 = vld [vmem:[%s21962_s1 + $0x218] sm:$0xf0]  ;;  %v7965_v32 = vpop.f32.mrf.mxu2 }
 0x360   :  { %8230 = vmatpush.bf16.msra.mxu3 %v9328_v11  ;;  %v13606_v11 = vld [vmem:[%s21962_s1 + $0x2c] sm:$0xf]  ;;  %v9264_v56 = vor.u32 %v13666_v61, %v9261_v36 }
 0x361   :  { %8217 = vmatpush.bf16.msra.mxu2 %v9200_v52  ;;  %v9040_v52 = vor.u32 %v13610_v24, %v9037_v30  ;;  %v9024_v21 = vor.u32 %v13606_v11, %v9021_v19  ;;  %v13602_v24 = vld [vmem:[%s21962_s1 + $0xc] sm:$0xf]  ;;  %v9280_v30 = vor.u32 %v13670_v39, %v9277_v58  ;;  %v9136_v11 = vor.u32 %v13634_v25, %v9133_v45  ;;  %v9885_v19 = vld [vmem:[%s21962_s1 + $0x6f8] sm:$0xf0] }
 0x362   :  { %8192 = vmatpush.bf16.msra.mxu0 %v13404_v3  ;;  %v13372_v3 = vor.u32 %v14696_v23, %v13371_v20  ;;  %v9757_v20 = vld [vmem:[%s21962_s1 + $0x5f8] sm:$0xf0]  ;;  %v13818_v25 = vld [vmem:[%s21962_s1 + $0x6cc] sm:$0xf] }
 0x363   :  { %8205 = vmatpush.bf16.msra.mxu1 %v9056_v22  ;;  %v13355_v22 = vld [vmem:[%s21962_s1 + $0x2208] sm:$0xf]  ;;  %v13718_v32 = vld [vmem:[%s21962_s1 + $0x3ac] sm:$0xf] }
 0x364   :  { %8231 = vmatpush.bf16.msra.mxu3 %v9312_v43  ;;  %v9005_v43 = vld [vmem:[%s21962_s1 + $0x18] sm:$0xf0] }
 0x365   :  { %8218 = vmatpush.bf16.msra.mxu2 %v9184_v26  ;;  %v14692_v26 = vld [vmem:[%s21962_s1 + $0x2214] sm:$0xf0]  ;;  %v9008_v23 = vor.u32 %v13602_v24, %v9005_v43  ;;  %v13786_v24 = vld [vmem:[%s21962_s1 + $0x5cc] sm:$0xf]  ;;  %v9741_v43 = vld [vmem:[%s21962_s1 + $0x5d8] sm:$0xf0] }
 0x366   :  { %8193 = vmatpush.bf16.msra.mxu0 %v13388_v44  ;;  %v7978_v44 = vpop.f32.mrf.mxu3  ;;  %v13356_v50 = vor.u32 %v14692_v26, %v13355_v22  ;;  %v9485_v22 = vld [vmem:[%s21962_s1 + $0x3d8] sm:$0xf0]  ;;  %v13754_v26 = vld [vmem:[%s21962_s1 + $0x4cc] sm:$0xf]  ;;  %v9744_v36 = vor.u32 %v13786_v24, %v9741_v43 }
 0x367   :  { %8206 = vmatpush.bf16.msra.mxu1 %v9040_v52  ;;  %v9629_v52 = vld [vmem:[%s21962_s1 + $0x4f8] sm:$0xf0] }
 0x368   :  { %8232 = vmatpush.bf16.msra.mxu3 %v9296_v55  ;;  %v13822_v55 = vld [vmem:[%s21962_s1 + $0x6ec] sm:$0xf]  ;;  %v9632_v39 = vor.u32 %v13758_v38, %v9629_v52  ;;  %v14762_v38 = vld [vmem:[#allocation1 + $0x12] sm:$0xff] }
 0x369   :  { %8219 = vmatpush.bf16.msra.mxu2 %v9168_v53  ;;  %v13790_v53 = vld [vmem:[%s21962_s1 + $0x5ec] sm:$0xf] }
 0x36a   :  { %8194 = vmatpush.bf16.msra.mxu0 %v13372_v3  ;;  %v9760_v58 = vor.u32 %v13790_v53, %v9757_v20  ;;  %v13722_v3 = vld [vmem:[%s21962_s1 + $0x3cc] sm:$0xf]  ;;  %v9725_v53 = vld [vmem:[%s21962_s1 + $0x5b8] sm:$0xf0] }
 0x36b   :  { %8207 = vmatpush.bf16.msra.mxu1 %v9024_v21  ;;  %v9888_v21 = vor.u32 %v13822_v55, %v9885_v19  ;;  %v9488_v45 = vor.u32 %v13722_v3, %v9485_v22  ;;  %v13782_v52 = vld [vmem:[%s21962_s1 + $0x5ac] sm:$0xf] }
 0x36c   :  { %8233 = vmatpush.bf16.msra.mxu3 %v9280_v30  ;;  %v9869_v30 = vld [vmem:[%s21962_s1 + $0x6d8] sm:$0xf0]  ;;  %v13814_v20 = vld [vmem:[%s21962_s1 + $0x6ac] sm:$0xf]  ;;  %v9728_v19 = vor.u32 %v13782_v52, %v9725_v53 }
 0x36d   :  { %8220 = vmatpush.bf16.msra.mxu2 %v9152_v31  ;;  %v9613_v31 = vld [vmem:[%s21962_s1 + $0x4d8] sm:$0xf0]  ;;  %v9872_v44 = vor.u32 %v13818_v25, %v9869_v30  ;;  %v13810_v22 = vld [vmem:[%s21962_s1 + $0x68c] sm:$0xf] }
 0x36e   :  { %8195 = vmatpush.bf16.msra.mxu0 %v13356_v50  ;;  %v9616_v61 = vor.u32 %v13754_v26, %v9613_v31  ;;  %v9597_v50 = vld [vmem:[%s21962_s1 + $0x4b8] sm:$0xf0]  ;;  %v7989_v3 = vpop.f32.mrf.mxu0  ;;  %v13710_v30 = vld [vmem:[%s21962_s1 + $0x36c] sm:$0xf] }
 0x36f   :  { %8208 = vmatpush.bf16.msra.mxu1 %v9008_v23  ;;  %v9853_v23 = vld [vmem:[%s21962_s1 + $0x6b8] sm:$0xf0]  ;;  %v9600_v55 = vor.u32 %v13750_v54, %v9597_v50  ;;  %v8002_v24 = vpop.f32.mrf.mxu1 }
 0x370   :  { %8234 = vmatpush.bf16.msra.mxu3 %v9264_v56  ;;  %v13714_v56 = vld [vmem:[%s21962_s1 + $0x38c] sm:$0xf]  ;;  %v9837_v26 = vld [vmem:[%s21962_s1 + $0x698] sm:$0xf0] }
 0x371   :  { %8221 = vmatpush.bf16.msra.mxu2 %v9136_v11  ;;  %8196 = vmatmul.bf16.vlgmr.msra.gmra.mxu0 %v14762_v38  ;;  %v9472_v11 = vor.u32 %v13718_v32, %v9469_v35  ;;  %v9565_v32 = vld [vmem:[%s21962_s1 + $0x478] sm:$0xf0]  ;;  %v13774_v35 = vld [vmem:[%s21962_s1 + $0x56c] sm:$0xf] }
 0x372   :  { %8240 = vmatpush.bf16.msrb.mxu0 %v9504_v57  ;;  %8209 = vmatmul.bf16.vlgmr.msra.gmra.mxu1 %v15144_v28  ;;  %v9453_v57 = vld [vmem:[%s21962_s1 + $0x398] sm:$0xf0]  ;;  %v13806_v38 = vld [vmem:[%s21962_s1 + $0x66c] sm:$0xf] }
 0x373   :  { %8253 = vmatpush.bf16.msrb.mxu1 %v9632_v39  ;;  %8235 = vmatmul.bf16.vlgmr.msra.gmra.mxu3 %v15142_v27  ;;  %v13746_v27 = vld [vmem:[%s21962_s1 + $0x48c] sm:$0xf]  ;;  %v9581_v28 = vld [vmem:[%s21962_s1 + $0x498] sm:$0xf0]  ;;  %v9456_v31 = vor.u32 %v13714_v56, %v9453_v57 }
 0x374   :  { %8279 = vmatpush.bf16.msrb.mxu3 %v9888_v21  ;;  %8222 = vmatmul.bf16.vlgmr.msra.gmra.mxu2 %v15154_v34  ;;  %v9856_v34 = vor.u32 %v13814_v20, %v9853_v23  ;;  %v13778_v39 = vld [vmem:[%s21962_s1 + $0x58c] sm:$0xf]  ;;  %v7990_v21 = vadd.f32 %v7989_v3, %v20208_v51  ;;  %v9584_v43 = vor.u32 %v13746_v27, %v9581_v28  ;;  %v9693_v54 = vld [vmem:[%s21962_s1 + $0x578] sm:$0xf0] }
 0x375   :  { %8266 = vmatpush.bf16.msrb.mxu2 %v9760_v58  ;;  %v9709_v58 = vld [vmem:[%s21962_s1 + $0x598] sm:$0xf0]  ;;  %v9840_v51 = vor.u32 %v13810_v22, %v9837_v26  ;;  %v9696_v53 = vor.u32 %v13774_v35, %v9693_v54  ;;  %v13706_v20 = vld [vmem:[%s21962_s1 + $0x34c] sm:$0xf] }
 0x376   :  { %8241 = vmatpush.bf16.msrb.mxu0 %v9488_v45  ;;  %v9712_v25 = vor.u32 %v13778_v39, %v9709_v58  ;;  %v9437_v45 = vld [vmem:[%s21962_s1 + $0x378] sm:$0xf0]  ;;  %v13770_v57 = vld [vmem:[%s21962_s1 + $0x54c] sm:$0xf]  ;;  %v8028_v28 = vpop.f32.mrf.mxu3  ;;  %v7991_v3 = vpop.f32.mrf.mxu0 }
 0x377   :  { %8254 = vmatpush.bf16.msrb.mxu1 %v9616_v61  ;;  %v13742_v61 = vld [vmem:[%s21962_s1 + $0x46c] sm:$0xf]  ;;  %v9440_v50 = vor.u32 %v13710_v30, %v9437_v45  ;;  %v9421_v23 = vld [vmem:[%s21962_s1 + $0x358] sm:$0xf0]  ;;  %v8004_v26 = vpop.f32.mrf.mxu1 }
 0x378   :  { %8280 = vmatpush.bf16.msrb.mxu3 %v9872_v44  ;;  %v9821_v44 = vld [vmem:[%s21962_s1 + $0x678] sm:$0xf0]  ;;  %v9568_v52 = vor.u32 %v13742_v61, %v9565_v32  ;;  %v13802_v39 = vld [vmem:[%s21962_s1 + $0x64c] sm:$0xf]  ;;  %v9424_v22 = vor.u32 %v13706_v20, %v9421_v23 }
 0x379   :  { %8267 = vmatpush.bf16.msrb.mxu2 %v9744_v36  ;;  %v8003_v36 = vadd.f32 %v8002_v24, %v7990_v21  ;;  %v9549_v56 = vld [vmem:[%s21962_s1 + $0x458] sm:$0xf0]  ;;  %v13734_v30 = vld [vmem:[%s21962_s1 + $0x42c] sm:$0xf] }
 0x37a   :  { %8242 = vmatpush.bf16.msrb.mxu0 %v9472_v11  ;;  %v13738_v11 = vld [vmem:[%s21962_s1 + $0x44c] sm:$0xf]  ;;  %v9677_v27 = vld [vmem:[%s21962_s1 + $0x558] sm:$0xf0] }
 0x37b   :  { %8255 = vmatpush.bf16.msrb.mxu1 %v9600_v55  ;;  %v9824_v55 = vor.u32 %v13806_v38, %v9821_v44  ;;  %v9805_v58 = vld [vmem:[%s21962_s1 + $0x658] sm:$0xf0]  ;;  %v9680_v24 = vor.u32 %v13770_v57, %v9677_v27  ;;  %v13798_v32 = vld [vmem:[%s21962_s1 + $0x62c] sm:$0xf] }
 0x37c   :  { %8281 = vmatpush.bf16.msrb.mxu3 %v9856_v34  ;;  %v9808_v45 = vor.u32 %v13802_v39, %v9805_v58  ;;  %v9533_v61 = vld [vmem:[%s21962_s1 + $0x438] sm:$0xf0]  ;;  %v13698_v38 = vld [vmem:[%s21962_s1 + $0x30c] sm:$0xf] }
 0x37d   :  { %8268 = vmatpush.bf16.msrb.mxu2 %v9728_v19  ;;  %v8015_v19 = vpop.f32.mrf.mxu2  ;;  %v9789_v35 = vld [vmem:[%s21962_s1 + $0x638] sm:$0xf0]  ;;  %v13762_v23 = vld [vmem:[%s21962_s1 + $0x50c] sm:$0xf] }
 0x37e   :  { %8243 = vmatpush.bf16.msrb.mxu0 %v9456_v31  ;;  %v8016_v34 = vadd.f32 %v8015_v19, %v8003_v36  ;;  %v9552_v31 = vor.u32 %v13738_v11, %v9549_v56  ;;  %v9661_v36 = vld [vmem:[%s21962_s1 + $0x538] sm:$0xf0]  ;;  %v9792_v11 = vor.u32 %v13798_v32, %v9789_v35  ;;  %v13794_v19 = vld [vmem:[%s21962_s1 + $0x60c] sm:$0xf]  ;;  %v8030_v39 = vpop.f32.mrf.mxu3 }
 0x37f   :  { %8256 = vmatpush.bf16.msrb.mxu1 %v9584_v43  ;;  %v13702_v43 = vld [vmem:[%s21962_s1 + $0x32c] sm:$0xf]  ;;  %v9389_v44 = vld [vmem:[%s21962_s1 + $0x318] sm:$0xf0] }
 0x380   :  { %8282 = vmatpush.bf16.msrb.mxu3 %v9840_v51  ;;  %v20406_v21 = vadd.f32 %v8028_v28, %v8016_v34  ;;  %v13766_v51 = vld [vmem:[%s21962_s1 + $0x52c] sm:$0xf]  ;;  %v9517_v20 = vld [vmem:[%s21962_s1 + $0x418] sm:$0xf0]  ;;  %v9392_v58 = vor.u32 %v13698_v38, %v9389_v44 }
 0x381   :  { %8269 = vmatpush.bf16.msrb.mxu2 %v9712_v25  ;;  %v9405_v25 = vld [vmem:[%s21962_s1 + $0x338] sm:$0xf0]  ;;  %v13854_v27 = vld [vmem:[%s21962_s1 + $0x7ec] sm:$0xf] }
 0x382   :  { %8244 = vmatpush.bf16.msrb.mxu0 %v9440_v50  ;;  %v9408_v54 = vor.u32 %v13702_v43, %v9405_v25  ;;  %v9536_v50 = vor.u32 %v13734_v30, %v9533_v61  ;;  %v9773_v56 = vld [vmem:[%s21962_s1 + $0x618] sm:$0xf0]  ;;  %v13886_v28 = vld [vmem:[%s21962_s1 + $0x8ec] sm:$0xf] }
 0x383   :  { %8257 = vmatpush.bf16.msrb.mxu1 %v9568_v52  ;;  %v9664_v52 = vor.u32 %v13766_v51, %v9661_v36  ;;  %v10013_v34 = vld [vmem:[%s21962_s1 + $0x7f8] sm:$0xf0]  ;;  %v13950_v43 = vld [vmem:[%s21962_s1 + $0xaec] sm:$0xf]  ;;  %v9776_v30 = vor.u32 %v13794_v19, %v9773_v56 }
 0x384   :  { %8283 = vmatpush.bf16.msrb.mxu3 %v9824_v55  ;;  %v9645_v55 = vld [vmem:[%s21962_s1 + $0x518] sm:$0xf0]  ;;  %v13850_v36 = vld [vmem:[%s21962_s1 + $0x7cc] sm:$0xf] }
 0x385   :  { %8270 = vmatpush.bf16.msrb.mxu2 %v9696_v53  ;;  %v13730_v53 = vld [vmem:[%s21962_s1 + $0x40c] sm:$0xf]  ;;  %v8017_v57 = vpop.f32.mrf.mxu2  ;;  %v10141_v3 = vld [vmem:[%s21962_s1 + $0x8f8] sm:$0xf0] }
 0x386   :  { %8245 = vmatpush.bf16.msrb.mxu0 %v9424_v22  ;;  %v13918_v22 = vld [vmem:[%s21962_s1 + $0x9ec] sm:$0xf]  ;;  %v10269_v26 = vld [vmem:[%s21962_s1 + $0x9f8] sm:$0xf0]  ;;  %v10144_v61 = vor.u32 %v13886_v28, %v10141_v3 }
 0x387   :  { %8258 = vmatpush.bf16.msrb.mxu1 %v9552_v31  ;;  %v9520_v31 = vor.u32 %v13730_v53, %v9517_v20  ;;  %v10397_v25 = vld [vmem:[%s21962_s1 + $0xaf8] sm:$0xf0]  ;;  %v10272_v51 = vor.u32 %v13918_v22, %v10269_v26  ;;  %v13882_v35 = vld [vmem:[%s21962_s1 + $0x8cc] sm:$0xf] }
 0x388   :  { %8284 = vmatpush.bf16.msrb.mxu3 %v9808_v45  ;;  %v10016_v45 = vor.u32 %v13854_v27, %v10013_v34  ;;  %v9997_v32 = vld [vmem:[%s21962_s1 + $0x7d8] sm:$0xf0]  ;;  %v13914_v44 = vld [vmem:[%s21962_s1 + $0x9cc] sm:$0xf] }
 0x389   :  { %8271 = vmatpush.bf16.msrb.mxu2 %v9680_v24  ;;  %v9648_v24 = vor.u32 %v13762_v23, %v9645_v55  ;;  %v10125_v38 = vld [vmem:[%s21962_s1 + $0x8d8] sm:$0xf0]  ;;  %v10000_v20 = vor.u32 %v13850_v36, %v9997_v32  ;;  %v13846_v55 = vld [vmem:[%s21962_s1 + $0x7ac] sm:$0xf] }
 0x38a   :  { %8246 = vmatpush.bf16.msrb.mxu0 %v9408_v54  ;;  %v10400_v54 = vor.u32 %v13950_v43, %v10397_v25  ;;  %v10381_v53 = vld [vmem:[%s21962_s1 + $0xad8] sm:$0xf0]  ;;  %v10128_v23 = vor.u32 %v13882_v35, %v10125_v38  ;;  %v13878_v56 = vld [vmem:[%s21962_s1 + $0x8ac] sm:$0xf] }
 0x38b   :  { %8259 = vmatpush.bf16.msrb.mxu1 %v9536_v50  ;;  %v10253_v50 = vld [vmem:[%s21962_s1 + $0x9d8] sm:$0xf0]  ;;  %v13910_v34 = vld [vmem:[%s21962_s1 + $0x9ac] sm:$0xf] }
 0x38c   :  { %8285 = vmatpush.bf16.msrb.mxu3 %v9792_v11  ;;  %v10256_v11 = vor.u32 %v13914_v44, %v10253_v50  ;;  %v9981_v19 = vld [vmem:[%s21962_s1 + $0x7b8] sm:$0xf0]  ;;  %v13942_v39 = vld [vmem:[%s21962_s1 + $0xaac] sm:$0xf] }
 0x38d   :  { %8272 = vmatpush.bf16.msrb.mxu2 %v9664_v52  ;;  %v13946_v52 = vld [vmem:[%s21962_s1 + $0xacc] sm:$0xf]  ;;  %v10109_v27 = vld [vmem:[%s21962_s1 + $0x8b8] sm:$0xf0] }
 0x38e   :  { %8247 = vmatpush.bf16.msrb.mxu0 %v9392_v58  ;;  %v10384_v57 = vor.u32 %v13946_v52, %v10381_v53  ;;  %v10237_v28 = vld [vmem:[%s21962_s1 + $0x9b8] sm:$0xf0]  ;;  %v9984_v58 = vor.u32 %v13846_v55, %v9981_v19  ;;  %v10112_v3 = vor.u32 %v13878_v56, %v10109_v27  ;;  %v13842_v26 = vld [vmem:[%s21962_s1 + $0x78c] sm:$0xf]  ;;  %v8041_v25 = vpop.f32.mrf.mxu0 }
 0x38f   :  { %8260 = vmatpush.bf16.msrb.mxu1 %v9520_v31  ;;  %v10240_v22 = vor.u32 %v13910_v34, %v10237_v28  ;;  %v9965_v31 = vld [vmem:[%s21962_s1 + $0x798] sm:$0xf0]  ;;  %v8054_v36 = vpop.f32.mrf.mxu1  ;;  %v13870_v44 = vld [vmem:[%s21962_s1 + $0x86c] sm:$0xf] }
 0x390   :  { %8286 = vmatpush.bf16.msrb.mxu3 %v9776_v30  ;;  %v10221_v43 = vld [vmem:[%s21962_s1 + $0x998] sm:$0xf0]  ;;  %v13938_v30 = vld [vmem:[%s21962_s1 + $0xa8c] sm:$0xf] }
 0x391   :  { %8273 = vmatpush.bf16.msrb.mxu2 %v9648_v24  ;;  %8248 = vmatmul.bf16.vlgmr.msrb.gmra.mxu0 %v15146_v29  ;;  %v13874_v29 = vld [vmem:[%s21962_s1 + $0x88c] sm:$0xf]  ;;  %v9949_v38 = vld [vmem:[%s21962_s1 + $0x778] sm:$0xf0] }
 0x392   :  { %8292 = vmatpush.bf16.msra.mxu0 %v10016_v45  ;;  %8261 = vmatmul.bf16.vlgmr.msrb.gmra.mxu1 %v15222_v0  ;;  %v10093_v0 = vld [vmem:[%s21962_s1 + $0x898] sm:$0xf0]  ;;  %v13906_v24 = vld [vmem:[%s21962_s1 + $0x98c] sm:$0xf] }
 0x393   :  { %8305 = vmatpush.bf16.msra.mxu1 %v10144_v61  ;;  %8287 = vmatmul.bf16.vlgmr.msrb.gmra.mxu3 %v15217_v60  ;;  %v10349_v45 = vld [vmem:[%s21962_s1 + $0xa98] sm:$0xf0]  ;;  %v8042_v61 = vadd.f32 %v8041_v25, %v20406_v21  ;;  %v10096_v32 = vor.u32 %v13874_v29, %v10093_v0  ;;  %v10224_v35 = vor.u32 %v13906_v24, %v10221_v43  ;;  %v13902_v53 = vld [vmem:[%s21962_s1 + $0x96c] sm:$0xf] }
 0x394   :  { %8331 = vmatpush.bf16.msra.mxu3 %v10400_v54  ;;  %8274 = vmatmul.bf16.vlgmr.msrb.gmra.mxu2 %v15226_v2  ;;  %v10365_v2 = vld [vmem:[%s21962_s1 + $0xab8] sm:$0xf0]  ;;  %v13838_v54 = vld [vmem:[%s21962_s1 + $0x76c] sm:$0xf]  ;;  %v10352_v21 = vor.u32 %v13938_v30, %v10349_v45 }
 0x395   :  { %8318 = vmatpush.bf16.msra.mxu2 %v10272_v51  ;;  %v10368_v60 = vor.u32 %v13942_v39, %v10365_v2  ;;  %v9968_v51 = vor.u32 %v13842_v26, %v9965_v31  ;;  %v8055_v50 = vadd.f32 %v8054_v36, %v8042_v61  ;;  %v10077_v52 = vld [vmem:[%s21962_s1 + $0x878] sm:$0xf0]  ;;  %v9952_v55 = vor.u32 %v13838_v54, %v9949_v38  ;;  %v13866_v34 = vld [vmem:[%s21962_s1 + $0x84c] sm:$0xf] }
 0x396   :  { %8293 = vmatpush.bf16.msra.mxu0 %v10000_v20  ;;  %v10205_v20 = vld [vmem:[%s21962_s1 + $0x978] sm:$0xf0]  ;;  %v10080_v19 = vor.u32 %v13870_v44, %v10077_v52  ;;  %v8080_v26 = vpop.f32.mrf.mxu3  ;;  %v13930_v31 = vld [vmem:[%s21962_s1 + $0xa4c] sm:$0xf] }
 0x397   :  { %8306 = vmatpush.bf16.msra.mxu1 %v10128_v23  ;;  %v13934_v23 = vld [vmem:[%s21962_s1 + $0xa6c] sm:$0xf]  ;;  %v10208_v56 = vor.u32 %v13902_v53, %v10205_v20  ;;  %v9933_v27 = vld [vmem:[%s21962_s1 + $0x758] sm:$0xf0]  ;;  %v8067_v39 = vpop.f32.mrf.mxu2  ;;  %v8056_v24 = vpop.f32.mrf.mxu1 }
 0x398   :  { %8332 = vmatpush.bf16.msra.mxu3 %v10384_v57  ;;  %v13834_v57 = vld [vmem:[%s21962_s1 + $0x74c] sm:$0xf]  ;;  %v10061_v2 = vld [vmem:[%s21962_s1 + $0x858] sm:$0xf0] }
 0x399   :  { %8319 = vmatpush.bf16.msra.mxu2 %v10256_v11  ;;  %v10333_v11 = vld [vmem:[%s21962_s1 + $0xa78] sm:$0xf0]  ;;  %v9936_v0 = vor.u32 %v13834_v57, %v9933_v27  ;;  %v10064_v25 = vor.u32 %v13866_v34, %v10061_v2  ;;  %v13830_v45 = vld [vmem:[%s21962_s1 + $0x72c] sm:$0xf] }
 0x39a   :  { %8294 = vmatpush.bf16.msra.mxu0 %v9984_v58  ;;  %v10336_v28 = vor.u32 %v13934_v23, %v10333_v11  ;;  %v13898_v58 = vld [vmem:[%s21962_s1 + $0x94c] sm:$0xf]  ;;  %v10317_v29 = vld [vmem:[%s21962_s1 + $0xa58] sm:$0xf0] }
 0x39b   :  { %8307 = vmatpush.bf16.msra.mxu1 %v10112_v3  ;;  %v10189_v3 = vld [vmem:[%s21962_s1 + $0x958] sm:$0xf0]  ;;  %v10320_v36 = vor.u32 %v13930_v31, %v10317_v29  ;;  %v13926_v38 = vld [vmem:[%s21962_s1 + $0xa2c] sm:$0xf] }
 0x39c   :  { %8333 = vmatpush.bf16.msra.mxu3 %v10368_v60  ;;  %v8043_v60 = vpop.f32.mrf.mxu0  ;;  %v10192_v30 = vor.u32 %v13898_v58, %v10189_v3  ;;  %v9917_v61 = vld [vmem:[%s21962_s1 + $0x738] sm:$0xf0]  ;;  %v13858_v23 = vld [vmem:[%s21962_s1 + $0x80c] sm:$0xf] }
 0x39d   :  { %8320 = vmatpush.bf16.msra.mxu2 %v10240_v22  ;;  %v8068_v22 = vadd.f32 %v8067_v39, %v8055_v50  ;;  %v10173_v54 = vld [vmem:[%s21962_s1 + $0x938] sm:$0xf0]  ;;  %v13826_v50 = vld [vmem:[%s21962_s1 + $0x70c] sm:$0xf] }
 0x39e   :  { %8295 = vmatpush.bf16.msra.mxu0 %v9968_v51  ;;  %v13862_v51 = vld [vmem:[%s21962_s1 + $0x82c] sm:$0xf]  ;;  %v10301_v44 = vld [vmem:[%s21962_s1 + $0xa38] sm:$0xf0]  ;;  %v8082_v58 = vpop.f32.mrf.mxu3 }
 0x39f   :  { %8308 = vmatpush.bf16.msra.mxu1 %v10096_v32  ;;  %v20605_v43 = vadd.f32 %v8080_v26, %v8068_v22  ;;  %v10045_v32 = vld [vmem:[%s21962_s1 + $0x838] sm:$0xf0]  ;;  %v13922_v57 = vld [vmem:[%s21962_s1 + $0xa0c] sm:$0xf]  ;;  %v8069_v34 = vpop.f32.mrf.mxu2 }
 0x3a0   :  { %8334 = vmatpush.bf16.msra.mxu3 %v10352_v21  ;;  %v9920_v21 = vor.u32 %v13830_v45, %v9917_v61  ;;  %v9901_v52 = vld [vmem:[%s21962_s1 + $0x718] sm:$0xf0]  ;;  %v10048_v53 = vor.u32 %v13862_v51, %v10045_v32  ;;  %v14014_v2 = vld [vmem:[%s21962_s1 + $0xcec] sm:$0xf] }
 0x3a1   :  { %8321 = vmatpush.bf16.msra.mxu2 %v10224_v35  ;;  %v13894_v35 = vld [vmem:[%s21962_s1 + $0x92c] sm:$0xf]  ;;  %v10029_v11 = vld [vmem:[%s21962_s1 + $0x818] sm:$0xf0]  ;;  %v9904_v3 = vor.u32 %v13826_v50, %v9901_v52 }
 0x3a2   :  { %8296 = vmatpush.bf16.msra.mxu0 %v9952_v55  ;;  %v10176_v20 = vor.u32 %v13894_v35, %v10173_v54  ;;  %v13890_v55 = vld [vmem:[%s21962_s1 + $0x90c] sm:$0xf]  ;;  %v10285_v27 = vld [vmem:[%s21962_s1 + $0xa18] sm:$0xf0]  ;;  %v10032_v29 = vor.u32 %v13858_v23, %v10029_v11 }
 0x3a3   :  { %8309 = vmatpush.bf16.msra.mxu1 %v10080_v19  ;;  %v10304_v19 = vor.u32 %v13926_v38, %v10301_v44  ;;  %v10525_v39 = vld [vmem:[%s21962_s1 + $0xbf8] sm:$0xf0]  ;;  %v14046_v26 = vld [vmem:[%s21962_s1 + $0xdec] sm:$0xf] }
 0x3a4   :  { %8335 = vmatpush.bf16.msra.mxu3 %v10336_v28  ;;  %v13982_v28 = vld [vmem:[%s21962_s1 + $0xbec] sm:$0xf]  ;;  %v10653_v22 = vld [vmem:[%s21962_s1 + $0xcf8] sm:$0xf0] }
 0x3a5   :  { %8322 = vmatpush.bf16.msra.mxu2 %v10208_v56  ;;  %v10157_v56 = vld [vmem:[%s21962_s1 + $0x918] sm:$0xf0]  ;;  %v10656_v45 = vor.u32 %v14014_v2, %v10653_v22  ;;  %v13978_v51 = vld [vmem:[%s21962_s1 + $0xbcc] sm:$0xf] }
 0x3a6   :  { %8297 = vmatpush.bf16.msra.mxu0 %v9936_v0  ;;  %v10781_v31 = vld [vmem:[%s21962_s1 + $0xdf8] sm:$0xf0]  ;;  %v10160_v60 = vor.u32 %v13890_v55, %v10157_v56  ;;  %v14078_v0 = vld [vmem:[%s21962_s1 + $0xeec] sm:$0xf] }
 0x3a7   :  { %8310 = vmatpush.bf16.msra.mxu1 %v10064_v25  ;;  %v10909_v24 = vld [vmem:[%s21962_s1 + $0xef8] sm:$0xf0]  ;;  %v10288_v25 = vor.u32 %v13922_v57, %v10285_v27  ;;  %v10784_v61 = vor.u32 %v14046_v26, %v10781_v31  ;;  %v14010_v32 = vld [vmem:[%s21962_s1 + $0xccc] sm:$0xf] }
 0x3a8   :  { %8336 = vmatpush.bf16.msra.mxu3 %v10320_v36  ;;  %v10509_v36 = vld [vmem:[%s21962_s1 + $0xbd8] sm:$0xf0]  ;;  %v10912_v35 = vor.u32 %v14078_v0, %v10909_v24  ;;  %v14042_v38 = vld [vmem:[%s21962_s1 + $0xdcc] sm:$0xf] }
 0x3a9   :  { %8323 = vmatpush.bf16.msra.mxu2 %v10192_v30  ;;  %v10528_v30 = vor.u32 %v13982_v28, %v10525_v39  ;;  %v10637_v54 = vld [vmem:[%s21962_s1 + $0xcd8] sm:$0xf0]  ;;  %v10512_v52 = vor.u32 %v13978_v51, %v10509_v36  ;;  %v13974_v23 = vld [vmem:[%s21962_s1 + $0xbac] sm:$0xf] }
 0x3aa   :  { %8298 = vmatpush.bf16.msra.mxu0 %v9920_v21  ;;  %v10765_v44 = vld [vmem:[%s21962_s1 + $0xdd8] sm:$0xf0]  ;;  %v14074_v21 = vld [vmem:[%s21962_s1 + $0xecc] sm:$0xf] }
 0x3ab   :  { %8311 = vmatpush.bf16.msra.mxu1 %v10048_v53  ;;  %v10893_v50 = vld [vmem:[%s21962_s1 + $0xed8] sm:$0xf0]  ;;  %v10640_v53 = vor.u32 %v14010_v32, %v10637_v54  ;;  %v14006_v55 = vld [vmem:[%s21962_s1 + $0xcac] sm:$0xf] }
 0x3ac   :  { %8337 = vmatpush.bf16.msra.mxu3 %v10304_v19  ;;  %v10493_v11 = vld [vmem:[%s21962_s1 + $0xbb8] sm:$0xf0]  ;;  %v10896_v19 = vor.u32 %v14074_v21, %v10893_v50  ;;  %v14038_v57 = vld [vmem:[%s21962_s1 + $0xdac] sm:$0xf] }
 0x3ad   :  { %8324 = vmatpush.bf16.msra.mxu2 %v10176_v20  ;;  %v10768_v20 = vor.u32 %v14042_v38, %v10765_v44  ;;  %v10621_v56 = vld [vmem:[%s21962_s1 + $0xcb8] sm:$0xf0]  ;;  %v10496_v28 = vor.u32 %v13974_v23, %v10493_v11  ;;  %v14002_v58 = vld [vmem:[%s21962_s1 + $0xc8c] sm:$0xf] }
 0x3ae   :  { %8299 = vmatpush.bf16.msra.mxu0 %v9904_v3  ;;  %v10749_v27 = vld [vmem:[%s21962_s1 + $0xdb8] sm:$0xf0]  ;;  %v10624_v39 = vor.u32 %v14006_v55, %v10621_v56  ;;  %v14034_v22 = vld [vmem:[%s21962_s1 + $0xd8c] sm:$0xf]  ;;  %v8093_v31 = vpop.f32.mrf.mxu0 }
 0x3af   :  { %8312 = vmatpush.bf16.msra.mxu1 %v10032_v29  ;;  %v10877_v34 = vld [vmem:[%s21962_s1 + $0xeb8] sm:$0xf0]  ;;  %v10752_v2 = vor.u32 %v14038_v57, %v10749_v27  ;;  %v14066_v29 = vld [vmem:[%s21962_s1 + $0xe8c] sm:$0xf]  ;;  %v8094_v0 = vadd.f32 %v8093_v31, %v20605_v43 }
 0x3b0   :  { %8338 = vmatpush.bf16.msra.mxu3 %v10288_v25  ;;  %v10605_v3 = vld [vmem:[%s21962_s1 + $0xc98] sm:$0xf0]  ;;  %v8106_v25 = vpop.f32.mrf.mxu1  ;;  %v13998_v36 = vld [vmem:[%s21962_s1 + $0xc6c] sm:$0xf] }
 0x3b1   :  { %8325 = vmatpush.bf16.msra.mxu2 %v10160_v60  ;;  %8300 = vmatmul.bf16.vlgmr.msra.gmra.mxu0 %v15224_v1  ;;  %v14070_v1 = vld [vmem:[%s21962_s1 + $0xeac] sm:$0xf]  ;;  %v10733_v26 = vld [vmem:[%s21962_s1 + $0xd98] sm:$0xf0]  ;;  %v8107_v32 = vadd.f32 %v8106_v25, %v8094_v0 }
 0x3b2   :  { %8344 = vmatpush.bf16.msrb.mxu0 %v10528_v30  ;;  %8313 = vmatmul.bf16.vlgmr.msra.gmra.mxu1 %v15472_v12  ;;  %v13970_v12 = vld [vmem:[%s21962_s1 + $0xb8c] sm:$0xf]  ;;  %v10861_v60 = vld [vmem:[%s21962_s1 + $0xe98] sm:$0xf0]  ;;  %v10608_v30 = vor.u32 %v14002_v58, %v10605_v3 }
 0x3b3   :  { %8357 = vmatpush.bf16.msrb.mxu1 %v10656_v45  ;;  %8339 = vmatmul.bf16.vlgmr.msra.gmra.mxu3 %v15480_v15  ;;  %v10880_v15 = vor.u32 %v14070_v1, %v10877_v34  ;;  %v10736_v45 = vor.u32 %v14034_v22, %v10733_v26  ;;  %v10461_v51 = vld [vmem:[%s21962_s1 + $0xb78] sm:$0xf0]  ;;  %v10864_v43 = vor.u32 %v14066_v29, %v10861_v60  ;;  %v14030_v54 = vld [vmem:[%s21962_s1 + $0xd6c] sm:$0xf] }
 0x3b4   :  { %8383 = vmatpush.bf16.msrb.mxu3 %v10912_v35  ;;  %8326 = vmatmul.bf16.vlgmr.msra.gmra.mxu2 %v15482_v16  ;;  %v10477_v16 = vld [vmem:[%s21962_s1 + $0xb98] sm:$0xf0]  ;;  %v14062_v44 = vld [vmem:[%s21962_s1 + $0xe6c] sm:$0xf] }
 0x3b5   :  { %8370 = vmatpush.bf16.msrb.mxu2 %v10784_v61  ;;  %v10480_v24 = vor.u32 %v13970_v12, %v10477_v16  ;;  %v13966_v61 = vld [vmem:[%s21962_s1 + $0xb6c] sm:$0xf]  ;;  %v10589_v35 = vld [vmem:[%s21962_s1 + $0xc78] sm:$0xf0] }
 0x3b6   :  { %8345 = vmatpush.bf16.msrb.mxu0 %v10512_v52  ;;  %v10717_v38 = vld [vmem:[%s21962_s1 + $0xd78] sm:$0xf0]  ;;  %v10464_v50 = vor.u32 %v13966_v61, %v10461_v51  ;;  %v10592_v52 = vor.u32 %v13998_v36, %v10589_v35  ;;  %v13994_v11 = vld [vmem:[%s21962_s1 + $0xc4c] sm:$0xf]  ;;  %v8132_v34 = vpop.f32.mrf.mxu3 }
 0x3b7   :  { %8358 = vmatpush.bf16.msrb.mxu1 %v10640_v53  ;;  %v10845_v21 = vld [vmem:[%s21962_s1 + $0xe78] sm:$0xf0]  ;;  %v10720_v53 = vor.u32 %v14030_v54, %v10717_v38  ;;  %v14026_v57 = vld [vmem:[%s21962_s1 + $0xd4c] sm:$0xf] }
 0x3b8   :  { %8384 = vmatpush.bf16.msrb.mxu3 %v10896_v19  ;;  %v10445_v23 = vld [vmem:[%s21962_s1 + $0xb58] sm:$0xf0]  ;;  %v10848_v55 = vor.u32 %v14062_v44, %v10845_v21  ;;  %v8119_v19 = vpop.f32.mrf.mxu2  ;;  %v8108_v16 = vpop.f32.mrf.mxu1  ;;  %v13958_v22 = vld [vmem:[%s21962_s1 + $0xb2c] sm:$0xf] }
 0x3b9   :  { %8371 = vmatpush.bf16.msrb.mxu2 %v10768_v20  ;;  %v13962_v20 = vld [vmem:[%s21962_s1 + $0xb4c] sm:$0xf]  ;;  %v10573_v56 = vld [vmem:[%s21962_s1 + $0xc58] sm:$0xf0]  ;;  %v8120_v1 = vadd.f32 %v8119_v19, %v8107_v32 }
 0x3ba   :  { %8346 = vmatpush.bf16.msrb.mxu0 %v10496_v28  ;;  %v10701_v27 = vld [vmem:[%s21962_s1 + $0xd58] sm:$0xf0]  ;;  %v14058_v28 = vld [vmem:[%s21962_s1 + $0xe4c] sm:$0xf]  ;;  %v10448_v12 = vor.u32 %v13962_v20, %v10445_v23 }
 0x3bb   :  { %8359 = vmatpush.bf16.msrb.mxu1 %v10624_v39  ;;  %v10829_v39 = vld [vmem:[%s21962_s1 + $0xe58] sm:$0xf0]  ;;  %v20804_v58 = vadd.f32 %v8132_v34, %v8120_v1  ;;  %v10704_v3 = vor.u32 %v14026_v57, %v10701_v27  ;;  %v13990_v31 = vld [vmem:[%s21962_s1 + $0xc2c] sm:$0xf] }
 0x3bc   :  { %8385 = vmatpush.bf16.msrb.mxu3 %v10880_v15  ;;  %v10576_v15 = vor.u32 %v13994_v11, %v10573_v56  ;;  %v10429_v26 = vld [vmem:[%s21962_s1 + $0xb38] sm:$0xf0]  ;;  %v10832_v29 = vor.u32 %v14058_v28, %v10829_v39  ;;  %v14022_v0 = vld [vmem:[%s21962_s1 + $0xd2c] sm:$0xf] }
 0x3bd   :  { %8372 = vmatpush.bf16.msrb.mxu2 %v10752_v2  ;;  %v8095_v2 = vpop.f32.mrf.mxu0  ;;  %v10557_v60 = vld [vmem:[%s21962_s1 + $0xc38] sm:$0xf0]  ;;  %v14054_v25 = vld [vmem:[%s21962_s1 + $0xe2c] sm:$0xf] }
 0x3be   :  { %8347 = vmatpush.bf16.msrb.mxu0 %v10480_v24  ;;  %v10685_v24 = vld [vmem:[%s21962_s1 + $0xd38] sm:$0xf0]  ;;  %v13954_v61 = vld [vmem:[%s21962_s1 + $0xb0c] sm:$0xf]  ;;  %v10560_v36 = vor.u32 %v13990_v31, %v10557_v60  ;;  %v8134_v11 = vpop.f32.mrf.mxu3 }
 0x3bf   :  { %8360 = vmatpush.bf16.msrb.mxu1 %v10608_v30  ;;  %v10813_v30 = vld [vmem:[%s21962_s1 + $0xe38] sm:$0xf0]  ;;  %v13986_v32 = vld [vmem:[%s21962_s1 + $0xc0c] sm:$0xf] }
 0x3c0   :  { %8386 = vmatpush.bf16.msrb.mxu3 %v10864_v43  ;;  %v10413_v51 = vld [vmem:[%s21962_s1 + $0xb18] sm:$0xf0]  ;;  %v10688_v43 = vor.u32 %v14022_v0, %v10685_v24  ;;  %v14018_v54 = vld [vmem:[%s21962_s1 + $0xd0c] sm:$0xf]  ;;  %v10816_v38 = vor.u32 %v14054_v25, %v10813_v30 }
 0x3c1   :  { %8373 = vmatpush.bf16.msrb.mxu2 %v10736_v45  ;;  %v10432_v45 = vor.u32 %v13958_v22, %v10429_v26  ;;  %v10541_v35 = vld [vmem:[%s21962_s1 + $0xc18] sm:$0xf0]  ;;  %v14050_v21 = vld [vmem:[%s21962_s1 + $0xe0c] sm:$0xf] }
 0x3c2   :  { %8348 = vmatpush.bf16.msrb.mxu0 %v10464_v50  ;;  %v10669_v44 = vld [vmem:[%s21962_s1 + $0xd18] sm:$0xf0]  ;;  %v14142_v23 = vld [vmem:[%s21962_s1 + $0x10ec] sm:$0xf]  ;;  %v10544_v27 = vor.u32 %v13986_v32, %v10541_v35 }
 0x3c3   :  { %8361 = vmatpush.bf16.msrb.mxu1 %v10592_v52  ;;  %v10797_v50 = vld [vmem:[%s21962_s1 + $0xe18] sm:$0xf0]  ;;  %v8121_v52 = vpop.f32.mrf.mxu2  ;;  %v14174_v56 = vld [vmem:[%s21962_s1 + $0x11ec] sm:$0xf]  ;;  %v10672_v1 = vor.u32 %v14018_v54, %v10669_v44 }
 0x3c4   :  { %8387 = vmatpush.bf16.msrb.mxu3 %v10848_v55  ;;  %v11037_v20 = vld [vmem:[%s21962_s1 + $0xff8] sm:$0xf0]  ;;  %v10416_v55 = vor.u32 %v13954_v61, %v10413_v51  ;;  %v14206_v34 = vld [vmem:[%s21962_s1 + $0x12ec] sm:$0xf]  ;;  %v10800_v39 = vor.u32 %v14050_v21, %v10797_v50 }
 0x3c5   :  { %8374 = vmatpush.bf16.msrb.mxu2 %v10720_v53  ;;  %v14110_v53 = vld [vmem:[%s21962_s1 + $0xfec] sm:$0xf]  ;;  %v11165_v19 = vld [vmem:[%s21962_s1 + $0x10f8] sm:$0xf0] }
 0x3c6   :  { %8349 = vmatpush.bf16.msrb.mxu0 %v10448_v12  ;;  %v11293_v57 = vld [vmem:[%s21962_s1 + $0x11f8] sm:$0xf0]  ;;  %v11040_v2 = vor.u32 %v14110_v53, %v11037_v20  ;;  %v11168_v12 = vor.u32 %v14142_v23, %v11165_v19  ;;  %v14138_v22 = vld [vmem:[%s21962_s1 + $0x10cc] sm:$0xf] }
 0x3c7   :  { %8362 = vmatpush.bf16.msrb.mxu1 %v10576_v15  ;;  %v11421_v28 = vld [vmem:[%s21962_s1 + $0x12f8] sm:$0xf0]  ;;  %v11296_v16 = vor.u32 %v14174_v56, %v11293_v57  ;;  %v14106_v15 = vld [vmem:[%s21962_s1 + $0xfcc] sm:$0xf] }
 0x3c8   :  { %8388 = vmatpush.bf16.msrb.mxu3 %v10832_v29  ;;  %v11424_v26 = vor.u32 %v14206_v34, %v11421_v28  ;;  %v11149_v31 = vld [vmem:[%s21962_s1 + $0x10d8] sm:$0xf0]  ;;  %v14170_v29 = vld [vmem:[%s21962_s1 + $0x11cc] sm:$0xf] }
 0x3c9   :  { %8375 = vmatpush.bf16.msrb.mxu2 %v10704_v3  ;;  %v11021_v3 = vld [vmem:[%s21962_s1 + $0xfd8] sm:$0xf0]  ;;  %v14202_v0 = vld [vmem:[%s21962_s1 + $0x12cc] sm:$0xf]  ;;  %v11152_v30 = vor.u32 %v14138_v22, %v11149_v31 }
 0x3ca   :  { %8350 = vmatpush.bf16.msrb.mxu0 %v10432_v45  ;;  %v11277_v60 = vld [vmem:[%s21962_s1 + $0x11d8] sm:$0xf0]  ;;  %v11024_v25 = vor.u32 %v14106_v15, %v11021_v3  ;;  %v14102_v61 = vld [vmem:[%s21962_s1 + $0xfac] sm:$0xf] }
 0x3cb   :  { %8363 = vmatpush.bf16.msrb.mxu1 %v10560_v36  ;;  %v11405_v24 = vld [vmem:[%s21962_s1 + $0x12d8] sm:$0xf0]  ;;  %v11280_v45 = vor.u32 %v14170_v29, %v11277_v60  ;;  %v14134_v36 = vld [vmem:[%s21962_s1 + $0x10ac] sm:$0xf] }
 0x3cc   :  { %8389 = vmatpush.bf16.msrb.mxu3 %v10816_v38  ;;  %v11005_v51 = vld [vmem:[%s21962_s1 + $0xfb8] sm:$0xf0]  ;;  %v14166_v35 = vld [vmem:[%s21962_s1 + $0x11ac] sm:$0xf] }
 0x3cd   :  { %8376 = vmatpush.bf16.msrb.mxu2 %v10688_v43  ;;  %v11408_v43 = vor.u32 %v14202_v0, %v11405_v24  ;;  %v11133_v32 = vld [vmem:[%s21962_s1 + $0x10b8] sm:$0xf0]  ;;  %v11008_v44 = vor.u32 %v14102_v61, %v11005_v51  ;;  %v14130_v52 = vld [vmem:[%s21962_s1 + $0x108c] sm:$0xf] }
 0x3ce   :  { %8351 = vmatpush.bf16.msrb.mxu0 %v10416_v55  ;;  %v11261_v54 = vld [vmem:[%s21962_s1 + $0x11b8] sm:$0xf0]  ;;  %v11136_v21 = vor.u32 %v14134_v36, %v11133_v32  ;;  %v14162_v20 = vld [vmem:[%s21962_s1 + $0x118c] sm:$0xf]  ;;  %v8145_v11 = vpop.f32.mrf.mxu0 }
 0x3cf   :  { %8364 = vmatpush.bf16.msrb.mxu1 %v10544_v27  ;;  %v11389_v38 = vld [vmem:[%s21962_s1 + $0x12b8] sm:$0xf0]  ;;  %v11264_v50 = vor.u32 %v14166_v35, %v11261_v54  ;;  %v14194_v55 = vld [vmem:[%s21962_s1 + $0x128c] sm:$0xf]  ;;  %v8146_v56 = vadd.f32 %v8145_v11, %v20804_v58  ;;  %v8158_v27 = vpop.f32.mrf.mxu1 }
 0x3d0   :  { %8390 = vmatpush.bf16.msrb.mxu3 %v10800_v39  ;;  %v11117_v53 = vld [vmem:[%s21962_s1 + $0x1098] sm:$0xf0]  ;;  %v14094_v28 = vld [vmem:[%s21962_s1 + $0xf6c] sm:$0xf] }
 0x3d1   :  { %8377 = vmatpush.bf16.msrb.mxu2 %v10672_v1  ;;  %8352 = vmatmul.bf16.vlgmr.msrb.gmra.mxu0 %v15484_v17  ;;  %v14198_v17 = vld [vmem:[%s21962_s1 + $0x12ac] sm:$0xf]  ;;  %v11245_v23 = vld [vmem:[%s21962_s1 + $0x1198] sm:$0xf0]  ;;  %v11120_v1 = vor.u32 %v14130_v52, %v11117_v53 }
 0x3d2   :  { %8396 = vmatpush.bf16.msra.mxu0 %v11040_v2  ;;  %8365 = vmatmul.bf16.vlgmr.msrb.gmra.mxu1 %v15646_v46  ;;  %v14098_v46 = vld [vmem:[%s21962_s1 + $0xf8c] sm:$0xf]  ;;  %v11373_v19 = vld [vmem:[%s21962_s1 + $0x1298] sm:$0xf0]  ;;  %v11248_v34 = vor.u32 %v14162_v20, %v11245_v23 }
 0x3d3   :  { %8409 = vmatpush.bf16.msra.mxu1 %v11168_v12  ;;  %8391 = vmatmul.bf16.vlgmr.msrb.gmra.mxu3 %v15648_v47  ;;  %v11392_v47 = vor.u32 %v14198_v17, %v11389_v38  ;;  %v10973_v39 = vld [vmem:[%s21962_s1 + $0xf78] sm:$0xf0]  ;;  %v14126_v2 = vld [vmem:[%s21962_s1 + $0x106c] sm:$0xf]  ;;  %v11376_v58 = vor.u32 %v14194_v55, %v11373_v19  ;;  %v8159_v12 = vadd.f32 %v8158_v27, %v8146_v56 }
 0x3d4   :  { %8435 = vmatpush.bf16.msra.mxu3 %v11424_v26  ;;  %8378 = vmatmul.bf16.vlgmr.msrb.gmra.mxu2 %v15650_v48  ;;  %v10989_v48 = vld [vmem:[%s21962_s1 + $0xf98] sm:$0xf0]  ;;  %v14158_v15 = vld [vmem:[%s21962_s1 + $0x116c] sm:$0xf]  ;;  %v10976_v31 = vor.u32 %v14094_v28, %v10973_v39 }
 0x3d5   :  { %8422 = vmatpush.bf16.msra.mxu2 %v11296_v16  ;;  %v10992_v57 = vor.u32 %v14098_v46, %v10989_v48  ;;  %v11101_v16 = vld [vmem:[%s21962_s1 + $0x1078] sm:$0xf0]  ;;  %v14190_v22 = vld [vmem:[%s21962_s1 + $0x126c] sm:$0xf] }
 0x3d6   :  { %8397 = vmatpush.bf16.msra.mxu0 %v11024_v25  ;;  %v11229_v3 = vld [vmem:[%s21962_s1 + $0x1178] sm:$0xf0]  ;;  %v11104_v29 = vor.u32 %v14126_v2, %v11101_v16  ;;  %v14090_v0 = vld [vmem:[%s21962_s1 + $0xf4c] sm:$0xf]  ;;  %v8184_v32 = vpop.f32.mrf.mxu3  ;;  %v8147_v17 = vpop.f32.mrf.mxu0 }
 0x3d7   :  { %8410 = vmatpush.bf16.msra.mxu1 %v11152_v30  ;;  %v11357_v26 = vld [vmem:[%s21962_s1 + $0x1278] sm:$0xf0]  ;;  %v11232_v60 = vor.u32 %v14158_v15, %v11229_v3  ;;  %v14122_v25 = vld [vmem:[%s21962_s1 + $0x104c] sm:$0xf] }
 0x3d8   :  { %8436 = vmatpush.bf16.msra.mxu3 %v11408_v43  ;;  %v10957_v24 = vld [vmem:[%s21962_s1 + $0xf58] sm:$0xf0]  ;;  %v11360_v30 = vor.u32 %v14190_v22, %v11357_v26  ;;  %v14154_v51 = vld [vmem:[%s21962_s1 + $0x114c] sm:$0xf] }
 0x3d9   :  { %8423 = vmatpush.bf16.msra.mxu2 %v11280_v45  ;;  %v8171_v45 = vpop.f32.mrf.mxu2  ;;  %v11085_v61 = vld [vmem:[%s21962_s1 + $0x1058] sm:$0xf0]  ;;  %v14186_v35 = vld [vmem:[%s21962_s1 + $0x124c] sm:$0xf]  ;;  %v10960_v38 = vor.u32 %v14090_v0, %v10957_v24 }
 0x3da   :  { %8398 = vmatpush.bf16.msra.mxu0 %v11008_v44  ;;  %v11213_v36 = vld [vmem:[%s21962_s1 + $0x1158] sm:$0xf0]  ;;  %v8172_v43 = vadd.f32 %v8171_v45, %v8159_v12  ;;  %v8160_v44 = vpop.f32.mrf.mxu1  ;;  %v14086_v48 = vld [vmem:[%s21962_s1 + $0xf2c] sm:$0xf] }
 0x3db   :  { %8411 = vmatpush.bf16.msra.mxu1 %v11136_v21  ;;  %v11341_v54 = vld [vmem:[%s21962_s1 + $0x1258] sm:$0xf0]  ;;  %v11216_v46 = vor.u32 %v14154_v51, %v11213_v36  ;;  %v14150_v23 = vld [vmem:[%s21962_s1 + $0x112c] sm:$0xf] }
 0x3dc   :  { %8437 = vmatpush.bf16.msra.mxu3 %v11392_v47  ;;  %v21003_v21 = vadd.f32 %v8184_v32, %v8172_v43  ;;  %v10941_v52 = vld [vmem:[%s21962_s1 + $0xf38] sm:$0xf0]  ;;  %v14118_v47 = vld [vmem:[%s21962_s1 + $0x102c] sm:$0xf]  ;;  %v11344_v53 = vor.u32 %v14186_v35, %v11341_v54 }
 0x3dd   :  { %8424 = vmatpush.bf16.msra.mxu2 %v11264_v50  ;;  %v11088_v50 = vor.u32 %v14122_v25, %v11085_v61  ;;  %v11069_v20 = vld [vmem:[%s21962_s1 + $0x1038] sm:$0xf0]  ;;  %v14182_v55 = vld [vmem:[%s21962_s1 + $0x122c] sm:$0xf]  ;;  %v10944_v56 = vor.u32 %v14086_v48, %v10941_v52 }
 0x3de   :  { %8399 = vmatpush.bf16.msra.mxu0 %v10992_v57  ;;  %v11197_v11 = vld [vmem:[%s21962_s1 + $0x1138] sm:$0xf0]  ;;  %v14082_v57 = vld [vmem:[%s21962_s1 + $0xf0c] sm:$0xf] }
 0x3df   :  { %8412 = vmatpush.bf16.msra.mxu1 %v11120_v1  ;;  %v11325_v19 = vld [vmem:[%s21962_s1 + $0x1238] sm:$0xf0]  ;;  %v11072_v1 = vor.u32 %v14118_v47, %v11069_v20  ;;  %v14114_v28 = vld [vmem:[%s21962_s1 + $0x100c] sm:$0xf] }
 0x3e0   :  { %8438 = vmatpush.bf16.msra.mxu3 %v11376_v58  ;;  %v10925_v27 = vld [vmem:[%s21962_s1 + $0xf18] sm:$0xf0]  ;;  %v14146_v2 = vld [vmem:[%s21962_s1 + $0x110c] sm:$0xf]  ;;  %v11328_v58 = vor.u32 %v14182_v55, %v11325_v19 }
 0x3e1   :  { %8425 = vmatpush.bf16.msra.mxu2 %v11248_v34  ;;  %v11200_v34 = vor.u32 %v14150_v23, %v11197_v11  ;;  %v11053_v39 = vld [vmem:[%s21962_s1 + $0x1018] sm:$0xf0]  ;;  %v14178_v16 = vld [vmem:[%s21962_s1 + $0x120c] sm:$0xf]  ;;  %v8173_v3 = vpop.f32.mrf.mxu2 }
 0x3e2   :  { %8400 = vmatpush.bf16.msra.mxu0 %v10976_v31  ;;  %v11181_v12 = vld [vmem:[%s21962_s1 + $0x1118] sm:$0xf0]  ;;  %v14238_v22 = vld [vmem:[%s21962_s1 + $0x13ec] sm:$0xf] }
 0x3e3   :  { %8413 = vmatpush.bf16.msra.mxu1 %v11104_v29  ;;  %v11309_v15 = vld [vmem:[%s21962_s1 + $0x1218] sm:$0xf0]  ;;  %v14270_v31 = vld [vmem:[%s21962_s1 + $0x14ec] sm:$0xf]  ;;  %v8186_v29 = vpop.f32.mrf.mxu3  ;;  %v11184_v45 = vor.u32 %v14146_v2, %v11181_v12 }
 0x3e4   :  { %8439 = vmatpush.bf16.msra.mxu3 %v11360_v30  ;;  %v11549_v26 = vld [vmem:[%s21962_s1 + $0x13f8] sm:$0xf0]  ;;  %v14302_v24 = vld [vmem:[%s21962_s1 + $0x15ec] sm:$0xf]  ;;  %v11056_v30 = vor.u32 %v14114_v28, %v11053_v39  ;;  %v11312_v36 = vor.u32 %v14178_v16, %v11309_v15 }
 0x3e5   :  { %8426 = vmatpush.bf16.msra.mxu2 %v11232_v60  ;;  %v10928_v60 = vor.u32 %v14082_v57, %v10925_v27  ;;  %v11677_v0 = vld [vmem:[%s21962_s1 + $0x14f8] sm:$0xf0]  ;;  %v14334_v61 = vld [vmem:[%s21962_s1 + $0x16ec] sm:$0xf]  ;;  %v11552_v43 = vor.u32 %v14238_v22, %v11549_v26 }
 0x3e6   :  { %8401 = vmatpush.bf16.msra.mxu0 %v10960_v38  ;;  %v11805_v25 = vld [vmem:[%s21962_s1 + $0x15f8] sm:$0xf0]  ;;  %v11680_v32 = vor.u32 %v14270_v31, %v11677_v0  ;;  %v14234_v54 = vld [vmem:[%s21962_s1 + $0x13cc] sm:$0xf]  ;;  %v14763_v31 = vld [vmem:[%s21963_s2] sm:$0xf] }
 0x3e7   :  { %8414 = vmatpush.bf16.msra.mxu1 %v11088_v50  ;;  %v11933_v51 = vld [vmem:[%s21962_s1 + $0x16f8] sm:$0xf0]  ;;  %v11808_v35 = vor.u32 %v14302_v24, %v11805_v25  ;;  %v14266_v38 = vld [vmem:[%s21962_s1 + $0x14cc] sm:$0xf]  ;;  %v1151_v29 = vperm.slane %v14763_v31, 3 }
 0x3e8   :  { %8440 = vmatpush.bf16.msra.mxu3 %v11344_v53  ;;  %v11533_v17 = vld [vmem:[%s21962_s1 + $0x13d8] sm:$0xf0]  ;;  %v11936_v44 = vor.u32 %v14334_v61, %v11933_v51  ;;  %v14330_v52 = vld [vmem:[%s21962_s1 + $0x16cc] sm:$0xf] }
 0x3e9   :  { %8427 = vmatpush.bf16.msra.mxu2 %v11216_v46  ;;  %v11661_v50 = vld [vmem:[%s21962_s1 + $0x14d8] sm:$0xf0]  ;;  %v14298_v46 = vld [vmem:[%s21962_s1 + $0x15cc] sm:$0xf]  ;;  %v11536_v53 = vor.u32 %v14234_v54, %v11533_v17 }
 0x3ea   :  { %8402 = vmatpush.bf16.msra.mxu0 %v10944_v56  ;;  %v11789_v48 = vld [vmem:[%s21962_s1 + $0x15d8] sm:$0xf0]  ;;  %v11664_v20 = vor.u32 %v14266_v38, %v11661_v50  ;;  %v14230_v11 = vld [vmem:[%s21962_s1 + $0x13ac] sm:$0xf] }
 0x3eb   :  { %8415 = vmatpush.bf16.msra.mxu1 %v11072_v1  ;;  %v11917_v47 = vld [vmem:[%s21962_s1 + $0x16d8] sm:$0xf0]  ;;  %v11792_v23 = vor.u32 %v14298_v46, %v11789_v48  ;;  %v14262_v19 = vld [vmem:[%s21962_s1 + $0x14ac] sm:$0xf] }
 0x3ec   :  { %8441 = vmatpush.bf16.msra.mxu3 %v11328_v58  ;;  %v11517_v55 = vld [vmem:[%s21962_s1 + $0x13b8] sm:$0xf0]  ;;  %v11920_v56 = vor.u32 %v14330_v52, %v11917_v47  ;;  %v14294_v27 = vld [vmem:[%s21962_s1 + $0x15ac] sm:$0xf] }
 0x3ed   :  { %8428 = vmatpush.bf16.msra.mxu2 %v11200_v34  ;;  %v11645_v57 = vld [vmem:[%s21962_s1 + $0x14b8] sm:$0xf0]  ;;  %v11520_v28 = vor.u32 %v14230_v11, %v11517_v55  ;;  %v14258_v58 = vld [vmem:[%s21962_s1 + $0x148c] sm:$0xf] }
 0x3ee   :  { %8403 = vmatpush.bf16.msra.mxu0 %v10928_v60  ;;  %v11773_v1 = vld [vmem:[%s21962_s1 + $0x15b8] sm:$0xf0]  ;;  %v11648_v39 = vor.u32 %v14262_v19, %v11645_v57  ;;  %v14290_v16 = vld [vmem:[%s21962_s1 + $0x158c] sm:$0xf]  ;;  %v8197_v3 = vpop.f32.mrf.mxu0 }
 0x3ef   :  { %8416 = vmatpush.bf16.msra.mxu1 %v11056_v30  ;;  %v11901_v34 = vld [vmem:[%s21962_s1 + $0x16b8] sm:$0xf0]  ;;  %v11776_v2 = vor.u32 %v14294_v27, %v11773_v1  ;;  %v14322_v22 = vld [vmem:[%s21962_s1 + $0x168c] sm:$0xf]  ;;  %v21157_v60 = vadd.f32 %v8197_v3, %v21003_v21  ;;  %v8210_v51 = vpop.f32.mrf.mxu1 }
 0x3f0   :  { %8442 = vmatpush.bf16.msra.mxu3 %v11312_v36  ;;  %v11629_v12 = vld [vmem:[%s21962_s1 + $0x1498] sm:$0xf0]  ;;  %v14222_v30 = vld [vmem:[%s21962_s1 + $0x136c] sm:$0xf]  ;;  %v8211_v17 = vadd.f32 %v8210_v51, %v1151_v29 }
 0x3f1   :  { %8429 = vmatpush.bf16.msra.mxu2 %v11184_v45  ;;  %8404 = vmatmul.bf16.vlgmr.msra.gmra.mxu0 %v15652_v49  ;;  %v14326_v49 = vld [vmem:[%s21962_s1 + $0x16ac] sm:$0xf]  ;;  %v11757_v15 = vld [vmem:[%s21962_s1 + $0x1598] sm:$0xf0]  ;;  %v11632_v24 = vor.u32 %v14258_v58, %v11629_v12 }
 0x3f2   :  { %8448 = vmatpush.bf16.msrb.mxu0 %v11552_v43  ;;  %8417 = vmatmul.bf16.vlgmr.msra.gmra.mxu1 %v15883_v9  ;;  %v14226_v9 = vld [vmem:[%s21962_s1 + $0x138c] sm:$0xf]  ;;  %v11885_v26 = vld [vmem:[%s21962_s1 + $0x1698] sm:$0xf0]  ;;  %v11760_v25 = vor.u32 %v14290_v16, %v11757_v15 }
 0x3f3   :  { %8461 = vmatpush.bf16.msrb.mxu1 %v11680_v32  ;;  %8443 = vmatmul.bf16.vlgmr.msra.gmra.mxu3 %v15891_v13  ;;  %v11904_v13 = vor.u32 %v14326_v49, %v11901_v34  ;;  %v11485_v45 = vld [vmem:[%s21962_s1 + $0x1378] sm:$0xf0]  ;;  %v14254_v61 = vld [vmem:[%s21962_s1 + $0x146c] sm:$0xf]  ;;  %v11888_v21 = vor.u32 %v14322_v22, %v11885_v26 }
 0x3f4   :  { %8487 = vmatpush.bf16.msrb.mxu3 %v11936_v44  ;;  %8430 = vmatmul.bf16.vlgmr.msra.gmra.mxu2 %v15893_v14  ;;  %v11501_v14 = vld [vmem:[%s21962_s1 + $0x1398] sm:$0xf0]  ;;  %v14286_v43 = vld [vmem:[%s21962_s1 + $0x156c] sm:$0xf]  ;;  %v11488_v38 = vor.u32 %v14222_v30, %v11485_v45 }
 0x3f5   :  { %8474 = vmatpush.bf16.msrb.mxu2 %v11808_v35  ;;  %v11504_v0 = vor.u32 %v14226_v9, %v11501_v14  ;;  %v11613_v36 = vld [vmem:[%s21962_s1 + $0x1478] sm:$0xf0]  ;;  %v14318_v35 = vld [vmem:[%s21962_s1 + $0x166c] sm:$0xf] }
 0x3f6   :  { %8449 = vmatpush.bf16.msrb.mxu0 %v11536_v53  ;;  %v11741_v32 = vld [vmem:[%s21962_s1 + $0x1578] sm:$0xf0]  ;;  %v11616_v44 = vor.u32 %v14254_v61, %v11613_v36  ;;  %v14218_v46 = vld [vmem:[%s21962_s1 + $0x134c] sm:$0xf]  ;;  %v8236_v55 = vpop.f32.mrf.mxu3  ;;  %v8199_v27 = vpop.f32.mrf.mxu0 }
 0x3f7   :  { %8462 = vmatpush.bf16.msrb.mxu1 %v11664_v20  ;;  %v11869_v54 = vld [vmem:[%s21962_s1 + $0x1678] sm:$0xf0]  ;;  %v11744_v50 = vor.u32 %v14286_v43, %v11741_v32  ;;  %v14250_v52 = vld [vmem:[%s21962_s1 + $0x144c] sm:$0xf]  ;;  %v8223_v11 = vpop.f32.mrf.mxu2  ;;  %v8212_v14 = vpop.f32.mrf.mxu1 }
 0x3f8   :  { %8488 = vmatpush.bf16.msrb.mxu3 %v11920_v56  ;;  %v11469_v48 = vld [vmem:[%s21962_s1 + $0x1358] sm:$0xf0]  ;;  %v11872_v47 = vor.u32 %v14318_v35, %v11869_v54  ;;  %v14282_v20 = vld [vmem:[%s21962_s1 + $0x154c] sm:$0xf]  ;;  %v8224_v57 = vadd.f32 %v8223_v11, %v8211_v17 }
 0x3f9   :  { %8475 = vmatpush.bf16.msrb.mxu2 %v11792_v23  ;;  %v11597_v53 = vld [vmem:[%s21962_s1 + $0x1458] sm:$0xf0]  ;;  %v14314_v19 = vld [vmem:[%s21962_s1 + $0x164c] sm:$0xf]  ;;  %v11472_v1 = vor.u32 %v14218_v46, %v11469_v48 }
 0x3fa   :  { %8450 = vmatpush.bf16.msrb.mxu0 %v11520_v28  ;;  %v11725_v23 = vld [vmem:[%s21962_s1 + $0x1558] sm:$0xf0]  ;;  %v11600_v49 = vor.u32 %v14250_v52, %v11597_v53  ;;  %v14214_v28 = vld [vmem:[%s21962_s1 + $0x132c] sm:$0xf]  ;;  %v21216_v9 = vadd.f32 %v8236_v55, %v8224_v57 }
 0x3fb   :  { %8463 = vmatpush.bf16.msrb.mxu1 %v11648_v39  ;;  %v11853_v56 = vld [vmem:[%s21962_s1 + $0x1658] sm:$0xf0]  ;;  %v11728_v34 = vor.u32 %v14282_v20, %v11725_v23  ;;  %v14278_v12 = vld [vmem:[%s21962_s1 + $0x152c] sm:$0xf] }
 0x3fc   :  { %8489 = vmatpush.bf16.msrb.mxu3 %v11904_v13  ;;  %v11453_v39 = vld [vmem:[%s21962_s1 + $0x1338] sm:$0xf0]  ;;  %v11856_v58 = vor.u32 %v14314_v19, %v11853_v56  ;;  %v14310_v15 = vld [vmem:[%s21962_s1 + $0x162c] sm:$0xf] }
 0x3fd   :  { %8476 = vmatpush.bf16.msrb.mxu2 %v11776_v2  ;;  %v14246_v2 = vld [vmem:[%s21962_s1 + $0x142c] sm:$0xf]  ;;  %v11581_v13 = vld [vmem:[%s21962_s1 + $0x1438] sm:$0xf0]  ;;  %v11456_v22 = vor.u32 %v14214_v28, %v11453_v39 }
 0x3fe   :  { %8451 = vmatpush.bf16.msrb.mxu0 %v11504_v0  ;;  %v11709_v16 = vld [vmem:[%s21962_s1 + $0x1538] sm:$0xf0]  ;;  %v14210_v26 = vld [vmem:[%s21962_s1 + $0x130c] sm:$0xf]  ;;  %v11584_v29 = vor.u32 %v14246_v2, %v11581_v13  ;;  %v8238_v43 = vpop.f32.mrf.mxu3 }
 0x3ff   :  { %8464 = vmatpush.bf16.msrb.mxu1 %v11632_v24  ;;  %v11837_v3 = vld [vmem:[%s21962_s1 + $0x1638] sm:$0xf0]  ;;  %v11712_v0 = vor.u32 %v14278_v12, %v11709_v16  ;;  %v14242_v24 = vld [vmem:[%s21962_s1 + $0x140c] sm:$0xf]  ;;  %v8225_v36 = vpop.f32.mrf.mxu2 }
 0x400   :  { %8490 = vmatpush.bf16.msrb.mxu3 %v11888_v21  ;;  %v11437_v31 = vld [vmem:[%s21962_s1 + $0x1318] sm:$0xf0]  ;;  %v14274_v30 = vld [vmem:[%s21962_s1 + $0x150c] sm:$0xf]  ;;  %v11840_v45 = vor.u32 %v14310_v15, %v11837_v3 }
 0x401   :  { %8477 = vmatpush.bf16.msrb.mxu2 %v11760_v25  ;;  %v11565_v25 = vld [vmem:[%s21962_s1 + $0x1418] sm:$0xf0]  ;;  %v14306_v51 = vld [vmem:[%s21962_s1 + $0x160c] sm:$0xf]  ;;  %v11440_v17 = vor.u32 %v14210_v26, %v11437_v31 }
 0x402   :  { %8452 = vmatpush.bf16.msrb.mxu0 %v11488_v38  ;;  %v11693_v61 = vld [vmem:[%s21962_s1 + $0x1518] sm:$0xf0]  ;;  %v14366_v32 = vld [vmem:[%s21962_s1 + $0x17ec] sm:$0xf]  ;;  %v11568_v46 = vor.u32 %v14242_v24, %v11565_v25 }
 0x403   :  { %8465 = vmatpush.bf16.msrb.mxu1 %v11616_v44  ;;  %v11821_v21 = vld [vmem:[%s21962_s1 + $0x1618] sm:$0xf0]  ;;  %v14398_v54 = vld [vmem:[%s21962_s1 + $0x18ec] sm:$0xf]  ;;  %v11696_v48 = vor.u32 %v14274_v30, %v11693_v61 }
 0x404   :  { %8491 = vmatpush.bf16.msrb.mxu3 %v11872_v47  ;;  %v12061_v35 = vld [vmem:[%s21962_s1 + $0x17f8] sm:$0xf0]  ;;  %v14430_v44 = vld [vmem:[%s21962_s1 + $0x19ec] sm:$0xf]  ;;  %v11824_v53 = vor.u32 %v14306_v51, %v11821_v21 }
 0x405   :  { %8478 = vmatpush.bf16.msrb.mxu2 %v11744_v50  ;;  %v12189_v38 = vld [vmem:[%s21962_s1 + $0x18f8] sm:$0xf0]  ;;  %v14462_v52 = vld [vmem:[%s21962_s1 + $0x1aec] sm:$0xf]  ;;  %v12064_v20 = vor.u32 %v14366_v32, %v12061_v35 }
 0x406   :  { %8453 = vmatpush.bf16.msrb.mxu0 %v11472_v1  ;;  %v12317_v50 = vld [vmem:[%s21962_s1 + $0x19f8] sm:$0xf0]  ;;  %v12192_v23 = vor.u32 %v14398_v54, %v12189_v38  ;;  %v14362_v55 = vld [vmem:[%s21962_s1 + $0x17cc] sm:$0xf] }
 0x407   :  { %8466 = vmatpush.bf16.msrb.mxu1 %v11600_v49  ;;  %v12445_v47 = vld [vmem:[%s21962_s1 + $0x1af8] sm:$0xf0]  ;;  %v12320_v11 = vor.u32 %v14430_v44, %v12317_v50  ;;  %v14394_v56 = vld [vmem:[%s21962_s1 + $0x18cc] sm:$0xf] }
 0x408   :  { %8492 = vmatpush.bf16.msrb.mxu3 %v11856_v58  ;;  %v12045_v19 = vld [vmem:[%s21962_s1 + $0x17d8] sm:$0xf0]  ;;  %v12448_v57 = vor.u32 %v14462_v52, %v12445_v47  ;;  %v14426_v1 = vld [vmem:[%s21962_s1 + $0x19cc] sm:$0xf] }
 0x409   :  { %8479 = vmatpush.bf16.msrb.mxu2 %v11728_v34  ;;  %v12173_v27 = vld [vmem:[%s21962_s1 + $0x18d8] sm:$0xf0]  ;;  %v14458_v34 = vld [vmem:[%s21962_s1 + $0x1acc] sm:$0xf]  ;;  %v12048_v39 = vor.u32 %v14362_v55, %v12045_v19 }
 0x40a   :  { %8454 = vmatpush.bf16.msrb.mxu0 %v11456_v22  ;;  %v12301_v49 = vld [vmem:[%s21962_s1 + $0x19d8] sm:$0xf0]  ;;  %v12176_v2 = vor.u32 %v14394_v56, %v12173_v27  ;;  %v14358_v58 = vld [vmem:[%s21962_s1 + $0x17ac] sm:$0xf] }
 0x40b   :  { %8467 = vmatpush.bf16.msrb.mxu1 %v11584_v29  ;;  %v12429_v28 = vld [vmem:[%s21962_s1 + $0x1ad8] sm:$0xf0]  ;;  %v12304_v14 = vor.u32 %v14426_v1, %v12301_v49  ;;  %v14390_v12 = vld [vmem:[%s21962_s1 + $0x18ac] sm:$0xf] }
 0x40c   :  { %8493 = vmatpush.bf16.msrb.mxu3 %v11840_v45  ;;  %v12029_v13 = vld [vmem:[%s21962_s1 + $0x17b8] sm:$0xf0]  ;;  %v12432_v16 = vor.u32 %v14458_v34, %v12429_v28  ;;  %v14422_v3 = vld [vmem:[%s21962_s1 + $0x19ac] sm:$0xf] }
 0x40d   :  { %8480 = vmatpush.bf16.msrb.mxu2 %v11712_v0  ;;  %v12157_v15 = vld [vmem:[%s21962_s1 + $0x18b8] sm:$0xf0]  ;;  %v12032_v31 = vor.u32 %v14358_v58, %v12029_v13  ;;  %v14386_v24 = vld [vmem:[%s21962_s1 + $0x188c] sm:$0xf] }
 0x40e   :  { %8455 = vmatpush.bf16.msrb.mxu0 %v11440_v17  ;;  %v12285_v22 = vld [vmem:[%s21962_s1 + $0x19b8] sm:$0xf0]  ;;  %v12160_v29 = vor.u32 %v14390_v12, %v12157_v15  ;;  %v14418_v30 = vld [vmem:[%s21962_s1 + $0x198c] sm:$0xf]  ;;  %v8249_v36 = vpop.f32.mrf.mxu0 }
 0x40f   :  { %8468 = vmatpush.bf16.msrb.mxu1 %v11568_v46  ;;  %v12413_v26 = vld [vmem:[%s21962_s1 + $0x1ab8] sm:$0xf0]  ;;  %v12288_v0 = vor.u32 %v14422_v3, %v12285_v22  ;;  %v14450_v61 = vld [vmem:[%s21962_s1 + $0x1a8c] sm:$0xf]  ;;  %v8250_v38 = vadd.f32 %v8249_v36, %v21216_v9  ;;  %v8262_v44 = vpop.f32.mrf.mxu1 }
 0x410   :  { %8494 = vmatpush.bf16.msrb.mxu3 %v11824_v53  ;;  %v12141_v25 = vld [vmem:[%s21962_s1 + $0x1898] sm:$0xf0]  ;;  %v14350_v35 = vld [vmem:[%s21962_s1 + $0x176c] sm:$0xf] }
 0x411   :  { %8481 = vmatpush.bf16.msrb.mxu2 %v11696_v48  ;;  %8456 = vmatmul.bf16.vlgmr.msrb.gmra.mxu0 %v15895_v18  ;;  %v14454_v18 = vld [vmem:[%s21962_s1 + $0x1aac] sm:$0xf]  ;;  %v12269_v45 = vld [vmem:[%s21962_s1 + $0x1998] sm:$0xf0]  ;;  %v12144_v43 = vor.u32 %v14386_v24, %v12141_v25  ;;  %v8263_v53 = vadd.f32 %v8262_v44, %v8250_v38 }
 0x412   :  { %8500 = vmatpush.bf16.msra.mxu0 %v12064_v20  ;;  %8469 = vmatmul.bf16.vlgmr.msrb.gmra.mxu1 %v16060_v4  ;;  %v14354_v4 = vld [vmem:[%s21962_s1 + $0x178c] sm:$0xf]  ;;  %v12397_v51 = vld [vmem:[%s21962_s1 + $0x1a98] sm:$0xf0]  ;;  %v12272_v32 = vor.u32 %v14418_v30, %v12269_v45 }
 0x413   :  { %8513 = vmatpush.bf16.msra.mxu1 %v12192_v23  ;;  %8495 = vmatmul.bf16.vlgmr.msrb.gmra.mxu3 %v16062_v5  ;;  %v12416_v5 = vor.u32 %v14454_v18, %v12413_v26  ;;  %v11997_v54 = vld [vmem:[%s21962_s1 + $0x1778] sm:$0xf0]  ;;  %v14382_v17 = vld [vmem:[%s21962_s1 + $0x186c] sm:$0xf]  ;;  %v12400_v50 = vor.u32 %v14450_v61, %v12397_v51 }
 0x414   :  { %8539 = vmatpush.bf16.msra.mxu3 %v12448_v57  ;;  %8482 = vmatmul.bf16.vlgmr.msrb.gmra.mxu2 %v16064_v6  ;;  %v12013_v6 = vld [vmem:[%s21962_s1 + $0x1798] sm:$0xf0]  ;;  %v14414_v48 = vld [vmem:[%s21962_s1 + $0x196c] sm:$0xf]  ;;  %v12000_v20 = vor.u32 %v14350_v35, %v11997_v54 }
 0x415   :  { %8526 = vmatpush.bf16.msra.mxu2 %v12320_v11  ;;  %v12016_v21 = vor.u32 %v14354_v4, %v12013_v6  ;;  %v12125_v46 = vld [vmem:[%s21962_s1 + $0x1878] sm:$0xf0]  ;;  %v14446_v47 = vld [vmem:[%s21962_s1 + $0x1a6c] sm:$0xf] }
 0x416   :  { %8501 = vmatpush.bf16.msra.mxu0 %v12048_v39  ;;  %v12253_v52 = vld [vmem:[%s21962_s1 + $0x1978] sm:$0xf0]  ;;  %v12128_v23 = vor.u32 %v14382_v17, %v12125_v46  ;;  %v14346_v55 = vld [vmem:[%s21962_s1 + $0x174c] sm:$0xf]  ;;  %v8288_v39 = vpop.f32.mrf.mxu3  ;;  %v8251_v12 = vpop.f32.mrf.mxu0 }
 0x417   :  { %8514 = vmatpush.bf16.msra.mxu1 %v12176_v2  ;;  %v12381_v9 = vld [vmem:[%s21962_s1 + $0x1a78] sm:$0xf0]  ;;  %v12256_v11 = vor.u32 %v14414_v48, %v12253_v52  ;;  %v14378_v56 = vld [vmem:[%s21962_s1 + $0x184c] sm:$0xf]  ;;  %v8275_v57 = vpop.f32.mrf.mxu2  ;;  %v8264_v26 = vpop.f32.mrf.mxu1 }
 0x418   :  { %8540 = vmatpush.bf16.msra.mxu3 %v12432_v16  ;;  %v11981_v19 = vld [vmem:[%s21962_s1 + $0x1758] sm:$0xf0]  ;;  %v12384_v27 = vor.u32 %v14446_v47, %v12381_v9  ;;  %v14410_v49 = vld [vmem:[%s21962_s1 + $0x194c] sm:$0xf]  ;;  %v8276_v28 = vadd.f32 %v8275_v57, %v8263_v53 }
 0x419   :  { %8527 = vmatpush.bf16.msra.mxu2 %v12304_v14  ;;  %v12109_v1 = vld [vmem:[%s21962_s1 + $0x1858] sm:$0xf0]  ;;  %v14442_v2 = vld [vmem:[%s21962_s1 + $0x1a4c] sm:$0xf]  ;;  %v11984_v58 = vor.u32 %v14346_v55, %v11981_v19 }
 0x41a   :  { %8502 = vmatpush.bf16.msra.mxu0 %v12032_v31  ;;  %v12237_v34 = vld [vmem:[%s21962_s1 + $0x1958] sm:$0xf0]  ;;  %v21406_v13 = vadd.f32 %v8288_v39, %v8276_v28  ;;  %v12112_v16 = vor.u32 %v14378_v56, %v12109_v1  ;;  %v14342_v3 = vld [vmem:[%s21962_s1 + $0x172c] sm:$0xf] }
 0x41b   :  { %8515 = vmatpush.bf16.msra.mxu1 %v12160_v29  ;;  %v12365_v14 = vld [vmem:[%s21962_s1 + $0x1a58] sm:$0xf0]  ;;  %v12240_v15 = vor.u32 %v14410_v49, %v12237_v34  ;;  %v14374_v18 = vld [vmem:[%s21962_s1 + $0x182c] sm:$0xf] }
 0x41c   :  { %8541 = vmatpush.bf16.msra.mxu3 %v12416_v5  ;;  %v11965_v22 = vld [vmem:[%s21962_s1 + $0x1738] sm:$0xf0]  ;;  %v12368_v31 = vor.u32 %v14442_v2, %v12365_v14  ;;  %v14438_v6 = vld [vmem:[%s21962_s1 + $0x1a2c] sm:$0xf] }
 0x41d   :  { %8528 = vmatpush.bf16.msra.mxu2 %v12288_v0  ;;  %v12093_v29 = vld [vmem:[%s21962_s1 + $0x1838] sm:$0xf0]  ;;  %v14406_v0 = vld [vmem:[%s21962_s1 + $0x192c] sm:$0xf]  ;;  %v11968_v5 = vor.u32 %v14342_v3, %v11965_v22 }
 0x41e   :  { %8503 = vmatpush.bf16.msra.mxu0 %v12016_v21  ;;  %v12221_v4 = vld [vmem:[%s21962_s1 + $0x1938] sm:$0xf0]  ;;  %v14338_v25 = vld [vmem:[%s21962_s1 + $0x170c] sm:$0xf]  ;;  %v12096_v45 = vor.u32 %v14374_v18, %v12093_v29  ;;  %v8290_v38 = vpop.f32.mrf.mxu3 }
 0x41f   :  { %8516 = vmatpush.bf16.msra.mxu1 %v12144_v43  ;;  %v12349_v24 = vld [vmem:[%s21962_s1 + $0x1a38] sm:$0xf0]  ;;  %v12224_v61 = vor.u32 %v14406_v0, %v12221_v4  ;;  %v14370_v51 = vld [vmem:[%s21962_s1 + $0x180c] sm:$0xf]  ;;  %v8277_v43 = vpop.f32.mrf.mxu2 }
 0x420   :  { %8542 = vmatpush.bf16.msra.mxu3 %v12400_v50  ;;  %v11949_v30 = vld [vmem:[%s21962_s1 + $0x1718] sm:$0xf0]  ;;  %v14402_v36 = vld [vmem:[%s21962_s1 + $0x190c] sm:$0xf] }
 0x421   :  { %8529 = vmatpush.bf16.msra.mxu2 %v12272_v32  ;;  %v12077_v21 = vld [vmem:[%s21962_s1 + $0x1818] sm:$0xf0]  ;;  %v12352_v32 = vor.u32 %v14438_v6, %v12349_v24  ;;  %v14434_v54 = vld [vmem:[%s21962_s1 + $0x1a0c] sm:$0xf]  ;;  %v11952_v48 = vor.u32 %v14338_v25, %v11949_v30 }
 0x422   :  { %8504 = vmatpush.bf16.msra.mxu0 %v12000_v20  ;;  %v12205_v35 = vld [vmem:[%s21962_s1 + $0x1918] sm:$0xf0]  ;;  %v14494_v44 = vld [vmem:[%s21962_s1 + $0x1bec] sm:$0xf]  ;;  %v12080_v53 = vor.u32 %v14370_v51, %v12077_v21 }
 0x423   :  { %8517 = vmatpush.bf16.msra.mxu1 %v12128_v23  ;;  %v12333_v17 = vld [vmem:[%s21962_s1 + $0x1a18] sm:$0xf0]  ;;  %v14526_v46 = vld [vmem:[%s21962_s1 + $0x1cec] sm:$0xf]  ;;  %v12208_v20 = vor.u32 %v14402_v36, %v12205_v35 }
 0x424   :  { %8543 = vmatpush.bf16.msra.mxu3 %v12384_v27  ;;  %v12573_v50 = vld [vmem:[%s21962_s1 + $0x1bf8] sm:$0xf0]  ;;  %v14558_v47 = vld [vmem:[%s21962_s1 + $0x1dec] sm:$0xf]  ;;  %v12336_v55 = vor.u32 %v14434_v54, %v12333_v17 }
 0x425   :  { %8530 = vmatpush.bf16.msra.mxu2 %v12256_v11  ;;  %v12701_v52 = vld [vmem:[%s21962_s1 + $0x1cf8] sm:$0xf0]  ;;  %v14590_v23 = vld [vmem:[%s21962_s1 + $0x1eec] sm:$0xf]  ;;  %v12576_v19 = vor.u32 %v14494_v44, %v12573_v50 }
 0x426   :  { %8505 = vmatpush.bf16.msra.mxu0 %v11984_v58  ;;  %v12829_v9 = vld [vmem:[%s21962_s1 + $0x1df8] sm:$0xf0]  ;;  %v12704_v56 = vor.u32 %v14526_v46, %v12701_v52  ;;  %v14490_v27 = vld [vmem:[%s21962_s1 + $0x1bcc] sm:$0xf] }
 0x427   :  { %8518 = vmatpush.bf16.msra.mxu1 %v12112_v16  ;;  %v12957_v11 = vld [vmem:[%s21962_s1 + $0x1ef8] sm:$0xf0]  ;;  %v12832_v57 = vor.u32 %v14558_v47, %v12829_v9  ;;  %v14522_v49 = vld [vmem:[%s21962_s1 + $0x1ccc] sm:$0xf] }
 0x428   :  { %8544 = vmatpush.bf16.msra.mxu3 %v12368_v31  ;;  %v12557_v1 = vld [vmem:[%s21962_s1 + $0x1bd8] sm:$0xf0]  ;;  %v12960_v34 = vor.u32 %v14590_v23, %v12957_v11  ;;  %v14554_v39 = vld [vmem:[%s21962_s1 + $0x1dcc] sm:$0xf] }
 0x429   :  { %8531 = vmatpush.bf16.msra.mxu2 %v12240_v15  ;;  %v12685_v28 = vld [vmem:[%s21962_s1 + $0x1cd8] sm:$0xf0]  ;;  %v14586_v14 = vld [vmem:[%s21962_s1 + $0x1ecc] sm:$0xf]  ;;  %v12560_v12 = vor.u32 %v14490_v27, %v12557_v1 }
 0x42a   :  { %8506 = vmatpush.bf16.msra.mxu0 %v11968_v5  ;;  %v12813_v2 = vld [vmem:[%s21962_s1 + $0x1dd8] sm:$0xf0]  ;;  %v12688_v16 = vor.u32 %v14522_v49, %v12685_v28  ;;  %v14486_v3 = vld [vmem:[%s21962_s1 + $0x1bac] sm:$0xf] }
 0x42b   :  { %8519 = vmatpush.bf16.msra.mxu1 %v12096_v45  ;;  %v12941_v58 = vld [vmem:[%s21962_s1 + $0x1ed8] sm:$0xf0]  ;;  %v12816_v15 = vor.u32 %v14554_v39, %v12813_v2  ;;  %v14518_v18 = vld [vmem:[%s21962_s1 + $0x1cac] sm:$0xf] }
 0x42c   :  { %8545 = vmatpush.bf16.msra.mxu3 %v12352_v32  ;;  %v12541_v22 = vld [vmem:[%s21962_s1 + $0x1bb8] sm:$0xf0]  ;;  %v12944_v26 = vor.u32 %v14586_v14, %v12941_v58  ;;  %v14550_v29 = vld [vmem:[%s21962_s1 + $0x1dac] sm:$0xf] }
 0x42d   :  { %8532 = vmatpush.bf16.msra.mxu2 %v12224_v61  ;;  %v12669_v31 = vld [vmem:[%s21962_s1 + $0x1cb8] sm:$0xf0]  ;;  %v12544_v6 = vor.u32 %v14486_v3, %v12541_v22  ;;  %v14514_v25 = vld [vmem:[%s21962_s1 + $0x1c8c] sm:$0xf] }
 0x42e   :  { %8507 = vmatpush.bf16.msra.mxu0 %v11952_v48  ;;  %v12797_v0 = vld [vmem:[%s21962_s1 + $0x1db8] sm:$0xf0]  ;;  %v12672_v24 = vor.u32 %v14518_v18, %v12669_v31  ;;  %v14546_v45 = vld [vmem:[%s21962_s1 + $0x1d8c] sm:$0xf]  ;;  %v8301_v51 = vpop.f32.mrf.mxu0 }
 0x42f   :  { %8520 = vmatpush.bf16.msra.mxu1 %v12080_v53  ;;  %v12925_v4 = vld [vmem:[%s21962_s1 + $0x1eb8] sm:$0xf0]  ;;  %v12800_v5 = vor.u32 %v14550_v29, %v12797_v0  ;;  %v14578_v21 = vld [vmem:[%s21962_s1 + $0x1e8c] sm:$0xf]  ;;  %v8302_v43 = vadd.f32 %v8301_v51, %v21406_v13  ;;  %v8314_v35 = vpop.f32.mrf.mxu1 }
 0x430   :  { %8546 = vmatpush.bf16.msra.mxu3 %v12336_v55  ;;  %v12653_v30 = vld [vmem:[%s21962_s1 + $0x1c98] sm:$0xf0]  ;;  %v14478_v38 = vld [vmem:[%s21962_s1 + $0x1b6c] sm:$0xf] }
 0x431   :  { %8533 = vmatpush.bf16.msra.mxu2 %v12208_v20  ;;  %8508 = vmatmul.bf16.vlgmr.msra.gmra.mxu0 %v16066_v7  ;;  %v14582_v7 = vld [vmem:[%s21962_s1 + $0x1eac] sm:$0xf]  ;;  %v12781_v61 = vld [vmem:[%s21962_s1 + $0x1d98] sm:$0xf0]  ;;  %v12656_v54 = vor.u32 %v14514_v25, %v12653_v30  ;;  %v8315_v46 = vadd.f32 %v8314_v35, %v8302_v43 }
 0x432   :  { %8552 = vmatpush.bf16.msrb.mxu0 %v12576_v19  ;;  %8521 = vmatmul.bf16.vlgmr.msra.gmra.mxu1 %v16299_v37  ;;  %v14482_v37 = vld [vmem:[%s21962_s1 + $0x1b8c] sm:$0xf]  ;;  %v12909_v36 = vld [vmem:[%s21962_s1 + $0x1e98] sm:$0xf0]  ;;  %v12784_v17 = vor.u32 %v14546_v45, %v12781_v61 }
 0x433   :  { %8565 = vmatpush.bf16.msrb.mxu1 %v12704_v56  ;;  %8547 = vmatmul.bf16.vlgmr.msra.gmra.mxu3 %v16307_v40  ;;  %v12928_v40 = vor.u32 %v14582_v7, %v12925_v4  ;;  %v12509_v44 = vld [vmem:[%s21962_s1 + $0x1b78] sm:$0xf0]  ;;  %v14510_v50 = vld [vmem:[%s21962_s1 + $0x1c6c] sm:$0xf]  ;;  %v12912_v13 = vor.u32 %v14578_v21, %v12909_v36 }
 0x434   :  { %8591 = vmatpush.bf16.msrb.mxu3 %v12960_v34  ;;  %8534 = vmatmul.bf16.vlgmr.msra.gmra.mxu2 %v16309_v41  ;;  %v12525_v41 = vld [vmem:[%s21962_s1 + $0x1b98] sm:$0xf0]  ;;  %v14542_v52 = vld [vmem:[%s21962_s1 + $0x1d6c] sm:$0xf]  ;;  %v12512_v20 = vor.u32 %v14478_v38, %v12509_v44 }
 0x435   :  { %8578 = vmatpush.bf16.msrb.mxu2 %v12832_v57  ;;  %v12528_v32 = vor.u32 %v14482_v37, %v12525_v41  ;;  %v12637_v48 = vld [vmem:[%s21962_s1 + $0x1c78] sm:$0xf0]  ;;  %v14574_v9 = vld [vmem:[%s21962_s1 + $0x1e6c] sm:$0xf] }
 0x436   :  { %8553 = vmatpush.bf16.msrb.mxu0 %v12560_v12  ;;  %v12765_v47 = vld [vmem:[%s21962_s1 + $0x1d78] sm:$0xf0]  ;;  %v12640_v23 = vor.u32 %v14510_v50, %v12637_v48  ;;  %v14474_v55 = vld [vmem:[%s21962_s1 + $0x1b4c] sm:$0xf]  ;;  %v8340_v39 = vpop.f32.mrf.mxu3  ;;  %v8303_v58 = vpop.f32.mrf.mxu0 }
 0x437   :  { %8566 = vmatpush.bf16.msrb.mxu1 %v12688_v16  ;;  %v12893_v53 = vld [vmem:[%s21962_s1 + $0x1e78] sm:$0xf0]  ;;  %v12768_v11 = vor.u32 %v14542_v52, %v12765_v47  ;;  %v14506_v56 = vld [vmem:[%s21962_s1 + $0x1c4c] sm:$0xf]  ;;  %v8327_v27 = vpop.f32.mrf.mxu2  ;;  %v8316_v16 = vpop.f32.mrf.mxu1 }
 0x438   :  { %8592 = vmatpush.bf16.msrb.mxu3 %v12944_v26  ;;  %v12493_v19 = vld [vmem:[%s21962_s1 + $0x1b58] sm:$0xf0]  ;;  %v12896_v57 = vor.u32 %v14574_v9, %v12893_v53  ;;  %v14538_v49 = vld [vmem:[%s21962_s1 + $0x1d4c] sm:$0xf]  ;;  %v8328_v28 = vadd.f32 %v8327_v27, %v8315_v46 }
 0x439   :  { %8579 = vmatpush.bf16.msrb.mxu2 %v12816_v15  ;;  %v12621_v1 = vld [vmem:[%s21962_s1 + $0x1c58] sm:$0xf0]  ;;  %v14570_v2 = vld [vmem:[%s21962_s1 + $0x1e4c] sm:$0xf]  ;;  %v12496_v12 = vor.u32 %v14474_v55, %v12493_v19 }
 0x43a   :  { %8554 = vmatpush.bf16.msrb.mxu0 %v12544_v6  ;;  %v12749_v34 = vld [vmem:[%s21962_s1 + $0x1d58] sm:$0xf0]  ;;  %v21605_v15 = vadd.f32 %v8340_v39, %v8328_v28  ;;  %v12624_v3 = vor.u32 %v14506_v56, %v12621_v1  ;;  %v14470_v18 = vld [vmem:[%s21962_s1 + $0x1b2c] sm:$0xf] }
 0x43b   :  { %8567 = vmatpush.bf16.msrb.mxu1 %v12672_v24  ;;  %v12877_v14 = vld [vmem:[%s21962_s1 + $0x1e58] sm:$0xf0]  ;;  %v12752_v22 = vor.u32 %v14538_v49, %v12749_v34  ;;  %v14502_v31 = vld [vmem:[%s21962_s1 + $0x1c2c] sm:$0xf] }
 0x43c   :  { %8593 = vmatpush.bf16.msrb.mxu3 %v12928_v40  ;;  %v12477_v26 = vld [vmem:[%s21962_s1 + $0x1b38] sm:$0xf0]  ;;  %v12880_v29 = vor.u32 %v14570_v2, %v12877_v14  ;;  %v14534_v7 = vld [vmem:[%s21962_s1 + $0x1d2c] sm:$0xf] }
 0x43d   :  { %8580 = vmatpush.bf16.msrb.mxu2 %v12800_v5  ;;  %v12605_v0 = vld [vmem:[%s21962_s1 + $0x1c38] sm:$0xf0]  ;;  %v14566_v6 = vld [vmem:[%s21962_s1 + $0x1e2c] sm:$0xf]  ;;  %v12480_v5 = vor.u32 %v14470_v18, %v12477_v26 }
 0x43e   :  { %8555 = vmatpush.bf16.msrb.mxu0 %v12528_v32  ;;  %v12733_v4 = vld [vmem:[%s21962_s1 + $0x1d38] sm:$0xf0]  ;;  %v14466_v37 = vld [vmem:[%s21962_s1 + $0x1b0c] sm:$0xf]  ;;  %v12608_v25 = vor.u32 %v14502_v31, %v12605_v0  ;;  %v8342_v38 = vpop.f32.mrf.mxu3 }
 0x43f   :  { %8568 = vmatpush.bf16.msrb.mxu1 %v12656_v54  ;;  %v12861_v24 = vld [vmem:[%s21962_s1 + $0x1e38] sm:$0xf0]  ;;  %v12736_v40 = vor.u32 %v14534_v7, %v12733_v4  ;;  %v14498_v30 = vld [vmem:[%s21962_s1 + $0x1c0c] sm:$0xf]  ;;  %v8329_v32 = vpop.f32.mrf.mxu2 }
 0x440   :  { %8594 = vmatpush.bf16.msrb.mxu3 %v12912_v13  ;;  %v12461_v41 = vld [vmem:[%s21962_s1 + $0x1b18] sm:$0xf0]  ;;  %v14530_v61 = vld [vmem:[%s21962_s1 + $0x1d0c] sm:$0xf]  ;;  %v12864_v51 = vor.u32 %v14566_v6, %v12861_v24 }
 0x441   :  { %8581 = vmatpush.bf16.msrb.mxu2 %v12784_v17  ;;  %v12589_v45 = vld [vmem:[%s21962_s1 + $0x1c18] sm:$0xf0]  ;;  %v14562_v36 = vld [vmem:[%s21962_s1 + $0x1e0c] sm:$0xf]  ;;  %v12464_v44 = vor.u32 %v14466_v37, %v12461_v41 }
 0x442   :  { %8556 = vmatpush.bf16.msrb.mxu0 %v12512_v20  ;;  %v12717_v21 = vld [vmem:[%s21962_s1 + $0x1d18] sm:$0xf0]  ;;  %v14622_v35 = vld [vmem:[%s21962_s1 + $0x1fec] sm:$0xf]  ;;  %v12592_v48 = vor.u32 %v14498_v30, %v12589_v45 }
 0x443   :  { %8569 = vmatpush.bf16.msrb.mxu1 %v12640_v23  ;;  %v12845_v43 = vld [vmem:[%s21962_s1 + $0x1e18] sm:$0xf0]  ;;  %v14654_v17 = vld [vmem:[%s21962_s1 + $0x20ec] sm:$0xf]  ;;  %v12720_v52 = vor.u32 %v14530_v61, %v12717_v21 }
 0x444   :  { %8595 = vmatpush.bf16.msrb.mxu3 %v12896_v57  ;;  %v13085_v54 = vld [vmem:[%s21962_s1 + $0x1ff8] sm:$0xf0]  ;;  %v14686_v13 = vld [vmem:[%s21962_s1 + $0x21ec] sm:$0xf]  ;;  %v12848_v53 = vor.u32 %v14562_v36, %v12845_v43 }
 0x445   :  { %8582 = vmatpush.bf16.msrb.mxu2 %v12768_v11  ;;  %v13213_v50 = vld [vmem:[%s21962_s1 + $0x20f8] sm:$0xf0]  ;;  %v14718_v47 = vld [vmem:[%s21962_s1 + $0x22ec] sm:$0xf]  ;;  %v13088_v20 = vor.u32 %v14622_v35, %v13085_v54 }
 0x446   :  { %8557 = vmatpush.bf16.msrb.mxu0 %v12496_v12  ;;  %v13341_v46 = vld [vmem:[%s21962_s1 + $0x21f8] sm:$0xf0]  ;;  %v13216_v23 = vor.u32 %v14654_v17, %v13213_v50  ;;  %v14618_v55 = vld [vmem:[%s21962_s1 + $0x1fcc] sm:$0xf] }
 0x447   :  { %8570 = vmatpush.bf16.msrb.mxu1 %v12624_v3  ;;  %v13469_v9 = vld [vmem:[%s21962_s1 + $0x22f8] sm:$0xf0]  ;;  %v13344_v11 = vor.u32 %v14686_v13, %v13341_v46  ;;  %v14650_v56 = vld [vmem:[%s21962_s1 + $0x20cc] sm:$0xf] }
 0x448   :  { %8596 = vmatpush.bf16.msrb.mxu3 %v12880_v29  ;;  %v13069_v19 = vld [vmem:[%s21962_s1 + $0x1fd8] sm:$0xf0]  ;;  %v13472_v57 = vor.u32 %v14718_v47, %v13469_v9  ;;  %v14682_v1 = vld [vmem:[%s21962_s1 + $0x21cc] sm:$0xf] }
 0x449   :  { %8583 = vmatpush.bf16.msrb.mxu2 %v12752_v22  ;;  %v13197_v27 = vld [vmem:[%s21962_s1 + $0x20d8] sm:$0xf0]  ;;  %v14714_v34 = vld [vmem:[%s21962_s1 + $0x22cc] sm:$0xf]  ;;  %v13072_v39 = vor.u32 %v14618_v55, %v13069_v19 }
 0x44a   :  { %8558 = vmatpush.bf16.msrb.mxu0 %v12480_v5  ;;  %v13325_v49 = vld [vmem:[%s21962_s1 + $0x21d8] sm:$0xf0]  ;;  %v13200_v2 = vor.u32 %v14650_v56, %v13197_v27  ;;  %v14614_v58 = vld [vmem:[%s21962_s1 + $0x1fac] sm:$0xf] }
 0x44b   :  { %8571 = vmatpush.bf16.msrb.mxu1 %v12608_v25  ;;  %v13453_v28 = vld [vmem:[%s21962_s1 + $0x22d8] sm:$0xf0]  ;;  %v13328_v14 = vor.u32 %v14682_v1, %v13325_v49  ;;  %v14646_v16 = vld [vmem:[%s21962_s1 + $0x20ac] sm:$0xf] }
 0x44c   :  { %8597 = vmatpush.bf16.msrb.mxu3 %v12864_v51  ;;  %v13053_v12 = vld [vmem:[%s21962_s1 + $0x1fb8] sm:$0xf0]  ;;  %v13456_v3 = vor.u32 %v14714_v34, %v13453_v28  ;;  %v14678_v18 = vld [vmem:[%s21962_s1 + $0x21ac] sm:$0xf] }
 0x44d   :  { %8584 = vmatpush.bf16.msrb.mxu2 %v12736_v40  ;;  %v13181_v22 = vld [vmem:[%s21962_s1 + $0x20b8] sm:$0xf0]  ;;  %v13056_v29 = vor.u32 %v14614_v58, %v13053_v12  ;;  %v14642_v4 = vld [vmem:[%s21962_s1 + $0x208c] sm:$0xf] }
 0x44e   :  { %8559 = vmatpush.bf16.msrb.mxu0 %v12464_v44  ;;  %v13309_v26 = vld [vmem:[%s21962_s1 + $0x21b8] sm:$0xf0]  ;;  %v13184_v0 = vor.u32 %v14646_v16, %v13181_v22  ;;  %v14674_v24 = vld [vmem:[%s21962_s1 + $0x218c] sm:$0xf]  ;;  %v8353_v37 = vpop.f32.mrf.mxu0 }
 0x44f   :  { %8572 = vmatpush.bf16.msrb.mxu1 %v12592_v48  ;;  %v13437_v31 = vld [vmem:[%s21962_s1 + $0x22b8] sm:$0xf0]  ;;  %v13312_v7 = vor.u32 %v14678_v18, %v13309_v26  ;;  %v14706_v41 = vld [vmem:[%s21962_s1 + $0x228c] sm:$0xf]  ;;  %v8354_v40 = vadd.f32 %v8353_v37, %v21605_v15  ;;  %v8366_v45 = vpop.f32.mrf.mxu1 }
 0x450   :  { %8598 = vmatpush.bf16.msrb.mxu3 %v12848_v53  ;;  %v13165_v6 = vld [vmem:[%s21962_s1 + $0x2098] sm:$0xf0]  ;;  %v14606_v21 = vld [vmem:[%s21962_s1 + $0x1f6c] sm:$0xf] }
 0x451   :  { %8585 = vmatpush.bf16.msrb.mxu2 %v12720_v52  ;;  %8560 = vmatmul.bf16.vlgmr.msrb.gmra.mxu0 %v16311_v42  ;;  %v14710_v42 = vld [vmem:[%s21962_s1 + $0x22ac] sm:$0xf]  ;;  %v13293_v5 = vld [vmem:[%s21962_s1 + $0x2198] sm:$0xf0]  ;;  %v13168_v61 = vor.u32 %v14642_v4, %v13165_v6  ;;  %v8367_v32 = vadd.f32 %v8366_v45, %v8354_v40 }
 0x452   :  { %8604 = vmatpush.bf16.msra.mxu0 %v13088_v20  ;;  %8573 = vmatmul.bf16.vlgmr.msrb.gmra.mxu1 %v16476_v62  ;;  %v14610_v62 = vld [vmem:[%s21962_s1 + $0x1f8c] sm:$0xf]  ;;  %v13421_v25 = vld [vmem:[%s21962_s1 + $0x2298] sm:$0xf0]  ;;  %v13296_v51 = vor.u32 %v14674_v24, %v13293_v5 }
 0x453   :  { %8617 = vmatpush.bf16.msra.mxu1 %v13216_v23  ;;  %8599 = vmatmul.bf16.vlgmr.msrb.gmra.mxu3 %v16478_v63  ;;  %v13440_v63 = vor.u32 %v14710_v42, %v13437_v31  ;;  %v13021_v36 = vld [vmem:[%s21962_s1 + $0x1f78] sm:$0xf0]  ;;  %v14638_v43 = vld [vmem:[%s21962_s1 + $0x206c] sm:$0xf]  ;;  %v13424_v15 = vor.u32 %v14706_v41, %v13421_v25 }
 0x454   :  { %8643 = vmatpush.bf16.msra.mxu3 %v13472_v57  ;;  %8586 = vmatmul.bf16.vlgmr.msrb.gmra.mxu2 %v16480_v8  ;;  %v13037_v8 = vld [vmem:[%s21962_s1 + $0x1f98] sm:$0xf0]  ;;  %v14670_v54 = vld [vmem:[%s21962_s1 + $0x216c] sm:$0xf]  ;;  %v13024_v50 = vor.u32 %v14606_v21, %v13021_v36  ;;  %v14727_v36 = vld [vmem:[%s21964_s3 + $0x30] sm:$0xff] }
 0x455   :  { %8630 = vmatpush.bf16.msra.mxu2 %v13344_v11  ;;  %v13040_v30 = vor.u32 %v14610_v62, %v13037_v8  ;;  %v13149_v35 = vld [vmem:[%s21962_s1 + $0x2078] sm:$0xf0]  ;;  %v14702_v38 = vld [vmem:[%s21962_s1 + $0x226c] sm:$0xf] }
 0x456   :  { %8605 = vmatpush.bf16.msra.mxu0 %v13072_v39  ;;  %v13277_v17 = vld [vmem:[%s21962_s1 + $0x2178] sm:$0xf0]  ;;  %v13152_v13 = vor.u32 %v14638_v43, %v13149_v35  ;;  %v14602_v48 = vld [vmem:[%s21962_s1 + $0x1f4c] sm:$0xf]  ;;  %v8392_v19 = vpop.f32.mrf.mxu3  ;;  %v8355_v27 = vpop.f32.mrf.mxu0  ;;  %v14735_v43 = vld [vmem:[%s21964_s3 + $0x70] sm:$0xff] }
 0x457   :  { %8618 = vmatpush.bf16.msra.mxu1 %v13200_v2  ;;  %v13405_v44 = vld [vmem:[%s21962_s1 + $0x2278] sm:$0xf0]  ;;  %v13280_v46 = vor.u32 %v14670_v54, %v13277_v17  ;;  %v14634_v47 = vld [vmem:[%s21962_s1 + $0x204c] sm:$0xf]  ;;  %v8379_v53 = vpop.f32.mrf.mxu2  ;;  %v8368_v49 = vpop.f32.mrf.mxu1  ;;  %v14766_v54 = vld [vmem:[#allocation1 + $0x12] sm:$0xff] }
 0x458   :  { %8644 = vmatpush.bf16.msra.mxu3 %v13456_v3  ;;  %v13005_v52 = vld [vmem:[%s21962_s1 + $0x1f58] sm:$0xf0]  ;;  %v13408_v9 = vor.u32 %v14702_v38, %v13405_v44  ;;  %v14666_v23 = vld [vmem:[%s21962_s1 + $0x214c] sm:$0xf]  ;;  %v8380_v55 = vadd.f32 %v8379_v53, %v8367_v32  ;;  %v14764_v32 = vld [vmem:[#allocation1] sm:$0xff] }
 0x459   :  { %8631 = vmatpush.bf16.msra.mxu2 %v13328_v14  ;;  %v13133_v20 = vld [vmem:[%s21962_s1 + $0x2058] sm:$0xf0]  ;;  %v14698_v56 = vld [vmem:[%s21962_s1 + $0x224c] sm:$0xf]  ;;  %v13008_v1 = vor.u32 %v14602_v48, %v13005_v52  ;;  %v14733_v48 = vld [vmem:[%s21964_s3 + $0x60] sm:$0xff] }
 0x45a   :  { %8606 = vmatpush.bf16.msra.mxu0 %v13056_v29  ;;  %v13261_v11 = vld [vmem:[%s21962_s1 + $0x2158] sm:$0xf0]  ;;  %v21804_v34 = vadd.f32 %v8392_v19, %v8380_v55  ;;  %v13136_v28 = vor.u32 %v14634_v47, %v13133_v20  ;;  %v14598_v2 = vld [vmem:[%s21962_s1 + $0x1f2c] sm:$0xf]  ;;  %v14741_v52 = vld [vmem:[%s21964_s3 + $0xa0] sm:$0xff] }
 0x45b   :  { %8619 = vmatpush.bf16.msra.mxu1 %v13184_v0  ;;  %v13389_v57 = vld [vmem:[%s21962_s1 + $0x2258] sm:$0xf0]  ;;  %v13264_v39 = vor.u32 %v14666_v23, %v13261_v11  ;;  %v14630_v58 = vld [vmem:[%s21962_s1 + $0x202c] sm:$0xf]  ;;  %v14739_v49 = vld [vmem:[%s21964_s3 + $0x90] sm:$0xff] }
 0x45c   :  { %8645 = vmatpush.bf16.msra.mxu3 %v13440_v63  ;;  %v12989_v14 = vld [vmem:[%s21962_s1 + $0x1f38] sm:$0xf0]  ;;  %v13392_v12 = vor.u32 %v14698_v56, %v13389_v57  ;;  %v14662_v3 = vld [vmem:[%s21962_s1 + $0x212c] sm:$0xf]  ;;  %v14723_v56 = vld [vmem:[%s21964_s3 + $0x10] sm:$0xff] }
 0x45d   :  { %8632 = vmatpush.bf16.msra.mxu2 %v13312_v7  ;;  %v13117_v16 = vld [vmem:[%s21962_s1 + $0x2038] sm:$0xf0]  ;;  %v14694_v18 = vld [vmem:[%s21962_s1 + $0x222c] sm:$0xf]  ;;  %v12992_v42 = vor.u32 %v14598_v2, %v12989_v14 }
 0x45e   :  { %8607 = vmatpush.bf16.msra.mxu0 %v13040_v30  ;;  %v13245_v22 = vld [vmem:[%s21962_s1 + $0x2138] sm:$0xf0]  ;;  %v13120_v31 = vor.u32 %v14630_v58, %v13117_v16  ;;  %v14594_v0 = vld [vmem:[%s21962_s1 + $0x1f0c] sm:$0xf]  ;;  %v8394_v41 = vpop.f32.mrf.mxu3  ;;  %v14721_v58 = vld [vmem:[%s21964_s3] sm:$0xff] }
 0x45f   :  { %8620 = vmatpush.bf16.msra.mxu1 %v13168_v61  ;;  %v13373_v26 = vld [vmem:[%s21962_s1 + $0x2238] sm:$0xf0]  ;;  %v13248_v29 = vor.u32 %v14662_v3, %v13245_v22  ;;  %v14626_v62 = vld [vmem:[%s21962_s1 + $0x200c] sm:$0xf]  ;;  %v8381_v24 = vpop.f32.mrf.mxu2  ;;  %v14729_v16 = vld [vmem:[%s21964_s3 + $0x40] sm:$0xff]  ;;  %v8657_v22 = vmax.f32 %v19370_v33, 0.0 }
 0x460   :  { %8646 = vmatpush.bf16.msra.mxu3 %v13424_v15  ;;  %v12973_v7 = vld [vmem:[%s21962_s1 + $0x1f18] sm:$0xf0]  ;;  %v13376_v8 = vor.u32 %v14694_v18, %v13373_v26  ;;  %v14658_v63 = vld [vmem:[%s21962_s1 + $0x210c] sm:$0xf]  ;;  %v14743_v15 = vld [vmem:[%s21964_s3 + $0xb0] sm:$0xff]  ;;  %v8658_v18 = vmax.f32 %v21157_v60, 0.0 }
 0x461   :  { %8633 = vmatpush.bf16.msra.mxu2 %v13296_v51  ;;  %v13101_v4 = vld [vmem:[%s21962_s1 + $0x2018] sm:$0xf0]  ;;  %v14690_v5 = vld [vmem:[%s21962_s1 + $0x220c] sm:$0xf]  ;;  %v12976_v25 = vor.u32 %v14594_v0, %v12973_v7  ;;  %v14737_v3 = vld [vmem:[%s21964_s3 + $0x80] sm:$0xff] }
 0x462   :  { %8608 = vmatpush.bf16.msra.mxu0 %v13024_v50  ;;  %v13229_v6 = vld [vmem:[%s21962_s1 + $0x2118] sm:$0xf0]  ;;  %v13104_v40 = vor.u32 %v14626_v62, %v13101_v4  ;;  %v14765_v35 = vld [vmem:[#allocation1 + $0x9] sm:$0xff] }
 0x463   :  { %8621 = vmatpush.bf16.msra.mxu1 %v13152_v13  ;;  %v13357_v37 = vld [vmem:[%s21962_s1 + $0x2218] sm:$0xf0]  ;;  %v13232_v30 = vor.u32 %v14658_v63, %v13229_v6  ;;  %v14726_v17 = vld [vmem:[%s21964_s3 + $0x28] sm:$0xff]  ;;  %v14725_v13 = vld [vmem:[%s21964_s3 + $0x20] sm:$0xff] }
 0x464   :  { %8647 = vmatpush.bf16.msra.mxu3 %v13408_v9  ;;  %v13360_v45 = vor.u32 %v14690_v5, %v13357_v37  ;;  %v14728_v61 = vld [vmem:[%s21964_s3 + $0x38] sm:$0xff]  ;;  %v14734_v38 = vld [vmem:[%s21964_s3 + $0x68] sm:$0xff] }
 0x465   :  { %8634 = vmatpush.bf16.msra.mxu2 %v13280_v46  ;;  %v14736_v51 = vld [vmem:[%s21964_s3 + $0x78] sm:$0xff] }
 0x466   :  { %8609 = vmatpush.bf16.msra.mxu0 %v13008_v1  ;;  %v14744_v21 = vld [vmem:[%s21964_s3 + $0xb8] sm:$0xff]  ;;  %v14731_v1 = vld [vmem:[%s21964_s3 + $0x50] sm:$0xff] }
 0x467   :  { %8622 = vmatpush.bf16.msra.mxu1 %v13136_v28  ;;  %v14724_v9 = vld [vmem:[%s21964_s3 + $0x18] sm:$0xff]  ;;  %v14730_v28 = vld [vmem:[%s21964_s3 + $0x48] sm:$0xff] }
 0x468   :  { %8648 = vmatpush.bf16.msra.mxu3 %v13392_v12  ;;  %v14732_v53 = vld [vmem:[%s21964_s3 + $0x58] sm:$0xff]  ;;  %v8656_v12 = vmax.f32 %v17610_v59, 0.0  ;;  %v8662_v59 = vpack.c.bf16 %v8658_v18, %v8658_v18 }
 0x469   :  { %8635 = vmatpush.bf16.msra.mxu2 %v13264_v39  ;;  %v14740_v20 = vld [vmem:[%s21964_s3 + $0x98] sm:$0xff]  ;;  %v14738_v39 = vld [vmem:[%s21964_s3 + $0x88] sm:$0xff] }
 0x46a   :  { %8610 = vmatpush.bf16.msra.mxu0 %v12992_v42  ;;  %v8660_v26 = vpack.c.bf16 %v8656_v12, %v8656_v12  ;;  %v8661_v42 = vpack.c.bf16 %v8657_v22, %v8657_v22 }
 0x46b   :  { %8623 = vmatpush.bf16.msra.mxu1 %v13120_v31 }
 0x46c   :  { %8649 = vmatpush.bf16.msra.mxu3 %v13376_v8 }
 0x46d   :  { %8636 = vmatpush.bf16.msra.mxu2 %v13248_v29 }
 0x46e   :  { %8611 = vmatpush.bf16.msra.mxu0 %v12976_v25  ;;  %v8405_v44 = vpop.f32.mrf.mxu0 }
 0x46f   :  { %8624 = vmatpush.bf16.msra.mxu1 %v13104_v40  ;;  %v8406_v50 = vadd.f32 %v8405_v44, %v21804_v34  ;;  %v8418_v46 = vpop.f32.mrf.mxu1  ;;  %v14722_v34 = vld [vmem:[%s21964_s3 + $0x8] sm:$0xff] }
 0x470   :  { %8650 = vmatpush.bf16.msra.mxu3 %v13360_v45 }
 0x471   :  { %8637 = vmatpush.bf16.msra.mxu2 %v13232_v30  ;;  %8612 = vmatmul.bf16.vlgmr.msra.gmra.mxu0 %v16482_v10  ;;  %v14742_v10 = vld [vmem:[%s21964_s3 + $0xa8] sm:$0xff]  ;;  %v8419_v47 = vadd.f32 %v8418_v46, %v8406_v50  ;;  %v14752_v30 = vld [vmem:[%s21964_s3 + $0xf8] sm:$0xff]  ;;  %v14745_v46 = vld [vmem:[%s21964_s3 + $0xc0] sm:$0xff] }
 0x472   :  { %8924 = vmatpush.bf16.msrb.mxu0 %v14728_v61  ;;  %8625 = vmatmul.bf16.vlgmr.msra.gmra.mxu1 %v14764_v32  ;;  %v14751_v61 = vld [vmem:[%s21964_s3 + $0xf0] sm:$0xff] }
 0x473   :  { %8937 = vmatpush.bf16.msrb.mxu1 %v14736_v51  ;;  %8651 = vmatmul.bf16.vlgmr.msra.gmra.mxu3 %v14766_v54  ;;  %v14750_v51 = vld [vmem:[%s21964_s3 + $0xe8] sm:$0xff]  ;;  %v14747_v54 = vld [vmem:[%s21964_s3 + $0xd0] sm:$0xff] }
 0x474   :  { %8638 = vmatmul.bf16.vlgmr.msra.gmra.mxu2 %v14765_v35  ;;  %8963 = vmatpush.bf16.msrb.mxu3 %v14752_v30 }
 0x475   :  { %8950 = vmatpush.bf16.msrb.mxu2 %v14744_v21 }
 0x476   :  { %8925 = vmatpush.bf16.msrb.mxu0 %v14727_v36  ;;  %v8444_v55 = vpop.f32.mrf.mxu3  ;;  %v8407_v19 = vpop.f32.mrf.mxu0 }
 0x477   :  { %8938 = vmatpush.bf16.msrb.mxu1 %v14735_v43  ;;  %v8431_v23 = vpop.f32.mrf.mxu2  ;;  %v8420_v57 = vpop.f32.mrf.mxu1  ;;  %v14749_v43 = vld [vmem:[%s21964_s3 + $0xe0] sm:$0xff] }
 0x478   :  { %v8432_v11 = vadd.f32 %v8431_v23, %v8419_v47  ;;  %8964 = vmatpush.bf16.msrb.mxu3 %v14751_v61 }
 0x479   :  { %8951 = vmatpush.bf16.msrb.mxu2 %v14743_v15  ;;  %v14748_v15 = vld [vmem:[%s21964_s3 + $0xd8] sm:$0xff] }
 0x47a   :  { %8926 = vmatpush.bf16.msrb.mxu0 %v14726_v17  ;;  %v8445_v27 = vadd.f32 %v8444_v55, %v8432_v11  ;;  %v14746_v17 = vld [vmem:[%s21964_s3 + $0xc8] sm:$0xff] }
 0x47b   :  { %8939 = vmatpush.bf16.msrb.mxu1 %v14734_v38 }
 0x47c   :  { %8965 = vmatpush.bf16.msrb.mxu3 %v14750_v51 }
 0x47d   :  { %8952 = vmatpush.bf16.msrb.mxu2 %v14742_v10 }
 0x47e   :  { %8927 = vmatpush.bf16.msrb.mxu0 %v14725_v13  ;;  %v8446_v14 = vpop.f32.mrf.mxu3 }
 0x47f   :  { %8940 = vmatpush.bf16.msrb.mxu1 %v14733_v48  ;;  %v8433_v2 = vpop.f32.mrf.mxu2 }
 0x480   :  { %8966 = vmatpush.bf16.msrb.mxu3 %v14749_v43 }
 0x481   :  { %8953 = vmatpush.bf16.msrb.mxu2 %v14741_v52 }
 0x482   :  { %8928 = vmatpush.bf16.msrb.mxu0 %v14724_v9 }
 0x483   :  { %8941 = vmatpush.bf16.msrb.mxu1 %v14732_v53 }
 0x484   :  { %8967 = vmatpush.bf16.msrb.mxu3 %v14748_v15 }
 0x485   :  { %8954 = vmatpush.bf16.msrb.mxu2 %v14740_v20 }
 0x486   :  { %8929 = vmatpush.bf16.msrb.mxu0 %v14723_v56 }
 0x487   :  { %8942 = vmatpush.bf16.msrb.mxu1 %v14731_v1 }
 0x488   :  { %8968 = vmatpush.bf16.msrb.mxu3 %v14747_v54 }
 0x489   :  { %8955 = vmatpush.bf16.msrb.mxu2 %v14739_v49 }
 0x48a   :  { %8930 = vmatpush.bf16.msrb.mxu0 %v14722_v34 }
 0x48b   :  { %8943 = vmatpush.bf16.msrb.mxu1 %v14730_v28 }
 0x48c   :  { %8969 = vmatpush.bf16.msrb.mxu3 %v14746_v17 }
 0x48d   :  { %8956 = vmatpush.bf16.msrb.mxu2 %v14738_v39 }
 0x48e   :  { %8931 = vmatpush.bf16.msrb.mxu0 %v14721_v58  ;;  %v8457_v31 = vpop.f32.mrf.mxu0 }
 0x48f   :  { %8944 = vmatpush.bf16.msrb.mxu1 %v14729_v16  ;;  %v8458_v29 = vadd.f32 %v8457_v31, %v8445_v27  ;;  %v8470_v0 = vpop.f32.mrf.mxu1 }
 0x490   :  { %8970 = vmatpush.bf16.msrb.mxu3 %v14745_v46 }
 0x491   :  { %8957 = vmatpush.bf16.msrb.mxu2 %v14737_v3  ;;  %8932 = vmatmul.bf16.vlgmr.msrb.gmra.mxu0 %v8660_v26  ;;  %v8471_v7 = vadd.f32 %v8470_v0, %v8458_v29  ;;  %v14754_v3 = vld [vmem:[%s21965_s4] ss:$0 sm:$0xff] }
 0x492   :  { %8945 = vmatmul.bf16.vlgmr.msrb.gmra.mxu1 %v8661_v42 }
 0x494   :  { %8958 = vmatmul.bf16.vlgmr.msrb.gmra.mxu2 %v8662_v59 }
 0x496   :  { %v8496_v4 = vpop.f32.mrf.mxu3  ;;  %v8459_v63 = vpop.f32.mrf.mxu0 }
 0x497   :  { %v8483_v62 = vpop.f32.mrf.mxu2  ;;  %v8472_v33 = vpop.f32.mrf.mxu1 }
 0x498   :  { %v8484_v8 = vadd.f32 %v8483_v62, %v8471_v7 }
 0x49a   :  { %v8497_v6 = vadd.f32 %v8496_v4, %v8484_v8 }
 0x49e   :  { %v8498_v24 = vpop.f32.mrf.mxu3 }
 0x49f   :  { %v8485_v60 = vpop.f32.mrf.mxu2 }
 0x4ae   :  { %v8509_v5 = vpop.f32.mrf.mxu0 }
 0x4af   :  { %v8522_v37 = vpop.f32.mrf.mxu1  ;;  %v8510_v10 = vadd.f32 %v8509_v5, %v8497_v6 }
 0x4b1   :  { %v8523_v48 = vadd.f32 %v8522_v37, %v8510_v10 }
 0x4b6   :  { %v8548_v25 = vpop.f32.mrf.mxu3  ;;  %v8511_v40 = vpop.f32.mrf.mxu0 }
 0x4b7   :  { %v8535_v41 = vpop.f32.mrf.mxu2  ;;  %v8524_v45 = vpop.f32.mrf.mxu1 }
 0x4b8   :  { %v8536_v52 = vadd.f32 %v8535_v41, %v8523_v48 }
 0x4ba   :  { %v8549_v53 = vadd.f32 %v8548_v25, %v8536_v52 }
 0x4be   :  { %v8550_v36 = vpop.f32.mrf.mxu3 }
 0x4bf   :  { %v8537_v21 = vpop.f32.mrf.mxu2 }
 0x4ce   :  { %v8561_v32 = vpop.f32.mrf.mxu0 }
 0x4cf   :  { %v8574_v35 = vpop.f32.mrf.mxu1  ;;  %v8562_v20 = vadd.f32 %v8561_v32, %v8549_v53 }
 0x4d1   :  { %v8575_v23 = vadd.f32 %v8574_v35, %v8562_v20 }
 0x4d6   :  { %v8600_v44 = vpop.f32.mrf.mxu3  ;;  %v8563_v50 = vpop.f32.mrf.mxu0 }
 0x4d7   :  { %v8587_v38 = vpop.f32.mrf.mxu2  ;;  %v8576_v13 = vpop.f32.mrf.mxu1 }
 0x4d8   :  { %v8588_v11 = vadd.f32 %v8587_v38, %v8575_v23 }
 0x4da   :  { %v8601_v55 = vadd.f32 %v8600_v44, %v8588_v11 }
 0x4de   :  { %v8602_v9 = vpop.f32.mrf.mxu3 }
 0x4df   :  { %v8589_v47 = vpop.f32.mrf.mxu2 }
 0x4ee   :  { %v8613_v19 = vpop.f32.mrf.mxu0 }
 0x4ef   :  { %v8626_v56 = vpop.f32.mrf.mxu1  ;;  %v8614_v57 = vadd.f32 %v8613_v19, %v8601_v55 }
 0x4f1   :  { %v8627_v27 = vadd.f32 %v8626_v56, %v8614_v57 }
 0x4f6   :  { %v8652_v49 = vpop.f32.mrf.mxu3  ;;  %v8615_v28 = vpop.f32.mrf.mxu0 }
 0x4f7   :  { %v8639_v1 = vpop.f32.mrf.mxu2  ;;  %v8628_v39 = vpop.f32.mrf.mxu1 }
 0x4f8   :  { %v8640_v34 = vadd.f32 %v8639_v1, %v8627_v27 }
 0x4fa   :  { %v8653_v2 = vadd.f32 %v8652_v49, %v8640_v34 }
 0x4fc   :  { %v8659_v14 = vmax.f32 %v8653_v2, 0.0 }
 0x4fe   :  { %v8663_v58 = vpack.c.bf16 %v8659_v14, %v8659_v14  ;;  %v8654_v16 = vpop.f32.mrf.mxu3 }
 0x4ff   :  { %v8641_v12 = vpop.f32.mrf.mxu2 }
 0x500   :  { %8971 = vmatmul.bf16.vlgmr.msrb.gmra.mxu3 %v8663_v58 }
 0x50e   :  { %v8933_v22 = vpop.f32.mrf.mxu0 }
 0x50f   :  { %v8934_v18 = vadd.f32 %v14754_v3, %v8933_v22  ;;  %v8946_v26 = vpop.f32.mrf.mxu1 }
 0x511   :  { %v8947_v42 = vadd.f32 %v8946_v26, %v8934_v18 }
 0x516   :  { %v8935_v29 = vpop.f32.mrf.mxu0 }
 0x517   :  { %v8959_v59 = vpop.f32.mrf.mxu2  ;;  %v8948_v0 = vpop.f32.mrf.mxu1 }
 0x518   :  { %v8960_v31 = vadd.f32 %v8959_v59, %v8947_v42 }
 0x51f   :  { %v8961_v7 = vpop.f32.mrf.mxu2 }
 0x583   :  { %v8972_v62 = vpop.f32.mrf.mxu3 }
 0x584   :  { %v8973_v8 = vadd.f32 %v8972_v62, %v8960_v31 }
 0x586   :  { %8976 = vst [vmem:[#allocation2] sm:$0x3] %v8973_v8 }
 0x587   :  { %8987 = dma.vmem_to_hbm [thread:$0]  %s8983_s25, 32, %s8985_s28, [#allocation3]  }
 0x58b   :  { %v8974_v4 = vpop.f32.mrf.mxu3 }
 0x58c   :  { %14791 = dma.done.wait [#allocation3], 32  }
 0x58d   :  { %14792 = vsyncadd [#allocation3], 4294967264 }
 0x58e   :  { %8992 = vsyncpa [#allocation3], 1 }

</bundles_post_ra>
